<compile_context>
chip_gen: v5e
topology: v5e:2x2
jax: 0.10.0
libtpu: 0.0.40
codegen_flags: <defaults>
</compile_context>

<pallas_src>
import functools

import jax
import jax.numpy as jnp
from jax.experimental import pallas as pl
from jax.experimental.pallas import tpu as pltpu


# ----------------------------------------------------------------------------
# Fused kernel: one batch element per grid step.
# ----------------------------------------------------------------------------
def _down_block_kernel(xg_ref, w1_ref, w2_ref, o_ref, hpad_ref, col1_ref,
                       *, Do, Ho, Wo, negval):
    """Fused DownBlock forward for one batch element.

    xg_ref  : (1, Do+1, Ho+1, Wo+1, 8*Cin)  parity-regrouped input incl. front halo
    w1_ref  : (8*8*Cin, F)                  conv1 weights folded onto that layout
    w2_ref  : (27, Cout, F)                 conv2 weights per tap, channel-major
    o_ref   : (1, Cout, M)                  channel-major, lane-dense output slab
    hpad_ref: (Do+2, Ho+2, Wo+2, F)         f32 intermediate with halo (scratch)
    col1_ref: (M, 8*8*Cin)                  conv1 im2col scratch
    """
    M = Do * Ho * Wo
    C8 = xg_ref.shape[-1]          # 8 * Cin
    F = w1_ref.shape[-1]
    Hp, Wp = Ho + 2, Wo + 2

    # ---- stage 1: stride-2 conv as ONE K = 8*C8 matmul on the parity-
    #      regrouped, front-halo-padded input (review items 2 & 5).
    for j in range(8):
        jd, jh, jw = j // 4, (j // 2) % 2, j % 2
        patch = xg_ref[0, jd:jd + Do, jh:jh + Ho, jw:jw + Wo, :]
        col1_ref[:, j * C8:(j + 1) * C8] = (
            patch.reshape(M, C8).astype(col1_ref.dtype))
    a1 = jnp.dot(col1_ref[...], w1_ref[...].astype(jnp.float32),
                 preferred_element_type=jnp.float32)          # (M, F), in vregs

    # ---- stage 2: fused LeakyReLU (f32, VPU), written once into the halo'd
    #      intermediate.  Only the 6 thin halo faces are (re)zeroed; the
    #      interior is fully overwritten each grid step, so this is correct
    #      under any core split of the "parallel" batch axis.
    h = jnp.where(a1 >= 0, a1, negval * a1)

    hpad_ref[0:1, :, :, :] = jnp.zeros((1, Hp, Wp, F), jnp.float32)
    hpad_ref[Do + 1:Do + 2, :, :, :] = jnp.zeros((1, Hp, Wp, F), jnp.float32)
    hpad_ref[1:Do + 1, 0:1, :, :] = jnp.zeros((Do, 1, Wp, F), jnp.float32)
    hpad_ref[1:Do + 1, Ho + 1:Ho + 2, :, :] = jnp.zeros((Do, 1, Wp, F), jnp.float32)
    hpad_ref[1:Do + 1, 1:Ho + 1, 0:1, :] = jnp.zeros((Do, Ho, 1, F), jnp.float32)
    hpad_ref[1:Do + 1, 1:Ho + 1, Wo + 1:Wo + 2, :] = jnp.zeros((Do, Ho, 1, F), jnp.float32)

    hpad_ref[1:Do + 1, 1:Ho + 1, 1:Wo + 1, :] = h.reshape(Do, Ho, Wo, F)

    # ---- stage 3: stride-1 3x3x3 conv.  Per tap: contract only the channel
    #      axis, (Cout, F) x (M, F)^T -> (Cout, M), accumulated in vregs.
    #      The result and the accumulator are lane-dense (M = multiple of 128)
    #      and the (Do,Ho,Wo,F)->(M,F) reshape is layout-preserving.
    acc2 = None
    for t in range(27):
        kd, kh, kw = t // 9, (t // 3) % 3, t % 3
        patch = hpad_ref[kd:kd + Do, kh:kh + Ho, kw:kw + Wo, :].reshape(M, F)
        part = jax.lax.dot_general(
            w2_ref[t].astype(jnp.float32), patch,
            dimension_numbers=(((1,), (1,)), ((), ())),
            preferred_element_type=jnp.float32)                # (Cout, M)
        acc2 = part if acc2 is None else acc2 + part

    o_ref[0] = acc2.astype(o_ref.dtype)


# ----------------------------------------------------------------------------
# Wrapper: layout plumbing only (parity regroup + halo pad, tiny weight folds).
# ----------------------------------------------------------------------------
def _vmem_padded_bytes(shape, itemsize):
    """VMEM footprint of a buffer incl. (8, 128) tile padding of the minor dims."""
    shape = tuple(int(d) for d in shape)
    if len(shape) == 1:
        return -(-(shape[0] * itemsize) // 512) * 512
    lead = 1
    for d in shape[:-2]:
        lead *= d
    sl = -(-shape[-2] // 8) * 8
    ln = -(-shape[-1] // 128) * 128
    return lead * sl * ln * itemsize


def down_block_forward(x_ncdhw, w1, w2, negval=0.2):
    """DownBlock forward. x: (N,Cin,D,H,W); w1: (F,Cin,3,3,3); w2: (Cout,F,3,3,3)."""
    N, Cin, D, H, W = x_ncdhw.shape
    F = w1.shape[0]
    Cout = w2.shape[0]
    assert D % 2 == 0 and H % 2 == 0 and W % 2 == 0, "even spatial dims assumed"
    Do, Ho, Wo = D // 2, H // 2, W // 2
    M = Do * Ho * Wo
    C8 = 8 * Cin
    K1 = 8 * C8

    # Parity regroup (one XLA transpose) + conv1 front halo (fused pad):
    #   xg_p[n, 1+bd, 1+bh, 1+bw, ((pd*2+ph)*2+pw)*Cin + c] = x[n, c, 2bd+pd, 2bh+ph, 2bw+pw]
    xg = x_ncdhw.reshape(N, Cin, Do, 2, Ho, 2, Wo, 2)
    xg = jnp.transpose(xg, (0, 2, 4, 6, 3, 5, 7, 1)).reshape(N, Do, Ho, Wo, C8)
    xg_p = jnp.pad(xg, ((0, 0), (1, 0), (1, 0), (1, 0), (0, 0)))

    # conv1 weight fold -> (8*C8, F), vectorized (no scatter loop).  Tap kd maps
    # to block offset jd and parity pd via kd = 2*jd + pd - 1 (front-pad = the
    # out-of-range kd = -1 plane is zero).
    w1k = jnp.transpose(w1, (2, 3, 4, 1, 0))                       # (3,3,3,Cin,F)
    w1p = jnp.pad(w1k, ((1, 0), (1, 0), (1, 0), (0, 0), (0, 0)))   # (4,4,4,Cin,F)
    w1p = w1p.reshape(2, 2, 2, 2, 2, 2, Cin, F)                    # (jd,pd,jh,ph,jw,pw,c,f)
    w1cat = jnp.transpose(w1p, (0, 2, 4, 1, 3, 5, 6, 7)).reshape(K1, F)

    # conv2 weights per tap (t = kd*9 + kh*3 + kw), output-channel-major.
    w2tap = jnp.transpose(w2, (2, 3, 4, 0, 1)).reshape(27, Cout, F)

    # VMEM budget: double-buffered I/O blocks + scratch + headroom, computed
    # from physically padded sizes and capped at 48 MiB (v7x-safe).
    itemsize = jnp.dtype(x_ncdhw.dtype).itemsize
    io_bytes = (_vmem_padded_bytes((1, Do + 1, Ho + 1, Wo + 1, C8), itemsize)
                + _vmem_padded_bytes((K1, F), itemsize)
                + _vmem_padded_bytes((27, Cout, F), itemsize)
                + _vmem_padded_bytes((1, Cout, M), itemsize))
    scratch_bytes = (_vmem_padded_bytes((Do + 2, Ho + 2, Wo + 2, F), 4)
                     + _vmem_padded_bytes((M, K1), 4))
    vmem_bytes = int(min(max(2 * io_bytes + scratch_bytes + (4 << 20), 16 << 20),
                         48 << 20))

    kernel = functools.partial(_down_block_kernel,
                               Do=Do, Ho=Ho, Wo=Wo, negval=negval)

    out = pl.pallas_call(
        kernel,
        out_shape=jax.ShapeDtypeStruct((N, Cout, M), x_ncdhw.dtype),
        grid=(N,),
        in_specs=[
            pl.BlockSpec((1, Do + 1, Ho + 1, Wo + 1, C8),
                         lambda n: (n, 0, 0, 0, 0)),
            pl.BlockSpec((K1, F), lambda n: (0, 0)),
            pl.BlockSpec((27, Cout, F), lambda n: (0, 0, 0)),
        ],
        out_specs=pl.BlockSpec((1, Cout, M), lambda n: (n, 0, 0)),
        scratch_shapes=[
            pltpu.VMEM((Do + 2, Ho + 2, Wo + 2, F), jnp.float32),  # halo'd intermediate
            pltpu.VMEM((M, K1), jnp.float32),                      # conv1 im2col
        ],
        compiler_params=pltpu.CompilerParams(
            dimension_semantics=("parallel",),
            vmem_limit_bytes=vmem_bytes,
        ),
    )(xg_p, w1cat, w2tap)

    # Kernel output is already channel-major: just unflatten the spatial dims.
    return out.reshape(N, Cout, Do, Ho, Wo)


# ----------------------------------------------------------------------------
# Pure-JAX reference (verification only)
# ----------------------------------------------------------------------------
def _ref_forward(x, w1, w2, negval=0.2):
    dn = ('NCDHW', 'OIDHW', 'NCDHW')
    h = jax.lax.conv_general_dilated(x, w1, window_strides=(2, 2, 2),
                                     padding=((1, 1), (1, 1), (1, 1)),
                                     dimension_numbers=dn)
    h = jnp.where(h >= 0, h, negval * h)
    return jax.lax.conv_general_dilated(h, w2, window_strides=(1, 1, 1),
                                        padding=((1, 1), (1, 1), (1, 1)),
                                        dimension_numbers=dn)


if __name__ == "__main__":
    # Module defaults are in_channels=1, out_channels=1; use a small nFeat.
    N, Cin, D, H, W = 2, 1, 16, 16, 16
    nFeat, Cout = 32, 1

    key = jax.random.PRNGKey(0)
    kx, k1, k2 = jax.random.split(key, 3)
    x = jax.random.normal(kx, (N, Cin, D, H, W), jnp.float32)
    w1 = jax.random.normal(k1, (nFeat, Cin, 3, 3, 3), jnp.float32) * (1.0 / (Cin * 27) ** 0.5)
    w2 = jax.random.normal(k2, (Cout, nFeat, 3, 3, 3), jnp.float32) * (1.0 / (nFeat * 27) ** 0.5)

    fwd = jax.jit(down_block_forward)
    out = jax.block_until_ready(fwd(x, w1, w2))

    ref = jax.block_until_ready(_ref_forward(x, w1, w2))
    assert out.shape == (N, Cout, D // 2, H // 2, W // 2), out.shape
    assert jnp.allclose(out, ref, atol=1e-4, rtol=1e-4), "mismatch vs reference"
    print("KERNEL_OK")
</pallas_src>

<mosaic_0001>
module attributes {stable_mosaic.version = 11 : i64} {
  func.func @_down_block_kernel(%arg0: i32, %arg1: memref<1x9x9x9x8xf32, #tpu.memory_space<vmem>>, %arg2: memref<64x32xf32, #tpu.memory_space<vmem>>, %arg3: memref<27x1x32xf32, #tpu.memory_space<vmem>>, %arg4: memref<1x1x512xf32, #tpu.memory_space<vmem>>, %arg5: memref<10x10x10x32xf32, #tpu.memory_space<vmem>>, %arg6: memref<512x64xf32, #tpu.memory_space<vmem>>) attributes {dimension_semantics = [#tpu.dimension_semantics<parallel>], iteration_bounds = array<i64: 2>, scalar_prefetch = 0 : i64, scratch_operands = 2 : i64, tpu.core_type = #tpu.core_type<tc>, window_params = [{transform_indices = @transform_0, window_bounds = array<i64: 1, 9, 9, 9, 8>}, {pipeline_mode = #tpu.pipeline_mode<synchronous>, transform_indices = @transform_1, window_bounds = array<i64: 64, 32>}, {pipeline_mode = #tpu.pipeline_mode<synchronous>, transform_indices = @transform_2, window_bounds = array<i64: 27, 1, 32>}, {transform_indices = @transform_3, window_bounds = array<i64: 1, 1, 512>}]} {
    %c0 = arith.constant 0 : index
    %c0_0 = arith.constant 0 : index
    %c0_1 = arith.constant 0 : index
    %c0_2 = arith.constant 0 : index
    %c0_3 = arith.constant 0 : index
    %0 = vector.load %arg1[%c0, %c0_0, %c0_1, %c0_2, %c0_3] : memref<1x9x9x9x8xf32, #tpu.memory_space<vmem>>, vector<1x8x8x8x8xf32>
    %1 = vector.shape_cast %0 : vector<1x8x8x8x8xf32> to vector<8x8x8x8xf32>
    %2 = vector.shape_cast %1 : vector<8x8x8x8xf32> to vector<512x8xf32>
    %c0_4 = arith.constant 0 : index
    %c0_5 = arith.constant 0 : index
    %3 = vector.load %arg6[%c0_4, %c0_5] : memref<512x64xf32, #tpu.memory_space<vmem>>, vector<512x8xf32>
    tpu.vector_store %arg6[%c0_4, %c0_5], %2 {strides = array<i32>} : memref<512x64xf32, #tpu.memory_space<vmem>>, vector<512x8xf32>,
    %c0_6 = arith.constant 0 : index
    %c0_7 = arith.constant 0 : index
    %c0_8 = arith.constant 0 : index
    %c1 = arith.constant 1 : index
    %c0_9 = arith.constant 0 : index
    %4 = vector.load %arg1[%c0_6, %c0_7, %c0_8, %c1, %c0_9] : memref<1x9x9x9x8xf32, #tpu.memory_space<vmem>>, vector<1x8x8x8x8xf32>
    %5 = vector.shape_cast %4 : vector<1x8x8x8x8xf32> to vector<8x8x8x8xf32>
    %6 = vector.shape_cast %5 : vector<8x8x8x8xf32> to vector<512x8xf32>
    %c0_10 = arith.constant 0 : index
    %c8 = arith.constant 8 : index
    %7 = vector.load %arg6[%c0_10, %c8] : memref<512x64xf32, #tpu.memory_space<vmem>>, vector<512x8xf32>
    tpu.vector_store %arg6[%c0_10, %c8], %6 {strides = array<i32>} : memref<512x64xf32, #tpu.memory_space<vmem>>, vector<512x8xf32>,
    %c0_11 = arith.constant 0 : index
    %c0_12 = arith.constant 0 : index
    %c1_13 = arith.constant 1 : index
    %c0_14 = arith.constant 0 : index
    %c0_15 = arith.constant 0 : index
    %8 = vector.load %arg1[%c0_11, %c0_12, %c1_13, %c0_14, %c0_15] : memref<1x9x9x9x8xf32, #tpu.memory_space<vmem>>, vector<1x8x8x8x8xf32>
    %9 = vector.shape_cast %8 : vector<1x8x8x8x8xf32> to vector<8x8x8x8xf32>
    %10 = vector.shape_cast %9 : vector<8x8x8x8xf32> to vector<512x8xf32>
    %c0_16 = arith.constant 0 : index
    %c16 = arith.constant 16 : index
    %11 = vector.load %arg6[%c0_16, %c16] : memref<512x64xf32, #tpu.memory_space<vmem>>, vector<512x8xf32>
    tpu.vector_store %arg6[%c0_16, %c16], %10 {strides = array<i32>} : memref<512x64xf32, #tpu.memory_space<vmem>>, vector<512x8xf32>,
    %c0_17 = arith.constant 0 : index
    %c0_18 = arith.constant 0 : index
    %c1_19 = arith.constant 1 : index
    %c1_20 = arith.constant 1 : index
    %c0_21 = arith.constant 0 : index
    %12 = vector.load %arg1[%c0_17, %c0_18, %c1_19, %c1_20, %c0_21] : memref<1x9x9x9x8xf32, #tpu.memory_space<vmem>>, vector<1x8x8x8x8xf32>
    %13 = vector.shape_cast %12 : vector<1x8x8x8x8xf32> to vector<8x8x8x8xf32>
    %14 = vector.shape_cast %13 : vector<8x8x8x8xf32> to vector<512x8xf32>
    %c0_22 = arith.constant 0 : index
    %c24 = arith.constant 24 : index
    %15 = vector.load %arg6[%c0_22, %c24] : memref<512x64xf32, #tpu.memory_space<vmem>>, vector<512x8xf32>
    tpu.vector_store %arg6[%c0_22, %c24], %14 {strides = array<i32>} : memref<512x64xf32, #tpu.memory_space<vmem>>, vector<512x8xf32>,
    %c0_23 = arith.constant 0 : index
    %c1_24 = arith.constant 1 : index
    %c0_25 = arith.constant 0 : index
    %c0_26 = arith.constant 0 : index
    %c0_27 = arith.constant 0 : index
    %16 = vector.load %arg1[%c0_23, %c1_24, %c0_25, %c0_26, %c0_27] : memref<1x9x9x9x8xf32, #tpu.memory_space<vmem>>, vector<1x8x8x8x8xf32>
    %17 = vector.shape_cast %16 : vector<1x8x8x8x8xf32> to vector<8x8x8x8xf32>
    %18 = vector.shape_cast %17 : vector<8x8x8x8xf32> to vector<512x8xf32>
    %c0_28 = arith.constant 0 : index
    %c32 = arith.constant 32 : index
    %19 = vector.load %arg6[%c0_28, %c32] : memref<512x64xf32, #tpu.memory_space<vmem>>, vector<512x8xf32>
    tpu.vector_store %arg6[%c0_28, %c32], %18 {strides = array<i32>} : memref<512x64xf32, #tpu.memory_space<vmem>>, vector<512x8xf32>,
    %c0_29 = arith.constant 0 : index
    %c1_30 = arith.constant 1 : index
    %c0_31 = arith.constant 0 : index
    %c1_32 = arith.constant 1 : index
    %c0_33 = arith.constant 0 : index
    %20 = vector.load %arg1[%c0_29, %c1_30, %c0_31, %c1_32, %c0_33] : memref<1x9x9x9x8xf32, #tpu.memory_space<vmem>>, vector<1x8x8x8x8xf32>
    %21 = vector.shape_cast %20 : vector<1x8x8x8x8xf32> to vector<8x8x8x8xf32>
    %22 = vector.shape_cast %21 : vector<8x8x8x8xf32> to vector<512x8xf32>
    %c0_34 = arith.constant 0 : index
    %c40 = arith.constant 40 : index
    %23 = vector.load %arg6[%c0_34, %c40] : memref<512x64xf32, #tpu.memory_space<vmem>>, vector<512x8xf32>
    tpu.vector_store %arg6[%c0_34, %c40], %22 {strides = array<i32>} : memref<512x64xf32, #tpu.memory_space<vmem>>, vector<512x8xf32>,
    %c0_35 = arith.constant 0 : index
    %c1_36 = arith.constant 1 : index
    %c1_37 = arith.constant 1 : index
    %c0_38 = arith.constant 0 : index
    %c0_39 = arith.constant 0 : index
    %24 = vector.load %arg1[%c0_35, %c1_36, %c1_37, %c0_38, %c0_39] : memref<1x9x9x9x8xf32, #tpu.memory_space<vmem>>, vector<1x8x8x8x8xf32>
    %25 = vector.shape_cast %24 : vector<1x8x8x8x8xf32> to vector<8x8x8x8xf32>
    %26 = vector.shape_cast %25 : vector<8x8x8x8xf32> to vector<512x8xf32>
    %c0_40 = arith.constant 0 : index
    %c48 = arith.constant 48 : index
    %27 = vector.load %arg6[%c0_40, %c48] : memref<512x64xf32, #tpu.memory_space<vmem>>, vector<512x8xf32>
    tpu.vector_store %arg6[%c0_40, %c48], %26 {strides = array<i32>} : memref<512x64xf32, #tpu.memory_space<vmem>>, vector<512x8xf32>,
    %c0_41 = arith.constant 0 : index
    %c1_42 = arith.constant 1 : index
    %c1_43 = arith.constant 1 : index
    %c1_44 = arith.constant 1 : index
    %c0_45 = arith.constant 0 : index
    %28 = vector.load %arg1[%c0_41, %c1_42, %c1_43, %c1_44, %c0_45] : memref<1x9x9x9x8xf32, #tpu.memory_space<vmem>>, vector<1x8x8x8x8xf32>
    %29 = vector.shape_cast %28 : vector<1x8x8x8x8xf32> to vector<8x8x8x8xf32>
    %30 = vector.shape_cast %29 : vector<8x8x8x8xf32> to vector<512x8xf32>
    %c0_46 = arith.constant 0 : index
    %c56 = arith.constant 56 : index
    %31 = vector.load %arg6[%c0_46, %c56] : memref<512x64xf32, #tpu.memory_space<vmem>>, vector<512x8xf32>
    tpu.vector_store %arg6[%c0_46, %c56], %30 {strides = array<i32>} : memref<512x64xf32, #tpu.memory_space<vmem>>, vector<512x8xf32>,
    %c0_47 = arith.constant 0 : index
    %c0_48 = arith.constant 0 : index
    %32 = vector.load %arg6[%c0_47, %c0_48] : memref<512x64xf32, #tpu.memory_space<vmem>>, vector<512x64xf32>
    %c0_49 = arith.constant 0 : index
    %c0_50 = arith.constant 0 : index
    %33 = vector.load %arg2[%c0_49, %c0_50] : memref<64x32xf32, #tpu.memory_space<vmem>>, vector<64x32xf32>
    %cst = arith.constant dense<0.000000e+00> : vector<512x32xf32>
    %34 = tpu.matmul %32, %33, %cst {dimension_numbers = #tpu.dot_dimension_numbers<[1], [0], [0], [1], [0, 0, 1, 1], [], []>} : vector<512x64xf32>, vector<64x32xf32>, vector<512x32xf32> -> vector<512x32xf32>
    %cst_51 = arith.constant 0.000000e+00 : f32
    %35 = vector.broadcast %cst_51 : f32 to vector<512x32xf32>
    %36 = arith.cmpf oge, %34, %35 : vector<512x32xf32>
    %cst_52 = arith.constant 2.000000e-01 : f32
    %37 = vector.broadcast %cst_52 : f32 to vector<512x32xf32>
    %38 = arith.mulf %37, %34 : vector<512x32xf32>
    %39 = arith.select %36, %34, %38 : vector<512x32xi1>, vector<512x32xf32>
    %cst_53 = arith.constant 0.000000e+00 : f32
    %40 = vector.broadcast %cst_53 : f32 to vector<1x10x10x32xf32>
    %c0_54 = arith.constant 0 : index
    %c0_55 = arith.constant 0 : index
    %c0_56 = arith.constant 0 : index
    %c0_57 = arith.constant 0 : index
    %41 = vector.load %arg5[%c0_54, %c0_55, %c0_56, %c0_57] : memref<10x10x10x32xf32, #tpu.memory_space<vmem>>, vector<1x10x10x32xf32>
    tpu.vector_store %arg5[%c0_54, %c0_55, %c0_56, %c0_57], %40 {strides = array<i32>} : memref<10x10x10x32xf32, #tpu.memory_space<vmem>>, vector<1x10x10x32xf32>,
    %cst_58 = arith.constant 0.000000e+00 : f32
    %42 = vector.broadcast %cst_58 : f32 to vector<1x10x10x32xf32>
    %c9 = arith.constant 9 : index
    %c0_59 = arith.constant 0 : index
    %c0_60 = arith.constant 0 : index
    %c0_61 = arith.constant 0 : index
    %43 = vector.load %arg5[%c9, %c0_59, %c0_60, %c0_61] : memref<10x10x10x32xf32, #tpu.memory_space<vmem>>, vector<1x10x10x32xf32>
    tpu.vector_store %arg5[%c9, %c0_59, %c0_60, %c0_61], %42 {strides = array<i32>} : memref<10x10x10x32xf32, #tpu.memory_space<vmem>>, vector<1x10x10x32xf32>,
    %cst_62 = arith.constant 0.000000e+00 : f32
    %44 = vector.broadcast %cst_62 : f32 to vector<8x1x10x32xf32>
    %c1_63 = arith.constant 1 : index
    %c0_64 = arith.constant 0 : index
    %c0_65 = arith.constant 0 : index
    %c0_66 = arith.constant 0 : index
    %45 = vector.load %arg5[%c1_63, %c0_64, %c0_65, %c0_66] : memref<10x10x10x32xf32, #tpu.memory_space<vmem>>, vector<8x1x10x32xf32>
    tpu.vector_store %arg5[%c1_63, %c0_64, %c0_65, %c0_66], %44 {strides = array<i32>} : memref<10x10x10x32xf32, #tpu.memory_space<vmem>>, vector<8x1x10x32xf32>,
    %cst_67 = arith.constant 0.000000e+00 : f32
    %46 = vector.broadcast %cst_67 : f32 to vector<8x1x10x32xf32>
    %c1_68 = arith.constant 1 : index
    %c9_69 = arith.constant 9 : index
    %c0_70 = arith.constant 0 : index
    %c0_71 = arith.constant 0 : index
    %47 = vector.load %arg5[%c1_68, %c9_69, %c0_70, %c0_71] : memref<10x10x10x32xf32, #tpu.memory_space<vmem>>, vector<8x1x10x32xf32>
    tpu.vector_store %arg5[%c1_68, %c9_69, %c0_70, %c0_71], %46 {strides = array<i32>} : memref<10x10x10x32xf32, #tpu.memory_space<vmem>>, vector<8x1x10x32xf32>,
    %cst_72 = arith.constant 0.000000e+00 : f32
    %48 = vector.broadcast %cst_72 : f32 to vector<8x8x1x32xf32>
    %c1_73 = arith.constant 1 : index
    %c1_74 = arith.constant 1 : index
    %c0_75 = arith.constant 0 : index
    %c0_76 = arith.constant 0 : index
    %49 = vector.load %arg5[%c1_73, %c1_74, %c0_75, %c0_76] : memref<10x10x10x32xf32, #tpu.memory_space<vmem>>, vector<8x8x1x32xf32>
    tpu.vector_store %arg5[%c1_73, %c1_74, %c0_75, %c0_76], %48 {strides = array<i32>} : memref<10x10x10x32xf32, #tpu.memory_space<vmem>>, vector<8x8x1x32xf32>,
    %cst_77 = arith.constant 0.000000e+00 : f32
    %50 = vector.broadcast %cst_77 : f32 to vector<8x8x1x32xf32>
    %c1_78 = arith.constant 1 : index
    %c1_79 = arith.constant 1 : index
    %c9_80 = arith.constant 9 : index
    %c0_81 = arith.constant 0 : index
    %51 = vector.load %arg5[%c1_78, %c1_79, %c9_80, %c0_81] : memref<10x10x10x32xf32, #tpu.memory_space<vmem>>, vector<8x8x1x32xf32>
    tpu.vector_store %arg5[%c1_78, %c1_79, %c9_80, %c0_81], %50 {strides = array<i32>} : memref<10x10x10x32xf32, #tpu.memory_space<vmem>>, vector<8x8x1x32xf32>,
    %52 = vector.shape_cast %39 : vector<512x32xf32> to vector<8x8x8x32xf32>
    %c1_82 = arith.constant 1 : index
    %c1_83 = arith.constant 1 : index
    %c1_84 = arith.constant 1 : index
    %c0_85 = arith.constant 0 : index
    %53 = vector.load %arg5[%c1_82, %c1_83, %c1_84, %c0_85] : memref<10x10x10x32xf32, #tpu.memory_space<vmem>>, vector<8x8x8x32xf32>
    tpu.vector_store %arg5[%c1_82, %c1_83, %c1_84, %c0_85], %52 {strides = array<i32>} : memref<10x10x10x32xf32, #tpu.memory_space<vmem>>, vector<8x8x8x32xf32>,
    %c0_86 = arith.constant 0 : index
    %c0_87 = arith.constant 0 : index
    %c0_88 = arith.constant 0 : index
    %c0_89 = arith.constant 0 : index
    %54 = vector.load %arg5[%c0_86, %c0_87, %c0_88, %c0_89] : memref<10x10x10x32xf32, #tpu.memory_space<vmem>>, vector<8x8x8x32xf32>
    %55 = vector.shape_cast %54 : vector<8x8x8x32xf32> to vector<512x32xf32>
    %c0_90 = arith.constant 0 : index
    %c0_91 = arith.constant 0 : index
    %c0_92 = arith.constant 0 : index
    %56 = vector.load %arg3[%c0_90, %c0_91, %c0_92] : memref<27x1x32xf32, #tpu.memory_space<vmem>>, vector<1x1x32xf32>
    %57 = vector.shape_cast %56 : vector<1x1x32xf32> to vector<1x32xf32>
    %cst_93 = arith.constant dense<0.000000e+00> : vector<1x512xf32>
    %58 = tpu.matmul %57, %55, %cst_93 {dimension_numbers = #tpu.dot_dimension_numbers<[1], [1], [0], [0], [0, 0, 1, 0], [], []>} : vector<1x32xf32>, vector<512x32xf32>, vector<1x512xf32> -> vector<1x512xf32>
    %c0_94 = arith.constant 0 : index
    %c0_95 = arith.constant 0 : index
    %c1_96 = arith.constant 1 : index
    %c0_97 = arith.constant 0 : index
    %59 = vector.load %arg5[%c0_94, %c0_95, %c1_96, %c0_97] : memref<10x10x10x32xf32, #tpu.memory_space<vmem>>, vector<8x8x8x32xf32>
    %60 = vector.shape_cast %59 : vector<8x8x8x32xf32> to vector<512x32xf32>
    %c1_98 = arith.constant 1 : index
    %c0_99 = arith.constant 0 : index
    %c0_100 = arith.constant 0 : index
    %61 = vector.load %arg3[%c1_98, %c0_99, %c0_100] : memref<27x1x32xf32, #tpu.memory_space<vmem>>, vector<1x1x32xf32>
    %62 = vector.shape_cast %61 : vector<1x1x32xf32> to vector<1x32xf32>
    %cst_101 = arith.constant dense<0.000000e+00> : vector<1x512xf32>
    %63 = tpu.matmul %62, %60, %cst_101 {dimension_numbers = #tpu.dot_dimension_numbers<[1], [1], [0], [0], [0, 0, 1, 0], [], []>} : vector<1x32xf32>, vector<512x32xf32>, vector<1x512xf32> -> vector<1x512xf32>
    %64 = arith.addf %58, %63 : vector<1x512xf32>
    %c0_102 = arith.constant 0 : index
    %c0_103 = arith.constant 0 : index
    %c2 = arith.constant 2 : index
    %c0_104 = arith.constant 0 : index
    %65 = vector.load %arg5[%c0_102, %c0_103, %c2, %c0_104] : memref<10x10x10x32xf32, #tpu.memory_space<vmem>>, vector<8x8x8x32xf32>
    %66 = vector.shape_cast %65 : vector<8x8x8x32xf32> to vector<512x32xf32>
    %c2_105 = arith.constant 2 : index
    %c0_106 = arith.constant 0 : index
    %c0_107 = arith.constant 0 : index
    %67 = vector.load %arg3[%c2_105, %c0_106, %c0_107] : memref<27x1x32xf32, #tpu.memory_space<vmem>>, vector<1x1x32xf32>
    %68 = vector.shape_cast %67 : vector<1x1x32xf32> to vector<1x32xf32>
    %cst_108 = arith.constant dense<0.000000e+00> : vector<1x512xf32>
    %69 = tpu.matmul %68, %66, %cst_108 {dimension_numbers = #tpu.dot_dimension_numbers<[1], [1], [0], [0], [0, 0, 1, 0], [], []>} : vector<1x32xf32>, vector<512x32xf32>, vector<1x512xf32> -> vector<1x512xf32>
    %70 = arith.addf %64, %69 : vector<1x512xf32>
    %c0_109 = arith.constant 0 : index
    %c1_110 = arith.constant 1 : index
    %c0_111 = arith.constant 0 : index
    %c0_112 = arith.constant 0 : index
    %71 = vector.load %arg5[%c0_109, %c1_110, %c0_111, %c0_112] : memref<10x10x10x32xf32, #tpu.memory_space<vmem>>, vector<8x8x8x32xf32>
    %72 = vector.shape_cast %71 : vector<8x8x8x32xf32> to vector<512x32xf32>
    %c3 = arith.constant 3 : index
    %c0_113 = arith.constant 0 : index
    %c0_114 = arith.constant 0 : index
    %73 = vector.load %arg3[%c3, %c0_113, %c0_114] : memref<27x1x32xf32, #tpu.memory_space<vmem>>, vector<1x1x32xf32>
    %74 = vector.shape_cast %73 : vector<1x1x32xf32> to vector<1x32xf32>
    %cst_115 = arith.constant dense<0.000000e+00> : vector<1x512xf32>
    %75 = tpu.matmul %74, %72, %cst_115 {dimension_numbers = #tpu.dot_dimension_numbers<[1], [1], [0], [0], [0, 0, 1, 0], [], []>} : vector<1x32xf32>, vector<512x32xf32>, vector<1x512xf32> -> vector<1x512xf32>
    %76 = arith.addf %70, %75 : vector<1x512xf32>
    %c0_116 = arith.constant 0 : index
    %c1_117 = arith.constant 1 : index
    %c1_118 = arith.constant 1 : index
    %c0_119 = arith.constant 0 : index
    %77 = vector.load %arg5[%c0_116, %c1_117, %c1_118, %c0_119] : memref<10x10x10x32xf32, #tpu.memory_space<vmem>>, vector<8x8x8x32xf32>
    %78 = vector.shape_cast %77 : vector<8x8x8x32xf32> to vector<512x32xf32>
    %c4 = arith.constant 4 : index
    %c0_120 = arith.constant 0 : index
    %c0_121 = arith.constant 0 : index
    %79 = vector.load %arg3[%c4, %c0_120, %c0_121] : memref<27x1x32xf32, #tpu.memory_space<vmem>>, vector<1x1x32xf32>
    %80 = vector.shape_cast %79 : vector<1x1x32xf32> to vector<1x32xf32>
    %cst_122 = arith.constant dense<0.000000e+00> : vector<1x512xf32>
    %81 = tpu.matmul %80, %78, %cst_122 {dimension_numbers = #tpu.dot_dimension_numbers<[1], [1], [0], [0], [0, 0, 1, 0], [], []>} : vector<1x32xf32>, vector<512x32xf32>, vector<1x512xf32> -> vector<1x512xf32>
    %82 = arith.addf %76, %81 : vector<1x512xf32>
    %c0_123 = arith.constant 0 : index
    %c1_124 = arith.constant 1 : index
    %c2_125 = arith.constant 2 : index
    %c0_126 = arith.constant 0 : index
    %83 = vector.load %arg5[%c0_123, %c1_124, %c2_125, %c0_126] : memref<10x10x10x32xf32, #tpu.memory_space<vmem>>, vector<8x8x8x32xf32>
    %84 = vector.shape_cast %83 : vector<8x8x8x32xf32> to vector<512x32xf32>
    %c5 = arith.constant 5 : index
    %c0_127 = arith.constant 0 : index
    %c0_128 = arith.constant 0 : index
    %85 = vector.load %arg3[%c5, %c0_127, %c0_128] : memref<27x1x32xf32, #tpu.memory_space<vmem>>, vector<1x1x32xf32>
    %86 = vector.shape_cast %85 : vector<1x1x32xf32> to vector<1x32xf32>
    %cst_129 = arith.constant dense<0.000000e+00> : vector<1x512xf32>
    %87 = tpu.matmul %86, %84, %cst_129 {dimension_numbers = #tpu.dot_dimension_numbers<[1], [1], [0], [0], [0, 0, 1, 0], [], []>} : vector<1x32xf32>, vector<512x32xf32>, vector<1x512xf32> -> vector<1x512xf32>
    %88 = arith.addf %82, %87 : vector<1x512xf32>
    %c0_130 = arith.constant 0 : index
    %c2_131 = arith.constant 2 : index
    %c0_132 = arith.constant 0 : index
    %c0_133 = arith.constant 0 : index
    %89 = vector.load %arg5[%c0_130, %c2_131, %c0_132, %c0_133] : memref<10x10x10x32xf32, #tpu.memory_space<vmem>>, vector<8x8x8x32xf32>
    %90 = vector.shape_cast %89 : vector<8x8x8x32xf32> to vector<512x32xf32>
    %c6 = arith.constant 6 : index
    %c0_134 = arith.constant 0 : index
    %c0_135 = arith.constant 0 : index
    %91 = vector.load %arg3[%c6, %c0_134, %c0_135] : memref<27x1x32xf32, #tpu.memory_space<vmem>>, vector<1x1x32xf32>
    %92 = vector.shape_cast %91 : vector<1x1x32xf32> to vector<1x32xf32>
    %cst_136 = arith.constant dense<0.000000e+00> : vector<1x512xf32>
    %93 = tpu.matmul %92, %90, %cst_136 {dimension_numbers = #tpu.dot_dimension_numbers<[1], [1], [0], [0], [0, 0, 1, 0], [], []>} : vector<1x32xf32>, vector<512x32xf32>, vector<1x512xf32> -> vector<1x512xf32>
    %94 = arith.addf %88, %93 : vector<1x512xf32>
    %c0_137 = arith.constant 0 : index
    %c2_138 = arith.constant 2 : index
    %c1_139 = arith.constant 1 : index
    %c0_140 = arith.constant 0 : index
    %95 = vector.load %arg5[%c0_137, %c2_138, %c1_139, %c0_140] : memref<10x10x10x32xf32, #tpu.memory_space<vmem>>, vector<8x8x8x32xf32>
    %96 = vector.shape_cast %95 : vector<8x8x8x32xf32> to vector<512x32xf32>
    %c7 = arith.constant 7 : index
    %c0_141 = arith.constant 0 : index
    %c0_142 = arith.constant 0 : index
    %97 = vector.load %arg3[%c7, %c0_141, %c0_142] : memref<27x1x32xf32, #tpu.memory_space<vmem>>, vector<1x1x32xf32>
    %98 = vector.shape_cast %97 : vector<1x1x32xf32> to vector<1x32xf32>
    %cst_143 = arith.constant dense<0.000000e+00> : vector<1x512xf32>
    %99 = tpu.matmul %98, %96, %cst_143 {dimension_numbers = #tpu.dot_dimension_numbers<[1], [1], [0], [0], [0, 0, 1, 0], [], []>} : vector<1x32xf32>, vector<512x32xf32>, vector<1x512xf32> -> vector<1x512xf32>
    %100 = arith.addf %94, %99 : vector<1x512xf32>
    %c0_144 = arith.constant 0 : index
    %c2_145 = arith.constant 2 : index
    %c2_146 = arith.constant 2 : index
    %c0_147 = arith.constant 0 : index
    %101 = vector.load %arg5[%c0_144, %c2_145, %c2_146, %c0_147] : memref<10x10x10x32xf32, #tpu.memory_space<vmem>>, vector<8x8x8x32xf32>
    %102 = vector.shape_cast %101 : vector<8x8x8x32xf32> to vector<512x32xf32>
    %c8_148 = arith.constant 8 : index
    %c0_149 = arith.constant 0 : index
    %c0_150 = arith.constant 0 : index
    %103 = vector.load %arg3[%c8_148, %c0_149, %c0_150] : memref<27x1x32xf32, #tpu.memory_space<vmem>>, vector<1x1x32xf32>
    %104 = vector.shape_cast %103 : vector<1x1x32xf32> to vector<1x32xf32>
    %cst_151 = arith.constant dense<0.000000e+00> : vector<1x512xf32>
    %105 = tpu.matmul %104, %102, %cst_151 {dimension_numbers = #tpu.dot_dimension_numbers<[1], [1], [0], [0], [0, 0, 1, 0], [], []>} : vector<1x32xf32>, vector<512x32xf32>, vector<1x512xf32> -> vector<1x512xf32>
    %106 = arith.addf %100, %105 : vector<1x512xf32>
    %c1_152 = arith.constant 1 : index
    %c0_153 = arith.constant 0 : index
    %c0_154 = arith.constant 0 : index
    %c0_155 = arith.constant 0 : index
    %107 = vector.load %arg5[%c1_152, %c0_153, %c0_154, %c0_155] : memref<10x10x10x32xf32, #tpu.memory_space<vmem>>, vector<8x8x8x32xf32>
    %108 = vector.shape_cast %107 : vector<8x8x8x32xf32> to vector<512x32xf32>
    %c9_156 = arith.constant 9 : index
    %c0_157 = arith.constant 0 : index
    %c0_158 = arith.constant 0 : index
    %109 = vector.load %arg3[%c9_156, %c0_157, %c0_158] : memref<27x1x32xf32, #tpu.memory_space<vmem>>, vector<1x1x32xf32>
    %110 = vector.shape_cast %109 : vector<1x1x32xf32> to vector<1x32xf32>
    %cst_159 = arith.constant dense<0.000000e+00> : vector<1x512xf32>
    %111 = tpu.matmul %110, %108, %cst_159 {dimension_numbers = #tpu.dot_dimension_numbers<[1], [1], [0], [0], [0, 0, 1, 0], [], []>} : vector<1x32xf32>, vector<512x32xf32>, vector<1x512xf32> -> vector<1x512xf32>
    %112 = arith.addf %106, %111 : vector<1x512xf32>
    %c1_160 = arith.constant 1 : index
    %c0_161 = arith.constant 0 : index
    %c1_162 = arith.constant 1 : index
    %c0_163 = arith.constant 0 : index
    %113 = vector.load %arg5[%c1_160, %c0_161, %c1_162, %c0_163] : memref<10x10x10x32xf32, #tpu.memory_space<vmem>>, vector<8x8x8x32xf32>
    %114 = vector.shape_cast %113 : vector<8x8x8x32xf32> to vector<512x32xf32>
    %c10 = arith.constant 10 : index
    %c0_164 = arith.constant 0 : index
    %c0_165 = arith.constant 0 : index
    %115 = vector.load %arg3[%c10, %c0_164, %c0_165] : memref<27x1x32xf32, #tpu.memory_space<vmem>>, vector<1x1x32xf32>
    %116 = vector.shape_cast %115 : vector<1x1x32xf32> to vector<1x32xf32>
    %cst_166 = arith.constant dense<0.000000e+00> : vector<1x512xf32>
    %117 = tpu.matmul %116, %114, %cst_166 {dimension_numbers = #tpu.dot_dimension_numbers<[1], [1], [0], [0], [0, 0, 1, 0], [], []>} : vector<1x32xf32>, vector<512x32xf32>, vector<1x512xf32> -> vector<1x512xf32>
    %118 = arith.addf %112, %117 : vector<1x512xf32>
    %c1_167 = arith.constant 1 : index
    %c0_168 = arith.constant 0 : index
    %c2_169 = arith.constant 2 : index
    %c0_170 = arith.constant 0 : index
    %119 = vector.load %arg5[%c1_167, %c0_168, %c2_169, %c0_170] : memref<10x10x10x32xf32, #tpu.memory_space<vmem>>, vector<8x8x8x32xf32>
    %120 = vector.shape_cast %119 : vector<8x8x8x32xf32> to vector<512x32xf32>
    %c11 = arith.constant 11 : index
    %c0_171 = arith.constant 0 : index
    %c0_172 = arith.constant 0 : index
    %121 = vector.load %arg3[%c11, %c0_171, %c0_172] : memref<27x1x32xf32, #tpu.memory_space<vmem>>, vector<1x1x32xf32>
    %122 = vector.shape_cast %121 : vector<1x1x32xf32> to vector<1x32xf32>
    %cst_173 = arith.constant dense<0.000000e+00> : vector<1x512xf32>
    %123 = tpu.matmul %122, %120, %cst_173 {dimension_numbers = #tpu.dot_dimension_numbers<[1], [1], [0], [0], [0, 0, 1, 0], [], []>} : vector<1x32xf32>, vector<512x32xf32>, vector<1x512xf32> -> vector<1x512xf32>
    %124 = arith.addf %118, %123 : vector<1x512xf32>
    %c1_174 = arith.constant 1 : index
    %c1_175 = arith.constant 1 : index
    %c0_176 = arith.constant 0 : index
    %c0_177 = arith.constant 0 : index
    %125 = vector.load %arg5[%c1_174, %c1_175, %c0_176, %c0_177] : memref<10x10x10x32xf32, #tpu.memory_space<vmem>>, vector<8x8x8x32xf32>
    %126 = vector.shape_cast %125 : vector<8x8x8x32xf32> to vector<512x32xf32>
    %c12 = arith.constant 12 : index
    %c0_178 = arith.constant 0 : index
    %c0_179 = arith.constant 0 : index
    %127 = vector.load %arg3[%c12, %c0_178, %c0_179] : memref<27x1x32xf32, #tpu.memory_space<vmem>>, vector<1x1x32xf32>
    %128 = vector.shape_cast %127 : vector<1x1x32xf32> to vector<1x32xf32>
    %cst_180 = arith.constant dense<0.000000e+00> : vector<1x512xf32>
    %129 = tpu.matmul %128, %126, %cst_180 {dimension_numbers = #tpu.dot_dimension_numbers<[1], [1], [0], [0], [0, 0, 1, 0], [], []>} : vector<1x32xf32>, vector<512x32xf32>, vector<1x512xf32> -> vector<1x512xf32>
    %130 = arith.addf %124, %129 : vector<1x512xf32>
    %c1_181 = arith.constant 1 : index
    %c1_182 = arith.constant 1 : index
    %c1_183 = arith.constant 1 : index
    %c0_184 = arith.constant 0 : index
    %131 = vector.load %arg5[%c1_181, %c1_182, %c1_183, %c0_184] : memref<10x10x10x32xf32, #tpu.memory_space<vmem>>, vector<8x8x8x32xf32>
    %132 = vector.shape_cast %131 : vector<8x8x8x32xf32> to vector<512x32xf32>
    %c13 = arith.constant 13 : index
    %c0_185 = arith.constant 0 : index
    %c0_186 = arith.constant 0 : index
    %133 = vector.load %arg3[%c13, %c0_185, %c0_186] : memref<27x1x32xf32, #tpu.memory_space<vmem>>, vector<1x1x32xf32>
    %134 = vector.shape_cast %133 : vector<1x1x32xf32> to vector<1x32xf32>
    %cst_187 = arith.constant dense<0.000000e+00> : vector<1x512xf32>
    %135 = tpu.matmul %134, %132, %cst_187 {dimension_numbers = #tpu.dot_dimension_numbers<[1], [1], [0], [0], [0, 0, 1, 0], [], []>} : vector<1x32xf32>, vector<512x32xf32>, vector<1x512xf32> -> vector<1x512xf32>
    %136 = arith.addf %130, %135 : vector<1x512xf32>
    %c1_188 = arith.constant 1 : index
    %c1_189 = arith.constant 1 : index
    %c2_190 = arith.constant 2 : index
    %c0_191 = arith.constant 0 : index
    %137 = vector.load %arg5[%c1_188, %c1_189, %c2_190, %c0_191] : memref<10x10x10x32xf32, #tpu.memory_space<vmem>>, vector<8x8x8x32xf32>
    %138 = vector.shape_cast %137 : vector<8x8x8x32xf32> to vector<512x32xf32>
    %c14 = arith.constant 14 : index
    %c0_192 = arith.constant 0 : index
    %c0_193 = arith.constant 0 : index
    %139 = vector.load %arg3[%c14, %c0_192, %c0_193] : memref<27x1x32xf32, #tpu.memory_space<vmem>>, vector<1x1x32xf32>
    %140 = vector.shape_cast %139 : vector<1x1x32xf32> to vector<1x32xf32>
    %cst_194 = arith.constant dense<0.000000e+00> : vector<1x512xf32>
    %141 = tpu.matmul %140, %138, %cst_194 {dimension_numbers = #tpu.dot_dimension_numbers<[1], [1], [0], [0], [0, 0, 1, 0], [], []>} : vector<1x32xf32>, vector<512x32xf32>, vector<1x512xf32> -> vector<1x512xf32>
    %142 = arith.addf %136, %141 : vector<1x512xf32>
    %c1_195 = arith.constant 1 : index
    %c2_196 = arith.constant 2 : index
    %c0_197 = arith.constant 0 : index
    %c0_198 = arith.constant 0 : index
    %143 = vector.load %arg5[%c1_195, %c2_196, %c0_197, %c0_198] : memref<10x10x10x32xf32, #tpu.memory_space<vmem>>, vector<8x8x8x32xf32>
    %144 = vector.shape_cast %143 : vector<8x8x8x32xf32> to vector<512x32xf32>
    %c15 = arith.constant 15 : index
    %c0_199 = arith.constant 0 : index
    %c0_200 = arith.constant 0 : index
    %145 = vector.load %arg3[%c15, %c0_199, %c0_200] : memref<27x1x32xf32, #tpu.memory_space<vmem>>, vector<1x1x32xf32>
    %146 = vector.shape_cast %145 : vector<1x1x32xf32> to vector<1x32xf32>
    %cst_201 = arith.constant dense<0.000000e+00> : vector<1x512xf32>
    %147 = tpu.matmul %146, %144, %cst_201 {dimension_numbers = #tpu.dot_dimension_numbers<[1], [1], [0], [0], [0, 0, 1, 0], [], []>} : vector<1x32xf32>, vector<512x32xf32>, vector<1x512xf32> -> vector<1x512xf32>
    %148 = arith.addf %142, %147 : vector<1x512xf32>
    %c1_202 = arith.constant 1 : index
    %c2_203 = arith.constant 2 : index
    %c1_204 = arith.constant 1 : index
    %c0_205 = arith.constant 0 : index
    %149 = vector.load %arg5[%c1_202, %c2_203, %c1_204, %c0_205] : memref<10x10x10x32xf32, #tpu.memory_space<vmem>>, vector<8x8x8x32xf32>
    %150 = vector.shape_cast %149 : vector<8x8x8x32xf32> to vector<512x32xf32>
    %c16_206 = arith.constant 16 : index
    %c0_207 = arith.constant 0 : index
    %c0_208 = arith.constant 0 : index
    %151 = vector.load %arg3[%c16_206, %c0_207, %c0_208] : memref<27x1x32xf32, #tpu.memory_space<vmem>>, vector<1x1x32xf32>
    %152 = vector.shape_cast %151 : vector<1x1x32xf32> to vector<1x32xf32>
    %cst_209 = arith.constant dense<0.000000e+00> : vector<1x512xf32>
    %153 = tpu.matmul %152, %150, %cst_209 {dimension_numbers = #tpu.dot_dimension_numbers<[1], [1], [0], [0], [0, 0, 1, 0], [], []>} : vector<1x32xf32>, vector<512x32xf32>, vector<1x512xf32> -> vector<1x512xf32>
    %154 = arith.addf %148, %153 : vector<1x512xf32>
    %c1_210 = arith.constant 1 : index
    %c2_211 = arith.constant 2 : index
    %c2_212 = arith.constant 2 : index
    %c0_213 = arith.constant 0 : index
    %155 = vector.load %arg5[%c1_210, %c2_211, %c2_212, %c0_213] : memref<10x10x10x32xf32, #tpu.memory_space<vmem>>, vector<8x8x8x32xf32>
    %156 = vector.shape_cast %155 : vector<8x8x8x32xf32> to vector<512x32xf32>
    %c17 = arith.constant 17 : index
    %c0_214 = arith.constant 0 : index
    %c0_215 = arith.constant 0 : index
    %157 = vector.load %arg3[%c17, %c0_214, %c0_215] : memref<27x1x32xf32, #tpu.memory_space<vmem>>, vector<1x1x32xf32>
    %158 = vector.shape_cast %157 : vector<1x1x32xf32> to vector<1x32xf32>
    %cst_216 = arith.constant dense<0.000000e+00> : vector<1x512xf32>
    %159 = tpu.matmul %158, %156, %cst_216 {dimension_numbers = #tpu.dot_dimension_numbers<[1], [1], [0], [0], [0, 0, 1, 0], [], []>} : vector<1x32xf32>, vector<512x32xf32>, vector<1x512xf32> -> vector<1x512xf32>
    %160 = arith.addf %154, %159 : vector<1x512xf32>
    %c2_217 = arith.constant 2 : index
    %c0_218 = arith.constant 0 : index
    %c0_219 = arith.constant 0 : index
    %c0_220 = arith.constant 0 : index
    %161 = vector.load %arg5[%c2_217, %c0_218, %c0_219, %c0_220] : memref<10x10x10x32xf32, #tpu.memory_space<vmem>>, vector<8x8x8x32xf32>
    %162 = vector.shape_cast %161 : vector<8x8x8x32xf32> to vector<512x32xf32>
    %c18 = arith.constant 18 : index
    %c0_221 = arith.constant 0 : index
    %c0_222 = arith.constant 0 : index
    %163 = vector.load %arg3[%c18, %c0_221, %c0_222] : memref<27x1x32xf32, #tpu.memory_space<vmem>>, vector<1x1x32xf32>
    %164 = vector.shape_cast %163 : vector<1x1x32xf32> to vector<1x32xf32>
    %cst_223 = arith.constant dense<0.000000e+00> : vector<1x512xf32>
    %165 = tpu.matmul %164, %162, %cst_223 {dimension_numbers = #tpu.dot_dimension_numbers<[1], [1], [0], [0], [0, 0, 1, 0], [], []>} : vector<1x32xf32>, vector<512x32xf32>, vector<1x512xf32> -> vector<1x512xf32>
    %166 = arith.addf %160, %165 : vector<1x512xf32>
    %c2_224 = arith.constant 2 : index
    %c0_225 = arith.constant 0 : index
    %c1_226 = arith.constant 1 : index
    %c0_227 = arith.constant 0 : index
    %167 = vector.load %arg5[%c2_224, %c0_225, %c1_226, %c0_227] : memref<10x10x10x32xf32, #tpu.memory_space<vmem>>, vector<8x8x8x32xf32>
    %168 = vector.shape_cast %167 : vector<8x8x8x32xf32> to vector<512x32xf32>
    %c19 = arith.constant 19 : index
    %c0_228 = arith.constant 0 : index
    %c0_229 = arith.constant 0 : index
    %169 = vector.load %arg3[%c19, %c0_228, %c0_229] : memref<27x1x32xf32, #tpu.memory_space<vmem>>, vector<1x1x32xf32>
    %170 = vector.shape_cast %169 : vector<1x1x32xf32> to vector<1x32xf32>
    %cst_230 = arith.constant dense<0.000000e+00> : vector<1x512xf32>
    %171 = tpu.matmul %170, %168, %cst_230 {dimension_numbers = #tpu.dot_dimension_numbers<[1], [1], [0], [0], [0, 0, 1, 0], [], []>} : vector<1x32xf32>, vector<512x32xf32>, vector<1x512xf32> -> vector<1x512xf32>
    %172 = arith.addf %166, %171 : vector<1x512xf32>
    %c2_231 = arith.constant 2 : index
    %c0_232 = arith.constant 0 : index
    %c2_233 = arith.constant 2 : index
    %c0_234 = arith.constant 0 : index
    %173 = vector.load %arg5[%c2_231, %c0_232, %c2_233, %c0_234] : memref<10x10x10x32xf32, #tpu.memory_space<vmem>>, vector<8x8x8x32xf32>
    %174 = vector.shape_cast %173 : vector<8x8x8x32xf32> to vector<512x32xf32>
    %c20 = arith.constant 20 : index
    %c0_235 = arith.constant 0 : index
    %c0_236 = arith.constant 0 : index
    %175 = vector.load %arg3[%c20, %c0_235, %c0_236] : memref<27x1x32xf32, #tpu.memory_space<vmem>>, vector<1x1x32xf32>
    %176 = vector.shape_cast %175 : vector<1x1x32xf32> to vector<1x32xf32>
    %cst_237 = arith.constant dense<0.000000e+00> : vector<1x512xf32>
    %177 = tpu.matmul %176, %174, %cst_237 {dimension_numbers = #tpu.dot_dimension_numbers<[1], [1], [0], [0], [0, 0, 1, 0], [], []>} : vector<1x32xf32>, vector<512x32xf32>, vector<1x512xf32> -> vector<1x512xf32>
    %178 = arith.addf %172, %177 : vector<1x512xf32>
    %c2_238 = arith.constant 2 : index
    %c1_239 = arith.constant 1 : index
    %c0_240 = arith.constant 0 : index
    %c0_241 = arith.constant 0 : index
    %179 = vector.load %arg5[%c2_238, %c1_239, %c0_240, %c0_241] : memref<10x10x10x32xf32, #tpu.memory_space<vmem>>, vector<8x8x8x32xf32>
    %180 = vector.shape_cast %179 : vector<8x8x8x32xf32> to vector<512x32xf32>
    %c21 = arith.constant 21 : index
    %c0_242 = arith.constant 0 : index
    %c0_243 = arith.constant 0 : index
    %181 = vector.load %arg3[%c21, %c0_242, %c0_243] : memref<27x1x32xf32, #tpu.memory_space<vmem>>, vector<1x1x32xf32>
    %182 = vector.shape_cast %181 : vector<1x1x32xf32> to vector<1x32xf32>
    %cst_244 = arith.constant dense<0.000000e+00> : vector<1x512xf32>
    %183 = tpu.matmul %182, %180, %cst_244 {dimension_numbers = #tpu.dot_dimension_numbers<[1], [1], [0], [0], [0, 0, 1, 0], [], []>} : vector<1x32xf32>, vector<512x32xf32>, vector<1x512xf32> -> vector<1x512xf32>
    %184 = arith.addf %178, %183 : vector<1x512xf32>
    %c2_245 = arith.constant 2 : index
    %c1_246 = arith.constant 1 : index
    %c1_247 = arith.constant 1 : index
    %c0_248 = arith.constant 0 : index
    %185 = vector.load %arg5[%c2_245, %c1_246, %c1_247, %c0_248] : memref<10x10x10x32xf32, #tpu.memory_space<vmem>>, vector<8x8x8x32xf32>
    %186 = vector.shape_cast %185 : vector<8x8x8x32xf32> to vector<512x32xf32>
    %c22 = arith.constant 22 : index
    %c0_249 = arith.constant 0 : index
    %c0_250 = arith.constant 0 : index
    %187 = vector.load %arg3[%c22, %c0_249, %c0_250] : memref<27x1x32xf32, #tpu.memory_space<vmem>>, vector<1x1x32xf32>
    %188 = vector.shape_cast %187 : vector<1x1x32xf32> to vector<1x32xf32>
    %cst_251 = arith.constant dense<0.000000e+00> : vector<1x512xf32>
    %189 = tpu.matmul %188, %186, %cst_251 {dimension_numbers = #tpu.dot_dimension_numbers<[1], [1], [0], [0], [0, 0, 1, 0], [], []>} : vector<1x32xf32>, vector<512x32xf32>, vector<1x512xf32> -> vector<1x512xf32>
    %190 = arith.addf %184, %189 : vector<1x512xf32>
    %c2_252 = arith.constant 2 : index
    %c1_253 = arith.constant 1 : index
    %c2_254 = arith.constant 2 : index
    %c0_255 = arith.constant 0 : index
    %191 = vector.load %arg5[%c2_252, %c1_253, %c2_254, %c0_255] : memref<10x10x10x32xf32, #tpu.memory_space<vmem>>, vector<8x8x8x32xf32>
    %192 = vector.shape_cast %191 : vector<8x8x8x32xf32> to vector<512x32xf32>
    %c23 = arith.constant 23 : index
    %c0_256 = arith.constant 0 : index
    %c0_257 = arith.constant 0 : index
    %193 = vector.load %arg3[%c23, %c0_256, %c0_257] : memref<27x1x32xf32, #tpu.memory_space<vmem>>, vector<1x1x32xf32>
    %194 = vector.shape_cast %193 : vector<1x1x32xf32> to vector<1x32xf32>
    %cst_258 = arith.constant dense<0.000000e+00> : vector<1x512xf32>
    %195 = tpu.matmul %194, %192, %cst_258 {dimension_numbers = #tpu.dot_dimension_numbers<[1], [1], [0], [0], [0, 0, 1, 0], [], []>} : vector<1x32xf32>, vector<512x32xf32>, vector<1x512xf32> -> vector<1x512xf32>
    %196 = arith.addf %190, %195 : vector<1x512xf32>
    %c2_259 = arith.constant 2 : index
    %c2_260 = arith.constant 2 : index
    %c0_261 = arith.constant 0 : index
    %c0_262 = arith.constant 0 : index
    %197 = vector.load %arg5[%c2_259, %c2_260, %c0_261, %c0_262] : memref<10x10x10x32xf32, #tpu.memory_space<vmem>>, vector<8x8x8x32xf32>
    %198 = vector.shape_cast %197 : vector<8x8x8x32xf32> to vector<512x32xf32>
    %c24_263 = arith.constant 24 : index
    %c0_264 = arith.constant 0 : index
    %c0_265 = arith.constant 0 : index
    %199 = vector.load %arg3[%c24_263, %c0_264, %c0_265] : memref<27x1x32xf32, #tpu.memory_space<vmem>>, vector<1x1x32xf32>
    %200 = vector.shape_cast %199 : vector<1x1x32xf32> to vector<1x32xf32>
    %cst_266 = arith.constant dense<0.000000e+00> : vector<1x512xf32>
    %201 = tpu.matmul %200, %198, %cst_266 {dimension_numbers = #tpu.dot_dimension_numbers<[1], [1], [0], [0], [0, 0, 1, 0], [], []>} : vector<1x32xf32>, vector<512x32xf32>, vector<1x512xf32> -> vector<1x512xf32>
    %202 = arith.addf %196, %201 : vector<1x512xf32>
    %c2_267 = arith.constant 2 : index
    %c2_268 = arith.constant 2 : index
    %c1_269 = arith.constant 1 : index
    %c0_270 = arith.constant 0 : index
    %203 = vector.load %arg5[%c2_267, %c2_268, %c1_269, %c0_270] : memref<10x10x10x32xf32, #tpu.memory_space<vmem>>, vector<8x8x8x32xf32>
    %204 = vector.shape_cast %203 : vector<8x8x8x32xf32> to vector<512x32xf32>
    %c25 = arith.constant 25 : index
    %c0_271 = arith.constant 0 : index
    %c0_272 = arith.constant 0 : index
    %205 = vector.load %arg3[%c25, %c0_271, %c0_272] : memref<27x1x32xf32, #tpu.memory_space<vmem>>, vector<1x1x32xf32>
    %206 = vector.shape_cast %205 : vector<1x1x32xf32> to vector<1x32xf32>
    %cst_273 = arith.constant dense<0.000000e+00> : vector<1x512xf32>
    %207 = tpu.matmul %206, %204, %cst_273 {dimension_numbers = #tpu.dot_dimension_numbers<[1], [1], [0], [0], [0, 0, 1, 0], [], []>} : vector<1x32xf32>, vector<512x32xf32>, vector<1x512xf32> -> vector<1x512xf32>
    %208 = arith.addf %202, %207 : vector<1x512xf32>
    %c2_274 = arith.constant 2 : index
    %c2_275 = arith.constant 2 : index
    %c2_276 = arith.constant 2 : index
    %c0_277 = arith.constant 0 : index
    %209 = vector.load %arg5[%c2_274, %c2_275, %c2_276, %c0_277] : memref<10x10x10x32xf32, #tpu.memory_space<vmem>>, vector<8x8x8x32xf32>
    %210 = vector.shape_cast %209 : vector<8x8x8x32xf32> to vector<512x32xf32>
    %c26 = arith.constant 26 : index
    %c0_278 = arith.constant 0 : index
    %c0_279 = arith.constant 0 : index
    %211 = vector.load %arg3[%c26, %c0_278, %c0_279] : memref<27x1x32xf32, #tpu.memory_space<vmem>>, vector<1x1x32xf32>
    %212 = vector.shape_cast %211 : vector<1x1x32xf32> to vector<1x32xf32>
    %cst_280 = arith.constant dense<0.000000e+00> : vector<1x512xf32>
    %213 = tpu.matmul %212, %210, %cst_280 {dimension_numbers = #tpu.dot_dimension_numbers<[1], [1], [0], [0], [0, 0, 1, 0], [], []>} : vector<1x32xf32>, vector<512x32xf32>, vector<1x512xf32> -> vector<1x512xf32>
    %214 = arith.addf %208, %213 : vector<1x512xf32>
    %c0_281 = arith.constant 0 : index
    %c0_282 = arith.constant 0 : index
    %c0_283 = arith.constant 0 : index
    %215 = vector.load %arg4[%c0_281, %c0_282, %c0_283] : memref<1x1x512xf32, #tpu.memory_space<vmem>>, vector<1x1x512xf32>
    %216 = vector.shape_cast %215 : vector<1x1x512xf32> to vector<1x512xf32>
    %217 = vector.shape_cast %214 : vector<1x512xf32> to vector<1x1x512xf32>
    tpu.vector_store %arg4[%c0_281, %c0_282, %c0_283], %217 {strides = array<i32>} : memref<1x1x512xf32, #tpu.memory_space<vmem>>, vector<1x1x512xf32>,
    return
  }
  func.func @transform_0(%arg0: i32) -> (i32, i32, i32, i32, i32) {
    %c0_i32 = arith.constant 0 : i32
    %c0_i32_0 = arith.constant 0 : i32
    %c0_i32_1 = arith.constant 0 : i32
    %c0_i32_2 = arith.constant 0 : i32
    %c0_i32_3 = arith.constant 0 : i32
    return %arg0, %c0_i32, %c0_i32_0, %c0_i32_1, %c0_i32_2 : i32, i32, i32, i32, i32
  }
  func.func @transform_1(%arg0: i32) -> (i32, i32) {
    %c0_i32 = arith.constant 0 : i32
    %c0_i32_0 = arith.constant 0 : i32
    %c0_i32_1 = arith.constant 0 : i32
    return %c0_i32, %c0_i32_0 : i32, i32
  }
  func.func @transform_2(%arg0: i32) -> (i32, i32, i32) {
    %c0_i32 = arith.constant 0 : i32
    %c0_i32_0 = arith.constant 0 : i32
    %c0_i32_1 = arith.constant 0 : i32
    %c0_i32_2 = arith.constant 0 : i32
    return %c0_i32, %c0_i32_0, %c0_i32_1 : i32, i32, i32
  }
  func.func @transform_3(%arg0: i32) -> (i32, i32, i32) {
    %c0_i32 = arith.constant 0 : i32
    %c0_i32_0 = arith.constant 0 : i32
    %c0_i32_1 = arith.constant 0 : i32
    return %arg0, %c0_i32, %c0_i32_0 : i32, i32, i32
  }
}

</mosaic_0001>

<bundles_post_ra>
// kernel: down_block_forward.1
= control target key start
LH: loop header
LB: loop body
LE: loop exit
PB: predicated region body
PF: predicated region fallthrough
CT: control target
= control target key end

     0   :  { %s15711_s12 = smov 0   ;;  %s22897_s0 = inlined_call_operand.vmem [shape: f32[2,9,9,9,8], index: 0, kind: input, shape index: {}]   ;;  %s22898_s1 = inlined_call_operand.vmem [shape: f32[64,32], index: 1, kind: input, shape index: {}]   ;;  %s22899_s2 = inlined_call_operand.vmem [shape: f32[27,1,32], index: 2, kind: input, shape index: {}]   ;;  %s22900_s3 = inlined_call_operand.vmem [shape: f32[2,1,512], index: 3, kind: output, shape index: {}]  }
   0x1 LB: > { %s13317_s13 = sadd.s32 4294967295, %s15681_s12   ;;  %p13321_p0 = scmp.ge.s32.totalorder %s15681_s12, 1  ;;  %s15681_s12 = sphi %s15711_s12, %s13_s12  }
   0x2   : > { %p137_p1 = scmp.lt.s32.totalorder %s15681_s12, 3 }
   0x4   : > { %p138_p2 = pnand %p13321_p0, %p137_p1 }
   0x6   : > { %141 = sbr.rel (%p138_p2) target bundleno = 3228 (0xc9c), region = 32 }
   0xb   : > { %p160_p3 = scmp.lt.s32.totalorder %s13317_s13, 1  ;;  %s15683_s18 = smov 8   ;;  %vm233_vm0 = vcmask 64512   ;;  %v3067_v26 = vld [vmem:[%s22898_s1 + $0x38] sm:$0xff]  ;;  %v3066_v29 = vld [vmem:[%s22898_s1 + $0x30] sm:$0xff]  ;;  %v3065_v31 = vld [vmem:[%s22898_s1 + $0x28] sm:$0xff] }
   0xc   : > { %s15684_s19 = smov 24   ;;  %s15685_s20 = smov 40   ;;  %3269 = vmatpush.msra.mxu0 %v3067_v26  ;;  %v3064_v32 = vld [vmem:[%s22898_s1 + $0x20] sm:$0xff]  ;;  %v3063_v33 = vld [vmem:[%s22898_s1 + $0x18] sm:$0xff]  ;;  %v3062_v35 = vld [vmem:[%s22898_s1 + $0x10] sm:$0xff]  ;;  %vm618_vm1 = vcmask 130112  }
   0xd   : > { %s23406_s13 = smov (!%p160_p3, %s13317_s13), 1  ;;  %s15686_s21 = smov 16   ;;  %v3061_v36 = vld [vmem:[%s22898_s1 + $0x8] sm:$0xff]  ;;  %v3060_v38 = vld [vmem:[%s22898_s1] sm:$0xff]  ;;  %vm1004_vm2 = vcmask 195712   ;;  %vm1389_vm3 = vcmask 261312  }
   0xe   : > { %s15636_s14 = smul.u32 1296, %s23406_s13  ;;  %s15687_s22 = smov 32   ;;  %3270 = vmatpush.msra.mxu0 %v3066_v29  ;;  %vm1775_vm4 = vcmask 326912   ;;  %vm2160_vm5 = vcmask 392512   ;;  %vm2546_vm6 = vcmask 458112   ;;  %vm2931_vm7 = vcmask 523712  }
   0xf   : > { %s15688_s23 = smov 48   ;;  %s15689_s24 = smov 56   ;;  %vm3068_vm8 = vcmask 523264   ;;  %vm3662_vm9 = vcmask 261120   ;;  %vm3740_vm12 = vcmask 253952  }
  0x10   : > { %s15725_s17 = scalar_lea.vmem %s22897_s0, %s15636_s14  ;;  %3271 = vmatpush.msra.mxu0 %v3065_v31  ;;  %s13323_s14 = sshll.u32 %s23406_s13, 2 }
  0x11   : > { %v298_v0 = vld [vmem:[%s15725_s17 + $0x1] sm:$0xff]  ;;  %v13388_v1 = vld [vmem:[%s15725_s17 + $0x11] sm:$0xff]  ;;  %s168_s25 = scalar_lea.vmem %s22900_s3, %s13323_s14 }
  0x12   : > { %426 = vrot.lane.b32.xlu0 %v298_v0, %s15683_s18  ;;  %1197 = vrot.lane.b32.xlu1 %v13388_v1, %s15684_s19  ;;  %v15732_v2 = vld [vmem:[%s15725_s17 + $0x91] sm:$0xff]  ;;  %v15744_v5 = vld [vmem:[%s15725_s17 + $0xa0] sm:$0xff] }
  0x13   : > { %1968 = vrot.lane.b32.xlu2 %v15732_v2, %s15685_s20  ;;  %v13324_v3 = vld [vmem:[%s15725_s17 + $0x10] sm:$0xff]  ;;  %v15749_v6 = vld [vmem:[%s15725_s17 + $0xa1] sm:$0xff]  ;;  %243 = vst.msk [vmem:[#allocation3 + $0x48] sm:$0xff] %vm233_vm0, %v15744_v5  ;;  %3272 = vmatpush.msra.mxu0 %v3064_v32 }
  0x14   : > { %v15738_v4 = vld [vmem:[%s15725_s17 + $0x90] sm:$0xff]  ;;  %v13325_v7 = vld [vmem:[%s15725_s17 + $0x20] sm:$0xff]  ;;  %235 = vst.msk [vmem:[#allocation3 + $0x8] sm:$0xff] %vm233_vm0, %v13324_v3 }
  0x15   : > { %v13389_v8 = vld [vmem:[%s15725_s17 + $0x21] sm:$0xff]  ;;  %v15763_v9 = vld [vmem:[%s15725_s17 + $0xb0] sm:$0xff]  ;;  %236 = vst.msk [vmem:[#allocation3 + $0x10] sm:$0xff] %vm233_vm0, %v13325_v7  ;;  %3273 = vmatpush.msra.mxu0 %v3063_v33 }
  0x16   : > { %v15766_v10 = vld [vmem:[%s15725_s17 + $0xb1] sm:$0xff]  ;;  %v15780_v13 = vld [vmem:[%s15725_s17 + $0xc0] sm:$0xff]  ;;  %242 = vst.msk [vmem:[#allocation3 + $0x40] sm:$0xff] %vm233_vm0, %v15738_v4 }
  0x17   : > { %v13326_v11 = vld [vmem:[%s15725_s17 + $0x30] sm:$0xff]  ;;  %v15787_v14 = vld [vmem:[%s15725_s17 + $0xc1] sm:$0xff]  ;;  %244 = vst.msk [vmem:[#allocation3 + $0x50] sm:$0xff] %vm233_vm0, %v15763_v9  ;;  %3274 = vmatpush.msra.mxu0 %v3062_v35 }
  0x18   : > { %v13390_v12 = vld [vmem:[%s15725_s17 + $0x31] sm:$0xff]  ;;  %v13327_v15 = vld [vmem:[%s15725_s17 + $0x40] sm:$0xff]  ;;  %237 = vst.msk [vmem:[#allocation3 + $0x18] sm:$0xff] %vm233_vm0, %v13326_v11 }
  0x19   : > { %v302_v16 = vld [vmem:[%s15725_s17 + $0x41] sm:$0xff]  ;;  %v15801_v17 = vld [vmem:[%s15725_s17 + $0xd0] sm:$0xff]  ;;  %238 = vst.msk [vmem:[#allocation3 + $0x20] sm:$0xff] %vm233_vm0, %v13327_v15  ;;  %3275 = vmatpush.msra.mxu0 %v3061_v36 }
  0x1a   : > { %812 = vrot.lane.b32.xlu0 %v13324_v3, %s15686_s21  ;;  %1583 = vrot.lane.b32.xlu1 %v15738_v4, %s15687_s22  ;;  %v15806_v18 = vld [vmem:[%s15725_s17 + $0xd1] sm:$0xff]  ;;  %v169_v21 = vld [vmem:[%s15725_s17] sm:$0xff]  ;;  %245 = vst.msk [vmem:[#allocation3 + $0x58] sm:$0xff] %vm233_vm0, %v15780_v13 }
  0x1b   : > { %2354 = vrot.lane.b32.xlu2 %v15744_v5, %s15688_s23  ;;  %v13328_v19 = vld [vmem:[%s15725_s17 + $0x50] sm:$0xff]  ;;  %234 = vst.msk [vmem:[#allocation3] sm:$0xff] %vm233_vm0, %v169_v21  ;;  %v15825_v22 = vld [vmem:[%s15725_s17 + $0xe0] sm:$0xff]  ;;  %3276 = vmatpush.msra.mxu0 %v3060_v38 }
  0x1c   : > { %v13392_v20 = vld [vmem:[%s15725_s17 + $0x51] sm:$0xff]  ;;  %v15828_v23 = vld [vmem:[%s15725_s17 + $0xe1] sm:$0xff]  ;;  %239 = vst.msk [vmem:[#allocation3 + $0x28] sm:$0xff] %vm233_vm0, %v13328_v19 }
  0x1d   : > { %v13329_v24 = vld [vmem:[%s15725_s17 + $0x60] sm:$0xff]  ;;  %v13330_v25 = vld [vmem:[%s15725_s17 + $0x70] sm:$0xff]  ;;  %246 = vst.msk [vmem:[#allocation3 + $0x60] sm:$0xff] %vm233_vm0, %v15801_v17 }
  0x1e   : > { %240 = vst.msk [vmem:[#allocation3 + $0x30] sm:$0xff] %vm233_vm0, %v13329_v24  ;;  %v13393_v28 = vld [vmem:[%s15725_s17 + $0x61] sm:$0xff]  ;;  %v15859_v30 = vld [vmem:[%s15725_s17 + $0xf0] sm:$0xff] }
  0x1f   : > { %241 = vst.msk [vmem:[#allocation3 + $0x38] sm:$0xff] %vm233_vm0, %v13330_v25  ;;  %v15889_v37 = vld [vmem:[%s15725_s17 + $0x100] sm:$0xff]  ;;  %v15895_v39 = vld [vmem:[%s15725_s17 + $0xf1] sm:$0xff] }
  0x20   : > { %247 = vst.msk [vmem:[#allocation3 + $0x68] sm:$0xff] %vm233_vm0, %v15825_v22  ;;  %v305_v41 = vld [vmem:[%s15725_s17 + $0x71] sm:$0xff]  ;;  %v15916_v48 = vld [vmem:[%s15725_s17 + $0x101] sm:$0xff] }
  0x21   : > { %248 = vst.msk [vmem:[#allocation3 + $0x70] sm:$0xff] %vm233_vm0, %v15859_v30  ;;  %v13331_v49 = vld [vmem:[%s15725_s17 + $0x80] sm:$0xff]  ;;  %v15940_v58 = vld [vmem:[%s15725_s17 + $0x110] sm:$0xff] }
  0x22   : > { %2739 = vrot.lane.b32.xlu0 %v15749_v6, %s15689_s24  ;;  %428 = vrot.lane.b32.xlu1 %v13388_v1, %s15683_s18  ;;  %249 = vst.msk [vmem:[#allocation3 + $0x78] sm:$0xff] %vm233_vm0, %v15889_v37  ;;  %v13395_v53 = vld [vmem:[%s15725_s17 + $0x81] sm:$0xff]  ;;  %v15943_v59 = vld [vmem:[%s15725_s17 + $0x111] sm:$0xff] }
  0x23   : > { %814 = vrot.lane.b32.xlu2 %v13325_v7, %s15686_s21  ;;  %v13460_v63 = vld [vmem:[%s15725_s17 + $0x120] sm:$0xff]  ;;  %v15974_v7 = vld [vmem:[%s15725_s17 + $0x131] sm:$0xff] }
  0x24   : > { %v15964_v4 = vld [vmem:[%s15725_s17 + $0x121] sm:$0xff]  ;;  %v16027_v32 = vld [vmem:[%s15725_s17 + $0x150] sm:$0xff] }
  0x25   : > { %v16030_v33 = vld [vmem:[%s15725_s17 + $0x151] sm:$0xff] }
  0x2a   : > { %1199 = vrot.lane.b32.xlu0 %v13389_v8, %s15684_s19  ;;  %1585 = vrot.lane.b32.xlu1 %v15744_v5, %s15687_s22 }
  0x2b   : > { %1970 = vrot.lane.b32.xlu2 %v15749_v6, %s15685_s20 }
  0x32   : > { %2356 = vrot.lane.b32.xlu0 %v15763_v9, %s15688_s23  ;;  %2741 = vrot.lane.b32.xlu1 %v15766_v10, %s15689_s24 }
  0x33   : > { %430 = vrot.lane.b32.xlu2 %v13389_v8, %s15683_s18 }
  0x3a   : > { %816 = vrot.lane.b32.xlu0 %v13326_v11, %s15686_s21  ;;  %1201 = vrot.lane.b32.xlu1 %v13390_v12, %s15684_s19 }
  0x3b   : > { %1587 = vrot.lane.b32.xlu2 %v15763_v9, %s15687_s22 }
  0x42   : > { %1972 = vrot.lane.b32.xlu0 %v15766_v10, %s15685_s20  ;;  %2358 = vrot.lane.b32.xlu1 %v15780_v13, %s15688_s23 }
  0x43   : > { %2743 = vrot.lane.b32.xlu2 %v15787_v14, %s15689_s24 }
  0x4a   : > { %432 = vrot.lane.b32.xlu0 %v13390_v12, %s15683_s18  ;;  %818 = vrot.lane.b32.xlu1 %v13327_v15, %s15686_s21 }
  0x4b   : > { %1203 = vrot.lane.b32.xlu2 %v302_v16, %s15684_s19 }
  0x52   : > { %1589 = vrot.lane.b32.xlu0 %v15780_v13, %s15687_s22  ;;  %1974 = vrot.lane.b32.xlu1 %v15787_v14, %s15685_s20 }
  0x53   : > { %2360 = vrot.lane.b32.xlu2 %v15801_v17, %s15688_s23 }
  0x5a   : > { %2745 = vrot.lane.b32.xlu0 %v15806_v18, %s15689_s24  ;;  %434 = vrot.lane.b32.xlu1 %v302_v16, %s15683_s18 }
  0x5b   : > { %820 = vrot.lane.b32.xlu2 %v13328_v19, %s15686_s21 }
  0x62   : > { %1205 = vrot.lane.b32.xlu0 %v13392_v20, %s15684_s19  ;;  %1591 = vrot.lane.b32.xlu1 %v15801_v17, %s15687_s22 }
  0x63   : > { %1976 = vrot.lane.b32.xlu2 %v15806_v18, %s15685_s20 }
  0x6a   : > { %2362 = vrot.lane.b32.xlu0 %v15825_v22, %s15688_s23  ;;  %2747 = vrot.lane.b32.xlu1 %v15828_v23, %s15689_s24 }
  0x6b   : > { %436 = vrot.lane.b32.xlu2 %v13392_v20, %s15683_s18 }
  0x6d   : > { %v1969_v27 = vpop.permute.xlu2 %1968 }
  0x72   : > { %822 = vrot.lane.b32.xlu0 %v13329_v24, %s15686_s21  ;;  %1207 = vrot.lane.b32.xlu1 %v13393_v28, %s15684_s19 }
  0x73   : > { %1593 = vrot.lane.b32.xlu2 %v15825_v22, %s15687_s22 }
  0x75   : > { %v2355_v34 = vpop.permute.xlu2 %2354 }
  0x7a   : > { %1978 = vrot.lane.b32.xlu0 %v15828_v23, %s15685_s20  ;;  %2364 = vrot.lane.b32.xlu1 %v15859_v30, %s15688_s23 }
  0x7b   : > { %2749 = vrot.lane.b32.xlu2 %v15895_v39, %s15689_s24 }
  0x7d   : > { %v815_v40 = vpop.permute.xlu2 %814 }
  0x82   : > { %438 = vrot.lane.b32.xlu0 %v13393_v28, %s15683_s18  ;;  %824 = vrot.lane.b32.xlu1 %v13330_v25, %s15686_s21  ;;  %v16004_v25 = vld [vmem:[%s15725_s17 + $0x141] sm:$0xff] }
  0x83   : > { %1209 = vrot.lane.b32.xlu2 %v305_v41, %s15684_s19 }
  0x84   : > { %v427_v42 = vpop.permute.xlu0 %426  ;;  %v1198_v43 = vpop.permute.xlu1 %1197 }
  0x85   : > { %619 = vst.msk [vmem:[#allocation3] sm:$0xff] %vm618_vm1, %v427_v42  ;;  %v1971_v44 = vpop.permute.xlu2 %1970  ;;  %v16051_v42 = vld [vmem:[%s15725_s17 + $0x160] sm:$0xff] }
  0x8a   : > { %1595 = vrot.lane.b32.xlu0 %v15859_v30, %s15687_s22  ;;  %1980 = vrot.lane.b32.xlu1 %v15895_v39, %s15685_s20 }
  0x8b   : > { %2366 = vrot.lane.b32.xlu2 %v15889_v37, %s15688_s23 }
  0x8c   : > { %v813_v45 = vpop.permute.xlu0 %812  ;;  %v1584_v46 = vpop.permute.xlu1 %1583 }
  0x8d   : > { %1005 = vst.msk [vmem:[#allocation3] sm:$0xff] %vm1004_vm2, %v813_v45  ;;  %v431_v47 = vpop.permute.xlu2 %430 }
  0x8e   : > { %1390 = vst.msk [vmem:[#allocation3] sm:$0xff] %vm1389_vm3, %v1198_v43 }
  0x8f   : > { %1776 = vst.msk [vmem:[#allocation3] sm:$0xff] %vm1775_vm4, %v1584_v46 }
  0x90   : > { %2161 = vst.msk [vmem:[#allocation3] sm:$0xff] %vm2160_vm5, %v1969_v27 }
  0x91   : > { %2547 = vst.msk [vmem:[#allocation3] sm:$0xff] %vm2546_vm6, %v2355_v34 }
  0x92   : > { %2751 = vrot.lane.b32.xlu0 %v15916_v48, %s15689_s24  ;;  %440 = vrot.lane.b32.xlu1 %v305_v41, %s15683_s18  ;;  %621 = vst.msk [vmem:[#allocation3 + $0x10] sm:$0xff] %vm618_vm1, %v431_v47 }
  0x93   : > { %826 = vrot.lane.b32.xlu2 %v13331_v49, %s15686_s21 }
  0x94   : > { %v2740_v50 = vpop.permute.xlu0 %2739  ;;  %v429_v51 = vpop.permute.xlu1 %428 }
  0x95   : > { %2932 = vst.msk [vmem:[#allocation3] sm:$0xff] %vm2931_vm7, %v2740_v50  ;;  %v1588_v52 = vpop.permute.xlu2 %1587 }
  0x96   : > { %620 = vst.msk [vmem:[#allocation3 + $0x8] sm:$0xff] %vm618_vm1, %v429_v51 }
  0x97   : > { %1006 = vst.msk [vmem:[#allocation3 + $0x8] sm:$0xff] %vm1004_vm2, %v815_v40 }
  0x9a   : > { %1211 = vrot.lane.b32.xlu0 %v13395_v53, %s15684_s19  ;;  %1597 = vrot.lane.b32.xlu1 %v15889_v37, %s15687_s22  ;;  %v16088_v53 = vld [vmem:[%s15725_s17 + $0x171] sm:$0xff] }
  0x9b   : > { %1982 = vrot.lane.b32.xlu2 %v15916_v48, %s15685_s20 }
  0x9c   : > { %v1200_v54 = vpop.permute.xlu0 %1199  ;;  %v1586_v55 = vpop.permute.xlu1 %1585  ;;  %v2996_v56 = vld [vmem:[#allocation3] sm:$0xff] }
  0x9d   : > { %1391 = vst.msk [vmem:[#allocation3 + $0x8] sm:$0xff] %vm1389_vm3, %v1200_v54  ;;  %13708 = vmatmul.msk.f32.vlgmr.msra.gmra.mxu0 %vm3068_vm8, %v2996_v56  ;;  %v2744_v57 = vpop.permute.xlu2 %2743  ;;  %v15690_v54 = vmov 0.0  }
  0x9e   : > { %1777 = vst.msk [vmem:[#allocation3 + $0x8] sm:$0xff] %vm1775_vm4, %v1586_v55 }
  0x9f   : > { %2162 = vst.msk [vmem:[#allocation3 + $0x8] sm:$0xff] %vm2160_vm5, %v1971_v44 }
  0xa0   : > { %3723 = vst.msk [vmem:[#allocation2 + $0x130] sm:$0xff] %vm3662_vm9, %v15690_v54 }
  0xa1   : > { %3663 = vst.msk [vmem:[#allocation2] sm:$0xff] %vm3662_vm9, %v15690_v54 }
  0xa2   : > { %2368 = vrot.lane.b32.xlu0 %v15940_v58, %s15688_s23  ;;  %2753 = vrot.lane.b32.xlu1 %v15943_v59, %s15689_s24  ;;  %3666 = vst.msk [vmem:[#allocation2 + $0x10] sm:$0xff] %vm3662_vm9, %v15690_v54 }
  0xa3   : > { %442 = vrot.lane.b32.xlu2 %v15732_v2, %s15683_s18  ;;  %3668 = vst.msk [vmem:[#allocation2 + $0x20] sm:$0xff] %vm3662_vm9, %v15690_v54 }
  0xa4   : > { %v2357_v60 = vpop.permute.xlu0 %2356  ;;  %v2742_v61 = vpop.permute.xlu1 %2741  ;;  %3670 = vst.msk [vmem:[#allocation2 + $0x30] sm:$0xff] %vm3662_vm9, %v15690_v54 }
  0xa5   : > { %2548 = vst.msk [vmem:[#allocation3 + $0x8] sm:$0xff] %vm2546_vm6, %v2357_v60  ;;  %v1204_v62 = vpop.permute.xlu2 %1203 }
  0xa6   : > { %2933 = vst.msk [vmem:[#allocation3 + $0x8] sm:$0xff] %vm2931_vm7, %v2742_v61 }
  0xa7   : > { %3672 = vst.msk [vmem:[#allocation2 + $0x40] sm:$0xff] %vm3662_vm9, %v15690_v54 }
  0xa8   : > { %3674 = vst.msk [vmem:[#allocation2 + $0x50] sm:$0xff] %vm3662_vm9, %v15690_v54 }
  0xa9   : > { %3676 = vst.msk [vmem:[#allocation2 + $0x60] sm:$0xff] %vm3662_vm9, %v15690_v54 }
  0xaa   : > { %828 = vrot.lane.b32.xlu0 %v15744_v5, %s15686_s21  ;;  %1213 = vrot.lane.b32.xlu1 %v15749_v6, %s15684_s19  ;;  %v15967_v5 = vld [vmem:[%s15725_s17 + $0x130] sm:$0xff]  ;;  %3678 = vst.msk [vmem:[#allocation2 + $0x70] sm:$0xff] %vm3662_vm9, %v15690_v54 }
  0xab   : > { %1599 = vrot.lane.b32.xlu2 %v13460_v63, %s15687_s22  ;;  %v16132_v63 = vld [vmem:[%s15725_s17 + $0x181] sm:$0xff]  ;;  %3680 = vst.msk [vmem:[#allocation2 + $0x80] sm:$0xff] %vm3662_vm9, %v15690_v54 }
  0xac   : > { %v817_v0 = vpop.permute.xlu0 %816  ;;  %v1202_v1 = vpop.permute.xlu1 %1201  ;;  %3682 = vst.msk [vmem:[#allocation2 + $0x90] sm:$0xff] %vm3662_vm9, %v15690_v54 }
  0xad   : > { %1007 = vst.msk [vmem:[#allocation3 + $0x10] sm:$0xff] %vm1004_vm2, %v817_v0  ;;  %v2997_v2 = vld [vmem:[#allocation3 + $0x8] sm:$0xff]  ;;  %v2361_v3 = vpop.permute.xlu2 %2360 }
  0xae   : > { %1392 = vst.msk [vmem:[#allocation3 + $0x10] sm:$0xff] %vm1389_vm3, %v1202_v1  ;;  %13709 = vmatmul.msk.f32.gmra.mxu0 %vm3068_vm8, %v2997_v2 }
  0xaf   : > { %1778 = vst.msk [vmem:[#allocation3 + $0x10] sm:$0xff] %vm1775_vm4, %v1588_v52 }
  0xb0   : > { %3685 = vst.msk [vmem:[#allocation2 + $0x5a0] sm:$0xff] %vm3662_vm9, %v15690_v54 }
  0xb1   : > { %3687 = vst.msk [vmem:[#allocation2 + $0x5b0] sm:$0xff] %vm3662_vm9, %v15690_v54 }
  0xb2   : > { %1984 = vrot.lane.b32.xlu0 %v15964_v4, %s15685_s20  ;;  %2370 = vrot.lane.b32.xlu1 %v15967_v5, %s15688_s23  ;;  %3689 = vst.msk [vmem:[#allocation2 + $0x5c0] sm:$0xff] %vm3662_vm9, %v15690_v54 }
  0xb3   : > { %2755 = vrot.lane.b32.xlu2 %v15974_v7, %s15689_s24  ;;  %3691 = vst.msk [vmem:[#allocation2 + $0x5d0] sm:$0xff] %vm3662_vm9, %v15690_v54 }
  0xb4   : > { %v1973_v8 = vpop.permute.xlu0 %1972  ;;  %v2359_v11 = vpop.permute.xlu1 %2358  ;;  %3693 = vst.msk [vmem:[#allocation2 + $0x5e0] sm:$0xff] %vm3662_vm9, %v15690_v54 }
  0xb5   : > { %2163 = vst.msk [vmem:[#allocation3 + $0x10] sm:$0xff] %vm2160_vm5, %v1973_v8  ;;  %v821_v12 = vpop.permute.xlu2 %820 }
  0xb6   : > { %2549 = vst.msk [vmem:[#allocation3 + $0x10] sm:$0xff] %vm2546_vm6, %v2359_v11 }
  0xb7   : > { %2934 = vst.msk [vmem:[#allocation3 + $0x10] sm:$0xff] %vm2931_vm7, %v2744_v57 }
  0xb8   : > { %3695 = vst.msk [vmem:[#allocation2 + $0x5f0] sm:$0xff] %vm3662_vm9, %v15690_v54 }
  0xb9   : > { %3697 = vst.msk [vmem:[#allocation2 + $0x600] sm:$0xff] %vm3662_vm9, %v15690_v54 }
  0xba   : > { %444 = vrot.lane.b32.xlu0 %v15749_v6, %s15683_s18  ;;  %830 = vrot.lane.b32.xlu1 %v15763_v9, %s15686_s21  ;;  %v15996_v6 = vld [vmem:[%s15725_s17 + $0x140] sm:$0xff]  ;;  %3699 = vst.msk [vmem:[#allocation2 + $0x610] sm:$0xff] %vm3662_vm9, %v15690_v54 }
  0xbb   : > { %1215 = vrot.lane.b32.xlu2 %v15766_v10, %s15684_s19  ;;  %3701 = vst.msk [vmem:[#allocation2 + $0x620] sm:$0xff] %vm3662_vm9, %v15690_v54 }
  0xbc   : > { %v433_v15 = vpop.permute.xlu0 %432  ;;  %v819_v16 = vpop.permute.xlu1 %818  ;;  %3703 = vst.msk [vmem:[#allocation2 + $0x630] sm:$0xff] %vm3662_vm9, %v15690_v54 }
  0xbd   : > { %622 = vst.msk [vmem:[#allocation3 + $0x18] sm:$0xff] %vm618_vm1, %v433_v15  ;;  %v1977_v20 = vpop.permute.xlu2 %1976 }
  0xbe   : > { %1008 = vst.msk [vmem:[#allocation3 + $0x18] sm:$0xff] %vm1004_vm2, %v819_v16  ;;  %v2998_v19 = vld [vmem:[#allocation3 + $0x10] sm:$0xff] }
  0xbf   : > { %1393 = vst.msk [vmem:[#allocation3 + $0x18] sm:$0xff] %vm1389_vm3, %v1204_v62  ;;  %13710 = vmatmul.msk.f32.gmra.mxu0 %vm3068_vm8, %v2998_v19  ;;  %v16129_v62 = vld [vmem:[%s15725_s17 + $0x180] sm:$0xff]  ;;  %v13594_v16 = vld [vmem:[%s15725_s17 + $0x190] sm:$0xff] }
  0xc0   : > { %3706 = vst.msk [vmem:[#allocation2 + $0xa0] sm:$0xff] %vm3662_vm9, %v15690_v54  ;;  %v16184_v19 = vld [vmem:[%s15725_s17 + $0x191] sm:$0xff] }
  0xc1   : > { %3708 = vst.msk [vmem:[#allocation2 + $0x140] sm:$0xff] %vm3662_vm9, %v15690_v54 }
  0xc2   : > { %1601 = vrot.lane.b32.xlu0 %v15967_v5, %s15687_s22  ;;  %1986 = vrot.lane.b32.xlu1 %v15974_v7, %s15685_s20  ;;  %3710 = vst.msk [vmem:[#allocation2 + $0x1e0] sm:$0xff] %vm3662_vm9, %v15690_v54 }
  0xc3   : > { %2372 = vrot.lane.b32.xlu2 %v15996_v6, %s15688_s23  ;;  %3712 = vst.msk [vmem:[#allocation2 + $0x280] sm:$0xff] %vm3662_vm9, %v15690_v54 }
  0xc4   : > { %v1590_v9 = vpop.permute.xlu0 %1589  ;;  %v1975_v21 = vpop.permute.xlu1 %1974  ;;  %3714 = vst.msk [vmem:[#allocation2 + $0x320] sm:$0xff] %vm3662_vm9, %v15690_v54 }
  0xc5   : > { %1779 = vst.msk [vmem:[#allocation3 + $0x18] sm:$0xff] %vm1775_vm4, %v1590_v9  ;;  %v437_v24 = vpop.permute.xlu2 %436 }
  0xc6   : > { %2164 = vst.msk [vmem:[#allocation3 + $0x18] sm:$0xff] %vm2160_vm5, %v1975_v21 }
  0xc7   : > { %2550 = vst.msk [vmem:[#allocation3 + $0x18] sm:$0xff] %vm2546_vm6, %v2361_v3 }
  0xc8   : > { %624 = vst.msk [vmem:[#allocation3 + $0x28] sm:$0xff] %vm618_vm1, %v437_v24 }
  0xc9   : > { %3716 = vst.msk [vmem:[#allocation2 + $0x3c0] sm:$0xff] %vm3662_vm9, %v15690_v54 }
  0xca   : > { %2757 = vrot.lane.b32.xlu0 %v16004_v25, %s15689_s24  ;;  %446 = vrot.lane.b32.xlu1 %v15766_v10, %s15683_s18  ;;  %3718 = vst.msk [vmem:[#allocation2 + $0x460] sm:$0xff] %vm3662_vm9, %v15690_v54 }
  0xcb   : > { %832 = vrot.lane.b32.xlu2 %v15780_v13, %s15686_s21  ;;  %3720 = vst.msk [vmem:[#allocation2 + $0x500] sm:$0xff] %vm3662_vm9, %v15690_v54 }
  0xcc   : > { %v2746_v26 = vpop.permute.xlu0 %2745  ;;  %v435_v27 = vpop.permute.xlu1 %434  ;;  %3725 = vst.msk [vmem:[#allocation2 + $0x1d0] sm:$0xff] %vm3662_vm9, %v15690_v54 }
  0xcd   : > { %2935 = vst.msk [vmem:[#allocation3 + $0x18] sm:$0xff] %vm2931_vm7, %v2746_v26  ;;  %v1594_v28 = vpop.permute.xlu2 %1593 }
  0xce   : > { %623 = vst.msk [vmem:[#allocation3 + $0x20] sm:$0xff] %vm618_vm1, %v435_v27 }
  0xcf   : > { %1009 = vst.msk [vmem:[#allocation3 + $0x20] sm:$0xff] %vm1004_vm2, %v821_v12 }
  0xd0   : > { %3727 = vst.msk [vmem:[#allocation2 + $0x270] sm:$0xff] %vm3662_vm9, %v15690_v54 }
  0xd1   : > { %3729 = vst.msk [vmem:[#allocation2 + $0x310] sm:$0xff] %vm3662_vm9, %v15690_v54 }
  0xd2   : > { %1217 = vrot.lane.b32.xlu0 %v15787_v14, %s15684_s19  ;;  %1603 = vrot.lane.b32.xlu1 %v15996_v6, %s15687_s22  ;;  %3731 = vst.msk [vmem:[#allocation2 + $0x3b0] sm:$0xff] %vm3662_vm9, %v15690_v54 }
  0xd3   : > { %1988 = vrot.lane.b32.xlu2 %v16004_v25, %s15685_s20  ;;  %3733 = vst.msk [vmem:[#allocation2 + $0x450] sm:$0xff] %vm3662_vm9, %v15690_v54 }
  0xd4   : > { %v1206_v10 = vpop.permute.xlu0 %1205  ;;  %v1592_v29 = vpop.permute.xlu1 %1591  ;;  %v2999_v31 = vld [vmem:[#allocation3 + $0x18] sm:$0xff]  ;;  %3735 = vst.msk [vmem:[#allocation2 + $0x4f0] sm:$0xff] %vm3662_vm9, %v15690_v54 }
  0xd5   : > { %1394 = vst.msk [vmem:[#allocation3 + $0x20] sm:$0xff] %vm1389_vm3, %v1206_v10  ;;  %13711 = vmatmul.msk.f32.gmra.mxu0 %vm3068_vm8, %v2999_v31  ;;  %v2750_v13 = vpop.permute.xlu2 %2749 }
  0xd6   : > { %1780 = vst.msk [vmem:[#allocation3 + $0x20] sm:$0xff] %vm1775_vm4, %v1592_v29  ;;  %v16217_v29 = vld [vmem:[%s15725_s17 + $0x1a0] sm:$0xff] }
  0xd7   : > { %2165 = vst.msk [vmem:[#allocation3 + $0x20] sm:$0xff] %vm2160_vm5, %v1977_v20 }
  0xd8   : > { %3737 = vst.msk [vmem:[#allocation2 + $0x590] sm:$0xff] %vm3662_vm9, %v15690_v54 }
  0xd9   : > { %3748 = vst.msk [vmem:[#allocation2 + $0x120] sm:$0x1] %vm3740_vm12, %v15690_v54 }
  0xda   : > { %2374 = vrot.lane.b32.xlu0 %v16027_v32, %s15688_s23  ;;  %2759 = vrot.lane.b32.xlu1 %v16030_v33, %s15689_s24  ;;  %3741 = vst.msk [vmem:[#allocation2 + $0xb0] sm:$0x1] %vm3740_vm12, %v15690_v54 }
  0xdb   : > { %448 = vrot.lane.b32.xlu2 %v15787_v14, %s15683_s18  ;;  %3742 = vst.msk [vmem:[#allocation2 + $0xc0] sm:$0x1] %vm3740_vm12, %v15690_v54 }
  0xdc   : > { %v2363_v34 = vpop.permute.xlu0 %2362  ;;  %v2748_v35 = vpop.permute.xlu1 %2747  ;;  %3743 = vst.msk [vmem:[#allocation2 + $0xd0] sm:$0x1] %vm3740_vm12, %v15690_v54 }
  0xdd   : > { %2551 = vst.msk [vmem:[#allocation3 + $0x20] sm:$0xff] %vm2546_vm6, %v2363_v34  ;;  %v1210_v36 = vpop.permute.xlu2 %1209  ;;  %v16236_v34 = vld [vmem:[%s15725_s17 + $0x1a1] sm:$0xff] }
  0xde   : > { %2936 = vst.msk [vmem:[#allocation3 + $0x20] sm:$0xff] %vm2931_vm7, %v2748_v35 }
  0xdf   : > { %3744 = vst.msk [vmem:[#allocation2 + $0xe0] sm:$0x1] %vm3740_vm12, %v15690_v54 }
  0xe0   : > { %3745 = vst.msk [vmem:[#allocation2 + $0xf0] sm:$0x1] %vm3740_vm12, %v15690_v54 }
  0xe1   : > { %3746 = vst.msk [vmem:[#allocation2 + $0x100] sm:$0x1] %vm3740_vm12, %v15690_v54 }
  0xe2   : > { %834 = vrot.lane.b32.xlu0 %v15801_v17, %s15686_s21  ;;  %1219 = vrot.lane.b32.xlu1 %v15806_v18, %s15684_s19  ;;  %v16058_v17 = vld [vmem:[%s15725_s17 + $0x161] sm:$0xff]  ;;  %3747 = vst.msk [vmem:[#allocation2 + $0x110] sm:$0x1] %vm3740_vm12, %v15690_v54 }
  0xe3   : > { %1605 = vrot.lane.b32.xlu2 %v16027_v32, %s15687_s22  ;;  %3749 = vst.msk [vmem:[#allocation2 + $0x150] sm:$0x1] %vm3740_vm12, %v15690_v54 }
  0xe4   : > { %v823_v38 = vpop.permute.xlu0 %822  ;;  %v1208_v40 = vpop.permute.xlu1 %1207  ;;  %3750 = vst.msk [vmem:[#allocation2 + $0x160] sm:$0x1] %vm3740_vm12, %v15690_v54 }
  0xe5   : > { %1010 = vst.msk [vmem:[#allocation3 + $0x28] sm:$0xff] %vm1004_vm2, %v823_v38  ;;  %v3000_v14 = vld [vmem:[#allocation3 + $0x20] sm:$0xff]  ;;  %v2367_v41 = vpop.permute.xlu2 %2366 }
  0xe6   : > { %1395 = vst.msk [vmem:[#allocation3 + $0x28] sm:$0xff] %vm1389_vm3, %v1208_v40  ;;  %13712 = vmatmul.msk.f32.gmra.mxu0 %vm3068_vm8, %v3000_v14  ;;  %v13468_v14 = vld [vmem:[%s15725_s17 + $0x1b0] sm:$0xff] }
  0xe7   : > { %1781 = vst.msk [vmem:[#allocation3 + $0x28] sm:$0xff] %vm1775_vm4, %v1594_v28 }
  0xe8   : > { %3751 = vst.msk [vmem:[#allocation2 + $0x170] sm:$0x1] %vm3740_vm12, %v15690_v54 }
  0xe9   : > { %3752 = vst.msk [vmem:[#allocation2 + $0x180] sm:$0x1] %vm3740_vm12, %v15690_v54 }
  0xea   : > { %1990 = vrot.lane.b32.xlu0 %v16030_v33, %s15685_s20  ;;  %2376 = vrot.lane.b32.xlu1 %v16051_v42, %s15688_s23  ;;  %3753 = vst.msk [vmem:[#allocation2 + $0x190] sm:$0x1] %vm3740_vm12, %v15690_v54 }
  0xeb   : > { %2761 = vrot.lane.b32.xlu2 %v16058_v17, %s15689_s24  ;;  %3754 = vst.msk [vmem:[#allocation2 + $0x1a0] sm:$0x1] %vm3740_vm12, %v15690_v54 }
  0xec   : > { %v1979_v43 = vpop.permute.xlu0 %1978  ;;  %v2365_v44 = vpop.permute.xlu1 %2364  ;;  %3755 = vst.msk [vmem:[#allocation2 + $0x1b0] sm:$0x1] %vm3740_vm12, %v15690_v54 }
  0xed   : > { %2166 = vst.msk [vmem:[#allocation3 + $0x28] sm:$0xff] %vm2160_vm5, %v1979_v43  ;;  %v827_v45 = vpop.permute.xlu2 %826 }
  0xee   : > { %2552 = vst.msk [vmem:[#allocation3 + $0x28] sm:$0xff] %vm2546_vm6, %v2365_v44 }
  0xef   : > { %2937 = vst.msk [vmem:[#allocation3 + $0x28] sm:$0xff] %vm2931_vm7, %v2750_v13 }
  0xf0   : > { %3756 = vst.msk [vmem:[#allocation2 + $0x1c0] sm:$0x1] %vm3740_vm12, %v15690_v54 }
  0xf1   : > { %3757 = vst.msk [vmem:[#allocation2 + $0x1f0] sm:$0x1] %vm3740_vm12, %v15690_v54 }
  0xf2   : > { %450 = vrot.lane.b32.xlu0 %v15806_v18, %s15683_s18  ;;  %836 = vrot.lane.b32.xlu1 %v15825_v22, %s15686_s21  ;;  %v16080_v18 = vld [vmem:[%s15725_s17 + $0x170] sm:$0xff]  ;;  %3758 = vst.msk [vmem:[#allocation2 + $0x200] sm:$0x1] %vm3740_vm12, %v15690_v54 }
  0xf3   : > { %1221 = vrot.lane.b32.xlu2 %v15828_v23, %s15684_s19  ;;  %3759 = vst.msk [vmem:[#allocation2 + $0x210] sm:$0x1] %vm3740_vm12, %v15690_v54 }
  0xf4   : > { %v439_v46 = vpop.permute.xlu0 %438  ;;  %v825_v47 = vpop.permute.xlu1 %824  ;;  %3760 = vst.msk [vmem:[#allocation2 + $0x220] sm:$0x1] %vm3740_vm12, %v15690_v54 }
  0xf5   : > { %625 = vst.msk [vmem:[#allocation3 + $0x30] sm:$0xff] %vm618_vm1, %v439_v46  ;;  %v1983_v50 = vpop.permute.xlu2 %1982 }
  0xf6   : > { %1011 = vst.msk [vmem:[#allocation3 + $0x30] sm:$0xff] %vm1004_vm2, %v825_v47  ;;  %v3001_v49 = vld [vmem:[#allocation3 + $0x28] sm:$0xff]  ;;  %v16279_v47 = vld [vmem:[%s15725_s17 + $0x1c0] sm:$0xff] }
  0xf7   : > { %1396 = vst.msk [vmem:[#allocation3 + $0x30] sm:$0xff] %vm1389_vm3, %v1210_v36  ;;  %13713 = vmatmul.msk.f32.gmra.mxu0 %vm3068_vm8, %v3001_v49  ;;  %v13660_v49 = vld [vmem:[%s15725_s17 + $0x1c1] sm:$0xff] }
  0xf8   : > { %3761 = vst.msk [vmem:[#allocation2 + $0x230] sm:$0x1] %vm3740_vm12, %v15690_v54 }
  0xf9   : > { %3762 = vst.msk [vmem:[#allocation2 + $0x240] sm:$0x1] %vm3740_vm12, %v15690_v54 }
  0xfa   : > { %1607 = vrot.lane.b32.xlu0 %v16051_v42, %s15687_s22  ;;  %1992 = vrot.lane.b32.xlu1 %v16058_v17, %s15685_s20  ;;  %3763 = vst.msk [vmem:[#allocation2 + $0x250] sm:$0x1] %vm3740_vm12, %v15690_v54 }
  0xfb   : > { %2378 = vrot.lane.b32.xlu2 %v16080_v18, %s15688_s23  ;;  %3764 = vst.msk [vmem:[#allocation2 + $0x260] sm:$0x1] %vm3740_vm12, %v15690_v54 }
  0xfc   : > { %v1596_v22 = vpop.permute.xlu0 %1595  ;;  %v1981_v51 = vpop.permute.xlu1 %1980  ;;  %3765 = vst.msk [vmem:[#allocation2 + $0x290] sm:$0x1] %vm3740_vm12, %v15690_v54 }
  0xfd   : > { %1782 = vst.msk [vmem:[#allocation3 + $0x30] sm:$0xff] %vm1775_vm4, %v1596_v22  ;;  %v443_v52 = vpop.permute.xlu2 %442 }
  0xfe   : > { %2167 = vst.msk [vmem:[#allocation3 + $0x30] sm:$0xff] %vm2160_vm5, %v1981_v51 }
  0xff   : > { %2553 = vst.msk [vmem:[#allocation3 + $0x30] sm:$0xff] %vm2546_vm6, %v2367_v41 }
 0x100   : > { %627 = vst.msk [vmem:[#allocation3 + $0x40] sm:$0xff] %vm618_vm1, %v443_v52 }
 0x101   : > { %3766 = vst.msk [vmem:[#allocation2 + $0x2a0] sm:$0x1] %vm3740_vm12, %v15690_v54 }
 0x102   : > { %2763 = vrot.lane.b32.xlu0 %v16088_v53, %s15689_s24  ;;  %452 = vrot.lane.b32.xlu1 %v15828_v23, %s15683_s18  ;;  %3767 = vst.msk [vmem:[#allocation2 + $0x2b0] sm:$0x1] %vm3740_vm12, %v15690_v54 }
 0x103   : > { %838 = vrot.lane.b32.xlu2 %v15859_v30, %s15686_s21  ;;  %3768 = vst.msk [vmem:[#allocation2 + $0x2c0] sm:$0x1] %vm3740_vm12, %v15690_v54 }
 0x104   : > { %v2752_v55 = vpop.permute.xlu0 %2751  ;;  %v441_v56 = vpop.permute.xlu1 %440  ;;  %3769 = vst.msk [vmem:[#allocation2 + $0x2d0] sm:$0x1] %vm3740_vm12, %v15690_v54 }
 0x105   : > { %2938 = vst.msk [vmem:[#allocation3 + $0x30] sm:$0xff] %vm2931_vm7, %v2752_v55  ;;  %v1600_v57 = vpop.permute.xlu2 %1599 }
 0x106   : > { %626 = vst.msk [vmem:[#allocation3 + $0x38] sm:$0xff] %vm618_vm1, %v441_v56 }
 0x107   : > { %1012 = vst.msk [vmem:[#allocation3 + $0x38] sm:$0xff] %vm1004_vm2, %v827_v45 }
 0x108   : > { %3770 = vst.msk [vmem:[#allocation2 + $0x2e0] sm:$0x1] %vm3740_vm12, %v15690_v54 }
 0x109   : > { %3771 = vst.msk [vmem:[#allocation2 + $0x2f0] sm:$0x1] %vm3740_vm12, %v15690_v54 }
 0x10a   : > { %1223 = vrot.lane.b32.xlu0 %v15895_v39, %s15684_s19  ;;  %1609 = vrot.lane.b32.xlu1 %v16080_v18, %s15687_s22  ;;  %3772 = vst.msk [vmem:[#allocation2 + $0x300] sm:$0x1] %vm3740_vm12, %v15690_v54 }
 0x10b   : > { %1994 = vrot.lane.b32.xlu2 %v16088_v53, %s15685_s20  ;;  %3773 = vst.msk [vmem:[#allocation2 + $0x330] sm:$0x1] %vm3740_vm12, %v15690_v54 }
 0x10c   : > { %v1212_v23 = vpop.permute.xlu0 %1211  ;;  %v1598_v30 = vpop.permute.xlu1 %1597  ;;  %v3002_v60 = vld [vmem:[#allocation3 + $0x30] sm:$0xff]  ;;  %3774 = vst.msk [vmem:[#allocation2 + $0x340] sm:$0x1] %vm3740_vm12, %v15690_v54 }
 0x10d   : > { %1397 = vst.msk [vmem:[#allocation3 + $0x38] sm:$0xff] %vm1389_vm3, %v1212_v23  ;;  %13714 = vmatmul.msk.f32.gmra.mxu0 %vm3068_vm8, %v3002_v60  ;;  %v2756_v61 = vpop.permute.xlu2 %2755  ;;  %v16330_v60 = vld [vmem:[%s15725_s17 + $0x1d1] sm:$0xff] }
 0x10e   : > { %1783 = vst.msk [vmem:[#allocation3 + $0x38] sm:$0xff] %vm1775_vm4, %v1598_v30  ;;  %v13597_v30 = vld [vmem:[%s15725_s17 + $0x1d0] sm:$0xff] }
 0x10f   : > { %2168 = vst.msk [vmem:[#allocation3 + $0x38] sm:$0xff] %vm2160_vm5, %v1983_v50 }
 0x110   : > { %3775 = vst.msk [vmem:[#allocation2 + $0x350] sm:$0x1] %vm3740_vm12, %v15690_v54 }
 0x111   : > { %3776 = vst.msk [vmem:[#allocation2 + $0x360] sm:$0x1] %vm3740_vm12, %v15690_v54 }
 0x112   : > { %2380 = vrot.lane.b32.xlu0 %v16129_v62, %s15688_s23  ;;  %2765 = vrot.lane.b32.xlu1 %v16132_v63, %s15689_s24  ;;  %3777 = vst.msk [vmem:[#allocation2 + $0x370] sm:$0x1] %vm3740_vm12, %v15690_v54 }
 0x113   : > { %454 = vrot.lane.b32.xlu2 %v15895_v39, %s15683_s18  ;;  %3778 = vst.msk [vmem:[#allocation2 + $0x380] sm:$0x1] %vm3740_vm12, %v15690_v54 }
 0x114   : > { %v2369_v0 = vpop.permute.xlu0 %2368  ;;  %v2754_v1 = vpop.permute.xlu1 %2753  ;;  %3779 = vst.msk [vmem:[#allocation2 + $0x390] sm:$0x1] %vm3740_vm12, %v15690_v54 }
 0x115   : > { %2554 = vst.msk [vmem:[#allocation3 + $0x38] sm:$0xff] %vm2546_vm6, %v2369_v0  ;;  %v1216_v2 = vpop.permute.xlu2 %1215 }
 0x116   : > { %2939 = vst.msk [vmem:[#allocation3 + $0x38] sm:$0xff] %vm2931_vm7, %v2754_v1 }
 0x117   : > { %3780 = vst.msk [vmem:[#allocation2 + $0x3a0] sm:$0x1] %vm3740_vm12, %v15690_v54 }
 0x118   : > { %3781 = vst.msk [vmem:[#allocation2 + $0x3d0] sm:$0x1] %vm3740_vm12, %v15690_v54 }
 0x119   : > { %3782 = vst.msk [vmem:[#allocation2 + $0x3e0] sm:$0x1] %vm3740_vm12, %v15690_v54 }
 0x11a   : > { %840 = vrot.lane.b32.xlu0 %v15889_v37, %s15686_s21  ;;  %v3278_v39 = vpop.f32.mrf.mxu0  ;;  %1225 = vrot.lane.b32.xlu1 %v15916_v48, %s15684_s19  ;;  %3783 = vst.msk [vmem:[#allocation2 + $0x3f0] sm:$0x1] %vm3740_vm12, %v15690_v54 }
 0x11b   : > { %vm3470_vm10 = vcmp.ge.f32.partialorder %v3278_v39, 0.0  ;;  %v3534_v3 = vmul.f32 0.2, %v3278_v39  ;;  %1611 = vrot.lane.b32.xlu2 %v16129_v62, %s15687_s22  ;;  %3784 = vst.msk [vmem:[#allocation2 + $0x400] sm:$0x1] %vm3740_vm12, %v15690_v54 }
 0x11c   : > { %v829_v8 = vpop.permute.xlu0 %828  ;;  %v1214_v11 = vpop.permute.xlu1 %1213  ;;  %3785 = vst.msk [vmem:[#allocation2 + $0x410] sm:$0x1] %vm3740_vm12, %v15690_v54 }
 0x11d   : > { %v3598_v37 = vsel %vm3470_vm10, %v3278_v39, %v3534_v3  ;;  %1013 = vst.msk [vmem:[#allocation3 + $0x40] sm:$0xff] %vm1004_vm2, %v829_v8  ;;  %v3003_v12 = vld [vmem:[#allocation3 + $0x38] sm:$0xff]  ;;  %v2373_v15 = vpop.permute.xlu2 %2372 }
 0x11e   : > { %3869 = vst.msk [vmem:[#allocation2 + $0xb1] sm:$0xff] %vm3662_vm9, %v3598_v37  ;;  %13715 = vmatmul.msk.f32.gmra.mxu0 %vm3068_vm8, %v3003_v12  ;;  %v16370_v37 = vld [vmem:[%s15725_s17 + $0x1e0] sm:$0xff] }
 0x11f   : > { %1398 = vst.msk [vmem:[#allocation3 + $0x40] sm:$0xff] %vm1389_vm3, %v1214_v11 }
 0x120   : > { %1784 = vst.msk [vmem:[#allocation3 + $0x40] sm:$0xff] %vm1775_vm4, %v1600_v57 }
 0x121   : > { %3786 = vst.msk [vmem:[#allocation2 + $0x420] sm:$0x1] %vm3740_vm12, %v15690_v54 }
 0x122   : > { %1996 = vrot.lane.b32.xlu0 %v16132_v63, %s15685_s20  ;;  %2382 = vrot.lane.b32.xlu1 %v13594_v16, %s15688_s23  ;;  %3787 = vst.msk [vmem:[#allocation2 + $0x430] sm:$0x1] %vm3740_vm12, %v15690_v54 }
 0x123   : > { %2767 = vrot.lane.b32.xlu2 %v16184_v19, %s15689_s24  ;;  %3788 = vst.msk [vmem:[#allocation2 + $0x440] sm:$0x1] %vm3740_vm12, %v15690_v54 }
 0x124   : > { %v1985_v20 = vpop.permute.xlu0 %1984  ;;  %v2371_v9 = vpop.permute.xlu1 %2370  ;;  %3789 = vst.msk [vmem:[#allocation2 + $0x470] sm:$0x1] %vm3740_vm12, %v15690_v54 }
 0x125   : > { %2169 = vst.msk [vmem:[#allocation3 + $0x40] sm:$0xff] %vm2160_vm5, %v1985_v20  ;;  %v833_v21 = vpop.permute.xlu2 %832 }
 0x126   : > { %2555 = vst.msk [vmem:[#allocation3 + $0x40] sm:$0xff] %vm2546_vm6, %v2371_v9 }
 0x127   : > { %2940 = vst.msk [vmem:[#allocation3 + $0x40] sm:$0xff] %vm2931_vm7, %v2756_v61 }
 0x128   : > { %3790 = vst.msk [vmem:[#allocation2 + $0x480] sm:$0x1] %vm3740_vm12, %v15690_v54 }
 0x129   : > { %3791 = vst.msk [vmem:[#allocation2 + $0x490] sm:$0x1] %vm3740_vm12, %v15690_v54 }
 0x12a   : > { %456 = vrot.lane.b32.xlu0 %v15916_v48, %s15683_s18  ;;  %842 = vrot.lane.b32.xlu1 %v15940_v58, %s15686_s21  ;;  %3792 = vst.msk [vmem:[#allocation2 + $0x4a0] sm:$0x1] %vm3740_vm12, %v15690_v54 }
 0x12b   : > { %v3281_v24 = vpop.f32.mrf.mxu0  ;;  %1227 = vrot.lane.b32.xlu2 %v15943_v59, %s15684_s19  ;;  %3793 = vst.msk [vmem:[#allocation2 + $0x4b0] sm:$0x1] %vm3740_vm12, %v15690_v54 }
 0x12c   : > { %v445_v26 = vpop.permute.xlu0 %444  ;;  %v831_v27 = vpop.permute.xlu1 %830  ;;  %vm3471_vm11 = vcmp.ge.f32.partialorder %v3281_v24, 0.0  ;;  %v3535_v28 = vmul.f32 0.2, %v3281_v24  ;;  %3794 = vst.msk [vmem:[#allocation2 + $0x4c0] sm:$0x1] %vm3740_vm12, %v15690_v54 }
 0x12d   : > { %628 = vst.msk [vmem:[#allocation3 + $0x48] sm:$0xff] %vm618_vm1, %v445_v26  ;;  %v1989_v10 = vpop.permute.xlu2 %1988 }
 0x12e   : > { %1014 = vst.msk [vmem:[#allocation3 + $0x48] sm:$0xff] %vm1004_vm2, %v831_v27  ;;  %v3599_v48 = vsel %vm3471_vm11, %v3281_v24, %v3535_v28  ;;  %v3004_v58 = vld [vmem:[#allocation3 + $0x40] sm:$0xff] }
 0x12f   : > { %1399 = vst.msk [vmem:[#allocation3 + $0x48] sm:$0xff] %vm1389_vm3, %v1216_v2  ;;  %13716 = vmatmul.msk.f32.gmra.mxu0 %vm3068_vm8, %v3004_v58  ;;  %v13663_v58 = vld [vmem:[%s15725_s17 + $0x1f1] sm:$0xff] }
 0x130   : > { %3870 = vst.msk [vmem:[#allocation2 + $0xc1] sm:$0xff] %vm3662_vm9, %v3599_v48  ;;  %v13599_v48 = vld [vmem:[%s15725_s17 + $0x1f0] sm:$0xff] }
 0x131   : > { %3795 = vst.msk [vmem:[#allocation2 + $0x4d0] sm:$0x1] %vm3740_vm12, %v15690_v54 }
 0x132   : > { %1613 = vrot.lane.b32.xlu0 %v13594_v16, %s15687_s22  ;;  %1998 = vrot.lane.b32.xlu1 %v16184_v19, %s15685_s20  ;;  %v13662_v16 = vld [vmem:[%s15725_s17 + $0x1e1] sm:$0xff]  ;;  %3796 = vst.msk [vmem:[#allocation2 + $0x4e0] sm:$0x1] %vm3740_vm12, %v15690_v54 }
 0x133   : > { %2384 = vrot.lane.b32.xlu2 %v16217_v29, %s15688_s23  ;;  %3797 = vst.msk [vmem:[#allocation2 + $0x510] sm:$0x1] %vm3740_vm12, %v15690_v54 }
 0x134   : > { %v1602_v59 = vpop.permute.xlu0 %1601  ;;  %v1987_v31 = vpop.permute.xlu1 %1986  ;;  %3798 = vst.msk [vmem:[#allocation2 + $0x520] sm:$0x1] %vm3740_vm12, %v15690_v54 }
 0x135   : > { %1785 = vst.msk [vmem:[#allocation3 + $0x48] sm:$0xff] %vm1775_vm4, %v1602_v59  ;;  %v449_v13 = vpop.permute.xlu2 %448 }
 0x136   : > { %2170 = vst.msk [vmem:[#allocation3 + $0x48] sm:$0xff] %vm2160_vm5, %v1987_v31 }
 0x137   : > { %2556 = vst.msk [vmem:[#allocation3 + $0x48] sm:$0xff] %vm2546_vm6, %v2373_v15 }
 0x138   : > { %630 = vst.msk [vmem:[#allocation3 + $0x58] sm:$0xff] %vm618_vm1, %v449_v13 }
 0x139   : > { %3799 = vst.msk [vmem:[#allocation2 + $0x530] sm:$0x1] %vm3740_vm12, %v15690_v54 }
 0x13a   : > { %2769 = vrot.lane.b32.xlu0 %v16236_v34, %s15689_s24  ;;  %458 = vrot.lane.b32.xlu1 %v15964_v4, %s15683_s18  ;;  %3800 = vst.msk [vmem:[#allocation2 + $0x540] sm:$0x1] %vm3740_vm12, %v15690_v54 }
 0x13b   : > { %844 = vrot.lane.b32.xlu2 %v15967_v5, %s15686_s21  ;;  %v16261_v5 = vld [vmem:[%s15725_s17 + $0x1b1] sm:$0xff]  ;;  %3801 = vst.msk [vmem:[#allocation2 + $0x550] sm:$0x1] %vm3740_vm12, %v15690_v54 }
 0x13c   : > { %v2758_v35 = vpop.permute.xlu0 %2757  ;;  %v447_v36 = vpop.permute.xlu1 %446  ;;  %3802 = vst.msk [vmem:[#allocation2 + $0x560] sm:$0x1] %vm3740_vm12, %v15690_v54 }
 0x13d   : > { %2941 = vst.msk [vmem:[#allocation3 + $0x48] sm:$0xff] %vm2931_vm7, %v2758_v35  ;;  %v3284_v38 = vpop.f32.mrf.mxu0  ;;  %v1606_v40 = vpop.permute.xlu2 %1605 }
 0x13e   : > { %629 = vst.msk [vmem:[#allocation3 + $0x50] sm:$0xff] %vm618_vm1, %v447_v36  ;;  %vm3472_vm13 = vcmp.ge.f32.partialorder %v3284_v38, 0.0  ;;  %v3536_v4 = vmul.f32 0.2, %v3284_v38 }
 0x13f   : > { %1015 = vst.msk [vmem:[#allocation3 + $0x50] sm:$0xff] %vm1004_vm2, %v833_v21 }
 0x140   : > { %v3600_v41 = vsel %vm3472_vm13, %v3284_v38, %v3536_v4  ;;  %3803 = vst.msk [vmem:[#allocation2 + $0x570] sm:$0x1] %vm3740_vm12, %v15690_v54 }
 0x141   : > { %3871 = vst.msk [vmem:[#allocation2 + $0xd1] sm:$0xff] %vm3662_vm9, %v3600_v41  ;;  %v16466_v41 = vld [vmem:[%s15725_s17 + $0x201] sm:$0xff] }
 0x142   : > { %1229 = vrot.lane.b32.xlu0 %v15974_v7, %s15684_s19  ;;  %1615 = vrot.lane.b32.xlu1 %v13468_v14, %s15687_s22  ;;  %3804 = vst.msk [vmem:[#allocation2 + $0x580] sm:$0x1] %vm3740_vm12, %v15690_v54 }
 0x143   : > { %2000 = vrot.lane.b32.xlu2 %v16261_v5, %s15685_s20  ;;  %3805 = vst.msk [vmem:[#allocation2 + $0xb9] sm:$0x1] %vm3740_vm12, %v15690_v54 }
 0x144   : > { %v1218_v43 = vpop.permute.xlu0 %1217  ;;  %v1604_v44 = vpop.permute.xlu1 %1603  ;;  %v3005_v45 = vld [vmem:[#allocation3 + $0x48] sm:$0xff]  ;;  %3806 = vst.msk [vmem:[#allocation2 + $0xc9] sm:$0x1] %vm3740_vm12, %v15690_v54 }
 0x145   : > { %1400 = vst.msk [vmem:[#allocation3 + $0x50] sm:$0xff] %vm1389_vm3, %v1218_v43  ;;  %13717 = vmatmul.msk.f32.gmra.mxu0 %vm3068_vm8, %v3005_v45  ;;  %v2762_v46 = vpop.permute.xlu2 %2761 }
 0x146   : > { %1786 = vst.msk [vmem:[#allocation3 + $0x50] sm:$0xff] %vm1775_vm4, %v1604_v44 }
 0x147   : > { %2171 = vst.msk [vmem:[#allocation3 + $0x50] sm:$0xff] %vm2160_vm5, %v1989_v10  ;;  %v6011_v10 = vld [vmem:[#allocation2 + $0x130] sm:$0xff] }
 0x148   : > { %14186 = vmatpush.xpose.msk.msrb.mxu0 %vm3662_vm9, %v6011_v10  ;;  %3807 = vst.msk [vmem:[#allocation2 + $0xd9] sm:$0x1] %vm3740_vm12, %v15690_v54  ;;  %v6002_v10 = vld [vmem:[#allocation2 + $0x80] sm:$0xff] }
 0x149   : > { %3808 = vst.msk [vmem:[#allocation2 + $0xe9] sm:$0x1] %vm3740_vm12, %v15690_v54 }
 0x14a   : > { %2386 = vrot.lane.b32.xlu0 %v16279_v47, %s15688_s23  ;;  %2771 = vrot.lane.b32.xlu1 %v13660_v49, %s15689_s24  ;;  %3809 = vst.msk [vmem:[#allocation2 + $0xf9] sm:$0x1] %vm3740_vm12, %v15690_v54 }
 0x14b   : > { %460 = vrot.lane.b32.xlu2 %v15974_v7, %s15683_s18  ;;  %3810 = vst.msk [vmem:[#allocation2 + $0x109] sm:$0x1] %vm3740_vm12, %v15690_v54 }
 0x14c   : > { %v2375_v50 = vpop.permute.xlu0 %2374  ;;  %v2760_v22 = vpop.permute.xlu1 %2759  ;;  %3811 = vst.msk [vmem:[#allocation2 + $0x119] sm:$0x1] %vm3740_vm12, %v15690_v54 }
 0x14d   : > { %2557 = vst.msk [vmem:[#allocation3 + $0x50] sm:$0xff] %vm2546_vm6, %v2375_v50  ;;  %v1222_v51 = vpop.permute.xlu2 %1221 }
 0x14e   : > { %2942 = vst.msk [vmem:[#allocation3 + $0x50] sm:$0xff] %vm2931_vm7, %v2760_v22 }
 0x14f   : > { %3812 = vst.msk [vmem:[#allocation2 + $0x129] sm:$0x1] %vm3740_vm12, %v15690_v54 }
 0x150   : > { %3813 = vst.msk [vmem:[#allocation2 + $0x159] sm:$0x1] %vm3740_vm12, %v15690_v54 }
 0x151   : > { %3814 = vst.msk [vmem:[#allocation2 + $0x169] sm:$0x1] %vm3740_vm12, %v15690_v54 }
 0x152   : > { %846 = vrot.lane.b32.xlu0 %v15996_v6, %s15686_s21  ;;  %v3287_v7 = vpop.f32.mrf.mxu0  ;;  %1231 = vrot.lane.b32.xlu1 %v16004_v25, %s15684_s19  ;;  %3815 = vst.msk [vmem:[#allocation2 + $0x179] sm:$0x1] %vm3740_vm12, %v15690_v54 }
 0x153   : > { %vm3473_vm14 = vcmp.ge.f32.partialorder %v3287_v7, 0.0  ;;  %v3537_v52 = vmul.f32 0.2, %v3287_v7  ;;  %1617 = vrot.lane.b32.xlu2 %v16279_v47, %s15687_s22  ;;  %3816 = vst.msk [vmem:[#allocation2 + $0x189] sm:$0x1] %vm3740_vm12, %v15690_v54 }
 0x154   : > { %v835_v55 = vpop.permute.xlu0 %834  ;;  %v1220_v56 = vpop.permute.xlu1 %1219  ;;  %3817 = vst.msk [vmem:[#allocation2 + $0x199] sm:$0x1] %vm3740_vm12, %v15690_v54 }
 0x155   : > { %v3601_v6 = vsel %vm3473_vm14, %v3287_v7, %v3537_v52  ;;  %1016 = vst.msk [vmem:[#allocation3 + $0x58] sm:$0xff] %vm1004_vm2, %v835_v55  ;;  %v3006_v57 = vld [vmem:[#allocation3 + $0x50] sm:$0xff]  ;;  %v2379_v23 = vpop.permute.xlu2 %2378 }
 0x156   : > { %3872 = vst.msk [vmem:[#allocation2 + $0xe1] sm:$0xff] %vm3662_vm9, %v3601_v6  ;;  %13718 = vmatmul.msk.f32.gmra.mxu0 %vm3068_vm8, %v3006_v57  ;;  %v16526_v57 = vld [vmem:[#allocation2 + $0xd1] sm:$0xff] }
 0x157   : > { %1401 = vst.msk [vmem:[#allocation3 + $0x58] sm:$0xff] %vm1389_vm3, %v1220_v56 }
 0x158   : > { %1787 = vst.msk [vmem:[#allocation3 + $0x58] sm:$0xff] %vm1775_vm4, %v1606_v40  ;;  %v13600_v40 = vld [vmem:[%s15725_s17 + $0x200] sm:$0xff] }
 0x159   : > { %3818 = vst.msk [vmem:[#allocation2 + $0x1a9] sm:$0x1] %vm3740_vm12, %v15690_v54 }
 0x15a   : > { %2002 = vrot.lane.b32.xlu0 %v13660_v49, %s15685_s20  ;;  %2388 = vrot.lane.b32.xlu1 %v13597_v30, %s15688_s23  ;;  %3819 = vst.msk [vmem:[#allocation2 + $0x1b9] sm:$0x1] %vm3740_vm12, %v15690_v54 }
 0x15b   : > { %2773 = vrot.lane.b32.xlu2 %v16330_v60, %s15689_s24  ;;  %3820 = vst.msk [vmem:[#allocation2 + $0x1c9] sm:$0x1] %vm3740_vm12, %v15690_v54 }
 0x15c   : > { %v1991_v61 = vpop.permute.xlu0 %1990  ;;  %v2377_v0 = vpop.permute.xlu1 %2376  ;;  %3821 = vst.msk [vmem:[#allocation2 + $0x1f9] sm:$0x1] %vm3740_vm12, %v15690_v54 }
 0x15d   : > { %2172 = vst.msk [vmem:[#allocation3 + $0x58] sm:$0xff] %vm2160_vm5, %v1991_v61  ;;  %v839_v1 = vpop.permute.xlu2 %838  ;;  %v16510_v55 = vld [vmem:[#allocation2 + $0xe1] sm:$0xff] }
 0x15e   : > { %2558 = vst.msk [vmem:[#allocation3 + $0x58] sm:$0xff] %vm2546_vm6, %v2377_v0  ;;  %v16537_v61 = vld [vmem:[#allocation2 + $0xc1] sm:$0xff]  ;;  %v4007_v0 = vld [vmem:[#allocation2 + $0xb1] sm:$0xff] }
 0x15f   : > { %2943 = vst.msk [vmem:[#allocation3 + $0x58] sm:$0xff] %vm2931_vm7, %v2762_v46 }
 0x160   : > { %3822 = vst.msk [vmem:[#allocation2 + $0x209] sm:$0x1] %vm3740_vm12, %v15690_v54 }
 0x161   : > { %3823 = vst.msk [vmem:[#allocation2 + $0x219] sm:$0x1] %vm3740_vm12, %v15690_v54 }
 0x162   : > { %462 = vrot.lane.b32.xlu0 %v16004_v25, %s15683_s18  ;;  %848 = vrot.lane.b32.xlu1 %v16027_v32, %s15686_s21  ;;  %3824 = vst.msk [vmem:[#allocation2 + $0x229] sm:$0x1] %vm3740_vm12, %v15690_v54 }
 0x163   : > { %v3290_v2 = vpop.f32.mrf.mxu0  ;;  %1233 = vrot.lane.b32.xlu2 %v16030_v33, %s15684_s19  ;;  %3825 = vst.msk [vmem:[#allocation2 + $0x239] sm:$0x1] %vm3740_vm12, %v15690_v54 }
 0x164   : > { %v451_v39 = vpop.permute.xlu0 %450  ;;  %v837_v3 = vpop.permute.xlu1 %836  ;;  %vm3474_vm15 = vcmp.ge.f32.partialorder %v3290_v2, 0.0  ;;  %v3538_v8 = vmul.f32 0.2, %v3290_v2  ;;  %3826 = vst.msk [vmem:[#allocation2 + $0x249] sm:$0x1] %vm3740_vm12, %v15690_v54 }
 0x165   : > { %631 = vst.msk [vmem:[#allocation3 + $0x60] sm:$0xff] %vm618_vm1, %v451_v39  ;;  %v1995_v11 = vpop.permute.xlu2 %1994 }
 0x166   : > { %1017 = vst.msk [vmem:[#allocation3 + $0x60] sm:$0xff] %vm1004_vm2, %v837_v3  ;;  %v3602_v25 = vsel %vm3474_vm15, %v3290_v2, %v3538_v8  ;;  %v3007_v32 = vld [vmem:[#allocation3 + $0x58] sm:$0xff] }
 0x167   : > { %1402 = vst.msk [vmem:[#allocation3 + $0x60] sm:$0xff] %vm1389_vm3, %v1222_v51  ;;  %13719 = vmatmul.msk.f32.gmra.mxu0 %vm3068_vm8, %v3007_v32 }
 0x168   : > { %3873 = vst.msk [vmem:[#allocation2 + $0xf1] sm:$0xff] %vm3662_vm9, %v3602_v25  ;;  %v16636_v25 = vld [vmem:[%s15725_s17 + $0x210] sm:$0xff] }
 0x169   : > { %3827 = vst.msk [vmem:[#allocation2 + $0x259] sm:$0x1] %vm3740_vm12, %v15690_v54 }
 0x16a   : > { %1619 = vrot.lane.b32.xlu0 %v13597_v30, %s15687_s22  ;;  %2004 = vrot.lane.b32.xlu1 %v16330_v60, %s15685_s20  ;;  %3828 = vst.msk [vmem:[#allocation2 + $0x269] sm:$0x1] %vm3740_vm12, %v15690_v54 }
 0x16b   : > { %2390 = vrot.lane.b32.xlu2 %v16370_v37, %s15688_s23  ;;  %3829 = vst.msk [vmem:[#allocation2 + $0x299] sm:$0x1] %vm3740_vm12, %v15690_v54 }
 0x16c   : > { %v1608_v12 = vpop.permute.xlu0 %1607  ;;  %v1993_v15 = vpop.permute.xlu1 %1992  ;;  %3830 = vst.msk [vmem:[#allocation2 + $0x2a9] sm:$0x1] %vm3740_vm12, %v15690_v54 }
 0x16d   : > { %1788 = vst.msk [vmem:[#allocation3 + $0x60] sm:$0xff] %vm1775_vm4, %v1608_v12  ;;  %v455_v20 = vpop.permute.xlu2 %454 }
 0x16e   : > { %2173 = vst.msk [vmem:[#allocation3 + $0x60] sm:$0xff] %vm2160_vm5, %v1993_v15 }
 0x16f   : > { %2559 = vst.msk [vmem:[#allocation3 + $0x60] sm:$0xff] %vm2546_vm6, %v2379_v23 }
 0x170   : > { %633 = vst.msk [vmem:[#allocation3 + $0x70] sm:$0xff] %vm618_vm1, %v455_v20  ;;  %v16672_v20 = vld [vmem:[%s15725_s17 + $0x220] sm:$0xff] }
 0x171   : > { %3831 = vst.msk [vmem:[#allocation2 + $0x2b9] sm:$0x1] %vm3740_vm12, %v15690_v54 }
 0x172   : > { %2775 = vrot.lane.b32.xlu0 %v13662_v16, %s15689_s24  ;;  %464 = vrot.lane.b32.xlu1 %v16030_v33, %s15683_s18  ;;  %3832 = vst.msk [vmem:[#allocation2 + $0x2c9] sm:$0x1] %vm3740_vm12, %v15690_v54 }
 0x173   : > { %850 = vrot.lane.b32.xlu2 %v16051_v42, %s15686_s21  ;;  %3833 = vst.msk [vmem:[#allocation2 + $0x2d9] sm:$0x1] %vm3740_vm12, %v15690_v54 }
 0x174   : > { %v2764_v9 = vpop.permute.xlu0 %2763  ;;  %v453_v21 = vpop.permute.xlu1 %452  ;;  %3834 = vst.msk [vmem:[#allocation2 + $0x2e9] sm:$0x1] %vm3740_vm12, %v15690_v54 }
 0x175   : > { %2944 = vst.msk [vmem:[#allocation3 + $0x60] sm:$0xff] %vm2931_vm7, %v2764_v9  ;;  %v3293_v24 = vpop.f32.mrf.mxu0  ;;  %v1612_v13 = vpop.permute.xlu2 %1611  ;;  %v16675_v9 = vld [vmem:[%s15725_s17 + $0x190] sm:$0xff] }
 0x176   : > { %632 = vst.msk [vmem:[#allocation3 + $0x68] sm:$0xff] %vm618_vm1, %v453_v21  ;;  %vm3475_vm10 = vcmp.ge.f32.partialorder %v3293_v24, 0.0  ;;  %v3539_v33 = vmul.f32 0.2, %v3293_v24 }
 0x177   : > { %1018 = vst.msk [vmem:[#allocation3 + $0x68] sm:$0xff] %vm1004_vm2, %v839_v1 }
 0x178   : > { %v3603_v26 = vsel %vm3475_vm10, %v3293_v24, %v3539_v33  ;;  %3835 = vst.msk [vmem:[#allocation2 + $0x2f9] sm:$0x1] %vm3740_vm12, %v15690_v54  ;;  %v6005_v24 = vld [vmem:[#allocation2 + $0xd0] sm:$0xff]  ;;  %vm3664_vm10 = vcmask 254976  }
 0x179   : > { %3874 = vst.msk [vmem:[#allocation2 + $0x101] sm:$0xff] %vm3662_vm9, %v3603_v26 }
 0x17a   : > { %1235 = vrot.lane.b32.xlu0 %v16058_v17, %s15684_s19  ;;  %1621 = vrot.lane.b32.xlu1 %v16370_v37, %s15687_s22  ;;  %3836 = vst.msk [vmem:[#allocation2 + $0x309] sm:$0x1] %vm3740_vm12, %v15690_v54 }
 0x17b   : > { %2006 = vrot.lane.b32.xlu2 %v13662_v16, %s15685_s20  ;;  %3837 = vst.msk [vmem:[#allocation2 + $0x339] sm:$0x1] %vm3740_vm12, %v15690_v54  ;;  %v16664_v16 = vld [vmem:[%s15725_s17 + $0x221] sm:$0xff] }
 0x17c   : > { %v1224_v42 = vpop.permute.xlu0 %1223  ;;  %v1610_v27 = vpop.permute.xlu1 %1609  ;;  %v3008_v28 = vld [vmem:[#allocation3 + $0x60] sm:$0xff]  ;;  %3838 = vst.msk [vmem:[#allocation2 + $0x349] sm:$0x1] %vm3740_vm12, %v15690_v54 }
 0x17d   : > { %1403 = vst.msk [vmem:[#allocation3 + $0x68] sm:$0xff] %vm1389_vm3, %v1224_v42  ;;  %13720 = vmatmul.msk.f32.gmra.mxu0 %vm3068_vm8, %v3008_v28  ;;  %v2768_v14 = vpop.permute.xlu2 %2767  ;;  %v6004_v42 = vld [vmem:[#allocation2 + $0xc0] sm:$0xff] }
 0x17e   : > { %1789 = vst.msk [vmem:[#allocation3 + $0x68] sm:$0xff] %vm1775_vm4, %v1610_v27  ;;  %v6003_v27 = vld [vmem:[#allocation2 + $0x90] sm:$0xff] }
 0x17f   : > { %2174 = vst.msk [vmem:[#allocation3 + $0x68] sm:$0xff] %vm2160_vm5, %v1995_v11  ;;  %v6007_v11 = vld [vmem:[#allocation2 + $0xf0] sm:$0xff] }
 0x180   : > { %v16483_v46 = vld [vmem:[#allocation2 + $0x101] sm:$0xff]  ;;  %3839 = vst.msk [vmem:[#allocation2 + $0x359] sm:$0x1] %vm3740_vm12, %v15690_v54 }
 0x181   : > { %3840 = vst.msk [vmem:[#allocation2 + $0x369] sm:$0x1] %vm3740_vm12, %v15690_v54  ;;  %v6008_v8 = vld [vmem:[#allocation2 + $0x100] sm:$0xff] }
 0x182   : > { %2392 = vrot.lane.b32.xlu0 %v13599_v48, %s15688_s23  ;;  %2777 = vrot.lane.b32.xlu1 %v13663_v58, %s15689_s24  ;;  %3841 = vst.msk [vmem:[#allocation2 + $0x379] sm:$0x1] %vm3740_vm12, %v15690_v54 }
 0x183   : > { %466 = vrot.lane.b32.xlu2 %v16058_v17, %s15683_s18  ;;  %3842 = vst.msk [vmem:[#allocation2 + $0x389] sm:$0x1] %vm3740_vm12, %v15690_v54 }
 0x184   : > { %v2381_v59 = vpop.permute.xlu0 %2380  ;;  %v2766_v31 = vpop.permute.xlu1 %2765  ;;  %3843 = vst.msk [vmem:[#allocation2 + $0x399] sm:$0x1] %vm3740_vm12, %v15690_v54 }
 0x185   : > { %2560 = vst.msk [vmem:[#allocation3 + $0x68] sm:$0xff] %vm2546_vm6, %v2381_v59  ;;  %v1228_v50 = vpop.permute.xlu2 %1227  ;;  %v16729_v59 = vld [vmem:[%s15725_s17 + $0x230] sm:$0xff] }
 0x186   : > { %2945 = vst.msk [vmem:[#allocation3 + $0x68] sm:$0xff] %vm2931_vm7, %v2766_v31 }
 0x187   : > { %3844 = vst.msk [vmem:[#allocation2 + $0x3a9] sm:$0x1] %vm3740_vm12, %v15690_v54 }
 0x188   : > { %3845 = vst.msk [vmem:[#allocation2 + $0x3d9] sm:$0x1] %vm3740_vm12, %v15690_v54 }
 0x189   : > { %3846 = vst.msk [vmem:[#allocation2 + $0x3e9] sm:$0x1] %vm3740_vm12, %v15690_v54 }
 0x18a   : > { %852 = vrot.lane.b32.xlu0 %v16080_v18, %s15686_s21  ;;  %v3296_v17 = vpop.f32.mrf.mxu0  ;;  %1237 = vrot.lane.b32.xlu1 %v16088_v53, %s15684_s19  ;;  %3847 = vst.msk [vmem:[#allocation2 + $0x3f9] sm:$0x1] %vm3740_vm12, %v15690_v54 }
 0x18b   : > { %vm3476_vm11 = vcmp.ge.f32.partialorder %v3296_v17, 0.0  ;;  %v3540_v35 = vmul.f32 0.2, %v3296_v17  ;;  %1623 = vrot.lane.b32.xlu2 %v13599_v48, %s15687_s22  ;;  %3848 = vst.msk [vmem:[#allocation2 + $0x409] sm:$0x1] %vm3740_vm12, %v15690_v54 }
 0x18c   : > { %v841_v36 = vpop.permute.xlu0 %840  ;;  %v1226_v38 = vpop.permute.xlu1 %1225  ;;  %3849 = vst.msk [vmem:[#allocation2 + $0x419] sm:$0x1] %vm3740_vm12, %v15690_v54 }
 0x18d   : > { %v3604_v18 = vsel %vm3476_vm11, %v3296_v17, %v3540_v35  ;;  %1019 = vst.msk [vmem:[#allocation3 + $0x70] sm:$0xff] %vm1004_vm2, %v841_v36  ;;  %v3009_v4 = vld [vmem:[#allocation3 + $0x68] sm:$0xff]  ;;  %v2385_v23 = vpop.permute.xlu2 %2384  ;;  %v6001_v17 = vld [vmem:[#allocation2 + $0x70] sm:$0xff] }
 0x18e   : > { %3875 = vst.msk [vmem:[#allocation2 + $0x111] sm:$0xff] %vm3662_vm9, %v3604_v18  ;;  %13721 = vmatmul.msk.f32.gmra.mxu0 %vm3068_vm8, %v3009_v4  ;;  %v6000_v4 = vld [vmem:[#allocation2 + $0x60] sm:$0xff] }
 0x18f   : > { %1404 = vst.msk [vmem:[#allocation3 + $0x70] sm:$0xff] %vm1389_vm3, %v1226_v38 }
 0x190   : > { %1790 = vst.msk [vmem:[#allocation3 + $0x70] sm:$0xff] %vm1775_vm4, %v1612_v13  ;;  %v185_v13 = vld [vmem:[%s15725_s17 + $0x120] sm:$0xff] }
 0x191   : > { %3850 = vst.msk [vmem:[#allocation2 + $0x429] sm:$0x1] %vm3740_vm12, %v15690_v54 }
 0x192   : > { %2008 = vrot.lane.b32.xlu0 %v13663_v58, %s15685_s20  ;;  %2394 = vrot.lane.b32.xlu1 %v13600_v40, %s15688_s23  ;;  %3851 = vst.msk [vmem:[#allocation2 + $0x439] sm:$0x1] %vm3740_vm12, %v15690_v54 }
 0x193   : > { %2779 = vrot.lane.b32.xlu2 %v16466_v41, %s15689_s24  ;;  %3852 = vst.msk [vmem:[#allocation2 + $0x449] sm:$0x1] %vm3740_vm12, %v15690_v54 }
 0x194   : > { %v1997_v43 = vpop.permute.xlu0 %1996  ;;  %v2383_v44 = vpop.permute.xlu1 %2382  ;;  %3853 = vst.msk [vmem:[#allocation2 + $0x479] sm:$0x1] %vm3740_vm12, %v15690_v54 }
 0x195   : > { %2175 = vst.msk [vmem:[#allocation3 + $0x70] sm:$0xff] %vm2160_vm5, %v1997_v43  ;;  %v16475_v45 = vld [vmem:[#allocation2 + $0x111] sm:$0xff]  ;;  %v16626_v3 = vpop.permute.xlu2 %844 }
 0x196   : > { %2561 = vst.msk [vmem:[#allocation3 + $0x70] sm:$0xff] %vm2546_vm6, %v2383_v44  ;;  %13773 = vmatpush.xpose.msk.msra.mxu1 %vm3662_vm9, %v16475_v45  ;;  %v6009_v1 = vld [vmem:[#allocation2 + $0x110] sm:$0xff] }
 0x197   : > { %2946 = vst.msk [vmem:[#allocation3 + $0x70] sm:$0xff] %vm2931_vm7, %v2768_v14  ;;  %v5999_v43 = vld [vmem:[#allocation2 + $0x50] sm:$0xff] }
 0x198   : > { %3854 = vst.msk [vmem:[#allocation2 + $0x489] sm:$0x1] %vm3740_vm12, %v15690_v54 }
 0x199   : > { %3855 = vst.msk [vmem:[#allocation2 + $0x499] sm:$0x1] %vm3740_vm12, %v15690_v54 }
 0x19a   : > { %468 = vrot.lane.b32.xlu0 %v16088_v53, %s15683_s18  ;;  %13774 = vmatpush.xpose.msk.msra.mxu1 %vm3662_vm9, %v16483_v46  ;;  %v16502_v53 = vld [vmem:[#allocation2 + $0xf1] sm:$0xff]  ;;  %3856 = vst.msk [vmem:[#allocation2 + $0x4a9] sm:$0x1] %vm3740_vm12, %v15690_v54 }
 0x19b   : > { %854 = vrot.lane.b32.xlu1 %v16129_v62, %s15686_s21  ;;  %v3299_v49 = vpop.f32.mrf.mxu0  ;;  %1239 = vrot.lane.b32.xlu2 %v16132_v63, %s15684_s19  ;;  %3857 = vst.msk [vmem:[#allocation2 + $0x4b9] sm:$0x1] %vm3740_vm12, %v15690_v54 }
 0x19c   : > { %vm3477_vm13 = vcmp.ge.f32.partialorder %v3299_v49, 0.0  ;;  %v3541_v22 = vmul.f32 0.2, %v3299_v49  ;;  %v457_v51 = vpop.permute.xlu0 %456  ;;  %v843_v7 = vpop.permute.xlu1 %842  ;;  %3858 = vst.msk [vmem:[#allocation2 + $0x4c9] sm:$0x1] %vm3740_vm12, %v15690_v54 }
 0x19d   : > { %634 = vst.msk [vmem:[#allocation3 + $0x78] sm:$0xff] %vm618_vm1, %v457_v51  ;;  %v16659_v15 = vpop.permute.xlu2 %2000 }
 0x19e   : > { %v3605_v62 = vsel %vm3477_vm13, %v3299_v49, %v3541_v22  ;;  %1020 = vst.msk [vmem:[#allocation3 + $0x78] sm:$0xff] %vm1004_vm2, %v843_v7  ;;  %13775 = vmatpush.xpose.msk.msra.mxu1 %vm3662_vm9, %v16502_v53  ;;  %v3010_v52 = vld [vmem:[#allocation3 + $0x70] sm:$0xff]  ;;  %v5998_v22 = vld [vmem:[#allocation2 + $0x40] sm:$0xff] }
 0x19f   : > { %3876 = vst.msk [vmem:[#allocation2 + $0x121] sm:$0xff] %vm3662_vm9, %v3605_v62  ;;  %13722 = vmatmul.msk.f32.gmra.mxu0 %vm3068_vm8, %v3010_v52  ;;  %v186_v49 = vld [vmem:[%s15725_s17 + $0x130] sm:$0xff]  ;;  %v16780_v7 = vld [vmem:[%s15725_s17 + $0x241] sm:$0xff] }
 0x1a0   : > { %1405 = vst.msk [vmem:[#allocation3 + $0x78] sm:$0xff] %vm1389_vm3, %v1228_v50  ;;  %v13476_v52 = vld [vmem:[%s15725_s17 + $0x240] sm:$0xff] }
 0x1a1   : > { %3859 = vst.msk [vmem:[#allocation2 + $0x4d9] sm:$0x1] %vm3740_vm12, %v15690_v54 }
 0x1a2   : > { %1625 = vrot.lane.b32.xlu0 %v13600_v40, %s15687_s22  ;;  %13776 = vmatpush.xpose.msk.msra.mxu1 %vm3662_vm9, %v16510_v55  ;;  %3860 = vst.msk [vmem:[#allocation2 + $0x4e9] sm:$0x1] %vm3740_vm12, %v15690_v54 }
 0x1a3   : > { %2010 = vrot.lane.b32.xlu1 %v16466_v41, %s15685_s20  ;;  %2396 = vrot.lane.b32.xlu2 %v16636_v25, %s15688_s23  ;;  %3861 = vst.msk [vmem:[#allocation2 + $0x519] sm:$0x1] %vm3740_vm12, %v15690_v54 }
 0x1a4   : > { %v1614_v56 = vpop.permute.xlu0 %1613  ;;  %v1999_v6 = vpop.permute.xlu1 %1998  ;;  %3862 = vst.msk [vmem:[#allocation2 + $0x529] sm:$0x1] %vm3740_vm12, %v15690_v54 }
 0x1a5   : > { %1791 = vst.msk [vmem:[#allocation3 + $0x78] sm:$0xff] %vm1775_vm4, %v1614_v56  ;;  %v16698_v26 = vpop.permute.xlu2 %460  ;;  %v5997_v56 = vld [vmem:[#allocation2 + $0x30] sm:$0xff] }
 0x1a6   : > { %2176 = vst.msk [vmem:[#allocation3 + $0x78] sm:$0xff] %vm2160_vm5, %v1999_v6  ;;  %13777 = vmatpush.xpose.msk.msra.mxu1 %vm3662_vm9, %v16526_v57  ;;  %v6010_v30 = vld [vmem:[#allocation2 + $0x120] sm:$0xff] }
 0x1a7   : > { %2562 = vst.msk [vmem:[#allocation3 + $0x78] sm:$0xff] %vm2546_vm6, %v2385_v23  ;;  %14187 = vmatpush.xpose.msk.msrb.mxu0 %vm3662_vm9, %v6010_v30  ;;  %v187_v23 = vld [vmem:[%s15725_s17 + $0x140] sm:$0xff] }
 0x1a8   : > { %3863 = vst.msk [vmem:[#allocation2 + $0x539] sm:$0x1] %vm3740_vm12, %v15690_v54 }
 0x1a9   : > { %3864 = vst.msk [vmem:[#allocation2 + $0x549] sm:$0x1] %vm3740_vm12, %v15690_v54 }
 0x1aa   : > { %13778 = vmatpush.xpose.msk.msra.mxu1 %vm3662_vm9, %v16537_v61  ;;  %3865 = vst.msk [vmem:[#allocation2 + $0x559] sm:$0x1] %vm3740_vm12, %v15690_v54 }
 0x1ab   : > { %470 = vrot.lane.b32.xlu1 %v16132_v63, %s15683_s18  ;;  %v16611_v63 = vld [vmem:[%s15725_s17 + $0x211] sm:$0xff]  ;;  %14188 = vmatpush.xpose.msk.msrb.mxu0 %vm3662_vm9, %v6009_v1  ;;  %3866 = vst.msk [vmem:[#allocation2 + $0x569] sm:$0x1] %vm3740_vm12, %v15690_v54 }
 0x1ac   : > { %v16613_v2 = vpop.permute.xlu0 %2769  ;;  %2781 = vrot.lane.b32.xlu0 %v16611_v63, %s15689_s24  ;;  %v16620_v39 = vpop.permute.xlu1 %458  ;;  %856 = vrot.lane.b32.xlu2 %v16675_v9, %s15686_s21  ;;  %3867 = vst.msk [vmem:[#allocation2 + $0x579] sm:$0x1] %vm3740_vm12, %v15690_v54 }
 0x1ad   : > { %v1618_v58 = vpop.permute.xlu2 %1617  ;;  %3868 = vst.msk [vmem:[#allocation2 + $0x589] sm:$0x1] %vm3740_vm12, %v15690_v54 }
 0x1ae   : > { %13779 = vmatpush.xpose.msk.msra.mxu1 %vm3662_vm9, %v4007_v0  ;;  %2947 = vst.msk [vmem:[#allocation3 + $0x78] sm:$0xff] %vm2931_vm7, %v16613_v2  ;;  %v5996_v0 = vld [vmem:[#allocation2 + $0x20] sm:$0xff] }
 0x1af   : > { %14189 = vmatpush.xpose.msk.msrb.mxu0 %vm3662_vm9, %v6008_v8  ;;  %250 = vst.msk [vmem:[#allocation3 + $0x80] sm:$0xff] %vm233_vm0, %v185_v13 }
 0x1b0   : > { %635 = vst.msk [vmem:[#allocation3 + $0x80] sm:$0xff] %vm618_vm1, %v16620_v39 }
 0x1b1   : > { %1021 = vst.msk [vmem:[#allocation3 + $0x80] sm:$0xff] %vm1004_vm2, %v16626_v3 }
 0x1b2   : > { %251 = vst.msk [vmem:[#allocation3 + $0x88] sm:$0xff] %vm233_vm0, %v186_v49 }
 0x1b3   : > { %1627 = vrot.lane.b32.xlu1 %v16636_v25, %s15687_s22  ;;  %14190 = vmatpush.xpose.msk.msrb.mxu0 %vm3662_vm9, %v6007_v11  ;;  %636 = vst.msk [vmem:[#allocation3 + $0x88] sm:$0xff] %vm618_vm1, %v16698_v26  ;;  %v323_v11 = vld [vmem:[%s15725_s17 + $0x1c1] sm:$0xff] }
 0x1b4   : > { %v16646_v32 = vpop.permute.xlu0 %1229  ;;  %1241 = vrot.lane.b32.xlu0 %v16184_v19, %s15684_s19  ;;  %v16652_v12 = vpop.permute.xlu1 %1615  ;;  %v6006_v19 = vld [vmem:[#allocation2 + $0xe0] sm:$0xff]  ;;  %2012 = vrot.lane.b32.xlu2 %v16611_v63, %s15685_s20  ;;  %252 = vst.msk [vmem:[#allocation3 + $0x90] sm:$0xff] %vm233_vm0, %v187_v23 }
 0x1b5   : > { %v2774_v40 = vpop.permute.xlu2 %2773  ;;  %1406 = vst.msk [vmem:[#allocation3 + $0x80] sm:$0xff] %vm1389_vm3, %v16646_v32  ;;  %v3011_v44 = vld [vmem:[#allocation3 + $0x78] sm:$0xff]  ;;  %v6355_v26 = vld [vmem:[#allocation2 + $0x121] sm:$0xff] }
 0x1b6   : > { %1792 = vst.msk [vmem:[#allocation3 + $0x80] sm:$0xff] %vm1775_vm4, %v16652_v12  ;;  %13723 = vmatmul.msk.f32.gmra.mxu0 %vm3068_vm8, %v3011_v44  ;;  %v16817_v32 = vld [vmem:[%s15725_s17 + $0x251] sm:$0xff] }
 0x1b7   : > { %14191 = vmatpush.xpose.msk.msrb.mxu0 %vm3662_vm9, %v6006_v19  ;;  %2177 = vst.msk [vmem:[#allocation3 + $0x80] sm:$0xff] %vm2160_vm5, %v16659_v15  ;;  %v16821_v12 = vld [vmem:[%s15725_s17 + $0x231] sm:$0xff] }
 0x1b8   : > { %3724 = vst.msk [vmem:[#allocation2 + $0x138] sm:$0x3] %vm3664_vm10, %v15690_v54 }
 0x1b9   : > { %3665 = vst.msk [vmem:[#allocation2 + $0x8] sm:$0x3] %vm3664_vm10, %v15690_v54 }
 0x1ba   : > { %3667 = vst.msk [vmem:[#allocation2 + $0x18] sm:$0x3] %vm3664_vm10, %v15690_v54 }
 0x1bb   : > { %2783 = vrot.lane.b32.xlu1 %v16664_v16, %s15689_s24  ;;  %14192 = vmatpush.xpose.msk.msrb.mxu0 %vm3662_vm9, %v6005_v24  ;;  %3669 = vst.msk [vmem:[#allocation2 + $0x28] sm:$0x3] %vm3664_vm10, %v15690_v54 }
 0x1bc   : > { %v16685_v21 = vpop.permute.xlu0 %2386  ;;  %2398 = vrot.lane.b32.xlu0 %v16672_v20, %s15688_s23  ;;  %v16691_v33 = vpop.permute.xlu1 %2771  ;;  %3671 = vst.msk [vmem:[#allocation2 + $0x38] sm:$0x3] %vm3664_vm10, %v15690_v54 }
 0x1bd   : > { %2563 = vst.msk [vmem:[#allocation3 + $0x80] sm:$0xff] %vm2546_vm6, %v16685_v21 }
 0x1be   : > { %2948 = vst.msk [vmem:[#allocation3 + $0x80] sm:$0xff] %vm2931_vm7, %v16691_v33  ;;  %v16850_v33 = vld [vmem:[%s15725_s17 + $0x250] sm:$0xff] }
 0x1bf   : > { %14193 = vmatpush.xpose.msk.msrb.mxu0 %vm3662_vm9, %v6004_v42  ;;  %3673 = vst.msk [vmem:[#allocation2 + $0x48] sm:$0x3] %vm3664_vm10, %v15690_v54  ;;  %v6356_v24 = vld [vmem:[#allocation2 + $0x131] sm:$0xff] }
 0x1c0   : > { %3675 = vst.msk [vmem:[#allocation2 + $0x58] sm:$0x3] %vm3664_vm10, %v15690_v54 }
 0x1c1   : > { %3677 = vst.msk [vmem:[#allocation2 + $0x68] sm:$0x3] %vm3664_vm10, %v15690_v54 }
 0x1c2   : > { %3679 = vst.msk [vmem:[#allocation2 + $0x78] sm:$0x3] %vm3664_vm10, %v15690_v54 }
 0x1c3   : > { %1243 = vrot.lane.b32.xlu1 %v16236_v34, %s15684_s19  ;;  %14194 = vmatpush.xpose.msk.msrb.mxu0 %vm3662_vm9, %v6003_v27  ;;  %v3302_v34 = vpop.f32.mrf.mxu0  ;;  %3681 = vst.msk [vmem:[#allocation2 + $0x88] sm:$0x3] %vm3664_vm10, %v15690_v54 }
 0x1c4   : > { %v847_v28 = vpop.permute.xlu0 %846  ;;  %858 = vrot.lane.b32.xlu0 %v16217_v29, %s15686_s21  ;;  %v16719_v48 = vpop.permute.xlu1 %1231  ;;  %v321_v29 = vld [vmem:[%s15725_s17 + $0x191] sm:$0xff]  ;;  %v3542_v31 = vmul.f32 0.2, %v3302_v34  ;;  %vm3478_vm14 = vcmp.ge.f32.partialorder %v3302_v34, 0.0  ;;  %3683 = vst.msk [vmem:[#allocation2 + $0x98] sm:$0x3] %vm3664_vm10, %v15690_v54 }
 0x1c5   : > { %472 = vrot.lane.b32.xlu2 %v321_v29, %s15683_s18  ;;  %1022 = vst.msk [vmem:[#allocation3 + $0x88] sm:$0xff] %vm1004_vm2, %v847_v28  ;;  %v3012_v6 = vld [vmem:[#allocation3 + $0x80] sm:$0xff] }
 0x1c6   : > { %v3606_v36 = vsel %vm3478_vm14, %v3302_v34, %v3542_v31  ;;  %1407 = vst.msk [vmem:[#allocation3 + $0x88] sm:$0xff] %vm1389_vm3, %v16719_v48  ;;  %13724 = vmatmul.msk.f32.gmra.mxu0 %vm3068_vm8, %v3012_v6  ;;  %v16886_v48 = vld [vmem:[%s15725_s17 + $0x261] sm:$0xff] }
 0x1c7   : > { %14195 = vmatpush.xpose.msk.msrb.mxu0 %vm3662_vm9, %v6002_v10  ;;  %3877 = vst.msk [vmem:[#allocation2 + $0x151] sm:$0xff] %vm3662_vm9, %v3606_v36  ;;  %v16922_v10 = vld [vmem:[%s15725_s17 + $0x1d0] sm:$0xff] }
 0x1c8   : > { %1793 = vst.msk [vmem:[#allocation3 + $0x88] sm:$0xff] %vm1775_vm4, %v1618_v58 }
 0x1c9   : > { %3686 = vst.msk [vmem:[#allocation2 + $0x5a8] sm:$0x3] %vm3664_vm10, %v15690_v54 }
 0x1ca   : > { %3688 = vst.msk [vmem:[#allocation2 + $0x5b8] sm:$0x3] %vm3664_vm10, %v15690_v54 }
 0x1cb   : > { %2400 = vrot.lane.b32.xlu1 %v16729_v59, %s15688_s23  ;;  %14196 = vmatpush.xpose.msk.msrb.mxu0 %vm3662_vm9, %v6001_v17  ;;  %v3305_v18 = vpop.f32.mrf.mxu0  ;;  %3690 = vst.msk [vmem:[#allocation2 + $0x5c8] sm:$0x3] %vm3664_vm10, %v15690_v54  ;;  %v16951_v17 = vld [vmem:[%s15725_s17 + $0x270] sm:$0xff] }
 0x1cc   : > { %2014 = vrot.lane.b32.xlu0 %v16664_v16, %s15685_s20  ;;  %v2003_v35 = vpop.permute.xlu0 %2002  ;;  %v2389_v38 = vpop.permute.xlu1 %2388  ;;  %v3543_v14 = vmul.f32 0.2, %v3305_v18  ;;  %vm3479_vm12 = vcmp.ge.f32.partialorder %v3305_v18, 0.0  ;;  %3692 = vst.msk [vmem:[#allocation2 + $0x5d8] sm:$0x3] %vm3664_vm10, %v15690_v54 }
 0x1cd   : > { %1629 = vrot.lane.b32.xlu2 %v16672_v20, %s15687_s22  ;;  %2178 = vst.msk [vmem:[#allocation3 + $0x88] sm:$0xff] %vm2160_vm5, %v2003_v35 }
 0x1ce   : > { %2564 = vst.msk [vmem:[#allocation3 + $0x88] sm:$0xff] %vm2546_vm6, %v2389_v38 }
 0x1cf   : > { %14197 = vmatpush.xpose.msk.msrb.mxu0 %vm3662_vm9, %v6000_v4  ;;  %2949 = vst.msk [vmem:[#allocation3 + $0x88] sm:$0xff] %vm2931_vm7, %v2774_v40  ;;  %v324_v4 = vld [vmem:[%s15725_s17 + $0x1d1] sm:$0xff] }
 0x1d0   : > { %3694 = vst.msk [vmem:[#allocation2 + $0x5e8] sm:$0x3] %vm3664_vm10, %v15690_v54 }
 0x1d1   : > { %3696 = vst.msk [vmem:[#allocation2 + $0x5f8] sm:$0x3] %vm3664_vm10, %v15690_v54 }
 0x1d2   : > { %3698 = vst.msk [vmem:[#allocation2 + $0x608] sm:$0x3] %vm3664_vm10, %v15690_v54 }
 0x1d3   : > { %860 = vrot.lane.b32.xlu1 %v16279_v47, %s15686_s21  ;;  %v3607_v47 = vsel %vm3479_vm12, %v3305_v18, %v3543_v14  ;;  %14198 = vmatpush.xpose.msk.msrb.mxu0 %vm3662_vm9, %v5999_v43  ;;  %v3308_v62 = vpop.f32.mrf.mxu0  ;;  %3700 = vst.msk [vmem:[#allocation2 + $0x618] sm:$0x3] %vm3664_vm10, %v15690_v54  ;;  %v16976_v18 = vld [vmem:[%s15725_s17 + $0x1f0] sm:$0xff]  ;;  %v189_v14 = vld [vmem:[%s15725_s17 + $0x160] sm:$0xff] }
 0x1d4   : > { %474 = vrot.lane.b32.xlu0 %v16261_v5, %s15683_s18  ;;  %v463_v50 = vpop.permute.xlu0 %462  ;;  %v849_v51 = vpop.permute.xlu1 %848  ;;  %3878 = vst.msk [vmem:[#allocation2 + $0x161] sm:$0xff] %vm3662_vm9, %v3607_v47  ;;  %v3544_v30 = vmul.f32 0.2, %v3308_v62  ;;  %vm3480_vm15 = vcmp.ge.f32.partialorder %v3308_v62, 0.0 }
 0x1d5   : > { %v1234_v5 = vpop.permute.xlu2 %1233  ;;  %637 = vst.msk [vmem:[#allocation3 + $0x90] sm:$0xff] %vm618_vm1, %v463_v50  ;;  %2785 = vrot.lane.b32.xlu2 %v16821_v12, %s15689_s24 }
 0x1d6   : > { %v3608_v1 = vsel %vm3480_vm15, %v3308_v62, %v3544_v30  ;;  %1023 = vst.msk [vmem:[#allocation3 + $0x90] sm:$0xff] %vm1004_vm2, %v849_v51  ;;  %v3013_v8 = vld [vmem:[#allocation3 + $0x88] sm:$0xff]  ;;  %v190_v62 = vld [vmem:[%s15725_s17 + $0x170] sm:$0xff] }
 0x1d7   : > { %14199 = vmatpush.xpose.msk.msrb.mxu0 %vm3662_vm9, %v5998_v22  ;;  %1408 = vst.msk [vmem:[#allocation3 + $0x90] sm:$0xff] %vm1389_vm3, %v1234_v5  ;;  %v16998_v22 = vld [vmem:[%s15725_s17 + $0x271] sm:$0xff]  ;;  %v17016_v30 = vld [vmem:[%s15725_s17 + $0x281] sm:$0xff] }
 0x1d8   : > { %3879 = vst.msk [vmem:[#allocation2 + $0x171] sm:$0xff] %vm3662_vm9, %v3608_v1  ;;  %13725 = vmatmul.msk.f32.gmra.mxu0 %vm3068_vm8, %v3013_v8  ;;  %v326_v1 = vld [vmem:[%s15725_s17 + $0x1f1] sm:$0xff] }
 0x1d9   : > { %3702 = vst.msk [vmem:[#allocation2 + $0x628] sm:$0x3] %vm3664_vm10, %v15690_v54 }
 0x1da   : > { %3704 = vst.msk [vmem:[#allocation2 + $0x638] sm:$0x3] %vm3664_vm10, %v15690_v54 }
 0x1db   : > { %2016 = vrot.lane.b32.xlu1 %v16780_v7, %s15685_s20  ;;  %14200 = vmatpush.xpose.msk.msrb.mxu0 %vm3662_vm9, %v5997_v56  ;;  %3707 = vst.msk [vmem:[#allocation2 + $0xa8] sm:$0x3] %vm3664_vm10, %v15690_v54 }
 0x1dc   : > { %1631 = vrot.lane.b32.xlu0 %v13476_v52, %s15687_s22  ;;  %v1620_v2 = vpop.permute.xlu0 %1619  ;;  %v2005_v39 = vpop.permute.xlu1 %2004  ;;  %3709 = vst.msk [vmem:[#allocation2 + $0x148] sm:$0x3] %vm3664_vm10, %v15690_v54 }
 0x1dd   : > { %v2391_v3 = vpop.permute.xlu2 %2390  ;;  %1794 = vst.msk [vmem:[#allocation3 + $0x90] sm:$0xff] %vm1775_vm4, %v1620_v2  ;;  %1245 = vrot.lane.b32.xlu2 %v323_v11, %s15684_s19 }
 0x1de   : > { %2179 = vst.msk [vmem:[#allocation3 + $0x90] sm:$0xff] %vm2160_vm5, %v2005_v39 }
 0x1df   : > { %14201 = vmatpush.xpose.msk.msrb.mxu0 %vm3662_vm9, %v5996_v0  ;;  %2565 = vst.msk [vmem:[#allocation3 + $0x90] sm:$0xff] %vm2546_vm6, %v2391_v3 }
 0x1e0   : > { %3711 = vst.msk [vmem:[#allocation2 + $0x1e8] sm:$0x3] %vm3664_vm10, %v15690_v54 }
 0x1e1   : > { %3713 = vst.msk [vmem:[#allocation2 + $0x288] sm:$0x3] %vm3664_vm10, %v15690_v54 }
 0x1e2   : > { %3715 = vst.msk [vmem:[#allocation2 + $0x328] sm:$0x3] %vm3664_vm10, %v15690_v54 }
 0x1e3   : > { %476 = vrot.lane.b32.xlu1 %v323_v11, %s15683_s18  ;;  %14255 = vmatpush.xpose.msk.msra.mxu0 %vm3662_vm9, %v6356_v24  ;;  %3717 = vst.msk [vmem:[#allocation2 + $0x3c8] sm:$0x3] %vm3664_vm10, %v15690_v54  ;;  %v191_v11 = vld [vmem:[%s15725_s17 + $0x180] sm:$0xff] }
 0x1e4   : > { %v16823_v15 = vpop.permute.xlu0 %2775  ;;  %2787 = vrot.lane.b32.xlu0 %v16817_v32, %s15689_s24  ;;  %v16830_v19 = vpop.permute.xlu1 %464  ;;  %3719 = vst.msk [vmem:[#allocation2 + $0x468] sm:$0x3] %vm3664_vm10, %v15690_v54 }
 0x1e5   : > { %v16838_v21 = vpop.permute.xlu2 %850  ;;  %2402 = vrot.lane.b32.xlu2 %v16850_v33, %s15688_s23  ;;  %3721 = vst.msk [vmem:[#allocation2 + $0x508] sm:$0x3] %vm3664_vm10, %v15690_v54  ;;  %v3311_v31 = vpop.f32.mrf.mxu0 }
 0x1e6   : > { %3726 = vst.msk [vmem:[#allocation2 + $0x1d8] sm:$0x3] %vm3664_vm10, %v15690_v54  ;;  %vm3481_vm11 = vcmp.ge.f32.partialorder %v3311_v31, 0.0 }
 0x1e7   : > { %14256 = vmatpush.xpose.msk.msra.mxu0 %vm3662_vm9, %v6355_v26  ;;  %3728 = vst.msk [vmem:[#allocation2 + $0x278] sm:$0x3] %vm3664_vm10, %v15690_v54 }
 0x1e8   : > { %3730 = vst.msk [vmem:[#allocation2 + $0x318] sm:$0x3] %vm3664_vm10, %v15690_v54 }
 0x1e9   : > { %3732 = vst.msk [vmem:[#allocation2 + $0x3b8] sm:$0x3] %vm3664_vm10, %v15690_v54 }
 0x1ea   : > { %3734 = vst.msk [vmem:[#allocation2 + $0x458] sm:$0x3] %vm3664_vm10, %v15690_v54 }
 0x1eb   : > { %1633 = vrot.lane.b32.xlu1 %v16850_v33, %s15687_s22  ;;  %14257 = vmatpush.xpose.msk.msra.mxu0 %vm3662_vm9, %v16475_v45  ;;  %3736 = vst.msk [vmem:[#allocation2 + $0x4f8] sm:$0x3] %vm3664_vm10, %v15690_v54 }
 0x1ec   : > { %v16854_v42 = vpop.permute.xlu0 %1235  ;;  %1247 = vrot.lane.b32.xlu0 %v16330_v60, %s15684_s19  ;;  %v16861_v27 = vpop.permute.xlu1 %1621  ;;  %v16881_v60 = vld [vmem:[%s15725_s17 + $0x260] sm:$0xff]  ;;  %3738 = vst.msk [vmem:[#allocation2 + $0x598] sm:$0x3] %vm3664_vm10, %v15690_v54 }
 0x1ed   : > { %v16870_v28 = vpop.permute.xlu2 %2006  ;;  %862 = vrot.lane.b32.xlu2 %v16922_v10, %s15686_s21  ;;  %2950 = vst.msk [vmem:[#allocation3 + $0x90] sm:$0xff] %vm2931_vm7, %v16823_v15 }
 0x1ee   : > { %254 = vst.msk [vmem:[#allocation3 + $0xa0] sm:$0xff] %vm233_vm0, %v189_v14 }
 0x1ef   : > { %14258 = vmatpush.xpose.msk.msra.mxu0 %vm3662_vm9, %v16483_v46  ;;  %v13414_v46 = vld [vmem:[%s15725_s17 + $0x1e1] sm:$0xff]  ;;  %255 = vst.msk [vmem:[#allocation3 + $0xa8] sm:$0xff] %vm233_vm0, %v190_v62 }
 0x1f0   : > { %256 = vst.msk [vmem:[#allocation3 + $0xb0] sm:$0xff] %vm233_vm0, %v191_v11 }
 0x1f1   : > { %257 = vst.msk [vmem:[#allocation3 + $0xb8] sm:$0xff] %vm233_vm0, %v16675_v9 }
 0x1f2   : > { %260 = vst.msk [vmem:[#allocation3 + $0xd0] sm:$0xff] %vm233_vm0, %v16922_v10 }
 0x1f3   : > { %2789 = vrot.lane.b32.xlu1 %v16886_v48, %s15689_s24  ;;  %14259 = vmatpush.xpose.msk.msra.mxu0 %vm3662_vm9, %v16502_v53  ;;  %262 = vst.msk [vmem:[#allocation3 + $0xe0] sm:$0xff] %vm233_vm0, %v16976_v18 }
 0x1f4   : > { %v16890_v34 = vpop.permute.xlu0 %2392  ;;  %2404 = vrot.lane.b32.xlu0 %v16881_v60, %s15688_s23  ;;  %v16898_v45 = vpop.permute.xlu1 %2777  ;;  %v3014_v40 = vld [vmem:[#allocation3 + $0x90] sm:$0xff] }
 0x1f5   : > { %v16908_v58 = vpop.permute.xlu2 %466  ;;  %2018 = vrot.lane.b32.xlu2 %v16817_v32, %s15685_s20  ;;  %13726 = vmatmul.msk.f32.gmra.mxu0 %vm3068_vm8, %v3014_v40 }
 0x1f6   : > { %639 = vst.msk [vmem:[#allocation3 + $0xa0] sm:$0xff] %vm618_vm1, %v16908_v58  ;;  %v193_v58 = vld [vmem:[%s15725_s17 + $0x1b0] sm:$0xff] }
 0x1f7   : > { %14260 = vmatpush.xpose.msk.msra.mxu0 %vm3662_vm9, %v16510_v55  ;;  %v188_v55 = vld [vmem:[%s15725_s17 + $0x150] sm:$0xff]  ;;  %258 = vst.msk [vmem:[#allocation3 + $0xc0] sm:$0xff] %vm233_vm0, %v193_v58 }
 0x1f8   : > { %253 = vst.msk [vmem:[#allocation3 + $0x98] sm:$0xff] %vm233_vm0, %v188_v55 }
 0x1f9   : > { %638 = vst.msk [vmem:[#allocation3 + $0x98] sm:$0xff] %vm618_vm1, %v16830_v19 }
 0x1fa   : > { %v3314_v54 = vpop.f32.mrf.mxu0  ;;  %1024 = vst.msk [vmem:[#allocation3 + $0x98] sm:$0xff] %vm1004_vm2, %v16838_v21  ;;  %v17036_v21 = vld [vmem:[%s15725_s17 + $0x280] sm:$0xff] }
 0x1fb   : > { %1249 = vrot.lane.b32.xlu1 %v13414_v46, %s15684_s19  ;;  %14261 = vmatpush.xpose.msk.msra.mxu0 %vm3662_vm9, %v16526_v57  ;;  %1409 = vst.msk [vmem:[#allocation3 + $0x98] sm:$0xff] %vm1389_vm3, %v16854_v42  ;;  %v3546_v38 = vmul.f32 0.2, %v3314_v54  ;;  %vm3482_vm13 = vcmp.ge.f32.partialorder %v3314_v54, 0.0 }
 0x1fc   : > { %v853_v29 = vpop.permute.xlu0 %852  ;;  %864 = vrot.lane.b32.xlu0 %v16370_v37, %s15686_s21  ;;  %v1238_v53 = vpop.permute.xlu1 %1237  ;;  %v3545_v37 = vmul.f32 0.2, %v3311_v31  ;;  %1795 = vst.msk [vmem:[#allocation3 + $0x98] sm:$0xff] %vm1775_vm4, %v16861_v27 }
 0x1fd   : > { %v1624_v13 = vpop.permute.xlu2 %1623  ;;  %2180 = vst.msk [vmem:[#allocation3 + $0x98] sm:$0xff] %vm2160_vm5, %v16870_v28  ;;  %v3610_v49 = vsel %vm3482_vm13, %v3314_v54, %v3546_v38  ;;  %478 = vrot.lane.b32.xlu2 %v324_v4, %s15683_s18  ;;  %v17058_v28 = vld [vmem:[%s15725_s17 + $0x291] sm:$0xff]  ;;  %v17107_v4 = vld [vmem:[%s15725_s17 + $0x2a1] sm:$0xff] }
 0x1fe   : > { %v3609_v36 = vsel %vm3481_vm11, %v3311_v31, %v3545_v37  ;;  %2566 = vst.msk [vmem:[#allocation3 + $0x98] sm:$0xff] %vm2546_vm6, %v16890_v34 }
 0x1ff   : > { %14262 = vmatpush.xpose.msk.msra.mxu0 %vm3662_vm9, %v16537_v61  ;;  %3880 = vst.msk [vmem:[#allocation2 + $0x181] sm:$0xff] %vm3662_vm9, %v3609_v36 }
 0x200   : > { %2951 = vst.msk [vmem:[#allocation3 + $0x98] sm:$0xff] %vm2931_vm7, %v16898_v45 }
 0x201   : > { %3881 = vst.msk [vmem:[#allocation2 + $0x191] sm:$0xff] %vm3662_vm9, %v3610_v49 }
 0x202   : > { %1025 = vst.msk [vmem:[#allocation3 + $0xa0] sm:$0xff] %vm1004_vm2, %v853_v29 }
 0x203   : > { %2406 = vrot.lane.b32.xlu1 %v16951_v17, %s15688_s23  ;;  %1410 = vst.msk [vmem:[#allocation3 + $0xa0] sm:$0xff] %vm1389_vm3, %v1238_v53 }
 0x204   : > { %v2009_v35 = vpop.permute.xlu0 %2008  ;;  %2020 = vrot.lane.b32.xlu0 %v16886_v48, %s15685_s20  ;;  %v2395_v57 = vpop.permute.xlu1 %2394  ;;  %1796 = vst.msk [vmem:[#allocation3 + $0xa0] sm:$0xff] %vm1775_vm4, %v1624_v13  ;;  %v194_v13 = vld [vmem:[%s15725_s17 + $0x1c0] sm:$0xff] }
 0x205   : > { %v2780_v61 = vpop.permute.xlu2 %2779  ;;  %2181 = vst.msk [vmem:[#allocation3 + $0xa0] sm:$0xff] %vm2160_vm5, %v2009_v35  ;;  %1635 = vrot.lane.b32.xlu2 %v16881_v60, %s15687_s22 }
 0x206   : > { %2567 = vst.msk [vmem:[#allocation3 + $0xa0] sm:$0xff] %vm2546_vm6, %v2395_v57  ;;  %v327_v57 = vld [vmem:[%s15725_s17 + $0x201] sm:$0xff] }
 0x207   : > { %v3015_v5 = vld [vmem:[#allocation3 + $0x98] sm:$0xff]  ;;  %2952 = vst.msk [vmem:[#allocation3 + $0xa0] sm:$0xff] %vm2931_vm7, %v2780_v61 }
 0x208   : > { %13727 = vmatmul.msk.f32.gmra.mxu0 %vm3068_vm8, %v3015_v5  ;;  %259 = vst.msk [vmem:[#allocation3 + $0xc8] sm:$0xff] %vm233_vm0, %v194_v13  ;;  %v17212_v13 = vld [vmem:[%s15725_s17 + $0x2f1] sm:$0xff] }
 0x20b   : > { %866 = vrot.lane.b32.xlu1 %v16976_v18, %s15686_s21  ;;  %v3317_v50 = vpop.f32.mrf.mxu0 }
 0x20c   : > { %v469_v43 = vpop.permute.xlu0 %468  ;;  %480 = vrot.lane.b32.xlu0 %v13414_v46, %s15683_s18  ;;  %v3547_v52 = vmul.f32 0.2, %v3317_v50  ;;  %vm3483_vm14 = vcmp.ge.f32.partialorder %v3317_v50, 0.0  ;;  %v13352_v46 = vld [vmem:[%s15725_s17 + $0x200] sm:$0xff] }
 0x20d   : > { %v855_v44 = vpop.permute.xlu1 %854  ;;  %v1240_v47 = vpop.permute.xlu2 %1239  ;;  %640 = vst.msk [vmem:[#allocation3 + $0xa8] sm:$0xff] %vm618_vm1, %v469_v43  ;;  %2791 = vrot.lane.b32.xlu2 %v16998_v22, %s15689_s24 }
 0x20e   : > { %v3611_v23 = vsel %vm3483_vm14, %v3317_v50, %v3547_v52  ;;  %1026 = vst.msk [vmem:[#allocation3 + $0xa8] sm:$0xff] %vm1004_vm2, %v855_v44  ;;  %v3016_v8 = vld [vmem:[#allocation3 + $0xa0] sm:$0xff]  ;;  %v17120_v44 = vld [vmem:[%s15725_s17 + $0x2b1] sm:$0xff] }
 0x20f   : > { %1411 = vst.msk [vmem:[#allocation3 + $0xa8] sm:$0xff] %vm1389_vm3, %v1240_v47  ;;  %v17133_v52 = vld [vmem:[%s15725_s17 + $0x2b0] sm:$0xff] }
 0x210   : > { %3882 = vst.msk [vmem:[#allocation2 + $0x1a1] sm:$0xff] %vm3662_vm9, %v3611_v23  ;;  %13728 = vmatmul.msk.f32.gmra.mxu0 %vm3068_vm8, %v3016_v8 }
 0x211   : > { %263 = vst.msk [vmem:[#allocation3 + $0xe8] sm:$0xff] %vm233_vm0, %v13352_v46 }
 0x213   : > { %2022 = vrot.lane.b32.xlu1 %v16998_v22, %s15685_s20 }
 0x214   : > { %v1626_v51 = vpop.permute.xlu0 %1625  ;;  %1637 = vrot.lane.b32.xlu0 %v16951_v17, %s15687_s22 }
 0x215   : > { %v2011_v56 = vpop.permute.xlu1 %2010  ;;  %v2397_v6 = vpop.permute.xlu2 %2396  ;;  %1797 = vst.msk [vmem:[#allocation3 + $0xa8] sm:$0xff] %vm1775_vm4, %v1626_v51  ;;  %1251 = vrot.lane.b32.xlu2 %v326_v1, %s15684_s19 }
 0x216   : > { %2182 = vst.msk [vmem:[#allocation3 + $0xa8] sm:$0xff] %vm2160_vm5, %v2011_v56 }
 0x217   : > { %2568 = vst.msk [vmem:[#allocation3 + $0xa8] sm:$0xff] %vm2546_vm6, %v2397_v6 }
 0x21b   : > { %482 = vrot.lane.b32.xlu1 %v326_v1, %s15683_s18 }
 0x21c   : > { %v3320_v0 = vpop.f32.mrf.mxu0  ;;  %2793 = vrot.lane.b32.xlu0 %v17016_v30, %s15689_s24 }
 0x21d   : > { %v471_v39 = vpop.permute.xlu1 %470  ;;  %v3548_v3 = vmul.f32 0.2, %v3320_v0  ;;  %vm3484_vm12 = vcmp.ge.f32.partialorder %v3320_v0, 0.0  ;;  %v857_v15 = vpop.permute.xlu2 %856  ;;  %2408 = vrot.lane.b32.xlu2 %v17036_v21, %s15688_s23 }
 0x21e   : > { %v2782_v2 = vpop.permute.xlu0 %2781  ;;  %641 = vst.msk [vmem:[#allocation3 + $0xb0] sm:$0xff] %vm618_vm1, %v471_v39 }
 0x21f   : > { %2953 = vst.msk [vmem:[#allocation3 + $0xa8] sm:$0xff] %vm2931_vm7, %v2782_v2  ;;  %v3612_v19 = vsel %vm3484_vm12, %v3320_v0, %v3548_v3  ;;  %v17150_v3 = vld [vmem:[%s15725_s17 + $0x2c1] sm:$0xff] }
 0x220   : > { %1027 = vst.msk [vmem:[#allocation3 + $0xb0] sm:$0xff] %vm1004_vm2, %v857_v15  ;;  %v196_v15 = vld [vmem:[%s15725_s17 + $0x1e0] sm:$0xff] }
 0x221   : > { %3883 = vst.msk [vmem:[#allocation2 + $0x1b1] sm:$0xff] %vm3662_vm9, %v3612_v19 }
 0x222   : > { %261 = vst.msk [vmem:[#allocation3 + $0xd8] sm:$0xff] %vm233_vm0, %v196_v15 }
 0x223   : > { %1639 = vrot.lane.b32.xlu1 %v17036_v21, %s15687_s22 }
 0x224   : > { %1253 = vrot.lane.b32.xlu0 %v16466_v41, %s15684_s19  ;;  %v17053_v41 = vld [vmem:[%s15725_s17 + $0x290] sm:$0xff] }
 0x225   : > { %v1628_v26 = vpop.permute.xlu1 %1627  ;;  %v2013_v27 = vpop.permute.xlu2 %2012  ;;  %868 = vrot.lane.b32.xlu2 %v13352_v46, %s15686_s21 }
 0x226   : > { %v1242_v24 = vpop.permute.xlu0 %1241  ;;  %v3017_v42 = vld [vmem:[#allocation3 + $0xa8] sm:$0xff] }
 0x227   : > { %1412 = vst.msk [vmem:[#allocation3 + $0xb0] sm:$0xff] %vm1389_vm3, %v1242_v24  ;;  %13729 = vmatmul.msk.f32.gmra.mxu0 %vm3068_vm8, %v3017_v42 }
 0x228   : > { %1798 = vst.msk [vmem:[#allocation3 + $0xb0] sm:$0xff] %vm1775_vm4, %v1628_v26 }
 0x229   : > { %2183 = vst.msk [vmem:[#allocation3 + $0xb0] sm:$0xff] %vm2160_vm5, %v2013_v27  ;;  %v17177_v27 = vld [vmem:[%s15725_s17 + $0x2e0] sm:$0xff] }
 0x22b   : > { %2795 = vrot.lane.b32.xlu1 %v17058_v28, %s15689_s24 }
 0x22c   : > { %2410 = vrot.lane.b32.xlu0 %v17053_v41, %s15688_s23 }
 0x22d   : > { %v2784_v9 = vpop.permute.xlu1 %2783  ;;  %v473_v45 = vpop.permute.xlu2 %472  ;;  %2024 = vrot.lane.b32.xlu2 %v17016_v30, %s15685_s20 }
 0x22e   : > { %v2399_v34 = vpop.permute.xlu0 %2398  ;;  %642 = vst.msk [vmem:[#allocation3 + $0xb8] sm:$0xff] %vm618_vm1, %v473_v45  ;;  %v13484_v45 = vld [vmem:[%s15725_s17 + $0x2d0] sm:$0xff] }
 0x22f   : > { %2569 = vst.msk [vmem:[#allocation3 + $0xb0] sm:$0xff] %vm2546_vm6, %v2399_v34 }
 0x230   : > { %2954 = vst.msk [vmem:[#allocation3 + $0xb0] sm:$0xff] %vm2931_vm7, %v2784_v9 }
 0x231   : > { %274 = vst.msk [vmem:[#allocation3 + $0x140] sm:$0xff] %vm233_vm0, %v13484_v45 }
 0x233   : > { %1255 = vrot.lane.b32.xlu1 %v16611_v63, %s15684_s19  ;;  %v3323_v18 = vpop.f32.mrf.mxu0 }
 0x234   : > { %870 = vrot.lane.b32.xlu0 %v16636_v25, %s15686_s21  ;;  %v17085_v25 = vld [vmem:[%s15725_s17 + $0x2a0] sm:$0xff]  ;;  %vm3485_vm15 = vcmp.ge.f32.partialorder %v3323_v18, 0.0 }
 0x235   : > { %v1244_v29 = vpop.permute.xlu1 %1243  ;;  %v1630_v31 = vpop.permute.xlu2 %1629  ;;  %484 = vrot.lane.b32.xlu2 %v327_v57, %s15683_s18 }
 0x236   : > { %v859_v10 = vpop.permute.xlu0 %858 }
 0x237   : > { %1028 = vst.msk [vmem:[#allocation3 + $0xb8] sm:$0xff] %vm1004_vm2, %v859_v10  ;;  %v3018_v53 = vld [vmem:[#allocation3 + $0xb0] sm:$0xff] }
 0x238   : > { %1413 = vst.msk [vmem:[#allocation3 + $0xb8] sm:$0xff] %vm1389_vm3, %v1244_v29  ;;  %13730 = vmatmul.msk.f32.gmra.mxu0 %vm3068_vm8, %v3018_v53 }
 0x239   : > { %1799 = vst.msk [vmem:[#allocation3 + $0xb8] sm:$0xff] %vm1775_vm4, %v1630_v31 }
 0x23b   : > { %2412 = vrot.lane.b32.xlu1 %v17085_v25, %s15688_s23 }
 0x23c   : > { %2026 = vrot.lane.b32.xlu0 %v17058_v28, %s15685_s20 }
 0x23d   : > { %v2401_v55 = vpop.permute.xlu1 %2400  ;;  %v2786_v35 = vpop.permute.xlu2 %2785  ;;  %1641 = vrot.lane.b32.xlu2 %v17053_v41, %s15687_s22 }
 0x23e   : > { %v2015_v37 = vpop.permute.xlu0 %2014 }
 0x23f   : > { %2184 = vst.msk [vmem:[#allocation3 + $0xb8] sm:$0xff] %vm2160_vm5, %v2015_v37 }
 0x240   : > { %2570 = vst.msk [vmem:[#allocation3 + $0xb8] sm:$0xff] %vm2546_vm6, %v2401_v55 }
 0x241   : > { %2955 = vst.msk [vmem:[#allocation3 + $0xb8] sm:$0xff] %vm2931_vm7, %v2786_v35 }
 0x243   : > { %872 = vrot.lane.b32.xlu1 %v16672_v20, %s15686_s21  ;;  %v3326_v49 = vpop.f32.mrf.mxu0 }
 0x244   : > { %486 = vrot.lane.b32.xlu0 %v16611_v63, %s15683_s18  ;;  %v3549_v63 = vmul.f32 0.2, %v3323_v18  ;;  %vm3486_vm10 = vcmp.ge.f32.partialorder %v3326_v49, 0.0  ;;  %v3550_v47 = vmul.f32 0.2, %v3326_v49 }
 0x245   : > { %v861_v54 = vpop.permute.xlu1 %860  ;;  %v1246_v61 = vpop.permute.xlu2 %1245  ;;  %2797 = vrot.lane.b32.xlu2 %v17107_v4, %s15689_s24 }
 0x246   : > { %v475_v36 = vpop.permute.xlu0 %474  ;;  %v3613_v14 = vsel %vm3485_vm15, %v3323_v18, %v3549_v63  ;;  %v3614_v50 = vsel %vm3486_vm10, %v3326_v49, %v3550_v47  ;;  %v17240_v49 = vld [vmem:[%s15725_s17 + $0x300] sm:$0xff] }
 0x247   : > { %643 = vst.msk [vmem:[#allocation3 + $0xc0] sm:$0xff] %vm618_vm1, %v475_v36  ;;  %v17243_v47 = vld [vmem:[%s15725_s17 + $0x301] sm:$0xff] }
 0x248   : > { %1029 = vst.msk [vmem:[#allocation3 + $0xc0] sm:$0xff] %vm1004_vm2, %v861_v54  ;;  %v3019_v38 = vld [vmem:[#allocation3 + $0xb8] sm:$0xff] }
 0x249   : > { %1414 = vst.msk [vmem:[#allocation3 + $0xc0] sm:$0xff] %vm1389_vm3, %v1246_v61  ;;  %13731 = vmatmul.msk.f32.gmra.mxu0 %vm3068_vm8, %v3019_v38  ;;  %v17225_v61 = vld [vmem:[%s15725_s17 + $0x2f0] sm:$0xff] }
 0x24a   : > { %3884 = vst.msk [vmem:[#allocation2 + $0x1c1] sm:$0xff] %vm3662_vm9, %v3613_v14  ;;  %v199_v14 = vld [vmem:[%s15725_s17 + $0x210] sm:$0xff] }
 0x24b   : > { %2028 = vrot.lane.b32.xlu1 %v17107_v4, %s15685_s20  ;;  %3885 = vst.msk [vmem:[#allocation2 + $0x1f1] sm:$0xff] %vm3662_vm9, %v3614_v50 }
 0x24c   : > { %1643 = vrot.lane.b32.xlu0 %v17085_v25, %s15687_s22  ;;  %264 = vst.msk [vmem:[#allocation3 + $0xf0] sm:$0xff] %vm233_vm0, %v199_v14  ;;  %v17339_v14 = vld [vmem:[%s15725_s17 + $0x330] sm:$0xff] }
 0x24d   : > { %v2017_v20 = vpop.permute.xlu1 %2016  ;;  %v2403_v43 = vpop.permute.xlu2 %2402  ;;  %1257 = vrot.lane.b32.xlu2 %v16664_v16, %s15684_s19 }
 0x24e   : > { %v1632_v40 = vpop.permute.xlu0 %1631 }
 0x24f   : > { %1800 = vst.msk [vmem:[#allocation3 + $0xc0] sm:$0xff] %vm1775_vm4, %v1632_v40 }
 0x250   : > { %2185 = vst.msk [vmem:[#allocation3 + $0xc0] sm:$0xff] %vm2160_vm5, %v2017_v20 }
 0x251   : > { %2571 = vst.msk [vmem:[#allocation3 + $0xc0] sm:$0xff] %vm2546_vm6, %v2403_v43 }
 0x253   : > { %488 = vrot.lane.b32.xlu1 %v16664_v16, %s15683_s18 }
 0x254   : > { %2799 = vrot.lane.b32.xlu0 %v17120_v44, %s15689_s24 }
 0x255   : > { %v477_v5 = vpop.permute.xlu1 %476  ;;  %v863_v62 = vpop.permute.xlu2 %862  ;;  %2414 = vrot.lane.b32.xlu2 %v17133_v52, %s15688_s23 }
 0x256   : > { %v2788_v51 = vpop.permute.xlu0 %2787  ;;  %644 = vst.msk [vmem:[#allocation3 + $0xc8] sm:$0xff] %vm618_vm1, %v477_v5  ;;  %v3329_v56 = vpop.f32.mrf.mxu0 }
 0x257   : > { %2956 = vst.msk [vmem:[#allocation3 + $0xc0] sm:$0xff] %vm2931_vm7, %v2788_v51  ;;  %vm3487_vm11 = vcmp.ge.f32.partialorder %v3329_v56, 0.0  ;;  %v3551_v6 = vmul.f32 0.2, %v3329_v56 }
 0x258   : > { %1030 = vst.msk [vmem:[#allocation3 + $0xc8] sm:$0xff] %vm1004_vm2, %v863_v62 }
 0x259   : > { %v3615_v0 = vsel %vm3487_vm11, %v3329_v56, %v3551_v6 }
 0x25a   : > { %3886 = vst.msk [vmem:[#allocation2 + $0x201] sm:$0xff] %vm3662_vm9, %v3615_v0 }
 0x25b   : > { %1645 = vrot.lane.b32.xlu1 %v17133_v52, %s15687_s22 }
 0x25c   : > { %1259 = vrot.lane.b32.xlu0 %v16821_v12, %s15684_s19  ;;  %v17146_v12 = vld [vmem:[%s15725_s17 + $0x2c0] sm:$0xff] }
 0x25d   : > { %v1634_v1 = vpop.permute.xlu1 %1633  ;;  %v2019_v39 = vpop.permute.xlu2 %2018  ;;  %874 = vrot.lane.b32.xlu2 %v16729_v59, %s15686_s21 }
 0x25e   : > { %v1248_v23 = vpop.permute.xlu0 %1247  ;;  %v3020_v2 = vld [vmem:[#allocation3 + $0xc0] sm:$0xff] }
 0x25f   : > { %1415 = vst.msk [vmem:[#allocation3 + $0xc8] sm:$0xff] %vm1389_vm3, %v1248_v23  ;;  %13732 = vmatmul.msk.f32.gmra.mxu0 %vm3068_vm8, %v3020_v2 }
 0x260   : > { %1801 = vst.msk [vmem:[#allocation3 + $0xc8] sm:$0xff] %vm1775_vm4, %v1634_v1 }
 0x261   : > { %2186 = vst.msk [vmem:[#allocation3 + $0xc8] sm:$0xff] %vm2160_vm5, %v2019_v39 }
 0x263   : > { %2801 = vrot.lane.b32.xlu1 %v17150_v3, %s15689_s24 }
 0x264   : > { %2416 = vrot.lane.b32.xlu0 %v17146_v12, %s15688_s23 }
 0x265   : > { %v2790_v8 = vpop.permute.xlu1 %2789  ;;  %v479_v11 = vpop.permute.xlu2 %478  ;;  %2030 = vrot.lane.b32.xlu2 %v17120_v44, %s15685_s20 }
 0x266   : > { %v2405_v16 = vpop.permute.xlu0 %2404  ;;  %645 = vst.msk [vmem:[#allocation3 + $0xd0] sm:$0xff] %vm618_vm1, %v479_v11 }
 0x267   : > { %2572 = vst.msk [vmem:[#allocation3 + $0xc8] sm:$0xff] %vm2546_vm6, %v2405_v16 }
 0x268   : > { %2957 = vst.msk [vmem:[#allocation3 + $0xc8] sm:$0xff] %vm2931_vm7, %v2790_v8  ;;  %v17269_v8 = vld [vmem:[%s15725_s17 + $0x310] sm:$0xff] }
 0x26b   : > { %1261 = vrot.lane.b32.xlu1 %v16817_v32, %s15684_s19 }
 0x26c   : > { %876 = vrot.lane.b32.xlu0 %v16850_v33, %s15686_s21  ;;  %v17174_v33 = vld [vmem:[%s15725_s17 + $0x2d1] sm:$0xff] }
 0x26d   : > { %v1250_v24 = vpop.permute.xlu1 %1249  ;;  %v1636_v42 = vpop.permute.xlu2 %1635  ;;  %490 = vrot.lane.b32.xlu2 %v16780_v7, %s15683_s18 }
 0x26e   : > { %v865_v19 = vpop.permute.xlu0 %864 }
 0x26f   : > { %1031 = vst.msk [vmem:[#allocation3 + $0xd0] sm:$0xff] %vm1004_vm2, %v865_v19  ;;  %v3021_v26 = vld [vmem:[#allocation3 + $0xc8] sm:$0xff] }
 0x270   : > { %1416 = vst.msk [vmem:[#allocation3 + $0xd0] sm:$0xff] %vm1389_vm3, %v1250_v24  ;;  %13733 = vmatmul.msk.f32.gmra.mxu0 %vm3068_vm8, %v3021_v26 }
 0x271   : > { %1802 = vst.msk [vmem:[#allocation3 + $0xd0] sm:$0xff] %vm1775_vm4, %v1636_v42 }
 0x272   : > { %v3332_v31 = vpop.f32.mrf.mxu0 }
 0x273   : > { %2418 = vrot.lane.b32.xlu1 %v17177_v27, %s15688_s23  ;;  %vm3488_vm13 = vcmp.ge.f32.partialorder %v3332_v31, 0.0  ;;  %v3552_v37 = vmul.f32 0.2, %v3332_v31 }
 0x274   : > { %2032 = vrot.lane.b32.xlu0 %v17174_v33, %s15685_s20 }
 0x275   : > { %v2407_v34 = vpop.permute.xlu1 %2406  ;;  %v2792_v9 = vpop.permute.xlu2 %2791  ;;  %1647 = vrot.lane.b32.xlu2 %v13484_v45, %s15687_s22  ;;  %v3616_v55 = vsel %vm3488_vm13, %v3332_v31, %v3552_v37  ;;  %v201_v45 = vld [vmem:[%s15725_s17 + $0x240] sm:$0xff] }
 0x276   : > { %v2021_v59 = vpop.permute.xlu0 %2020  ;;  %3887 = vst.msk [vmem:[#allocation2 + $0x211] sm:$0xff] %vm3662_vm9, %v3616_v55 }
 0x277   : > { %2187 = vst.msk [vmem:[#allocation3 + $0xd0] sm:$0xff] %vm2160_vm5, %v2021_v59 }
 0x278   : > { %2573 = vst.msk [vmem:[#allocation3 + $0xd0] sm:$0xff] %vm2546_vm6, %v2407_v34 }
 0x279   : > { %2958 = vst.msk [vmem:[#allocation3 + $0xd0] sm:$0xff] %vm2931_vm7, %v2792_v9 }
 0x27a   : > { %266 = vst.msk [vmem:[#allocation3 + $0x100] sm:$0xff] %vm233_vm0, %v201_v45 }
 0x27b   : > { %878 = vrot.lane.b32.xlu1 %v16881_v60, %s15686_s21 }
 0x27c   : > { %492 = vrot.lane.b32.xlu0 %v16817_v32, %s15683_s18  ;;  %v17201_v32 = vld [vmem:[%s15725_s17 + $0x2e1] sm:$0xff] }
 0x27d   : > { %v867_v46 = vpop.permute.xlu1 %866  ;;  %v1252_v10 = vpop.permute.xlu2 %1251  ;;  %2803 = vrot.lane.b32.xlu2 %v17201_v32, %s15689_s24 }
 0x27e   : > { %v481_v58 = vpop.permute.xlu0 %480 }
 0x27f   : > { %646 = vst.msk [vmem:[#allocation3 + $0xd8] sm:$0xff] %vm618_vm1, %v481_v58 }
 0x280   : > { %1032 = vst.msk [vmem:[#allocation3 + $0xd8] sm:$0xff] %vm1004_vm2, %v867_v46  ;;  %v3022_v29 = vld [vmem:[#allocation3 + $0xd0] sm:$0xff] }
 0x281   : > { %1417 = vst.msk [vmem:[#allocation3 + $0xd8] sm:$0xff] %vm1389_vm3, %v1252_v10  ;;  %13734 = vmatmul.msk.f32.gmra.mxu0 %vm3068_vm8, %v3022_v29  ;;  %v17308_v10 = vld [vmem:[%s15725_s17 + $0x321] sm:$0xff] }
 0x283   : > { %2034 = vrot.lane.b32.xlu1 %v17201_v32, %s15685_s20 }
 0x284   : > { %1649 = vrot.lane.b32.xlu0 %v17177_v27, %s15687_s22 }
 0x285   : > { %v2023_v60 = vpop.permute.xlu1 %2022  ;;  %v2409_v53 = vpop.permute.xlu2 %2408  ;;  %1263 = vrot.lane.b32.xlu2 %v16886_v48, %s15684_s19 }
 0x286   : > { %v1638_v7 = vpop.permute.xlu0 %1637  ;;  %v3335_v54 = vpop.f32.mrf.mxu0 }
 0x287   : > { %1803 = vst.msk [vmem:[#allocation3 + $0xd8] sm:$0xff] %vm1775_vm4, %v1638_v7  ;;  %vm3489_vm14 = vcmp.ge.f32.partialorder %v3335_v54, 0.0  ;;  %v3553_v38 = vmul.f32 0.2, %v3335_v54 }
 0x288   : > { %2188 = vst.msk [vmem:[#allocation3 + $0xd8] sm:$0xff] %vm2160_vm5, %v2023_v60 }
 0x289   : > { %2574 = vst.msk [vmem:[#allocation3 + $0xd8] sm:$0xff] %vm2546_vm6, %v2409_v53  ;;  %v3617_v18 = vsel %vm3489_vm14, %v3335_v54, %v3553_v38  ;;  %v4025_v54 = vld [vmem:[#allocation2 + $0x211] sm:$0xff] }
 0x28a   : > { %3888 = vst.msk [vmem:[#allocation2 + $0x221] sm:$0xff] %vm3662_vm9, %v3617_v18 }
 0x28b   : > { %494 = vrot.lane.b32.xlu1 %v16886_v48, %s15683_s18 }
 0x28c   : > { %2805 = vrot.lane.b32.xlu0 %v17212_v13, %s15689_s24 }
 0x28d   : > { %v483_v57 = vpop.permute.xlu1 %482  ;;  %v869_v36 = vpop.permute.xlu2 %868  ;;  %2420 = vrot.lane.b32.xlu2 %v17225_v61, %s15688_s23 }
 0x28e   : > { %v2794_v35 = vpop.permute.xlu0 %2793  ;;  %647 = vst.msk [vmem:[#allocation3 + $0xe0] sm:$0xff] %vm618_vm1, %v483_v57  ;;  %v3338_v48 = vpop.f32.mrf.mxu0 }
 0x28f   : > { %2959 = vst.msk [vmem:[#allocation3 + $0xd8] sm:$0xff] %vm2931_vm7, %v2794_v35  ;;  %vm3490_vm12 = vcmp.ge.f32.partialorder %v3338_v48, 0.0  ;;  %v3554_v50 = vmul.f32 0.2, %v3338_v48 }
 0x290   : > { %1033 = vst.msk [vmem:[#allocation3 + $0xe0] sm:$0xff] %vm1004_vm2, %v869_v36  ;;  %v17323_v36 = vld [vmem:[%s15725_s17 + $0x320] sm:$0xff] }
 0x291   : > { %v3618_v51 = vsel %vm3490_vm12, %v3338_v48, %v3554_v50  ;;  %v4026_v57 = vld [vmem:[#allocation2 + $0x221] sm:$0xff]  ;;  %v17342_v48 = vld [vmem:[%s15725_s17 + $0x331] sm:$0xff] }
 0x292   : > { %3889 = vst.msk [vmem:[#allocation2 + $0x231] sm:$0xff] %vm3662_vm9, %v3618_v51 }
 0x293   : > { %1651 = vrot.lane.b32.xlu1 %v17225_v61, %s15687_s22 }
 0x294   : > { %1265 = vrot.lane.b32.xlu0 %v16998_v22, %s15684_s19 }
 0x295   : > { %v1640_v20 = vpop.permute.xlu1 %1639  ;;  %v2025_v43 = vpop.permute.xlu2 %2024  ;;  %880 = vrot.lane.b32.xlu2 %v16951_v17, %s15686_s21 }
 0x296   : > { %v1254_v63 = vpop.permute.xlu0 %1253  ;;  %v3023_v40 = vld [vmem:[#allocation3 + $0xd8] sm:$0xff] }
 0x297   : > { %1418 = vst.msk [vmem:[#allocation3 + $0xe0] sm:$0xff] %vm1389_vm3, %v1254_v63  ;;  %13735 = vmatmul.msk.f32.gmra.mxu0 %vm3068_vm8, %v3023_v40  ;;  %v202_v40 = vld [vmem:[%s15725_s17 + $0x250] sm:$0xff] }
 0x298   : > { %1804 = vst.msk [vmem:[#allocation3 + $0xe0] sm:$0xff] %vm1775_vm4, %v1640_v20 }
 0x299   : > { %2189 = vst.msk [vmem:[#allocation3 + $0xe0] sm:$0xff] %vm2160_vm5, %v2025_v43  ;;  %v4027_v60 = vld [vmem:[#allocation2 + $0x231] sm:$0xff]  ;;  %v4024_v43 = vld [vmem:[#allocation2 + $0x201] sm:$0xff] }
 0x29a   : > { %267 = vst.msk [vmem:[#allocation3 + $0x108] sm:$0xff] %vm233_vm0, %v202_v40 }
 0x29b   : > { %2807 = vrot.lane.b32.xlu1 %v17243_v47, %s15689_s24 }
 0x29c   : > { %2422 = vrot.lane.b32.xlu0 %v17240_v49, %s15688_s23 }
 0x29d   : > { %v2796_v62 = vpop.permute.xlu1 %2795  ;;  %v485_v56 = vpop.permute.xlu2 %484  ;;  %2036 = vrot.lane.b32.xlu2 %v17212_v13, %s15685_s20 }
 0x29e   : > { %v2411_v5 = vpop.permute.xlu0 %2410  ;;  %648 = vst.msk [vmem:[#allocation3 + $0xe8] sm:$0xff] %vm618_vm1, %v485_v56 }
 0x29f   : > { %2575 = vst.msk [vmem:[#allocation3 + $0xe0] sm:$0xff] %vm2546_vm6, %v2411_v5  ;;  %v4022_v5 = vld [vmem:[#allocation2 + $0x1e1] sm:$0xff] }
 0x2a0   : > { %2960 = vst.msk [vmem:[#allocation3 + $0xe0] sm:$0xff] %vm2931_vm7, %v2796_v62 }
 0x2a3   : > { %1267 = vrot.lane.b32.xlu1 %v17016_v30, %s15684_s19 }
 0x2a4   : > { %882 = vrot.lane.b32.xlu0 %v17036_v21, %s15686_s21  ;;  %v3341_v6 = vpop.f32.mrf.mxu0  ;;  %v200_v21 = vld [vmem:[%s15725_s17 + $0x220] sm:$0xff] }
 0x2a5   : > { %vm3491_vm15 = vcmp.ge.f32.partialorder %v3341_v6, 0.0  ;;  %v3555_v23 = vmul.f32 0.2, %v3341_v6  ;;  %v1256_v2 = vpop.permute.xlu1 %1255  ;;  %v1642_v39 = vpop.permute.xlu2 %1641  ;;  %265 = vst.msk [vmem:[#allocation3 + $0xf8] sm:$0xff] %vm233_vm0, %v200_v21  ;;  %496 = vrot.lane.b32.xlu2 %v16998_v22, %s15683_s18  ;;  %v4020_v21 = vld [vmem:[#allocation2 + $0x1a1] sm:$0xff] }
 0x2a6   : > { %v871_v0 = vpop.permute.xlu0 %870 }
 0x2a7   : > { %v3619_v1 = vsel %vm3491_vm15, %v3341_v6, %v3555_v23  ;;  %1034 = vst.msk [vmem:[#allocation3 + $0xe8] sm:$0xff] %vm1004_vm2, %v871_v0  ;;  %v3024_v16 = vld [vmem:[#allocation3 + $0xe0] sm:$0xff]  ;;  %v4021_v6 = vld [vmem:[#allocation2 + $0x1b1] sm:$0xff] }
 0x2a8   : > { %3890 = vst.msk [vmem:[#allocation2 + $0x241] sm:$0xff] %vm3662_vm9, %v3619_v1  ;;  %13736 = vmatmul.msk.f32.gmra.mxu0 %vm3068_vm8, %v3024_v16  ;;  %v203_v16 = vld [vmem:[%s15725_s17 + $0x260] sm:$0xff] }
 0x2a9   : > { %1419 = vst.msk [vmem:[#allocation3 + $0xe8] sm:$0xff] %vm1389_vm3, %v1256_v2 }
 0x2aa   : > { %1805 = vst.msk [vmem:[#allocation3 + $0xe8] sm:$0xff] %vm1775_vm4, %v1642_v39 }
 0x2ab   : > { %2424 = vrot.lane.b32.xlu1 %v17269_v8, %s15688_s23  ;;  %268 = vst.msk [vmem:[#allocation3 + $0x110] sm:$0xff] %vm233_vm0, %v203_v16 }
 0x2ac   : > { %2038 = vrot.lane.b32.xlu0 %v17243_v47, %s15685_s20 }
 0x2ad   : > { %v2413_v11 = vpop.permute.xlu1 %2412  ;;  %v2798_v15 = vpop.permute.xlu2 %2797  ;;  %1653 = vrot.lane.b32.xlu2 %v17240_v49, %s15687_s22 }
 0x2ae   : > { %v2027_v17 = vpop.permute.xlu0 %2026 }
 0x2af   : > { %2190 = vst.msk [vmem:[#allocation3 + $0xe8] sm:$0xff] %vm2160_vm5, %v2027_v17  ;;  %v4028_v29 = vld [vmem:[#allocation2 + $0x241] sm:$0xff]  ;;  %v4019_v17 = vld [vmem:[#allocation2 + $0x191] sm:$0xff] }
 0x2b0   : > { %2576 = vst.msk [vmem:[#allocation3 + $0xe8] sm:$0xff] %vm2546_vm6, %v2413_v11 }
 0x2b1   : > { %2961 = vst.msk [vmem:[#allocation3 + $0xe8] sm:$0xff] %vm2931_vm7, %v2798_v15 }
 0x2b3   : > { %884 = vrot.lane.b32.xlu1 %v17053_v41, %s15686_s21 }
 0x2b4   : > { %498 = vrot.lane.b32.xlu0 %v17016_v30, %s15683_s18  ;;  %v17294_v30 = vld [vmem:[%s15725_s17 + $0x311] sm:$0xff] }
 0x2b5   : > { %v3344_v19 = vpop.f32.mrf.mxu0  ;;  %v873_v59 = vpop.permute.xlu1 %872  ;;  %2809 = vrot.lane.b32.xlu2 %v17294_v30, %s15689_s24 }
 0x2b6   : > { %vm3492_vm10 = vcmp.ge.f32.partialorder %v3344_v19, 0.0  ;;  %v3556_v24 = vmul.f32 0.2, %v3344_v19  ;;  %v487_v42 = vpop.permute.xlu0 %486  ;;  %v1258_v34 = vpop.permute.xlu2 %1257 }
 0x2b7   : > { %649 = vst.msk [vmem:[#allocation3 + $0xf0] sm:$0xff] %vm618_vm1, %v487_v42  ;;  %v4017_v42 = vld [vmem:[#allocation2 + $0x171] sm:$0xff] }
 0x2b8   : > { %v3620_v26 = vsel %vm3492_vm10, %v3344_v19, %v3556_v24  ;;  %1035 = vst.msk [vmem:[#allocation3 + $0xf0] sm:$0xff] %vm1004_vm2, %v873_v59  ;;  %v3025_v9 = vld [vmem:[#allocation3 + $0xe8] sm:$0xff] }
 0x2b9   : > { %3891 = vst.msk [vmem:[#allocation2 + $0x251] sm:$0xff] %vm3662_vm9, %v3620_v26  ;;  %13737 = vmatmul.msk.f32.gmra.mxu0 %vm3068_vm8, %v3025_v9  ;;  %v4018_v24 = vld [vmem:[#allocation2 + $0x181] sm:$0xff] }
 0x2ba   : > { %1420 = vst.msk [vmem:[#allocation3 + $0xf0] sm:$0xff] %vm1389_vm3, %v1258_v34 }
 0x2bb   : > { %2040 = vrot.lane.b32.xlu1 %v17294_v30, %s15685_s20 }
 0x2bc   : > { %1655 = vrot.lane.b32.xlu0 %v17269_v8, %s15687_s22 }
 0x2bd   : > { %v2029_v58 = vpop.permute.xlu1 %2028  ;;  %1269 = vrot.lane.b32.xlu2 %v17058_v28, %s15684_s19 }
 0x2be   : > { %v1644_v41 = vpop.permute.xlu0 %1643  ;;  %v2415_v46 = vpop.permute.xlu2 %2414 }
 0x2bf   : > { %1806 = vst.msk [vmem:[#allocation3 + $0xf0] sm:$0xff] %vm1775_vm4, %v1644_v41  ;;  %v17401_v41 = vld [vmem:[%s15725_s17 + $0x341] sm:$0xff] }
 0x2c0   : > { %v4029_v22 = vld [vmem:[#allocation2 + $0x251] sm:$0xff]  ;;  %2191 = vst.msk [vmem:[#allocation3 + $0xf0] sm:$0xff] %vm2160_vm5, %v2029_v58 }
 0x2c1   : > { %13790 = vmatpush.xpose.msk.msra.mxu2 %vm3662_vm9, %v4029_v22  ;;  %2577 = vst.msk [vmem:[#allocation3 + $0xf0] sm:$0xff] %vm2546_vm6, %v2415_v46  ;;  %v4015_v58 = vld [vmem:[#allocation2 + $0x151] sm:$0xff] }
 0x2c3   : > { %500 = vrot.lane.b32.xlu1 %v17058_v28, %s15683_s18  ;;  %v4023_v28 = vld [vmem:[#allocation2 + $0x1f1] sm:$0xff] }
 0x2c4   : > { %2811 = vrot.lane.b32.xlu0 %v17308_v10, %s15689_s24 }
 0x2c5   : > { %13791 = vmatpush.xpose.msk.msra.mxu2 %vm3662_vm9, %v4028_v29  ;;  %v489_v37 = vpop.permute.xlu1 %488  ;;  %2426 = vrot.lane.b32.xlu2 %v17323_v36, %s15688_s23 }
 0x2c6   : > { %v3347_v7 = vpop.f32.mrf.mxu0  ;;  %v2800_v53 = vpop.permute.xlu0 %2799  ;;  %650 = vst.msk [vmem:[#allocation3 + $0xf8] sm:$0xff] %vm618_vm1, %v489_v37 }
 0x2c7   : > { %vm3493_vm11 = vcmp.ge.f32.partialorder %v3347_v7, 0.0  ;;  %v3557_v31 = vmul.f32 0.2, %v3347_v7  ;;  %2962 = vst.msk [vmem:[#allocation3 + $0xf0] sm:$0xff] %vm2931_vm7, %v2800_v53  ;;  %v875_v55 = vpop.permute.xlu2 %874  ;;  %v17415_v53 = vld [vmem:[%s15725_s17 + $0x351] sm:$0xff] }
 0x2c8   : > { %1036 = vst.msk [vmem:[#allocation3 + $0xf8] sm:$0xff] %vm1004_vm2, %v875_v55 }
 0x2c9   : > { %13792 = vmatpush.xpose.msk.msra.mxu2 %vm3662_vm9, %v4027_v60  ;;  %v3621_v35 = vsel %vm3493_vm11, %v3347_v7, %v3557_v31  ;;  %v4014_v7 = vld [vmem:[#allocation2 + $0x141] sm:$0xff]  ;;  %v3948_v31 = vld [vmem:[#allocation2 + $0x110] sm:$0xff] }
 0x2ca   : > { %3892 = vst.msk [vmem:[#allocation2 + $0x261] sm:$0xff] %vm3662_vm9, %v3621_v35  ;;  %v3947_v35 = vld [vmem:[#allocation2 + $0x100] sm:$0xff] }
 0x2cb   : > { %1657 = vrot.lane.b32.xlu1 %v17323_v36, %s15687_s22 }
 0x2cc   : > { %1271 = vrot.lane.b32.xlu0 %v17107_v4, %s15684_s19 }
 0x2cd   : > { %13793 = vmatpush.xpose.msk.msra.mxu2 %vm3662_vm9, %v4026_v57  ;;  %v1646_v63 = vpop.permute.xlu1 %1645  ;;  %886 = vrot.lane.b32.xlu2 %v17085_v25, %s15686_s21  ;;  %v17371_v25 = vld [vmem:[%s15725_s17 + $0x340] sm:$0xff] }
 0x2ce   : > { %v1260_v38 = vpop.permute.xlu0 %1259  ;;  %v3026_v18 = vld [vmem:[#allocation3 + $0xf0] sm:$0xff] }
 0x2cf   : > { %1421 = vst.msk [vmem:[#allocation3 + $0xf8] sm:$0xff] %vm1389_vm3, %v1260_v38  ;;  %13738 = vmatmul.msk.f32.gmra.mxu0 %vm3068_vm8, %v3026_v18  ;;  %v2031_v20 = vpop.permute.xlu2 %2030  ;;  %v3946_v18 = vld [vmem:[#allocation2 + $0xf0] sm:$0xff] }
 0x2d0   : > { %1807 = vst.msk [vmem:[#allocation3 + $0xf8] sm:$0xff] %vm1775_vm4, %v1646_v63  ;;  %v13492_v63 = vld [vmem:[%s15725_s17 + $0x360] sm:$0xff] }
 0x2d1   : > { %13794 = vmatpush.xpose.msk.msra.mxu2 %vm3662_vm9, %v4025_v54  ;;  %2192 = vst.msk [vmem:[#allocation3 + $0xf8] sm:$0xff] %vm2160_vm5, %v2031_v20 }
 0x2d3   : > { %2813 = vrot.lane.b32.xlu1 %v17342_v48, %s15689_s24 }
 0x2d4   : > { %2428 = vrot.lane.b32.xlu0 %v17339_v14, %s15688_s23 }
 0x2d5   : > { %13795 = vmatpush.xpose.msk.msra.mxu2 %vm3662_vm9, %v4024_v43  ;;  %v2802_v51 = vpop.permute.xlu1 %2801  ;;  %2042 = vrot.lane.b32.xlu2 %v17308_v10, %s15685_s20  ;;  %v3945_v43 = vld [vmem:[#allocation2 + $0xe0] sm:$0xff] }
 0x2d6   : > { %v2417_v50 = vpop.permute.xlu0 %2416 }
 0x2d7   : > { %2578 = vst.msk [vmem:[#allocation3 + $0xf8] sm:$0xff] %vm2546_vm6, %v2417_v50  ;;  %v491_v62 = vpop.permute.xlu2 %490  ;;  %v205_v50 = vld [vmem:[%s15725_s17 + $0x280] sm:$0xff] }
 0x2d8   : > { %2963 = vst.msk [vmem:[#allocation3 + $0xf8] sm:$0xff] %vm2931_vm7, %v2802_v51 }
 0x2d9   : > { %13796 = vmatpush.xpose.msk.msra.mxu2 %vm3662_vm9, %v4023_v28  ;;  %651 = vst.msk [vmem:[#allocation3 + $0x100] sm:$0xff] %vm618_vm1, %v491_v62  ;;  %v3944_v62 = vld [vmem:[#allocation2 + $0xd0] sm:$0xff] }
 0x2da   : > { %270 = vst.msk [vmem:[#allocation3 + $0x120] sm:$0xff] %vm233_vm0, %v205_v50 }
 0x2db   : > { %1273 = vrot.lane.b32.xlu1 %v17120_v44, %s15684_s19 }
 0x2dc   : > { %888 = vrot.lane.b32.xlu0 %v17133_v52, %s15686_s21  ;;  %v3350_v56 = vpop.f32.mrf.mxu0 }
 0x2dd   : > { %13797 = vmatpush.xpose.msk.msra.mxu2 %vm3662_vm9, %v4022_v5  ;;  %vm3494_vm13 = vcmp.ge.f32.partialorder %v3350_v56, 0.0  ;;  %v3558_v23 = vmul.f32 0.2, %v3350_v56  ;;  %v1262_v1 = vpop.permute.xlu1 %1261  ;;  %502 = vrot.lane.b32.xlu2 %v17107_v4, %s15683_s18  ;;  %v4016_v4 = vld [vmem:[#allocation2 + $0x161] sm:$0xff]  ;;  %v17444_v5 = vld [vmem:[%s15725_s17 + $0x370] sm:$0xff] }
 0x2de   : > { %v877_v0 = vpop.permute.xlu0 %876 }
 0x2df   : > { %1037 = vst.msk [vmem:[#allocation3 + $0x100] sm:$0xff] %vm1004_vm2, %v877_v0  ;;  %v3027_v2 = vld [vmem:[#allocation3 + $0xf8] sm:$0xff]  ;;  %v3622_v52 = vsel %vm3494_vm13, %v3350_v56, %v3558_v23  ;;  %v1648_v39 = vpop.permute.xlu2 %1647  ;;  %v3943_v23 = vld [vmem:[#allocation2 + $0xc0] sm:$0xff] }
 0x2e0   : > { %1422 = vst.msk [vmem:[#allocation3 + $0x100] sm:$0xff] %vm1389_vm3, %v1262_v1  ;;  %13739 = vmatmul.msk.f32.gmra.mxu0 %vm3068_vm8, %v3027_v2  ;;  %v17447_v56 = vld [vmem:[%s15725_s17 + $0x371] sm:$0xff] }
 0x2e1   : > { %13798 = vmatpush.xpose.msk.msra.mxu2 %vm3662_vm9, %v4021_v6  ;;  %3893 = vst.msk [vmem:[#allocation2 + $0x291] sm:$0xff] %vm3662_vm9, %v3622_v52  ;;  %v3942_v2 = vld [vmem:[#allocation2 + $0xb0] sm:$0xff] }
 0x2e2   : > { %1808 = vst.msk [vmem:[#allocation3 + $0x100] sm:$0xff] %vm1775_vm4, %v1648_v39 }
 0x2e3   : > { %2430 = vrot.lane.b32.xlu1 %v17371_v25, %s15688_s23 }
 0x2e4   : > { %2044 = vrot.lane.b32.xlu0 %v17342_v48, %s15685_s20 }
 0x2e5   : > { %13799 = vmatpush.xpose.msk.msra.mxu2 %vm3662_vm9, %v4020_v21  ;;  %v2419_v15 = vpop.permute.xlu1 %2418  ;;  %1659 = vrot.lane.b32.xlu2 %v17339_v14, %s15687_s22 }
 0x2e6   : > { %v2033_v11 = vpop.permute.xlu0 %2032 }
 0x2e7   : > { %2193 = vst.msk [vmem:[#allocation3 + $0x100] sm:$0xff] %vm2160_vm5, %v2033_v11  ;;  %v2804_v19 = vpop.permute.xlu2 %2803 }
 0x2e8   : > { %2579 = vst.msk [vmem:[#allocation3 + $0x100] sm:$0xff] %vm2546_vm6, %v2419_v15  ;;  %v206_v15 = vld [vmem:[%s15725_s17 + $0x290] sm:$0xff] }
 0x2e9   : > { %13800 = vmatpush.xpose.msk.msra.mxu2 %vm3662_vm9, %v4019_v17  ;;  %2964 = vst.msk [vmem:[#allocation3 + $0x100] sm:$0xff] %vm2931_vm7, %v2804_v19  ;;  %v17478_v19 = vld [vmem:[%s15725_s17 + $0x380] sm:$0xff] }
 0x2ea   : > { %271 = vst.msk [vmem:[#allocation3 + $0x128] sm:$0xff] %vm233_vm0, %v206_v15 }
 0x2eb   : > { %890 = vrot.lane.b32.xlu1 %v17146_v12, %s15686_s21  ;;  %v204_v12 = vld [vmem:[%s15725_s17 + $0x270] sm:$0xff] }
 0x2ec   : > { %504 = vrot.lane.b32.xlu0 %v17120_v44, %s15683_s18  ;;  %269 = vst.msk [vmem:[#allocation3 + $0x118] sm:$0xff] %vm233_vm0, %v204_v12  ;;  %v207_v12 = vld [vmem:[%s15725_s17 + $0x2a0] sm:$0xff] }
 0x2ed   : > { %13801 = vmatpush.xpose.msk.msra.mxu2 %vm3662_vm9, %v4018_v24  ;;  %v3353_v26 = vpop.f32.mrf.mxu0  ;;  %v879_v9 = vpop.permute.xlu1 %878  ;;  %2815 = vrot.lane.b32.xlu2 %v17401_v41, %s15689_s24  ;;  %v17481_v24 = vld [vmem:[%s15725_s17 + $0x361] sm:$0xff]  ;;  %272 = vst.msk [vmem:[#allocation3 + $0x130] sm:$0xff] %vm233_vm0, %v207_v12 }
 0x2ee   : > { %v493_v59 = vpop.permute.xlu0 %492  ;;  %vm3495_vm14 = vcmp.ge.f32.partialorder %v3353_v26, 0.0  ;;  %v3559_v34 = vmul.f32 0.2, %v3353_v26 }
 0x2ef   : > { %652 = vst.msk [vmem:[#allocation3 + $0x108] sm:$0xff] %vm618_vm1, %v493_v59  ;;  %v1264_v44 = vpop.permute.xlu2 %1263 }
 0x2f0   : > { %1038 = vst.msk [vmem:[#allocation3 + $0x108] sm:$0xff] %vm1004_vm2, %v879_v9  ;;  %v3623_v45 = vsel %vm3495_vm14, %v3353_v26, %v3559_v34  ;;  %v3028_v22 = vld [vmem:[#allocation3 + $0x100] sm:$0xff] }
 0x2f1   : > { %13802 = vmatpush.xpose.msk.msra.mxu2 %vm3662_vm9, %v4017_v42  ;;  %1423 = vst.msk [vmem:[#allocation3 + $0x108] sm:$0xff] %vm1389_vm3, %v1264_v44  ;;  %13740 = vmatmul.msk.f32.gmra.mxu0 %vm3068_vm8, %v3028_v22 }
 0x2f2   : > { %3894 = vst.msk [vmem:[#allocation2 + $0x2a1] sm:$0xff] %vm3662_vm9, %v3623_v45 }
 0x2f3   : > { %2046 = vrot.lane.b32.xlu1 %v17401_v41, %s15685_s20 }
 0x2f4   : > { %1661 = vrot.lane.b32.xlu0 %v17371_v25, %s15687_s22 }
 0x2f5   : > { %13803 = vmatpush.xpose.msk.msra.mxu2 %vm3662_vm9, %v4016_v4  ;;  %v2035_v29 = vpop.permute.xlu1 %2034  ;;  %1275 = vrot.lane.b32.xlu2 %v17150_v3, %s15684_s19  ;;  %v17452_v3 = vld [vmem:[%s15725_s17 + $0x350] sm:$0xff] }
 0x2f6   : > { %v1650_v46 = vpop.permute.xlu0 %1649 }
 0x2f7   : > { %1809 = vst.msk [vmem:[#allocation3 + $0x108] sm:$0xff] %vm1775_vm4, %v1650_v46  ;;  %v2421_v60 = vpop.permute.xlu2 %2420  ;;  %v17519_v46 = vld [vmem:[%s15725_s17 + $0x391] sm:$0xff] }
 0x2f8   : > { %2194 = vst.msk [vmem:[#allocation3 + $0x108] sm:$0xff] %vm2160_vm5, %v2035_v29 }
 0x2f9   : > { %13804 = vmatpush.xpose.msk.msra.mxu2 %vm3662_vm9, %v4015_v58  ;;  %2580 = vst.msk [vmem:[#allocation3 + $0x108] sm:$0xff] %vm2546_vm6, %v2421_v60 }
 0x2fb   : > { %506 = vrot.lane.b32.xlu1 %v17174_v33, %s15683_s18 }
 0x2fc   : > { %2817 = vrot.lane.b32.xlu0 %v17415_v53, %s15689_s24 }
 0x2fd   : > { %13805 = vmatpush.xpose.msk.msra.mxu2 %vm3662_vm9, %v4014_v7  ;;  %v495_v57 = vpop.permute.xlu1 %494  ;;  %2432 = vrot.lane.b32.xlu2 %v17452_v3, %s15688_s23 }
 0x2fe   : > { %v2806_v37 = vpop.permute.xlu0 %2805  ;;  %v3356_v55 = vpop.f32.mrf.mxu0  ;;  %653 = vst.msk [vmem:[#allocation3 + $0x110] sm:$0xff] %vm618_vm1, %v495_v57 }
 0x2ff   : > { %2965 = vst.msk [vmem:[#allocation3 + $0x108] sm:$0xff] %vm2931_vm7, %v2806_v37  ;;  %vm3496_vm12 = vcmp.ge.f32.partialorder %v3356_v55, 0.0  ;;  %v3560_v54 = vmul.f32 0.2, %v3356_v55  ;;  %v881_v38 = vpop.permute.xlu2 %880 }
 0x300   : > { %1039 = vst.msk [vmem:[#allocation3 + $0x110] sm:$0xff] %vm1004_vm2, %v881_v38 }
 0x301   : > { %13841 = vmatpush.xpose.msk.msrb.mxu2 %vm3662_vm9, %v3948_v31  ;;  %v3624_v33 = vsel %vm3496_vm12, %v3356_v55, %v3560_v54 }
 0x302   : > { %3895 = vst.msk [vmem:[#allocation2 + $0x2b1] sm:$0xff] %vm3662_vm9, %v3624_v33  ;;  %v208_v33 = vld [vmem:[%s15725_s17 + $0x2b0] sm:$0xff] }
 0x303   : > { %1663 = vrot.lane.b32.xlu1 %v13492_v63, %s15687_s22  ;;  %v17546_v63 = vld [vmem:[%s15725_s17 + $0x3a0] sm:$0xff]  ;;  %273 = vst.msk [vmem:[#allocation3 + $0x138] sm:$0xff] %vm233_vm0, %v208_v33 }
 0x304   : > { %1277 = vrot.lane.b32.xlu0 %v17201_v32, %s15684_s19 }
 0x305   : > { %13842 = vmatpush.xpose.msk.msrb.mxu2 %vm3662_vm9, %v3947_v35  ;;  %v1652_v28 = vpop.permute.xlu1 %1651  ;;  %892 = vrot.lane.b32.xlu2 %v17177_v27, %s15686_s21  ;;  %v17532_v35 = vld [vmem:[%s15725_s17 + $0x390] sm:$0xff] }
 0x306   : > { %v1266_v40 = vpop.permute.xlu0 %1265  ;;  %v3029_v20 = vld [vmem:[#allocation3 + $0x108] sm:$0xff] }
 0x307   : > { %1424 = vst.msk [vmem:[#allocation3 + $0x110] sm:$0xff] %vm1389_vm3, %v1266_v40  ;;  %13741 = vmatmul.msk.f32.gmra.mxu0 %vm3068_vm8, %v3029_v20  ;;  %v2037_v51 = vpop.permute.xlu2 %2036  ;;  %v17549_v40 = vld [vmem:[%s15725_s17 + $0x3a1] sm:$0xff] }
 0x308   : > { %1810 = vst.msk [vmem:[#allocation3 + $0x110] sm:$0xff] %vm1775_vm4, %v1652_v28 }
 0x309   : > { %13843 = vmatpush.xpose.msk.msrb.mxu2 %vm3662_vm9, %v3946_v18  ;;  %2195 = vst.msk [vmem:[#allocation3 + $0x110] sm:$0xff] %vm2160_vm5, %v2037_v51 }
 0x30b   : > { %2819 = vrot.lane.b32.xlu1 %v17447_v56, %s15689_s24 }
 0x30c   : > { %2434 = vrot.lane.b32.xlu0 %v17444_v5, %s15688_s23 }
 0x30d   : > { %13844 = vmatpush.xpose.msk.msrb.mxu2 %vm3662_vm9, %v3945_v43  ;;  %v2808_v0 = vpop.permute.xlu1 %2807  ;;  %2048 = vrot.lane.b32.xlu2 %v17481_v24, %s15685_s20 }
 0x30e   : > { %v2423_v6 = vpop.permute.xlu0 %2422 }
 0x30f   : > { %2581 = vst.msk [vmem:[#allocation3 + $0x110] sm:$0xff] %vm2546_vm6, %v2423_v6  ;;  %v497_v1 = vpop.permute.xlu2 %496 }
 0x310   : > { %2966 = vst.msk [vmem:[#allocation3 + $0x110] sm:$0xff] %vm2931_vm7, %v2808_v0 }
 0x311   : > { %13845 = vmatpush.xpose.msk.msrb.mxu2 %vm3662_vm9, %v3944_v62  ;;  %654 = vst.msk [vmem:[#allocation3 + $0x118] sm:$0xff] %vm618_vm1, %v497_v1 }
 0x313   : > { %1279 = vrot.lane.b32.xlu1 %v17212_v13, %s15684_s19 }
 0x314   : > { %894 = vrot.lane.b32.xlu0 %v17225_v61, %s15686_s21  ;;  %v3359_v52 = vpop.f32.mrf.mxu0 }
 0x315   : > { %13846 = vmatpush.xpose.msk.msrb.mxu2 %vm3662_vm9, %v3943_v23  ;;  %vm3497_vm15 = vcmp.ge.f32.partialorder %v3359_v52, 0.0  ;;  %v3561_v39 = vmul.f32 0.2, %v3359_v52  ;;  %v1268_v17 = vpop.permute.xlu1 %1267  ;;  %508 = vrot.lane.b32.xlu2 %v17201_v32, %s15683_s18 }
 0x316   : > { %v883_v16 = vpop.permute.xlu0 %882 }
 0x317   : > { %v3625_v21 = vsel %vm3497_vm15, %v3359_v52, %v3561_v39  ;;  %1040 = vst.msk [vmem:[#allocation3 + $0x118] sm:$0xff] %vm1004_vm2, %v883_v16  ;;  %v3030_v11 = vld [vmem:[#allocation3 + $0x110] sm:$0xff]  ;;  %v1654_v61 = vpop.permute.xlu2 %1653 }
 0x318   : > { %3896 = vst.msk [vmem:[#allocation2 + $0x2c1] sm:$0xff] %vm3662_vm9, %v3625_v21  ;;  %13742 = vmatmul.msk.f32.gmra.mxu0 %vm3068_vm8, %v3030_v11 }
 0x319   : > { %13847 = vmatpush.xpose.msk.msrb.mxu2 %vm3662_vm9, %v3942_v2  ;;  %1425 = vst.msk [vmem:[#allocation3 + $0x118] sm:$0xff] %vm1389_vm3, %v1268_v17 }
 0x31a   : > { %1811 = vst.msk [vmem:[#allocation3 + $0x118] sm:$0xff] %vm1775_vm4, %v1654_v61 }
 0x31b   : > { %2436 = vrot.lane.b32.xlu1 %v17478_v19, %s15688_s23 }
 0x31c   : > { %2050 = vrot.lane.b32.xlu0 %v17447_v56, %s15685_s20 }
 0x31d   : > { %v2425_v26 = vpop.permute.xlu1 %2424  ;;  %1665 = vrot.lane.b32.xlu2 %v17444_v5, %s15687_s22 }
 0x31e   : > { %v2039_v27 = vpop.permute.xlu0 %2038 }
 0x31f   : > { %2196 = vst.msk [vmem:[#allocation3 + $0x118] sm:$0xff] %vm2160_vm5, %v2039_v27  ;;  %v2810_v42 = vpop.permute.xlu2 %2809 }
 0x320   : > { %2582 = vst.msk [vmem:[#allocation3 + $0x118] sm:$0xff] %vm2546_vm6, %v2425_v26  ;;  %v17610_v26 = vld [vmem:[%s15725_s17 + $0x3c1] sm:$0xff] }
 0x321   : > { %2967 = vst.msk [vmem:[#allocation3 + $0x118] sm:$0xff] %vm2931_vm7, %v2810_v42 }
 0x323   : > { %896 = vrot.lane.b32.xlu1 %v17240_v49, %s15686_s21  ;;  %v17506_v49 = vld [vmem:[%s15725_s17 + $0x381] sm:$0xff] }
 0x324   : > { %510 = vrot.lane.b32.xlu0 %v17212_v13, %s15683_s18 }
 0x325   : > { %v3362_v34 = vpop.f32.mrf.mxu0  ;;  %v885_v9 = vpop.permute.xlu1 %884  ;;  %2821 = vrot.lane.b32.xlu2 %v17506_v49, %s15689_s24 }
 0x326   : > { %v499_v59 = vpop.permute.xlu0 %498  ;;  %vm3498_vm10 = vcmp.ge.f32.partialorder %v3362_v34, 0.0  ;;  %v3562_v44 = vmul.f32 0.2, %v3362_v34 }
 0x327   : > { %655 = vst.msk [vmem:[#allocation3 + $0x120] sm:$0xff] %vm618_vm1, %v499_v59  ;;  %v1270_v45 = vpop.permute.xlu2 %1269 }
 0x328   : > { %1041 = vst.msk [vmem:[#allocation3 + $0x120] sm:$0xff] %vm1004_vm2, %v885_v9  ;;  %v3031_v22 = vld [vmem:[#allocation3 + $0x118] sm:$0xff]  ;;  %v3626_v13 = vsel %vm3498_vm10, %v3362_v34, %v3562_v44 }
 0x329   : > { %1426 = vst.msk [vmem:[#allocation3 + $0x120] sm:$0xff] %vm1389_vm3, %v1270_v45  ;;  %13743 = vmatmul.msk.f32.gmra.mxu0 %vm3068_vm8, %v3031_v22  ;;  %v17623_v22 = vld [vmem:[%s15725_s17 + $0x3c0] sm:$0xff] }
 0x32a   : > { %3897 = vst.msk [vmem:[#allocation2 + $0x2d1] sm:$0xff] %vm3662_vm9, %v3626_v13 }
 0x32b   : > { %2052 = vrot.lane.b32.xlu1 %v17506_v49, %s15685_s20 }
 0x32c   : > { %1667 = vrot.lane.b32.xlu0 %v17478_v19, %s15687_s22 }
 0x32d   : > { %v2041_v4 = vpop.permute.xlu1 %2040  ;;  %1281 = vrot.lane.b32.xlu2 %v17243_v47, %s15684_s19 }
 0x32e   : > { %v1656_v32 = vpop.permute.xlu0 %1655 }
 0x32f   : > { %1812 = vst.msk [vmem:[#allocation3 + $0x120] sm:$0xff] %vm1775_vm4, %v1656_v32  ;;  %v2427_v58 = vpop.permute.xlu2 %2426 }
 0x330   : > { %2197 = vst.msk [vmem:[#allocation3 + $0x120] sm:$0xff] %vm2160_vm5, %v2041_v4  ;;  %v211_v4 = vld [vmem:[%s15725_s17 + $0x2f0] sm:$0xff] }
 0x331   : > { %2583 = vst.msk [vmem:[#allocation3 + $0x120] sm:$0xff] %vm2546_vm6, %v2427_v58 }
 0x332   : > { %276 = vst.msk [vmem:[#allocation3 + $0x150] sm:$0xff] %vm233_vm0, %v211_v4 }
 0x333   : > { %512 = vrot.lane.b32.xlu1 %v17243_v47, %s15683_s18 }
 0x334   : > { %2823 = vrot.lane.b32.xlu0 %v17519_v46, %s15689_s24 }
 0x335   : > { %v501_v60 = vpop.permute.xlu1 %500  ;;  %2438 = vrot.lane.b32.xlu2 %v17532_v35, %s15688_s23 }
 0x336   : > { %v2812_v29 = vpop.permute.xlu0 %2811  ;;  %v3365_v7 = vpop.f32.mrf.mxu0  ;;  %656 = vst.msk [vmem:[#allocation3 + $0x128] sm:$0xff] %vm618_vm1, %v501_v60 }
 0x337   : > { %2968 = vst.msk [vmem:[#allocation3 + $0x120] sm:$0xff] %vm2931_vm7, %v2812_v29  ;;  %vm3499_vm11 = vcmp.ge.f32.partialorder %v3365_v7, 0.0  ;;  %v3563_v31 = vmul.f32 0.2, %v3365_v7  ;;  %v887_v37 = vpop.permute.xlu2 %886  ;;  %v17637_v29 = vld [vmem:[%s15725_s17 + $0x3d0] sm:$0xff] }
 0x338   : > { %1042 = vst.msk [vmem:[#allocation3 + $0x128] sm:$0xff] %vm1004_vm2, %v887_v37 }
 0x339   : > { %v3627_v55 = vsel %vm3499_vm11, %v3365_v7, %v3563_v31  ;;  %v17640_v7 = vld [vmem:[%s15725_s17 + $0x3d1] sm:$0xff] }
 0x33a   : > { %3898 = vst.msk [vmem:[#allocation2 + $0x2e1] sm:$0xff] %vm3662_vm9, %v3627_v55 }
 0x33b   : > { %1669 = vrot.lane.b32.xlu1 %v17532_v35, %s15687_s22 }
 0x33c   : > { %1283 = vrot.lane.b32.xlu0 %v17294_v30, %s15684_s19 }
 0x33d   : > { %v1658_v38 = vpop.permute.xlu1 %1657  ;;  %898 = vrot.lane.b32.xlu2 %v17269_v8, %s15686_s21 }
 0x33e   : > { %v1272_v57 = vpop.permute.xlu0 %1271  ;;  %v3032_v54 = vld [vmem:[#allocation3 + $0x120] sm:$0xff] }
 0x33f   : > { %1427 = vst.msk [vmem:[#allocation3 + $0x128] sm:$0xff] %vm1389_vm3, %v1272_v57  ;;  %13744 = vmatmul.msk.f32.gmra.mxu0 %vm3068_vm8, %v3032_v54  ;;  %v2043_v18 = vpop.permute.xlu2 %2042 }
 0x340   : > { %1813 = vst.msk [vmem:[#allocation3 + $0x128] sm:$0xff] %vm1775_vm4, %v1658_v38 }
 0x341   : > { %2198 = vst.msk [vmem:[#allocation3 + $0x128] sm:$0xff] %vm2160_vm5, %v2043_v18  ;;  %v17664_v18 = vld [vmem:[%s15725_s17 + $0x3e0] sm:$0xff] }
 0x343   : > { %2825 = vrot.lane.b32.xlu1 %v17549_v40, %s15689_s24 }
 0x344   : > { %2440 = vrot.lane.b32.xlu0 %v17546_v63, %s15688_s23 }
 0x345   : > { %v2814_v20 = vpop.permute.xlu1 %2813  ;;  %2054 = vrot.lane.b32.xlu2 %v17519_v46, %s15685_s20 }
 0x346   : > { %v2429_v47 = vpop.permute.xlu0 %2428 }
 0x347   : > { %2584 = vst.msk [vmem:[#allocation3 + $0x128] sm:$0xff] %vm2546_vm6, %v2429_v47  ;;  %v503_v43 = vpop.permute.xlu2 %502 }
 0x348   : > { %2969 = vst.msk [vmem:[#allocation3 + $0x128] sm:$0xff] %vm2931_vm7, %v2814_v20 }
 0x349   : > { %657 = vst.msk [vmem:[#allocation3 + $0x130] sm:$0xff] %vm618_vm1, %v503_v43 }
 0x34b   : > { %1285 = vrot.lane.b32.xlu1 %v17308_v10, %s15684_s19 }
 0x34c   : > { %900 = vrot.lane.b32.xlu0 %v17323_v36, %s15686_s21  ;;  %v3368_v28 = vpop.f32.mrf.mxu0  ;;  %v17573_v36 = vld [vmem:[%s15725_s17 + $0x3b0] sm:$0xff] }
 0x34d   : > { %vm3500_vm13 = vcmp.ge.f32.partialorder %v3368_v28, 0.0  ;;  %v3564_v50 = vmul.f32 0.2, %v3368_v28  ;;  %v1274_v6 = vpop.permute.xlu1 %1273  ;;  %514 = vrot.lane.b32.xlu2 %v17294_v30, %s15683_s18 }
 0x34e   : > { %v889_v51 = vpop.permute.xlu0 %888 }
 0x34f   : > { %v3628_v62 = vsel %vm3500_vm13, %v3368_v28, %v3564_v50  ;;  %1043 = vst.msk [vmem:[#allocation3 + $0x130] sm:$0xff] %vm1004_vm2, %v889_v51  ;;  %v3033_v23 = vld [vmem:[#allocation3 + $0x128] sm:$0xff]  ;;  %v1660_v0 = vpop.permute.xlu2 %1659 }
 0x350   : > { %3899 = vst.msk [vmem:[#allocation2 + $0x2f1] sm:$0xff] %vm3662_vm9, %v3628_v62  ;;  %13745 = vmatmul.msk.f32.gmra.mxu0 %vm3068_vm8, %v3033_v23 }
 0x351   : > { %1428 = vst.msk [vmem:[#allocation3 + $0x130] sm:$0xff] %vm1389_vm3, %v1274_v6 }
 0x352   : > { %1814 = vst.msk [vmem:[#allocation3 + $0x130] sm:$0xff] %vm1775_vm4, %v1660_v0  ;;  %v17691_v0 = vld [vmem:[%s15725_s17 + $0x3f1] sm:$0xff] }
 0x353   : > { %2442 = vrot.lane.b32.xlu1 %v17573_v36, %s15688_s23 }
 0x354   : > { %2056 = vrot.lane.b32.xlu0 %v17549_v40, %s15685_s20 }
 0x355   : > { %v2431_v1 = vpop.permute.xlu1 %2430  ;;  %1671 = vrot.lane.b32.xlu2 %v17546_v63, %s15687_s22 }
 0x356   : > { %v2045_v8 = vpop.permute.xlu0 %2044 }
 0x357   : > { %2199 = vst.msk [vmem:[#allocation3 + $0x130] sm:$0xff] %vm2160_vm5, %v2045_v8  ;;  %v2816_v2 = vpop.permute.xlu2 %2815 }
 0x358   : > { %2585 = vst.msk [vmem:[#allocation3 + $0x130] sm:$0xff] %vm2546_vm6, %v2431_v1 }
 0x359   : > { %2970 = vst.msk [vmem:[#allocation3 + $0x130] sm:$0xff] %vm2931_vm7, %v2816_v2  ;;  %v17703_v2 = vld [vmem:[%s15725_s17 + $0x401] sm:$0xff] }
 0x35b   : > { %902 = vrot.lane.b32.xlu1 %v17339_v14, %s15686_s21  ;;  %v17597_v14 = vld [vmem:[%s15725_s17 + $0x3b1] sm:$0xff] }
 0x35c   : > { %516 = vrot.lane.b32.xlu0 %v17308_v10, %s15683_s18  ;;  %v210_v10 = vld [vmem:[%s15725_s17 + $0x2e0] sm:$0xff] }
 0x35d   : > { %v3371_v52 = vpop.f32.mrf.mxu0  ;;  %v891_v21 = vpop.permute.xlu1 %890  ;;  %275 = vst.msk [vmem:[#allocation3 + $0x148] sm:$0xff] %vm233_vm0, %v210_v10  ;;  %2827 = vrot.lane.b32.xlu2 %v17597_v14, %s15689_s24  ;;  %v17719_v10 = vld [vmem:[%s15725_s17 + $0x400] sm:$0xff] }
 0x35e   : > { %v505_v39 = vpop.permute.xlu0 %504  ;;  %vm3501_vm14 = vcmp.ge.f32.partialorder %v3371_v52, 0.0  ;;  %v3565_v16 = vmul.f32 0.2, %v3371_v52 }
 0x35f   : > { %658 = vst.msk [vmem:[#allocation3 + $0x138] sm:$0xff] %vm618_vm1, %v505_v39  ;;  %v1276_v61 = vpop.permute.xlu2 %1275 }
 0x360   : > { %v3629_v17 = vsel %vm3501_vm14, %v3371_v52, %v3565_v16  ;;  %v3034_v11 = vld [vmem:[#allocation3 + $0x130] sm:$0xff]  ;;  %1044 = vst.msk [vmem:[#allocation3 + $0x138] sm:$0xff] %vm1004_vm2, %v891_v21  ;;  %v17706_v52 = vld [vmem:[%s15725_s17 + $0x3e1] sm:$0xff] }
 0x361   : > { %3900 = vst.msk [vmem:[#allocation2 + $0x301] sm:$0xff] %vm3662_vm9, %v3629_v17  ;;  %13746 = vmatmul.msk.f32.gmra.mxu0 %vm3068_vm8, %v3034_v11 }
 0x362   : > { %1429 = vst.msk [vmem:[#allocation3 + $0x138] sm:$0xff] %vm1389_vm3, %v1276_v61 }
 0x363   : > { %2058 = vrot.lane.b32.xlu1 %v17597_v14, %s15685_s20 }
 0x364   : > { %1673 = vrot.lane.b32.xlu0 %v17573_v36, %s15687_s22 }
 0x365   : > { %v2047_v15 = vpop.permute.xlu1 %2046  ;;  %1287 = vrot.lane.b32.xlu2 %v17342_v48, %s15684_s19 }
 0x366   : > { %v1662_v30 = vpop.permute.xlu0 %1661 }
 0x367   : > { %1815 = vst.msk [vmem:[#allocation3 + $0x138] sm:$0xff] %vm1775_vm4, %v1662_v30  ;;  %v2433_v27 = vpop.permute.xlu2 %2432 }
 0x368   : > { %2200 = vst.msk [vmem:[#allocation3 + $0x138] sm:$0xff] %vm2160_vm5, %v2047_v15 }
 0x369   : > { %2586 = vst.msk [vmem:[#allocation3 + $0x138] sm:$0xff] %vm2546_vm6, %v2433_v27 }
 0x36b   : > { %518 = vrot.lane.b32.xlu1 %v17342_v48, %s15683_s18 }
 0x36c   : > { %2829 = vrot.lane.b32.xlu0 %v17610_v26, %s15689_s24 }
 0x36d   : > { %v507_v9 = vpop.permute.xlu1 %506  ;;  %2444 = vrot.lane.b32.xlu2 %v17623_v22, %s15688_s23 }
 0x36e   : > { %v2818_v42 = vpop.permute.xlu0 %2817  ;;  %v3374_v59 = vpop.f32.mrf.mxu0  ;;  %659 = vst.msk [vmem:[#allocation3 + $0x140] sm:$0xff] %vm618_vm1, %v507_v9  ;;  %v17736_v9 = vld [vmem:[%s15725_s17 + $0x411] sm:$0xff] }
 0x36f   : > { %2971 = vst.msk [vmem:[#allocation3 + $0x138] sm:$0xff] %vm2931_vm7, %v2818_v42  ;;  %vm3502_vm12 = vcmp.ge.f32.partialorder %v3374_v59, 0.0  ;;  %v3566_v34 = vmul.f32 0.2, %v3374_v59  ;;  %v893_v44 = vpop.permute.xlu2 %892  ;;  %v214_v42 = vld [vmem:[%s15725_s17 + $0x320] sm:$0xff] }
 0x370   : > { %1045 = vst.msk [vmem:[#allocation3 + $0x140] sm:$0xff] %vm1004_vm2, %v893_v44 }
 0x371   : > { %v3630_v45 = vsel %vm3502_vm12, %v3374_v59, %v3566_v34  ;;  %v17733_v34 = vld [vmem:[%s15725_s17 + $0x410] sm:$0xff]  ;;  %279 = vst.msk [vmem:[#allocation3 + $0x168] sm:$0xff] %vm233_vm0, %v214_v42 }
 0x372   : > { %3901 = vst.msk [vmem:[#allocation2 + $0x331] sm:$0xff] %vm3662_vm9, %v3630_v45 }
 0x373   : > { %1675 = vrot.lane.b32.xlu1 %v17623_v22, %s15687_s22 }
 0x374   : > { %1289 = vrot.lane.b32.xlu0 %v17401_v41, %s15684_s19 }
 0x375   : > { %v1664_v32 = vpop.permute.xlu1 %1663  ;;  %904 = vrot.lane.b32.xlu2 %v17371_v25, %s15686_s21 }
 0x376   : > { %v1278_v12 = vpop.permute.xlu0 %1277  ;;  %v3035_v13 = vld [vmem:[#allocation3 + $0x138] sm:$0xff] }
 0x377   : > { %1430 = vst.msk [vmem:[#allocation3 + $0x140] sm:$0xff] %vm1389_vm3, %v1278_v12  ;;  %13747 = vmatmul.msk.f32.gmra.mxu0 %vm3068_vm8, %v3035_v13  ;;  %v2049_v58 = vpop.permute.xlu2 %2048 }
 0x378   : > { %1816 = vst.msk [vmem:[#allocation3 + $0x140] sm:$0xff] %vm1775_vm4, %v1664_v32 }
 0x379   : > { %2201 = vst.msk [vmem:[#allocation3 + $0x140] sm:$0xff] %vm2160_vm5, %v2049_v58 }
 0x37b   : > { %2831 = vrot.lane.b32.xlu1 %v17640_v7, %s15689_s24 }
 0x37c   : > { %2446 = vrot.lane.b32.xlu0 %v17637_v29, %s15688_s23 }
 0x37d   : > { %v2820_v60 = vpop.permute.xlu1 %2819  ;;  %2060 = vrot.lane.b32.xlu2 %v17610_v26, %s15685_s20 }
 0x37e   : > { %v2435_v48 = vpop.permute.xlu0 %2434 }
 0x37f   : > { %2587 = vst.msk [vmem:[#allocation3 + $0x140] sm:$0xff] %vm2546_vm6, %v2435_v48  ;;  %v509_v31 = vpop.permute.xlu2 %508 }
 0x380   : > { %2972 = vst.msk [vmem:[#allocation3 + $0x140] sm:$0xff] %vm2931_vm7, %v2820_v60  ;;  %v17760_v60 = vld [vmem:[%s15725_s17 + $0x420] sm:$0xff] }
 0x381   : > { %660 = vst.msk [vmem:[#allocation3 + $0x148] sm:$0xff] %vm618_vm1, %v509_v31  ;;  %v215_v31 = vld [vmem:[%s15725_s17 + $0x330] sm:$0xff] }
 0x382   : > { %280 = vst.msk [vmem:[#allocation3 + $0x170] sm:$0xff] %vm233_vm0, %v215_v31  ;;  %v4039_v31 = vld [vmem:[#allocation2 + $0x331] sm:$0xff] }
 0x383   : > { %1291 = vrot.lane.b32.xlu1 %v17415_v53, %s15684_s19  ;;  %v212_v53 = vld [vmem:[%s15725_s17 + $0x300] sm:$0xff] }
 0x384   : > { %906 = vrot.lane.b32.xlu0 %v17452_v3, %s15686_s21  ;;  %v3377_v37 = vpop.f32.mrf.mxu0  ;;  %277 = vst.msk [vmem:[#allocation3 + $0x158] sm:$0xff] %vm233_vm0, %v212_v53 }
 0x385   : > { %vm3503_vm15 = vcmp.ge.f32.partialorder %v3377_v37, 0.0  ;;  %v3567_v55 = vmul.f32 0.2, %v3377_v37  ;;  %v1280_v38 = vpop.permute.xlu1 %1279  ;;  %520 = vrot.lane.b32.xlu2 %v17401_v41, %s15683_s18 }
 0x386   : > { %v895_v57 = vpop.permute.xlu0 %894 }
 0x387   : > { %v3631_v54 = vsel %vm3503_vm15, %v3377_v37, %v3567_v55  ;;  %1046 = vst.msk [vmem:[#allocation3 + $0x148] sm:$0xff] %vm1004_vm2, %v895_v57  ;;  %v3036_v33 = vld [vmem:[#allocation3 + $0x140] sm:$0xff]  ;;  %v1666_v3 = vpop.permute.xlu2 %1665 }
 0x388   : > { %3902 = vst.msk [vmem:[#allocation2 + $0x341] sm:$0xff] %vm3662_vm9, %v3631_v54  ;;  %13748 = vmatmul.msk.f32.gmra.mxu0 %vm3068_vm8, %v3036_v33 }
 0x389   : > { %1431 = vst.msk [vmem:[#allocation3 + $0x148] sm:$0xff] %vm1389_vm3, %v1280_v38 }
 0x38a   : > { %1817 = vst.msk [vmem:[#allocation3 + $0x148] sm:$0xff] %vm1775_vm4, %v1666_v3 }
 0x38b   : > { %2448 = vrot.lane.b32.xlu1 %v17664_v18, %s15688_s23 }
 0x38c   : > { %2062 = vrot.lane.b32.xlu0 %v17640_v7, %s15685_s20 }
 0x38d   : > { %v2437_v47 = vpop.permute.xlu1 %2436  ;;  %1677 = vrot.lane.b32.xlu2 %v17637_v29, %s15687_s22 }
 0x38e   : > { %v2051_v25 = vpop.permute.xlu0 %2050 }
 0x38f   : > { %2202 = vst.msk [vmem:[#allocation3 + $0x148] sm:$0xff] %vm2160_vm5, %v2051_v25  ;;  %v2822_v20 = vpop.permute.xlu2 %2821  ;;  %v216_v25 = vld [vmem:[%s15725_s17 + $0x340] sm:$0xff] }
 0x390   : > { %2588 = vst.msk [vmem:[#allocation3 + $0x148] sm:$0xff] %vm2546_vm6, %v2437_v47 }
 0x391   : > { %2973 = vst.msk [vmem:[#allocation3 + $0x148] sm:$0xff] %vm2931_vm7, %v2822_v20 }
 0x392   : > { %281 = vst.msk [vmem:[#allocation3 + $0x178] sm:$0xff] %vm233_vm0, %v216_v25 }
 0x393   : > { %908 = vrot.lane.b32.xlu1 %v17444_v5, %s15686_s21  ;;  %v13500_v5 = vld [vmem:[%s15725_s17 + $0x3f0] sm:$0xff] }
 0x394   : > { %522 = vrot.lane.b32.xlu0 %v17481_v24, %s15683_s18  ;;  %v213_v24 = vld [vmem:[%s15725_s17 + $0x310] sm:$0xff] }
 0x395   : > { %v3380_v43 = vpop.f32.mrf.mxu0  ;;  %v897_v51 = vpop.permute.xlu1 %896  ;;  %278 = vst.msk [vmem:[#allocation3 + $0x160] sm:$0xff] %vm233_vm0, %v213_v24  ;;  %2833 = vrot.lane.b32.xlu2 %v17706_v52, %s15689_s24  ;;  %v17812_v24 = vld [vmem:[%s15725_s17 + $0x430] sm:$0xff] }
 0x396   : > { %v511_v28 = vpop.permute.xlu0 %510  ;;  %vm3504_vm10 = vcmp.ge.f32.partialorder %v3380_v43, 0.0  ;;  %v3568_v50 = vmul.f32 0.2, %v3380_v43 }
 0x397   : > { %661 = vst.msk [vmem:[#allocation3 + $0x150] sm:$0xff] %vm618_vm1, %v511_v28  ;;  %v1282_v6 = vpop.permute.xlu2 %1281 }
 0x398   : > { %v3632_v62 = vsel %vm3504_vm10, %v3380_v43, %v3568_v50  ;;  %1047 = vst.msk [vmem:[#allocation3 + $0x150] sm:$0xff] %vm1004_vm2, %v897_v51  ;;  %v3037_v23 = vld [vmem:[#allocation3 + $0x148] sm:$0xff]  ;;  %v17799_v43 = vld [vmem:[%s15725_s17 + $0x431] sm:$0xff] }
 0x399   : > { %3903 = vst.msk [vmem:[#allocation2 + $0x351] sm:$0xff] %vm3662_vm9, %v3632_v62  ;;  %13749 = vmatmul.msk.f32.gmra.mxu0 %vm3068_vm8, %v3037_v23 }
 0x39a   : > { %1432 = vst.msk [vmem:[#allocation3 + $0x150] sm:$0xff] %vm1389_vm3, %v1282_v6 }
 0x39b   : > { %2064 = vrot.lane.b32.xlu1 %v17691_v0, %s15685_s20 }
 0x39c   : > { %1679 = vrot.lane.b32.xlu0 %v13500_v5, %s15687_s22 }
 0x39d   : > { %v2053_v8 = vpop.permute.xlu1 %2052  ;;  %1293 = vrot.lane.b32.xlu2 %v17447_v56, %s15684_s19 }
 0x39e   : > { %v1668_v41 = vpop.permute.xlu0 %1667 }
 0x39f   : > { %1818 = vst.msk [vmem:[#allocation3 + $0x150] sm:$0xff] %vm1775_vm4, %v1668_v41  ;;  %v2439_v1 = vpop.permute.xlu2 %2438 }
 0x3a0   : > { %2203 = vst.msk [vmem:[#allocation3 + $0x150] sm:$0xff] %vm2160_vm5, %v2053_v8 }
 0x3a1   : > { %2589 = vst.msk [vmem:[#allocation3 + $0x150] sm:$0xff] %vm2546_vm6, %v2439_v1  ;;  %v217_v1 = vld [vmem:[%s15725_s17 + $0x360] sm:$0xff] }
 0x3a2   : > { %282 = vst.msk [vmem:[#allocation3 + $0x180] sm:$0xff] %vm233_vm0, %v217_v1  ;;  %v4032_v1 = vld [vmem:[#allocation2 + $0x2a1] sm:$0xff] }
 0x3a3   : > { %524 = vrot.lane.b32.xlu1 %v17447_v56, %s15683_s18 }
 0x3a4   : > { %2835 = vrot.lane.b32.xlu0 %v17703_v2, %s15689_s24 }
 0x3a5   : > { %v513_v17 = vpop.permute.xlu1 %512  ;;  %2450 = vrot.lane.b32.xlu2 %v17719_v10, %s15688_s23 }
 0x3a6   : > { %v2824_v39 = vpop.permute.xlu0 %2823  ;;  %v3383_v16 = vpop.f32.mrf.mxu0  ;;  %662 = vst.msk [vmem:[#allocation3 + $0x158] sm:$0xff] %vm618_vm1, %v513_v17  ;;  %v17830_v17 = vld [vmem:[%s15725_s17 + $0x441] sm:$0xff] }
 0x3a7   : > { %2974 = vst.msk [vmem:[#allocation3 + $0x150] sm:$0xff] %vm2931_vm7, %v2824_v39  ;;  %vm3505_vm11 = vcmp.ge.f32.partialorder %v3383_v16, 0.0  ;;  %v3569_v21 = vmul.f32 0.2, %v3383_v16  ;;  %v899_v11 = vpop.permute.xlu2 %898 }
 0x3a8   : > { %1048 = vst.msk [vmem:[#allocation3 + $0x158] sm:$0xff] %vm1004_vm2, %v899_v11 }
 0x3a9   : > { %v3633_v61 = vsel %vm3505_vm11, %v3383_v16, %v3569_v21  ;;  %v17826_v21 = vld [vmem:[%s15725_s17 + $0x440] sm:$0xff] }
 0x3aa   : > { %3904 = vst.msk [vmem:[#allocation2 + $0x361] sm:$0xff] %vm3662_vm9, %v3633_v61 }
 0x3ab   : > { %1681 = vrot.lane.b32.xlu1 %v17719_v10, %s15687_s22 }
 0x3ac   : > { %1295 = vrot.lane.b32.xlu0 %v17506_v49, %s15684_s19 }
 0x3ad   : > { %v1670_v27 = vpop.permute.xlu1 %1669  ;;  %910 = vrot.lane.b32.xlu2 %v17478_v19, %s15686_s21 }
 0x3ae   : > { %v1284_v30 = vpop.permute.xlu0 %1283  ;;  %v3038_v15 = vld [vmem:[#allocation3 + $0x150] sm:$0xff] }
 0x3af   : > { %1433 = vst.msk [vmem:[#allocation3 + $0x158] sm:$0xff] %vm1389_vm3, %v1284_v30  ;;  %13750 = vmatmul.msk.f32.gmra.mxu0 %vm3068_vm8, %v3038_v15  ;;  %v2055_v59 = vpop.permute.xlu2 %2054 }
 0x3b0   : > { %1819 = vst.msk [vmem:[#allocation3 + $0x158] sm:$0xff] %vm1775_vm4, %v1670_v27 }
 0x3b1   : > { %2204 = vst.msk [vmem:[#allocation3 + $0x158] sm:$0xff] %vm2160_vm5, %v2055_v59  ;;  %v4042_v59 = vld [vmem:[#allocation2 + $0x361] sm:$0xff] }
 0x3b3   : > { %2837 = vrot.lane.b32.xlu1 %v17736_v9, %s15689_s24 }
 0x3b4   : > { %2452 = vrot.lane.b32.xlu0 %v17733_v34, %s15688_s23 }
 0x3b5   : > { %v2826_v44 = vpop.permute.xlu1 %2825  ;;  %2066 = vrot.lane.b32.xlu2 %v17703_v2, %s15685_s20 }
 0x3b6   : > { %v2441_v56 = vpop.permute.xlu0 %2440 }
 0x3b7   : > { %2590 = vst.msk [vmem:[#allocation3 + $0x158] sm:$0xff] %vm2546_vm6, %v2441_v56  ;;  %v515_v45 = vpop.permute.xlu2 %514 }
 0x3b8   : > { %2975 = vst.msk [vmem:[#allocation3 + $0x158] sm:$0xff] %vm2931_vm7, %v2826_v44 }
 0x3b9   : > { %663 = vst.msk [vmem:[#allocation3 + $0x160] sm:$0xff] %vm618_vm1, %v515_v45 }
 0x3bb   : > { %1297 = vrot.lane.b32.xlu1 %v17519_v46, %s15684_s19 }
 0x3bc   : > { %912 = vrot.lane.b32.xlu0 %v17532_v35, %s15686_s21  ;;  %v3386_v12 = vpop.f32.mrf.mxu0 }
 0x3bd   : > { %vm3506_vm13 = vcmp.ge.f32.partialorder %v3386_v12, 0.0  ;;  %v3570_v13 = vmul.f32 0.2, %v3386_v12  ;;  %v1286_v58 = vpop.permute.xlu1 %1285  ;;  %526 = vrot.lane.b32.xlu2 %v17506_v49, %s15683_s18 }
 0x3be   : > { %v901_v32 = vpop.permute.xlu0 %900 }
 0x3bf   : > { %v3634_v4 = vsel %vm3506_vm13, %v3386_v12, %v3570_v13  ;;  %1049 = vst.msk [vmem:[#allocation3 + $0x160] sm:$0xff] %vm1004_vm2, %v901_v32  ;;  %v3039_v48 = vld [vmem:[#allocation3 + $0x158] sm:$0xff]  ;;  %v1672_v35 = vpop.permute.xlu2 %1671  ;;  %v17858_v32 = vld [vmem:[%s15725_s17 + $0x450] sm:$0xff] }
 0x3c0   : > { %3905 = vst.msk [vmem:[#allocation2 + $0x371] sm:$0xff] %vm3662_vm9, %v3634_v4  ;;  %13751 = vmatmul.msk.f32.gmra.mxu0 %vm3068_vm8, %v3039_v48  ;;  %v4041_v13 = vld [vmem:[#allocation2 + $0x351] sm:$0xff]  ;;  %v4040_v4 = vld [vmem:[#allocation2 + $0x341] sm:$0xff] }
 0x3c1   : > { %1434 = vst.msk [vmem:[#allocation3 + $0x160] sm:$0xff] %vm1389_vm3, %v1286_v58 }
 0x3c2   : > { %1820 = vst.msk [vmem:[#allocation3 + $0x160] sm:$0xff] %vm1775_vm4, %v1672_v35 }
 0x3c3   : > { %2454 = vrot.lane.b32.xlu1 %v17760_v60, %s15688_s23 }
 0x3c4   : > { %2068 = vrot.lane.b32.xlu0 %v17736_v9, %s15685_s20 }
 0x3c5   : > { %v2443_v37 = vpop.permute.xlu1 %2442  ;;  %1683 = vrot.lane.b32.xlu2 %v17733_v34, %s15687_s22 }
 0x3c6   : > { %v2057_v19 = vpop.permute.xlu0 %2056 }
 0x3c7   : > { %2205 = vst.msk [vmem:[#allocation3 + $0x160] sm:$0xff] %vm2160_vm5, %v2057_v19  ;;  %v2828_v55 = vpop.permute.xlu2 %2827  ;;  %v4043_v15 = vld [vmem:[#allocation2 + $0x371] sm:$0xff]  ;;  %v4038_v19 = vld [vmem:[#allocation2 + $0x321] sm:$0xff] }
 0x3c8   : > { %2591 = vst.msk [vmem:[#allocation3 + $0x160] sm:$0xff] %vm2546_vm6, %v2443_v37 }
 0x3c9   : > { %2976 = vst.msk [vmem:[#allocation3 + $0x160] sm:$0xff] %vm2931_vm7, %v2828_v55 }
 0x3cb   : > { %914 = vrot.lane.b32.xlu1 %v17546_v63, %s15686_s21  ;;  %v17785_v63 = vld [vmem:[%s15725_s17 + $0x421] sm:$0xff] }
 0x3cc   : > { %528 = vrot.lane.b32.xlu0 %v17519_v46, %s15683_s18 }
 0x3cd   : > { %v3389_v57 = vpop.f32.mrf.mxu0  ;;  %v903_v33 = vpop.permute.xlu1 %902  ;;  %2839 = vrot.lane.b32.xlu2 %v17785_v63, %s15689_s24 }
 0x3ce   : > { %v517_v54 = vpop.permute.xlu0 %516  ;;  %vm3507_vm14 = vcmp.ge.f32.partialorder %v3389_v57, 0.0  ;;  %v3571_v38 = vmul.f32 0.2, %v3389_v57 }
 0x3cf   : > { %664 = vst.msk [vmem:[#allocation3 + $0x168] sm:$0xff] %vm618_vm1, %v517_v54  ;;  %v1288_v53 = vpop.permute.xlu2 %1287 }
 0x3d0   : > { %v3635_v3 = vsel %vm3507_vm14, %v3389_v57, %v3571_v38  ;;  %1050 = vst.msk [vmem:[#allocation3 + $0x168] sm:$0xff] %vm1004_vm2, %v903_v33  ;;  %v3040_v46 = vld [vmem:[#allocation3 + $0x160] sm:$0xff] }
 0x3d1   : > { %3906 = vst.msk [vmem:[#allocation2 + $0x381] sm:$0xff] %vm3662_vm9, %v3635_v3  ;;  %13752 = vmatmul.msk.f32.gmra.mxu0 %vm3068_vm8, %v3040_v46  ;;  %v219_v3 = vld [vmem:[%s15725_s17 + $0x380] sm:$0xff] }
 0x3d2   : > { %1435 = vst.msk [vmem:[#allocation3 + $0x168] sm:$0xff] %vm1389_vm3, %v1288_v53  ;;  %v4036_v53 = vld [vmem:[#allocation2 + $0x2e1] sm:$0xff] }
 0x3d3   : > { %2070 = vrot.lane.b32.xlu1 %v17785_v63, %s15685_s20  ;;  %284 = vst.msk [vmem:[#allocation3 + $0x190] sm:$0xff] %vm233_vm0, %v219_v3 }
 0x3d4   : > { %1685 = vrot.lane.b32.xlu0 %v17760_v60, %s15687_s22 }
 0x3d5   : > { %v2059_v47 = vpop.permute.xlu1 %2058  ;;  %1299 = vrot.lane.b32.xlu2 %v17549_v40, %s15684_s19 }
 0x3d6   : > { %v1674_v49 = vpop.permute.xlu0 %1673 }
 0x3d7   : > { %1821 = vst.msk [vmem:[#allocation3 + $0x168] sm:$0xff] %vm1775_vm4, %v1674_v49  ;;  %v2445_v20 = vpop.permute.xlu2 %2444 }
 0x3d8   : > { %2206 = vst.msk [vmem:[#allocation3 + $0x168] sm:$0xff] %vm2160_vm5, %v2059_v47  ;;  %v4035_v47 = vld [vmem:[#allocation2 + $0x2d1] sm:$0xff] }
 0x3d9   : > { %2592 = vst.msk [vmem:[#allocation3 + $0x168] sm:$0xff] %vm2546_vm6, %v2445_v20  ;;  %v17902_v20 = vld [vmem:[%s15725_s17 + $0x461] sm:$0xff] }
 0x3db   : > { %530 = vrot.lane.b32.xlu1 %v17549_v40, %s15683_s18  ;;  %v4044_v40 = vld [vmem:[#allocation2 + $0x381] sm:$0xff] }
 0x3dc   : > { %2841 = vrot.lane.b32.xlu0 %v17799_v43, %s15689_s24 }
 0x3dd   : > { %v519_v62 = vpop.permute.xlu1 %518  ;;  %2456 = vrot.lane.b32.xlu2 %v17812_v24, %s15688_s23 }
 0x3de   : > { %v2830_v28 = vpop.permute.xlu0 %2829  ;;  %v3392_v50 = vpop.f32.mrf.mxu0  ;;  %665 = vst.msk [vmem:[#allocation3 + $0x170] sm:$0xff] %vm618_vm1, %v519_v62 }
 0x3df   : > { %2977 = vst.msk [vmem:[#allocation3 + $0x168] sm:$0xff] %vm2931_vm7, %v2830_v28  ;;  %vm3508_vm12 = vcmp.ge.f32.partialorder %v3392_v50, 0.0  ;;  %v3572_v51 = vmul.f32 0.2, %v3392_v50  ;;  %v905_v6 = vpop.permute.xlu2 %904  ;;  %v4034_v28 = vld [vmem:[#allocation2 + $0x2c1] sm:$0xff] }
 0x3e0   : > { %1051 = vst.msk [vmem:[#allocation3 + $0x170] sm:$0xff] %vm1004_vm2, %v905_v6 }
 0x3e1   : > { %v3636_v23 = vsel %vm3508_vm12, %v3392_v50, %v3572_v51 }
 0x3e2   : > { %3907 = vst.msk [vmem:[#allocation2 + $0x391] sm:$0xff] %vm3662_vm9, %v3636_v23 }
 0x3e3   : > { %1687 = vrot.lane.b32.xlu1 %v17812_v24, %s15687_s22 }
 0x3e4   : > { %1301 = vrot.lane.b32.xlu0 %v17597_v14, %s15684_s19 }
 0x3e5   : > { %v1676_v8 = vpop.permute.xlu1 %1675  ;;  %916 = vrot.lane.b32.xlu2 %v17573_v36, %s15686_s21  ;;  %v218_v36 = vld [vmem:[%s15725_s17 + $0x370] sm:$0xff] }
 0x3e6   : > { %v1290_v5 = vpop.permute.xlu0 %1289  ;;  %v3041_v41 = vld [vmem:[#allocation3 + $0x168] sm:$0xff]  ;;  %283 = vst.msk [vmem:[#allocation3 + $0x188] sm:$0xff] %vm233_vm0, %v218_v36 }
 0x3e7   : > { %1436 = vst.msk [vmem:[#allocation3 + $0x170] sm:$0xff] %vm1389_vm3, %v1290_v5  ;;  %13753 = vmatmul.msk.f32.gmra.mxu0 %vm3068_vm8, %v3041_v41  ;;  %v2061_v39 = vpop.permute.xlu2 %2060  ;;  %v4033_v41 = vld [vmem:[#allocation2 + $0x2b1] sm:$0xff] }
 0x3e8   : > { %1822 = vst.msk [vmem:[#allocation3 + $0x170] sm:$0xff] %vm1775_vm4, %v1676_v8  ;;  %v17918_v8 = vld [vmem:[%s15725_s17 + $0x460] sm:$0xff] }
 0x3e9   : > { %v4045_v16 = vld [vmem:[#allocation2 + $0x391] sm:$0xff]  ;;  %2207 = vst.msk [vmem:[#allocation3 + $0x170] sm:$0xff] %vm2160_vm5, %v2061_v39 }
 0x3ea   : > { %13807 = vmatpush.xpose.msk.msra.mxu3 %vm3662_vm9, %v4045_v16 }
 0x3eb   : > { %2843 = vrot.lane.b32.xlu1 %v17830_v17, %s15689_s24 }
 0x3ec   : > { %2458 = vrot.lane.b32.xlu0 %v17826_v21, %s15688_s23 }
 0x3ed   : > { %v2832_v61 = vpop.permute.xlu1 %2831  ;;  %2072 = vrot.lane.b32.xlu2 %v17799_v43, %s15685_s20 }
 0x3ee   : > { %v2447_v11 = vpop.permute.xlu0 %2446  ;;  %13808 = vmatpush.xpose.msk.msra.mxu3 %vm3662_vm9, %v4044_v40 }
 0x3ef   : > { %2593 = vst.msk [vmem:[#allocation3 + $0x170] sm:$0xff] %vm2546_vm6, %v2447_v11  ;;  %v521_v30 = vpop.permute.xlu2 %520  ;;  %v220_v11 = vld [vmem:[%s15725_s17 + $0x390] sm:$0xff] }
 0x3f0   : > { %2978 = vst.msk [vmem:[#allocation3 + $0x170] sm:$0xff] %vm2931_vm7, %v2832_v61  ;;  %v4031_v61 = vld [vmem:[#allocation2 + $0x291] sm:$0xff] }
 0x3f1   : > { %666 = vst.msk [vmem:[#allocation3 + $0x178] sm:$0xff] %vm618_vm1, %v521_v30  ;;  %v17933_v30 = vld [vmem:[%s15725_s17 + $0x470] sm:$0xff] }
 0x3f2   : > { %13809 = vmatpush.xpose.msk.msra.mxu3 %vm3662_vm9, %v4043_v15  ;;  %v17937_v15 = vld [vmem:[%s15725_s17 + $0x471] sm:$0xff]  ;;  %285 = vst.msk [vmem:[#allocation3 + $0x198] sm:$0xff] %vm233_vm0, %v220_v11 }
 0x3f3   : > { %1303 = vrot.lane.b32.xlu1 %v17610_v26, %s15684_s19 }
 0x3f4   : > { %918 = vrot.lane.b32.xlu0 %v17623_v22, %s15686_s21  ;;  %v3395_v27 = vpop.f32.mrf.mxu0 }
 0x3f5   : > { %vm3509_vm15 = vcmp.ge.f32.partialorder %v3395_v27, 0.0  ;;  %v3573_v42 = vmul.f32 0.2, %v3395_v27  ;;  %v1292_v45 = vpop.permute.xlu1 %1291  ;;  %532 = vrot.lane.b32.xlu2 %v17597_v14, %s15683_s18  ;;  %v17888_v14 = vld [vmem:[%s15725_s17 + $0x451] sm:$0xff] }
 0x3f6   : > { %v907_v56 = vpop.permute.xlu0 %906  ;;  %13810 = vmatpush.xpose.msk.msra.mxu3 %vm3662_vm9, %v4042_v59 }
 0x3f7   : > { %v3637_v44 = vsel %vm3509_vm15, %v3395_v27, %v3573_v42  ;;  %1052 = vst.msk [vmem:[#allocation3 + $0x178] sm:$0xff] %vm1004_vm2, %v907_v56  ;;  %v3042_v22 = vld [vmem:[#allocation3 + $0x170] sm:$0xff]  ;;  %v1678_v12 = vpop.permute.xlu2 %1677 }
 0x3f8   : > { %3908 = vst.msk [vmem:[#allocation2 + $0x3a1] sm:$0xff] %vm3662_vm9, %v3637_v44  ;;  %13754 = vmatmul.msk.f32.gmra.mxu0 %vm3068_vm8, %v3042_v22  ;;  %v3964_v42 = vld [vmem:[#allocation2 + $0x250] sm:$0xff]  ;;  %v3963_v44 = vld [vmem:[#allocation2 + $0x240] sm:$0xff] }
 0x3f9   : > { %1437 = vst.msk [vmem:[#allocation3 + $0x178] sm:$0xff] %vm1389_vm3, %v1292_v45 }
 0x3fa   : > { %13811 = vmatpush.xpose.msk.msra.mxu3 %vm3662_vm9, %v4041_v13  ;;  %1823 = vst.msk [vmem:[#allocation3 + $0x178] sm:$0xff] %vm1775_vm4, %v1678_v12  ;;  %v3962_v13 = vld [vmem:[#allocation2 + $0x230] sm:$0xff] }
 0x3fb   : > { %2460 = vrot.lane.b32.xlu1 %v17858_v32, %s15688_s23 }
 0x3fc   : > { %2074 = vrot.lane.b32.xlu0 %v17830_v17, %s15685_s20 }
 0x3fd   : > { %v2449_v48 = vpop.permute.xlu1 %2448  ;;  %1689 = vrot.lane.b32.xlu2 %v17826_v21, %s15687_s22 }
 0x3fe   : > { %v2063_v58 = vpop.permute.xlu0 %2062  ;;  %13812 = vmatpush.xpose.msk.msra.mxu3 %vm3662_vm9, %v4040_v4 }
 0x3ff   : > { %2208 = vst.msk [vmem:[#allocation3 + $0x178] sm:$0xff] %vm2160_vm5, %v2063_v58  ;;  %v2834_v35 = vpop.permute.xlu2 %2833 }
 0x400   : > { %2594 = vst.msk [vmem:[#allocation3 + $0x178] sm:$0xff] %vm2546_vm6, %v2449_v48  ;;  %v13572_v48 = vld [vmem:[%s15725_s17 + $0x481] sm:$0xff] }
 0x401   : > { %2979 = vst.msk [vmem:[#allocation3 + $0x178] sm:$0xff] %vm2931_vm7, %v2834_v35  ;;  %v3961_v35 = vld [vmem:[#allocation2 + $0x220] sm:$0xff] }
 0x402   : > { %13813 = vmatpush.xpose.msk.msra.mxu3 %vm3662_vm9, %v4039_v31  ;;  %v13636_v31 = vld [vmem:[%s15725_s17 + $0x490] sm:$0xff] }
 0x403   : > { %920 = vrot.lane.b32.xlu1 %v17637_v29, %s15686_s21  ;;  %v4037_v29 = vld [vmem:[#allocation2 + $0x2f1] sm:$0xff] }
 0x404   : > { %534 = vrot.lane.b32.xlu0 %v17610_v26, %s15683_s18 }
 0x405   : > { %v3398_v37 = vpop.f32.mrf.mxu0  ;;  %v909_v54 = vpop.permute.xlu1 %908  ;;  %2845 = vrot.lane.b32.xlu2 %v17888_v14, %s15689_s24 }
 0x406   : > { %v523_v55 = vpop.permute.xlu0 %522  ;;  %13814 = vmatpush.xpose.msk.msra.mxu3 %vm3662_vm9, %v4038_v19  ;;  %vm3510_vm10 = vcmp.ge.f32.partialorder %v3398_v37, 0.0  ;;  %v3574_v57 = vmul.f32 0.2, %v3398_v37 }
 0x407   : > { %667 = vst.msk [vmem:[#allocation3 + $0x180] sm:$0xff] %vm618_vm1, %v523_v55  ;;  %v1294_v26 = vpop.permute.xlu2 %1293 }
 0x408   : > { %v3638_v38 = vsel %vm3510_vm10, %v3398_v37, %v3574_v57  ;;  %1053 = vst.msk [vmem:[#allocation3 + $0x180] sm:$0xff] %vm1004_vm2, %v909_v54  ;;  %v3043_v33 = vld [vmem:[#allocation3 + $0x178] sm:$0xff]  ;;  %v3960_v37 = vld [vmem:[#allocation2 + $0x210] sm:$0xff]  ;;  %v3959_v54 = vld [vmem:[#allocation2 + $0x200] sm:$0xff] }
 0x409   : > { %3909 = vst.msk [vmem:[#allocation2 + $0x3d1] sm:$0xff] %vm3662_vm9, %v3638_v38  ;;  %13755 = vmatmul.msk.f32.gmra.mxu0 %vm3068_vm8, %v3043_v33  ;;  %v3958_v33 = vld [vmem:[#allocation2 + $0x1f0] sm:$0xff] }
 0x40a   : > { %13815 = vmatpush.xpose.msk.msra.mxu3 %vm3662_vm9, %v4037_v29  ;;  %1438 = vst.msk [vmem:[#allocation3 + $0x180] sm:$0xff] %vm1389_vm3, %v1294_v26 }
 0x40b   : > { %2076 = vrot.lane.b32.xlu1 %v17888_v14, %s15685_s20 }
 0x40c   : > { %1691 = vrot.lane.b32.xlu0 %v17858_v32, %s15687_s22 }
 0x40d   : > { %v2065_v25 = vpop.permute.xlu1 %2064  ;;  %1305 = vrot.lane.b32.xlu2 %v17640_v7, %s15684_s19 }
 0x40e   : > { %v1680_v46 = vpop.permute.xlu0 %1679  ;;  %13816 = vmatpush.xpose.msk.msra.mxu3 %vm3662_vm9, %v4036_v53 }
 0x40f   : > { %1824 = vst.msk [vmem:[#allocation3 + $0x180] sm:$0xff] %vm1775_vm4, %v1680_v46  ;;  %v2451_v49 = vpop.permute.xlu2 %2450  ;;  %v3957_v46 = vld [vmem:[#allocation2 + $0x1e0] sm:$0xff] }
 0x410   : > { %2209 = vst.msk [vmem:[#allocation3 + $0x180] sm:$0xff] %vm2160_vm5, %v2065_v25  ;;  %v222_v25 = vld [vmem:[%s15725_s17 + $0x3b0] sm:$0xff] }
 0x411   : > { %2595 = vst.msk [vmem:[#allocation3 + $0x180] sm:$0xff] %vm2546_vm6, %v2451_v49  ;;  %v13573_v49 = vld [vmem:[%s15725_s17 + $0x491] sm:$0xff] }
 0x412   : > { %13817 = vmatpush.xpose.msk.msra.mxu3 %vm3662_vm9, %v4035_v47  ;;  %287 = vst.msk [vmem:[#allocation3 + $0x1a8] sm:$0xff] %vm233_vm0, %v222_v25 }
 0x413   : > { %536 = vrot.lane.b32.xlu1 %v17640_v7, %s15683_s18  ;;  %v4030_v7 = vld [vmem:[#allocation2 + $0x281] sm:$0xff] }
 0x414   : > { %2847 = vrot.lane.b32.xlu0 %v17902_v20, %s15689_s24 }
 0x415   : > { %v525_v6 = vpop.permute.xlu1 %524  ;;  %2462 = vrot.lane.b32.xlu2 %v17918_v8, %s15688_s23 }
 0x416   : > { %v2836_v50 = vpop.permute.xlu0 %2835  ;;  %13818 = vmatpush.xpose.msk.msra.mxu3 %vm3662_vm9, %v4034_v28  ;;  %v3401_v51 = vpop.f32.mrf.mxu0  ;;  %668 = vst.msk [vmem:[#allocation3 + $0x188] sm:$0xff] %vm618_vm1, %v525_v6  ;;  %v3956_v28 = vld [vmem:[#allocation2 + $0x1b0] sm:$0xff]  ;;  %v18008_v6 = vld [vmem:[%s15725_s17 + $0x4a1] sm:$0xff] }
 0x417   : > { %2980 = vst.msk [vmem:[#allocation3 + $0x180] sm:$0xff] %vm2931_vm7, %v2836_v50  ;;  %vm3511_vm11 = vcmp.ge.f32.partialorder %v3401_v51, 0.0  ;;  %v3575_v62 = vmul.f32 0.2, %v3401_v51  ;;  %v911_v23 = vpop.permute.xlu2 %910 }
 0x418   : > { %1054 = vst.msk [vmem:[#allocation3 + $0x188] sm:$0xff] %vm1004_vm2, %v911_v23  ;;  %v3955_v23 = vld [vmem:[#allocation2 + $0x1a0] sm:$0xff] }
 0x419   : > { %v3639_v5 = vsel %vm3511_vm11, %v3401_v51, %v3575_v62  ;;  %v18004_v62 = vld [vmem:[%s22899_s2 + $0x1] sm:$0x1] }
 0x41a   : > { %3910 = vst.msk [vmem:[#allocation2 + $0x3e1] sm:$0xff] %vm3662_vm9, %v3639_v5  ;;  %13819 = vmatpush.xpose.msk.msra.mxu3 %vm3662_vm9, %v4033_v41  ;;  %13806 = vmatmul.msk.f32.vlgmr.msra.gmra.mxu2 %vm3662_vm9, %v18004_v62  ;;  %v3954_v41 = vld [vmem:[#allocation2 + $0x190] sm:$0xff] }
 0x41b   : > { %1693 = vrot.lane.b32.xlu1 %v17918_v8, %s15687_s22 }
 0x41c   : > { %1307 = vrot.lane.b32.xlu0 %v17706_v52, %s15684_s19 }
 0x41d   : > { %v1682_v40 = vpop.permute.xlu1 %1681  ;;  %922 = vrot.lane.b32.xlu2 %v17664_v18, %s15686_s21  ;;  %v221_v18 = vld [vmem:[%s15725_s17 + $0x3a0] sm:$0xff] }
 0x41e   : > { %v1296_v39 = vpop.permute.xlu0 %1295  ;;  %13820 = vmatpush.xpose.msk.msra.mxu3 %vm3662_vm9, %v4032_v1  ;;  %v3044_v16 = vld [vmem:[#allocation3 + $0x180] sm:$0xff]  ;;  %286 = vst.msk [vmem:[#allocation3 + $0x1a0] sm:$0xff] %vm233_vm0, %v221_v18 }
 0x41f   : > { %1439 = vst.msk [vmem:[#allocation3 + $0x188] sm:$0xff] %vm1389_vm3, %v1296_v39  ;;  %13756 = vmatmul.msk.f32.gmra.mxu0 %vm3068_vm8, %v3044_v16  ;;  %v2067_v52 = vpop.permute.xlu2 %2066 }
 0x420   : > { %1825 = vst.msk [vmem:[#allocation3 + $0x188] sm:$0xff] %vm1775_vm4, %v1682_v40 }
 0x421   : > { %2210 = vst.msk [vmem:[#allocation3 + $0x188] sm:$0xff] %vm2160_vm5, %v2067_v52  ;;  %v3953_v52 = vld [vmem:[#allocation2 + $0x180] sm:$0xff] }
 0x422   : > { %13821 = vmatpush.xpose.msk.msra.mxu3 %vm3662_vm9, %v4031_v61  ;;  %v13510_v61 = vld [vmem:[%s15725_s17 + $0x4a0] sm:$0xff] }
 0x423   : > { %2849 = vrot.lane.b32.xlu1 %v17937_v15, %s15689_s24 }
 0x424   : > { %2464 = vrot.lane.b32.xlu0 %v17933_v30, %s15688_s23 }
 0x425   : > { %v2838_v59 = vpop.permute.xlu1 %2837  ;;  %2078 = vrot.lane.b32.xlu2 %v17902_v20, %s15685_s20 }
 0x426   : > { %v2453_v27 = vpop.permute.xlu0 %2452  ;;  %13822 = vmatpush.xpose.msk.msra.mxu3 %vm3662_vm9, %v4030_v7 }
 0x427   : > { %2596 = vst.msk [vmem:[#allocation3 + $0x188] sm:$0xff] %vm2546_vm6, %v2453_v27  ;;  %v527_v56 = vpop.permute.xlu2 %526 }
 0x428   : > { %2981 = vst.msk [vmem:[#allocation3 + $0x188] sm:$0xff] %vm2931_vm7, %v2838_v59 }
 0x429   : > { %669 = vst.msk [vmem:[#allocation3 + $0x190] sm:$0xff] %vm618_vm1, %v527_v56  ;;  %13823 = vmatmul.msk.f32.vlgmr.msra.gmra.mxu3 %vm3662_vm9, %v18004_v62  ;;  %v223_v56 = vld [vmem:[%s15725_s17 + $0x3c0] sm:$0xff] }
 0x42a   : > { %13858 = vmatpush.xpose.msk.msrb.mxu3 %vm3662_vm9, %v3964_v42  ;;  %v3952_v42 = vld [vmem:[#allocation2 + $0x170] sm:$0xff]  ;;  %288 = vst.msk [vmem:[#allocation3 + $0x1b0] sm:$0xff] %vm233_vm0, %v223_v56 }
 0x42b   : > { %1309 = vrot.lane.b32.xlu1 %v17703_v2, %s15684_s19 }
 0x42c   : > { %924 = vrot.lane.b32.xlu0 %v17719_v10, %s15686_s21  ;;  %v3404_v45 = vpop.f32.mrf.mxu0 }
 0x42d   : > { %vm3512_vm13 = vcmp.ge.f32.partialorder %v3404_v45, 0.0  ;;  %v3576_v22 = vmul.f32 0.2, %v3404_v45  ;;  %v1298_v10 = vpop.permute.xlu1 %1297  ;;  %538 = vrot.lane.b32.xlu2 %v17691_v0, %s15683_s18  ;;  %v13508_v0 = vld [vmem:[%s15725_s17 + $0x480] sm:$0xff] }
 0x42e   : > { %13859 = vmatpush.xpose.msk.msrb.mxu3 %vm3662_vm9, %v3963_v44  ;;  %v913_v12 = vpop.permute.xlu0 %912 }
 0x42f   : > { %v3640_v36 = vsel %vm3512_vm13, %v3404_v45, %v3576_v22  ;;  %1055 = vst.msk [vmem:[#allocation3 + $0x190] sm:$0xff] %vm1004_vm2, %v913_v12  ;;  %v3045_v4 = vld [vmem:[#allocation3 + $0x188] sm:$0xff]  ;;  %v1684_v58 = vpop.permute.xlu2 %1683  ;;  %v18039_v45 = vld [vmem:[%s15725_s17 + $0x4b0] sm:$0xff]  ;;  %v3951_v22 = vld [vmem:[#allocation2 + $0x160] sm:$0xff] }
 0x430   : > { %3911 = vst.msk [vmem:[#allocation2 + $0x3f1] sm:$0xff] %vm3662_vm9, %v3640_v36  ;;  %13757 = vmatmul.msk.f32.gmra.mxu0 %vm3068_vm8, %v3045_v4  ;;  %v13702_v12 = vld [vmem:[%s15725_s17 + $0x4b1] sm:$0xff]  ;;  %v3949_v4 = vld [vmem:[#allocation2 + $0x140] sm:$0xff] }
 0x431   : > { %1440 = vst.msk [vmem:[#allocation3 + $0x190] sm:$0xff] %vm1389_vm3, %v1298_v10 }
 0x432   : > { %13860 = vmatpush.xpose.msk.msrb.mxu3 %vm3662_vm9, %v3962_v13  ;;  %1826 = vst.msk [vmem:[#allocation3 + $0x190] sm:$0xff] %vm1775_vm4, %v1684_v58  ;;  %v3950_v13 = vld [vmem:[#allocation2 + $0x150] sm:$0xff] }
 0x433   : > { %2466 = vrot.lane.b32.xlu1 %v13636_v31, %s15688_s23  ;;  %v18053_v58 = vld [vmem:[#allocation2 + $0x112] sm:$0xff] }
 0x434   : > { %2080 = vrot.lane.b32.xlu0 %v13572_v48, %s15685_s20 }
 0x435   : > { %v2455_v55 = vpop.permute.xlu1 %2454  ;;  %1695 = vrot.lane.b32.xlu2 %v13508_v0, %s15687_s22  ;;  %v4623_v0 = vld [vmem:[#allocation2 + $0xb2] sm:$0xff] }
 0x436   : > { %13861 = vmatpush.xpose.msk.msrb.mxu3 %vm3662_vm9, %v3961_v35  ;;  %v2069_v19 = vpop.permute.xlu0 %2068 }
 0x437   : > { %2211 = vst.msk [vmem:[#allocation3 + $0x190] sm:$0xff] %vm2160_vm5, %v2069_v19  ;;  %v2840_v57 = vpop.permute.xlu2 %2839  ;;  %v18064_v19 = vld [vmem:[#allocation2 + $0x102] sm:$0xff] }
 0x438   : > { %2597 = vst.msk [vmem:[#allocation3 + $0x190] sm:$0xff] %vm2546_vm6, %v2455_v55 }
 0x439   : > { %2982 = vst.msk [vmem:[#allocation3 + $0x190] sm:$0xff] %vm2931_vm7, %v2840_v57  ;;  %v224_v57 = vld [vmem:[%s15725_s17 + $0x3d0] sm:$0xff] }
 0x43a   : > { %13862 = vmatpush.xpose.msk.msrb.mxu3 %vm3662_vm9, %v3960_v37  ;;  %289 = vst.msk [vmem:[#allocation3 + $0x1b8] sm:$0xff] %vm233_vm0, %v224_v57  ;;  %v228_v57 = vld [vmem:[%s15725_s17 + $0x420] sm:$0xff] }
 0x43b   : > { %926 = vrot.lane.b32.xlu1 %v17733_v34, %s15686_s21  ;;  %293 = vst.msk [vmem:[#allocation3 + $0x1d8] sm:$0xff] %vm233_vm0, %v228_v57 }
 0x43c   : > { %540 = vrot.lane.b32.xlu0 %v17703_v2, %s15683_s18 }
 0x43d   : > { %v3407_v38 = vpop.f32.mrf.mxu0  ;;  %v915_v29 = vpop.permute.xlu1 %914  ;;  %2851 = vrot.lane.b32.xlu2 %v13573_v49, %s15689_s24 }
 0x43e   : > { %13863 = vmatpush.xpose.msk.msrb.mxu3 %vm3662_vm9, %v3959_v54  ;;  %v529_v26 = vpop.permute.xlu0 %528  ;;  %vm3513_vm14 = vcmp.ge.f32.partialorder %v3407_v38, 0.0  ;;  %v3577_v3 = vmul.f32 0.2, %v3407_v38  ;;  %v18074_v54 = vld [vmem:[#allocation2 + $0xf2] sm:$0xff] }
 0x43f   : > { %670 = vst.msk [vmem:[#allocation3 + $0x198] sm:$0xff] %vm618_vm1, %v529_v26  ;;  %v1300_v53 = vpop.permute.xlu2 %1299  ;;  %v18084_v26 = vld [vmem:[#allocation2 + $0xe2] sm:$0xff] }
 0x440   : > { %v3641_v2 = vsel %vm3513_vm14, %v3407_v38, %v3577_v3  ;;  %1056 = vst.msk [vmem:[#allocation3 + $0x198] sm:$0xff] %vm1004_vm2, %v915_v29  ;;  %v3046_v34 = vld [vmem:[#allocation3 + $0x190] sm:$0xff] }
 0x441   : > { %3912 = vst.msk [vmem:[#allocation2 + $0x401] sm:$0xff] %vm3662_vm9, %v3641_v2  ;;  %13758 = vmatmul.msk.f32.gmra.mxu0 %vm3068_vm8, %v3046_v34  ;;  %v18090_v29 = vld [vmem:[#allocation2 + $0xd2] sm:$0xff]  ;;  %v18101_v34 = vld [vmem:[#allocation2 + $0xc2] sm:$0xff] }
 0x442   : > { %13864 = vmatpush.xpose.msk.msrb.mxu3 %vm3662_vm9, %v3958_v33  ;;  %1441 = vst.msk [vmem:[#allocation3 + $0x198] sm:$0xff] %vm1389_vm3, %v1300_v53 }
 0x443   : > { %2082 = vrot.lane.b32.xlu1 %v13573_v49, %s15685_s20 }
 0x444   : > { %1697 = vrot.lane.b32.xlu0 %v13636_v31, %s15687_s22 }
 0x445   : > { %v2071_v50 = vpop.permute.xlu1 %2070  ;;  %1311 = vrot.lane.b32.xlu2 %v17736_v9, %s15684_s19 }
 0x446   : > { %13865 = vmatpush.xpose.msk.msrb.mxu3 %vm3662_vm9, %v3957_v46  ;;  %v1686_v47 = vpop.permute.xlu0 %1685 }
 0x447   : > { %1827 = vst.msk [vmem:[#allocation3 + $0x198] sm:$0xff] %vm1775_vm4, %v1686_v47  ;;  %v2457_v51 = vpop.permute.xlu2 %2456 }
 0x448   : > { %2212 = vst.msk [vmem:[#allocation3 + $0x198] sm:$0xff] %vm2160_vm5, %v2071_v50 }
 0x449   : > { %2598 = vst.msk [vmem:[#allocation3 + $0x198] sm:$0xff] %vm2546_vm6, %v2457_v51  ;;  %v225_v51 = vld [vmem:[%s15725_s17 + $0x3f0] sm:$0xff] }
 0x44a   : > { %13866 = vmatpush.xpose.msk.msrb.mxu3 %vm3662_vm9, %v3956_v28  ;;  %290 = vst.msk [vmem:[#allocation3 + $0x1c0] sm:$0xff] %vm233_vm0, %v225_v51 }
 0x44b   : > { %542 = vrot.lane.b32.xlu1 %v17736_v9, %s15683_s18 }
 0x44c   : > { %2853 = vrot.lane.b32.xlu0 %v18008_v6, %s15689_s24 }
 0x44d   : > { %v531_v16 = vpop.permute.xlu1 %530  ;;  %2468 = vrot.lane.b32.xlu2 %v13510_v61, %s15688_s23 }
 0x44e   : > { %13867 = vmatpush.xpose.msk.msrb.mxu3 %vm3662_vm9, %v3955_v23  ;;  %v2842_v5 = vpop.permute.xlu0 %2841  ;;  %v3410_v1 = vpop.f32.mrf.mxu0  ;;  %671 = vst.msk [vmem:[#allocation3 + $0x1a0] sm:$0xff] %vm618_vm1, %v531_v16 }
 0x44f   : > { %2983 = vst.msk [vmem:[#allocation3 + $0x198] sm:$0xff] %vm2931_vm7, %v2842_v5  ;;  %vm3514_vm12 = vcmp.ge.f32.partialorder %v3410_v1, 0.0  ;;  %v3578_v39 = vmul.f32 0.2, %v3410_v1  ;;  %v917_v40 = vpop.permute.xlu2 %916 }
 0x450   : > { %1057 = vst.msk [vmem:[#allocation3 + $0x1a0] sm:$0xff] %vm1004_vm2, %v917_v40  ;;  %v13513_v40 = vld [vmem:[%s15725_s17 + $0x4d0] sm:$0xff] }
 0x451   : > { %v3642_v11 = vsel %vm3514_vm12, %v3410_v1, %v3578_v39 }
 0x452   : > { %13868 = vmatpush.xpose.msk.msrb.mxu3 %vm3662_vm9, %v3954_v41  ;;  %3913 = vst.msk [vmem:[#allocation2 + $0x411] sm:$0xff] %vm3662_vm9, %v3642_v11 }
 0x453   : > { %1699 = vrot.lane.b32.xlu1 %v13510_v61, %s15687_s22 }
 0x454   : > { %1313 = vrot.lane.b32.xlu0 %v17785_v63, %s15684_s19 }
 0x455   : > { %v1688_v59 = vpop.permute.xlu1 %1687  ;;  %928 = vrot.lane.b32.xlu2 %v17760_v60, %s15686_s21  ;;  %v13639_v60 = vld [vmem:[%s15725_s17 + $0x4c0] sm:$0xff] }
 0x456   : > { %13869 = vmatpush.xpose.msk.msrb.mxu3 %vm3662_vm9, %v3953_v52  ;;  %v1302_v7 = vpop.permute.xlu0 %1301  ;;  %v3047_v27 = vld [vmem:[#allocation3 + $0x198] sm:$0xff] }
 0x457   : > { %1442 = vst.msk [vmem:[#allocation3 + $0x1a0] sm:$0xff] %vm1389_vm3, %v1302_v7  ;;  %13759 = vmatmul.msk.f32.gmra.mxu0 %vm3068_vm8, %v3047_v27  ;;  %v2073_v44 = vpop.permute.xlu2 %2072  ;;  %v226_v7 = vld [vmem:[%s15725_s17 + $0x400] sm:$0xff] }
 0x458   : > { %1828 = vst.msk [vmem:[#allocation3 + $0x1a0] sm:$0xff] %vm1775_vm4, %v1688_v59  ;;  %v13705_v59 = vld [vmem:[%s15725_s17 + $0x4e1] sm:$0xff] }
 0x459   : > { %2213 = vst.msk [vmem:[#allocation3 + $0x1a0] sm:$0xff] %vm2160_vm5, %v2073_v44 }
 0x45a   : > { %13870 = vmatpush.xpose.msk.msrb.mxu3 %vm3662_vm9, %v3952_v42  ;;  %v13641_v42 = vld [vmem:[%s15725_s17 + $0x4e0] sm:$0xff]  ;;  %291 = vst.msk [vmem:[#allocation3 + $0x1c8] sm:$0xff] %vm233_vm0, %v226_v7 }
 0x45b   : > { %2855 = vrot.lane.b32.xlu1 %v13702_v12, %s15689_s24  ;;  %v230_v7 = vld [vmem:[%s15725_s17 + $0x440] sm:$0xff] }
 0x45c   : > { %2470 = vrot.lane.b32.xlu0 %v18039_v45, %s15688_s23  ;;  %295 = vst.msk [vmem:[#allocation3 + $0x1e8] sm:$0xff] %vm233_vm0, %v230_v7 }
 0x45d   : > { %v2844_v36 = vpop.permute.xlu1 %2843  ;;  %2084 = vrot.lane.b32.xlu2 %v18008_v6, %s15685_s20  ;;  %v13704_v6 = vld [vmem:[%s15725_s17 + $0x4d1] sm:$0xff] }
 0x45e   : > { %13871 = vmatpush.xpose.msk.msrb.mxu3 %vm3662_vm9, %v3951_v22  ;;  %v2459_v9 = vpop.permute.xlu0 %2458 }
 0x45f   : > { %2599 = vst.msk [vmem:[#allocation3 + $0x1a0] sm:$0xff] %vm2546_vm6, %v2459_v9  ;;  %v533_v10 = vpop.permute.xlu2 %532 }
 0x460   : > { %2984 = vst.msk [vmem:[#allocation3 + $0x1a0] sm:$0xff] %vm2931_vm7, %v2844_v36 }
 0x461   : > { %672 = vst.msk [vmem:[#allocation3 + $0x1a8] sm:$0xff] %vm618_vm1, %v533_v10  ;;  %v227_v10 = vld [vmem:[%s15725_s17 + $0x410] sm:$0xff] }
 0x462   : > { %13872 = vmatpush.xpose.msk.msrb.mxu3 %vm3662_vm9, %v3950_v13  ;;  %292 = vst.msk [vmem:[#allocation3 + $0x1d0] sm:$0xff] %vm233_vm0, %v227_v10 }
 0x463   : > { %1315 = vrot.lane.b32.xlu1 %v17799_v43, %s15684_s19 }
 0x464   : > { %930 = vrot.lane.b32.xlu0 %v17812_v24, %s15686_s21  ;;  %v3413_v48 = vpop.f32.mrf.mxu0 }
 0x465   : > { %vm3515_vm15 = vcmp.ge.f32.partialorder %v3413_v48, 0.0  ;;  %v3579_v35 = vmul.f32 0.2, %v3413_v48  ;;  %v1304_v24 = vpop.permute.xlu1 %1303  ;;  %544 = vrot.lane.b32.xlu2 %v17785_v63, %s15683_s18  ;;  %v13576_v63 = vld [vmem:[%s15725_s17 + $0x4c1] sm:$0xff] }
 0x466   : > { %13873 = vmatpush.xpose.msk.msrb.mxu3 %vm3662_vm9, %v3949_v4  ;;  %v919_v31 = vpop.permute.xlu0 %918 }
 0x467   : > { %v3643_v18 = vsel %vm3515_vm15, %v3413_v48, %v3579_v35  ;;  %1058 = vst.msk [vmem:[#allocation3 + $0x1a8] sm:$0xff] %vm1004_vm2, %v919_v31  ;;  %v3048_v37 = vld [vmem:[#allocation3 + $0x1a0] sm:$0xff]  ;;  %v1690_v55 = vpop.permute.xlu2 %1689 }
 0x468   : > { %3914 = vst.msk [vmem:[#allocation2 + $0x421] sm:$0xff] %vm3662_vm9, %v3643_v18  ;;  %13760 = vmatmul.msk.f32.gmra.mxu0 %vm3068_vm8, %v3048_v37 }
 0x469   : > { %1443 = vst.msk [vmem:[#allocation3 + $0x1a8] sm:$0xff] %vm1389_vm3, %v1304_v24 }
 0x46a   : > { %13910 = vmatpush.xpose.msk.msra.mxu3 %vm3662_vm9, %v18053_v58  ;;  %1829 = vst.msk [vmem:[#allocation3 + $0x1a8] sm:$0xff] %vm1775_vm4, %v1690_v55 }
 0x46b   : > { %2472 = vrot.lane.b32.xlu1 %v13639_v60, %s15688_s23 }
 0x46c   : > { %2086 = vrot.lane.b32.xlu0 %v13702_v12, %s15685_s20 }
 0x46d   : > { %v2461_v33 = vpop.permute.xlu1 %2460  ;;  %1701 = vrot.lane.b32.xlu2 %v18039_v45, %s15687_s22 }
 0x46e   : > { %13911 = vmatpush.xpose.msk.msra.mxu3 %vm3662_vm9, %v18064_v19  ;;  %v2075_v38 = vpop.permute.xlu0 %2074 }
 0x46f   : > { %2214 = vst.msk [vmem:[#allocation3 + $0x1a8] sm:$0xff] %vm2160_vm5, %v2075_v38  ;;  %v2846_v3 = vpop.permute.xlu2 %2845  ;;  %v13707_v38 = vld [vmem:[%s15725_s17 + $0x501] sm:$0xff] }
 0x470   : > { %2600 = vst.msk [vmem:[#allocation3 + $0x1a8] sm:$0xff] %vm2546_vm6, %v2461_v33 }
 0x471   : > { %2985 = vst.msk [vmem:[#allocation3 + $0x1a8] sm:$0xff] %vm2931_vm7, %v2846_v3 }
 0x472   : > { %13912 = vmatpush.xpose.msk.msra.mxu3 %vm3662_vm9, %v18074_v54 }
 0x473   : > { %932 = vrot.lane.b32.xlu1 %v17826_v21, %s15686_s21 }
 0x474   : > { %546 = vrot.lane.b32.xlu0 %v17799_v43, %s15683_s18 }
 0x475   : > { %v3416_v2 = vpop.f32.mrf.mxu0  ;;  %v921_v25 = vpop.permute.xlu1 %920  ;;  %2857 = vrot.lane.b32.xlu2 %v13576_v63, %s15689_s24 }
 0x476   : > { %13913 = vmatpush.xpose.msk.msra.mxu3 %vm3662_vm9, %v18084_v26  ;;  %v535_v53 = vpop.permute.xlu0 %534  ;;  %vm3516_vm10 = vcmp.ge.f32.partialorder %v3416_v2, 0.0  ;;  %v3580_v46 = vmul.f32 0.2, %v3416_v2 }
 0x477   : > { %673 = vst.msk [vmem:[#allocation3 + $0x1b0] sm:$0xff] %vm618_vm1, %v535_v53  ;;  %v1306_v21 = vpop.permute.xlu2 %1305 }
 0x478   : > { %v3644_v43 = vsel %vm3516_vm10, %v3416_v2, %v3580_v46  ;;  %1059 = vst.msk [vmem:[#allocation3 + $0x1b0] sm:$0xff] %vm1004_vm2, %v921_v25  ;;  %v3049_v49 = vld [vmem:[#allocation3 + $0x1a8] sm:$0xff] }
 0x479   : > { %3915 = vst.msk [vmem:[#allocation2 + $0x431] sm:$0xff] %vm3662_vm9, %v3644_v43  ;;  %13761 = vmatmul.msk.f32.gmra.mxu0 %vm3068_vm8, %v3049_v49 }
 0x47a   : > { %13914 = vmatpush.xpose.msk.msra.mxu3 %vm3662_vm9, %v18090_v29  ;;  %1444 = vst.msk [vmem:[#allocation3 + $0x1b0] sm:$0xff] %vm1389_vm3, %v1306_v21  ;;  %v229_v21 = vld [vmem:[%s15725_s17 + $0x430] sm:$0xff] }
 0x47b   : > { %2088 = vrot.lane.b32.xlu1 %v13576_v63, %s15685_s20  ;;  %294 = vst.msk [vmem:[#allocation3 + $0x1e0] sm:$0xff] %vm233_vm0, %v229_v21 }
 0x47c   : > { %1703 = vrot.lane.b32.xlu0 %v13639_v60, %s15687_s22 }
 0x47d   : > { %v2077_v28 = vpop.permute.xlu1 %2076  ;;  %1317 = vrot.lane.b32.xlu2 %v17830_v17, %s15684_s19 }
 0x47e   : > { %13915 = vmatpush.xpose.msk.msra.mxu3 %vm3662_vm9, %v18101_v34  ;;  %v1692_v47 = vpop.permute.xlu0 %1691 }
 0x47f   : > { %1830 = vst.msk [vmem:[#allocation3 + $0x1b0] sm:$0xff] %vm1775_vm4, %v1692_v47  ;;  %v2463_v50 = vpop.permute.xlu2 %2462 }
 0x480   : > { %2215 = vst.msk [vmem:[#allocation3 + $0x1b0] sm:$0xff] %vm2160_vm5, %v2077_v28 }
 0x481   : > { %2601 = vst.msk [vmem:[#allocation3 + $0x1b0] sm:$0xff] %vm2546_vm6, %v2463_v50 }
 0x482   : > { %13916 = vmatpush.xpose.msk.msra.mxu3 %vm3662_vm9, %v4623_v0  ;;  %v13643_v0 = vld [vmem:[%s15725_s17 + $0x500] sm:$0xff] }
 0x483   : > { %548 = vrot.lane.b32.xlu1 %v17830_v17, %s15683_s18 }
 0x484   : > { %2859 = vrot.lane.b32.xlu0 %v13704_v6, %s15689_s24 }
 0x485   : > { %v537_v1 = vpop.permute.xlu1 %536  ;;  %2474 = vrot.lane.b32.xlu2 %v13513_v40, %s15688_s23 }
 0x486   : > { %v2848_v23 = vpop.permute.xlu0 %2847  ;;  %v3419_v5 = vpop.f32.mrf.mxu0  ;;  %674 = vst.msk [vmem:[#allocation3 + $0x1b8] sm:$0xff] %vm618_vm1, %v537_v1  ;;  %v4006_v1 = vld [vmem:[#allocation2 + $0xa1] sm:$0xff] }
 0x487   : > { %2986 = vst.msk [vmem:[#allocation3 + $0x1b0] sm:$0xff] %vm2931_vm7, %v2848_v23  ;;  %vm3517_vm11 = vcmp.ge.f32.partialorder %v3419_v5, 0.0  ;;  %v3581_v41 = vmul.f32 0.2, %v3419_v5  ;;  %v923_v39 = vpop.permute.xlu2 %922  ;;  %13780 = vmatpush.xpose.msk.msra.mxu1 %vm3662_vm9, %v4006_v1 }
 0x488   : > { %1060 = vst.msk [vmem:[#allocation3 + $0x1b8] sm:$0xff] %vm1004_vm2, %v923_v39  ;;  %v18207_v39 = vld [vmem:[#allocation2 + $0xa0] sm:$0xff] }
 0x489   : > { %v3645_v16 = vsel %vm3517_vm11, %v3419_v5, %v3581_v41  ;;  %13848 = vmatpush.xpose.msk.msrb.mxu2 %vm3662_vm9, %v18207_v39 }
 0x48a   : > { %3916 = vst.msk [vmem:[#allocation2 + $0x441] sm:$0xff] %vm3662_vm9, %v3645_v16 }
 0x48b   : > { %1705 = vrot.lane.b32.xlu1 %v13513_v40, %s15687_s22  ;;  %v4622_v40 = vld [vmem:[#allocation2 + $0xa2] sm:$0xff] }
 0x48c   : > { %1319 = vrot.lane.b32.xlu0 %v17888_v14, %s15684_s19  ;;  %13917 = vmatpush.xpose.msk.msra.mxu3 %vm3662_vm9, %v4622_v40 }
 0x48d   : > { %v1694_v61 = vpop.permute.xlu1 %1693  ;;  %934 = vrot.lane.b32.xlu2 %v17858_v32, %s15686_s21 }
 0x48e   : > { %v1308_v11 = vpop.permute.xlu0 %1307  ;;  %v3050_v52 = vld [vmem:[#allocation3 + $0x1b0] sm:$0xff] }
 0x48f   : > { %1445 = vst.msk [vmem:[#allocation3 + $0x1b8] sm:$0xff] %vm1389_vm3, %v1308_v11  ;;  %13762 = vmatmul.msk.f32.gmra.mxu0 %vm3068_vm8, %v3050_v52  ;;  %v2079_v27 = vpop.permute.xlu2 %2078  ;;  %v18217_v11 = vld [vmem:[#allocation2 + $0x71] sm:$0xff] }
 0x490   : > { %1831 = vst.msk [vmem:[#allocation3 + $0x1b8] sm:$0xff] %vm1775_vm4, %v1694_v61  ;;  %v3940_v52 = vld [vmem:[#allocation2 + $0x70] sm:$0xff]  ;;  %13781 = vmatpush.xpose.msk.msra.mxu1 %vm3662_vm9, %v18217_v11 }
 0x491   : > { %2216 = vst.msk [vmem:[#allocation3 + $0x1b8] sm:$0xff] %vm2160_vm5, %v2079_v27  ;;  %v18219_v61 = vld [vmem:[#allocation2 + $0x72] sm:$0xff]  ;;  %13849 = vmatpush.xpose.msk.msrb.mxu2 %vm3662_vm9, %v3940_v52  ;;  %v18318_v52 = vld [vmem:[#allocation2 + $0x81] sm:$0xff] }
 0x492   : > { %13918 = vmatpush.xpose.msk.msra.mxu3 %vm3662_vm9, %v18219_v61 }
 0x493   : > { %2861 = vrot.lane.b32.xlu1 %v13705_v59, %s15689_s24 }
 0x494   : > { %2476 = vrot.lane.b32.xlu0 %v13641_v42, %s15688_s23 }
 0x495   : > { %v2850_v56 = vpop.permute.xlu1 %2849  ;;  %2090 = vrot.lane.b32.xlu2 %v13704_v6, %s15685_s20 }
 0x496   : > { %v2465_v17 = vpop.permute.xlu0 %2464 }
 0x497   : > { %2602 = vst.msk [vmem:[#allocation3 + $0x1b8] sm:$0xff] %vm2546_vm6, %v2465_v17  ;;  %v539_v44 = vpop.permute.xlu2 %538  ;;  %v18229_v17 = vld [vmem:[#allocation2 + $0x61] sm:$0xff] }
 0x498   : > { %2987 = vst.msk [vmem:[#allocation3 + $0x1b8] sm:$0xff] %vm2931_vm7, %v2850_v56  ;;  %v3939_v56 = vld [vmem:[#allocation2 + $0x60] sm:$0xff]  ;;  %13782 = vmatpush.xpose.msk.msra.mxu1 %vm3662_vm9, %v18229_v17 }
 0x499   : > { %675 = vst.msk [vmem:[#allocation3 + $0x1c0] sm:$0xff] %vm618_vm1, %v539_v44  ;;  %13850 = vmatpush.xpose.msk.msrb.mxu2 %vm3662_vm9, %v3939_v56 }
 0x49b   : > { %1321 = vrot.lane.b32.xlu1 %v17902_v20, %s15684_s19 }
 0x49c   : > { %936 = vrot.lane.b32.xlu0 %v17918_v8, %s15686_s21  ;;  %v3422_v45 = vpop.f32.mrf.mxu0  ;;  %v13642_v8 = vld [vmem:[%s15725_s17 + $0x4f0] sm:$0xff] }
 0x49d   : > { %vm3518_vm13 = vcmp.ge.f32.partialorder %v3422_v45, 0.0  ;;  %v3582_v22 = vmul.f32 0.2, %v3422_v45  ;;  %v1310_v13 = vpop.permute.xlu1 %1309  ;;  %550 = vrot.lane.b32.xlu2 %v17888_v14, %s15683_s18 }
 0x49e   : > { %v925_v12 = vpop.permute.xlu0 %924 }
 0x49f   : > { %v3646_v9 = vsel %vm3518_vm13, %v3422_v45, %v3582_v22  ;;  %1061 = vst.msk [vmem:[#allocation3 + $0x1c0] sm:$0xff] %vm1004_vm2, %v925_v12  ;;  %v1696_v36 = vpop.permute.xlu2 %1695  ;;  %v3051_v41 = vld [vmem:[#allocation3 + $0x1b8] sm:$0xff]  ;;  %v18235_v45 = vld [vmem:[#allocation2 + $0x62] sm:$0xff]  ;;  %v3938_v12 = vld [vmem:[#allocation2 + $0x50] sm:$0xff] }
 0x4a0   : > { %3917 = vst.msk [vmem:[#allocation2 + $0x471] sm:$0xff] %vm3662_vm9, %v3646_v9  ;;  %13763 = vmatmul.msk.f32.gmra.mxu0 %vm3068_vm8, %v3051_v41  ;;  %13919 = vmatpush.xpose.msk.msra.mxu3 %vm3662_vm9, %v18235_v45  ;;  %v18241_v22 = vld [vmem:[#allocation2 + $0x51] sm:$0xff] }
 0x4a1   : > { %1446 = vst.msk [vmem:[#allocation3 + $0x1c0] sm:$0xff] %vm1389_vm3, %v1310_v13  ;;  %v18243_v9 = vld [vmem:[#allocation2 + $0x52] sm:$0xff]  ;;  %13783 = vmatpush.xpose.msk.msra.mxu1 %vm3662_vm9, %v18241_v22  ;;  %13851 = vmatpush.xpose.msk.msrb.mxu2 %vm3662_vm9, %v3938_v12 }
 0x4a2   : > { %1832 = vst.msk [vmem:[#allocation3 + $0x1c0] sm:$0xff] %vm1775_vm4, %v1696_v36 }
 0x4a3   : > { %2478 = vrot.lane.b32.xlu1 %v13642_v8, %s15688_s23 }
 0x4a4   : > { %2092 = vrot.lane.b32.xlu0 %v13705_v59, %s15685_s20  ;;  %13920 = vmatpush.xpose.msk.msra.mxu3 %vm3662_vm9, %v18243_v9 }
 0x4a5   : > { %v2467_v4 = vpop.permute.xlu1 %2466  ;;  %1707 = vrot.lane.b32.xlu2 %v13641_v42, %s15687_s22 }
 0x4a6   : > { %v2081_v32 = vpop.permute.xlu0 %2080 }
 0x4a7   : > { %2217 = vst.msk [vmem:[#allocation3 + $0x1c0] sm:$0xff] %vm2160_vm5, %v2081_v32  ;;  %v2852_v48 = vpop.permute.xlu2 %2851 }
 0x4a8   : > { %2603 = vst.msk [vmem:[#allocation3 + $0x1c0] sm:$0xff] %vm2546_vm6, %v2467_v4  ;;  %v18251_v4 = vld [vmem:[#allocation2 + $0x41] sm:$0xff] }
 0x4a9   : > { %2988 = vst.msk [vmem:[#allocation3 + $0x1c0] sm:$0xff] %vm2931_vm7, %v2852_v48  ;;  %v3937_v48 = vld [vmem:[#allocation2 + $0x40] sm:$0xff]  ;;  %13784 = vmatpush.xpose.msk.msra.mxu1 %vm3662_vm9, %v18251_v4 }
 0x4aa   : > { %13852 = vmatpush.xpose.msk.msrb.mxu2 %vm3662_vm9, %v3937_v48 }
 0x4ab   : > { %938 = vrot.lane.b32.xlu1 %v17933_v30, %s15686_s21 }
 0x4ac   : > { %552 = vrot.lane.b32.xlu0 %v17902_v20, %s15683_s18  ;;  %v13579_v20 = vld [vmem:[%s15725_s17 + $0x4f1] sm:$0xff] }
 0x4ad   : > { %v3425_v35 = vpop.f32.mrf.mxu0  ;;  %v927_v24 = vpop.permute.xlu1 %926  ;;  %2863 = vrot.lane.b32.xlu2 %v13579_v20, %s15689_s24 }
 0x4ae   : > { %v541_v31 = vpop.permute.xlu0 %540  ;;  %vm3519_vm14 = vcmp.ge.f32.partialorder %v3425_v35, 0.0  ;;  %v3583_v18 = vmul.f32 0.2, %v3425_v35 }
 0x4af   : > { %676 = vst.msk [vmem:[#allocation3 + $0x1c8] sm:$0xff] %vm618_vm1, %v541_v31  ;;  %v1312_v55 = vpop.permute.xlu2 %1311 }
 0x4b0   : > { %v3647_v37 = vsel %vm3519_vm14, %v3425_v35, %v3583_v18  ;;  %1062 = vst.msk [vmem:[#allocation3 + $0x1c8] sm:$0xff] %vm1004_vm2, %v927_v24  ;;  %v3052_v59 = vld [vmem:[#allocation3 + $0x1c0] sm:$0xff]  ;;  %v18263_v24 = vld [vmem:[#allocation2 + $0x31] sm:$0xff]  ;;  %vm13252_vm14 = vcmask 1040384  }
 0x4b1   : > { %3918 = vst.msk [vmem:[#allocation2 + $0x481] sm:$0xff] %vm3662_vm9, %v3647_v37  ;;  %13764 = vmatmul.msk.f32.gmra.mxu0 %vm3068_vm8, %v3052_v59  ;;  %v18257_v18 = vld [vmem:[#allocation2 + $0x42] sm:$0xff]  ;;  %v3936_v37 = vld [vmem:[#allocation2 + $0x30] sm:$0xff]  ;;  %13785 = vmatpush.xpose.msk.msra.mxu1 %vm3662_vm9, %v18263_v24 }
 0x4b2   : > { %1447 = vst.msk [vmem:[#allocation3 + $0x1c8] sm:$0xff] %vm1389_vm3, %v1312_v55  ;;  %13921 = vmatpush.xpose.msk.msra.mxu3 %vm3662_vm9, %v18257_v18  ;;  %v18266_v55 = vld [vmem:[#allocation2 + $0x32] sm:$0xff]  ;;  %13853 = vmatpush.xpose.msk.msrb.mxu2 %vm3662_vm9, %v3936_v37 }
 0x4b3   : > { %2094 = vrot.lane.b32.xlu1 %v13579_v20, %s15685_s20 }
 0x4b4   : > { %1709 = vrot.lane.b32.xlu0 %v13642_v8, %s15687_s22 }
 0x4b5   : > { %v2083_v14 = vpop.permute.xlu1 %2082  ;;  %1323 = vrot.lane.b32.xlu2 %v17937_v15, %s15684_s19 }
 0x4b6   : > { %v1698_v30 = vpop.permute.xlu0 %1697  ;;  %13922 = vmatpush.xpose.msk.msra.mxu3 %vm3662_vm9, %v18266_v55 }
 0x4b7   : > { %1833 = vst.msk [vmem:[#allocation3 + $0x1c8] sm:$0xff] %vm1775_vm4, %v1698_v30  ;;  %v2469_v60 = vpop.permute.xlu2 %2468 }
 0x4b8   : > { %2218 = vst.msk [vmem:[#allocation3 + $0x1c8] sm:$0xff] %vm2160_vm5, %v2083_v14 }
 0x4b9   : > { %2604 = vst.msk [vmem:[#allocation3 + $0x1c8] sm:$0xff] %vm2546_vm6, %v2469_v60  ;;  %v231_v60 = vld [vmem:[%s15725_s17 + $0x450] sm:$0xff] }
 0x4ba   : > { %296 = vst.msk [vmem:[#allocation3 + $0x1f0] sm:$0xff] %vm233_vm0, %v231_v60 }
 0x4bc   : > { %2865 = vrot.lane.b32.xlu0 %v13707_v38, %s15689_s24  ;;  %v18276_v38 = vld [vmem:[#allocation2 + $0x21] sm:$0xff] }
 0x4bd   : > { %v543_v53 = vpop.permute.xlu1 %542  ;;  %2480 = vrot.lane.b32.xlu2 %v13643_v0, %s15688_s23  ;;  %13786 = vmatpush.xpose.msk.msra.mxu1 %vm3662_vm9, %v18276_v38  ;;  %v3998_v0 = vld [vmem:[#allocation2 + $0x1] sm:$0xff] }
 0x4be   : > { %v2854_v33 = vpop.permute.xlu0 %2853  ;;  %v3428_v3 = vpop.f32.mrf.mxu0  ;;  %677 = vst.msk [vmem:[#allocation3 + $0x1d0] sm:$0xff] %vm618_vm1, %v543_v53  ;;  %v3934_v53 = vld [vmem:[#allocation2 + $0x10] sm:$0xff] }
 0x4bf   : > { %2989 = vst.msk [vmem:[#allocation3 + $0x1c8] sm:$0xff] %vm2931_vm7, %v2854_v33  ;;  %vm3520_vm12 = vcmp.ge.f32.partialorder %v3428_v3, 0.0  ;;  %v3584_v2 = vmul.f32 0.2, %v3428_v3  ;;  %v929_v46 = vpop.permute.xlu2 %928  ;;  %v3935_v33 = vld [vmem:[#allocation2 + $0x20] sm:$0xff] }
 0x4c0   : > { %1063 = vst.msk [vmem:[#allocation3 + $0x1d0] sm:$0xff] %vm1004_vm2, %v929_v46  ;;  %13854 = vmatpush.xpose.msk.msrb.mxu2 %vm3662_vm9, %v3935_v33  ;;  %v4615_v46 = vld [vmem:[#allocation2 + $0x12] sm:$0xff] }
 0x4c1   : > { %v3648_v25 = vsel %vm3520_vm12, %v3428_v3, %v3584_v2  ;;  %v18282_v3 = vld [vmem:[#allocation2 + $0x22] sm:$0xff]  ;;  %v3999_v2 = vld [vmem:[#allocation2 + $0x11] sm:$0xff]  ;;  %vm13256_vm12 = vcmask 1041408  }
 0x4c2   : > { %3919 = vst.msk [vmem:[#allocation2 + $0x491] sm:$0xff] %vm3662_vm9, %v3648_v25  ;;  %13923 = vmatpush.xpose.msk.msra.mxu3 %vm3662_vm9, %v18282_v3  ;;  %13787 = vmatpush.xpose.msk.msra.mxu1 %vm3662_vm9, %v3999_v2 }
 0x4c4   : > { %13855 = vmatpush.xpose.msk.msrb.mxu2 %vm3662_vm9, %v3934_v53 }
 0x4c5   : > { %v1700_v49 = vpop.permute.xlu1 %1699 }
 0x4c6   : > { %v1314_v43 = vpop.permute.xlu0 %1313  ;;  %v3053_v32 = vld [vmem:[#allocation3 + $0x1c8] sm:$0xff]  ;;  %13924 = vmatpush.xpose.msk.msra.mxu3 %vm3662_vm9, %v4615_v46  ;;  %13788 = vmatpush.xpose.msk.msra.mxu1 %vm3662_vm9, %v3998_v0 }
 0x4c7   : > { %1448 = vst.msk [vmem:[#allocation3 + $0x1d0] sm:$0xff] %vm1389_vm3, %v1314_v43  ;;  %v2085_v63 = vpop.permute.xlu2 %2084  ;;  %13765 = vmatmul.msk.f32.gmra.mxu0 %vm3068_vm8, %v3053_v32 }
 0x4c8   : > { %1834 = vst.msk [vmem:[#allocation3 + $0x1d0] sm:$0xff] %vm1775_vm4, %v1700_v49 }
 0x4c9   : > { %2219 = vst.msk [vmem:[#allocation3 + $0x1d0] sm:$0xff] %vm2160_vm5, %v2085_v63  ;;  %13789 = vmatmul.msk.f32.vlgmr.msra.gmra.mxu1 %vm3662_vm9, %v18004_v62  ;;  %v4057_v53 = vld [vmem:[#allocation2 + $0x491] sm:$0xff] }
 0x4ca   : > { %v3992_v46 = vld [vmem:[#allocation2 + $0x490] sm:$0xff] }
 0x4cd   : > { %v2856_v28 = vpop.permute.xlu1 %2855 }
 0x4ce   : > { %v2471_v47 = vpop.permute.xlu0 %2470 }
 0x4cf   : > { %2605 = vst.msk [vmem:[#allocation3 + $0x1d0] sm:$0xff] %vm2546_vm6, %v2471_v47  ;;  %v545_v15 = vpop.permute.xlu2 %544 }
 0x4d0   : > { %2990 = vst.msk [vmem:[#allocation3 + $0x1d0] sm:$0xff] %vm2931_vm7, %v2856_v28  ;;  %v3933_v28 = vld [vmem:[#allocation2] sm:$0xff] }
 0x4d1   : > { %678 = vst.msk [vmem:[#allocation3 + $0x1d8] sm:$0xff] %vm618_vm1, %v545_v15  ;;  %v4614_v15 = vld [vmem:[#allocation2 + $0x2] sm:$0xff]  ;;  %13856 = vmatpush.xpose.msk.msrb.mxu2 %vm3662_vm9, %v3933_v28  ;;  %v3990_v28 = vld [vmem:[#allocation2 + $0x470] sm:$0xff] }
 0x4d2   : > { %13925 = vmatpush.xpose.msk.msra.mxu3 %vm3662_vm9, %v4614_v15  ;;  %v4671_v15 = vld [vmem:[#allocation2 + $0x472] sm:$0xff] }
 0x4d4   : > { %v3431_v50 = vpop.f32.mrf.mxu0 }
 0x4d5   : > { %vm3521_vm15 = vcmp.ge.f32.partialorder %v3431_v50, 0.0  ;;  %v3585_v51 = vmul.f32 0.2, %v3431_v50  ;;  %v1316_v5 = vpop.permute.xlu1 %1315 }
 0x4d6   : > { %v931_v6 = vpop.permute.xlu0 %930 }
 0x4d7   : > { %v3649_v23 = vsel %vm3521_vm15, %v3431_v50, %v3585_v51  ;;  %1064 = vst.msk [vmem:[#allocation3 + $0x1d8] sm:$0xff] %vm1004_vm2, %v931_v6  ;;  %v1702_v16 = vpop.permute.xlu2 %1701  ;;  %v3054_v57 = vld [vmem:[#allocation3 + $0x1d0] sm:$0xff]  ;;  %v18296_v50 = vld [vmem:[%s22899_s2] sm:$0x1] }
 0x4d8   : > { %3920 = vst.msk [vmem:[#allocation2 + $0x4a1] sm:$0xff] %vm3662_vm9, %v3649_v23  ;;  %13766 = vmatmul.msk.f32.gmra.mxu0 %vm3068_vm8, %v3054_v57  ;;  %13874 = vmatmul.msk.f32.vlgmr.msrb.gmra.mxu3 %vm3662_vm9, %v18296_v50 }
 0x4d9   : > { %1449 = vst.msk [vmem:[#allocation3 + $0x1d8] sm:$0xff] %vm1389_vm3, %v1316_v5  ;;  %13857 = vmatmul.msk.f32.vlgmr.msrb.gmra.mxu2 %vm3662_vm9, %v18296_v50  ;;  %v232_v5 = vld [vmem:[%s15725_s17 + $0x460] sm:$0xff] }
 0x4da   : > { %1835 = vst.msk [vmem:[#allocation3 + $0x1d8] sm:$0xff] %vm1775_vm4, %v1702_v16  ;;  %v6348_v16 = vld [vmem:[#allocation2 + $0x91] sm:$0xff] }
 0x4db   : > { %297 = vst.msk [vmem:[#allocation3 + $0x1f8] sm:$0xff] %vm233_vm0, %v232_v5  ;;  %14263 = vmatpush.xpose.msk.msra.mxu0 %vm3662_vm9, %v6348_v16  ;;  %v4670_v5 = vld [vmem:[#allocation2 + $0x462] sm:$0xff]  ;;  %v3988_v16 = vld [vmem:[#allocation2 + $0x430] sm:$0xff] }
 0x4dd   : > { %v2473_v42 = vpop.permute.xlu1 %2472 }
 0x4de   : > { %v2087_v27 = vpop.permute.xlu0 %2086 }
 0x4df   : > { %2220 = vst.msk [vmem:[#allocation3 + $0x1d8] sm:$0xff] %vm2160_vm5, %v2087_v27  ;;  %v2858_v44 = vpop.permute.xlu2 %2857  ;;  %14264 = vmatpush.xpose.msk.msra.mxu0 %vm3662_vm9, %v18318_v52  ;;  %v3993_v57 = vld [vmem:[#allocation2 + $0x4a0] sm:$0xff] }
 0x4e0   : > { %2606 = vst.msk [vmem:[#allocation3 + $0x1d8] sm:$0xff] %vm2546_vm6, %v2473_v42  ;;  %v4674_v33 = vld [vmem:[#allocation2 + $0x4a2] sm:$0xff] }
 0x4e1   : > { %2991 = vst.msk [vmem:[#allocation3 + $0x1d8] sm:$0xff] %vm2931_vm7, %v2858_v44 }
 0x4e3   : > { %14265 = vmatpush.xpose.msk.msra.mxu0 %vm3662_vm9, %v18217_v11 }
 0x4e5   : > { %v3434_v13 = vpop.f32.mrf.mxu0  ;;  %v933_v10 = vpop.permute.xlu1 %932 }
 0x4e6   : > { %v547_v36 = vpop.permute.xlu0 %546  ;;  %vm3522_vm10 = vcmp.ge.f32.partialorder %v3434_v13, 0.0  ;;  %v3586_v8 = vmul.f32 0.2, %v3434_v13 }
 0x4e7   : > { %679 = vst.msk [vmem:[#allocation3 + $0x1e0] sm:$0xff] %vm618_vm1, %v547_v36  ;;  %v1318_v31 = vpop.permute.xlu2 %1317  ;;  %14266 = vmatpush.xpose.msk.msra.mxu0 %vm3662_vm9, %v18229_v17 }
 0x4e8   : > { %v3650_v35 = vsel %vm3522_vm10, %v3434_v13, %v3586_v8  ;;  %1065 = vst.msk [vmem:[#allocation3 + $0x1e0] sm:$0xff] %vm1004_vm2, %v933_v10  ;;  %v3055_v63 = vld [vmem:[#allocation3 + $0x1d8] sm:$0xff] }
 0x4e9   : > { %3921 = vst.msk [vmem:[#allocation2 + $0x4b1] sm:$0xff] %vm3662_vm9, %v3650_v35  ;;  %13767 = vmatmul.msk.f32.gmra.mxu0 %vm3068_vm8, %v3055_v63  ;;  %v4672_v63 = vld [vmem:[#allocation2 + $0x482] sm:$0xff] }
 0x4ea   : > { %1450 = vst.msk [vmem:[#allocation3 + $0x1e0] sm:$0xff] %vm1389_vm3, %v1318_v31 }
 0x4eb   : > { %14267 = vmatpush.xpose.msk.msra.mxu0 %vm3662_vm9, %v18241_v22 }
 0x4ed   : > { %v2089_v30 = vpop.permute.xlu1 %2088 }
 0x4ee   : > { %v1704_v20 = vpop.permute.xlu0 %1703 }
 0x4ef   : > { %1836 = vst.msk [vmem:[#allocation3 + $0x1e0] sm:$0xff] %vm1775_vm4, %v1704_v20  ;;  %v2475_v14 = vpop.permute.xlu2 %2474  ;;  %14268 = vmatpush.xpose.msk.msra.mxu0 %vm3662_vm9, %v18251_v4 }
 0x4f0   : > { %2221 = vst.msk [vmem:[#allocation3 + $0x1e0] sm:$0xff] %vm2160_vm5, %v2089_v30  ;;  %v4059_v37 = vld [vmem:[#allocation2 + $0x4b1] sm:$0xff] }
 0x4f1   : > { %2607 = vst.msk [vmem:[#allocation3 + $0x1e0] sm:$0xff] %vm2546_vm6, %v2475_v14  ;;  %v3994_v20 = vld [vmem:[#allocation2 + $0x4b0] sm:$0xff] }
 0x4f2   : > { %v4675_v4 = vld [vmem:[#allocation2 + $0x4b2] sm:$0xff] }
 0x4f3   : > { %14269 = vmatpush.xpose.msk.msra.mxu0 %vm3662_vm9, %v18263_v24  ;;  %v4058_v24 = vld [vmem:[#allocation2 + $0x4a1] sm:$0xff] }
 0x4f5   : > { %v549_v21 = vpop.permute.xlu1 %548 }
 0x4f6   : > { %v2860_v25 = vpop.permute.xlu0 %2859  ;;  %v3437_v43 = vpop.f32.mrf.mxu0  ;;  %680 = vst.msk [vmem:[#allocation3 + $0x1e8] sm:$0xff] %vm618_vm1, %v549_v21  ;;  %v3991_v21 = vld [vmem:[#allocation2 + $0x480] sm:$0xff] }
 0x4f7   : > { %2992 = vst.msk [vmem:[#allocation3 + $0x1e0] sm:$0xff] %vm2931_vm7, %v2860_v25  ;;  %vm3523_vm11 = vcmp.ge.f32.partialorder %v3437_v43, 0.0  ;;  %v3587_v49 = vmul.f32 0.2, %v3437_v43  ;;  %v935_v47 = vpop.permute.xlu2 %934  ;;  %14270 = vmatpush.xpose.msk.msra.mxu0 %vm3662_vm9, %v18276_v38  ;;  %v4673_v38 = vld [vmem:[#allocation2 + $0x492] sm:$0xff] }
 0x4f8   : > { %1066 = vst.msk [vmem:[#allocation3 + $0x1e8] sm:$0xff] %vm1004_vm2, %v935_v47  ;;  %v4055_v47 = vld [vmem:[#allocation2 + $0x471] sm:$0xff] }
 0x4f9   : > { %v3651_v51 = vsel %vm3523_vm11, %v3437_v43, %v3587_v49  ;;  %v4056_v49 = vld [vmem:[#allocation2 + $0x481] sm:$0xff] }
 0x4fa   : > { %3922 = vst.msk [vmem:[#allocation2 + $0x4c1] sm:$0xff] %vm3662_vm9, %v3651_v51  ;;  %v4054_v51 = vld [vmem:[#allocation2 + $0x461] sm:$0xff] }
 0x4fd   : > { %v1706_v23 = vpop.permute.xlu1 %1705 }
 0x4fe   : > { %v1320_v6 = vpop.permute.xlu0 %1319  ;;  %v3056_v41 = vld [vmem:[#allocation3 + $0x1e0] sm:$0xff] }
 0x4ff   : > { %1451 = vst.msk [vmem:[#allocation3 + $0x1e8] sm:$0xff] %vm1389_vm3, %v1320_v6  ;;  %v2091_v1 = vpop.permute.xlu2 %2090  ;;  %13768 = vmatmul.msk.f32.gmra.mxu0 %vm3068_vm8, %v3056_v41  ;;  %v3989_v6 = vld [vmem:[#allocation2 + $0x460] sm:$0xff] }
 0x500   : > { %1837 = vst.msk [vmem:[#allocation3 + $0x1e8] sm:$0xff] %vm1775_vm4, %v1706_v23  ;;  %v18376_v23 = vld [vmem:[%s22899_s2 + $0x2] sm:$0x1] }
 0x501   : > { %2222 = vst.msk [vmem:[#allocation3 + $0x1e8] sm:$0xff] %vm2160_vm5, %v2091_v1  ;;  %v4060_v17 = vld [vmem:[#allocation2 + $0x4c1] sm:$0xff]  ;;  %13926 = vmatmul.msk.f32.vlgmr.msra.gmra.mxu3 %vm3662_vm9, %v18376_v23  ;;  %v4053_v1 = vld [vmem:[#allocation2 + $0x431] sm:$0xff] }
 0x502   : > { %v3995_v22 = vld [vmem:[#allocation2 + $0x4c0] sm:$0xff] }
 0x503   : > { %v4676_v35 = vld [vmem:[#allocation2 + $0x4c2] sm:$0xff] }
 0x505   : > { %v2862_v40 = vpop.permute.xlu1 %2861 }
 0x506   : > { %v2477_v62 = vpop.permute.xlu0 %2476 }
 0x507   : > { %2608 = vst.msk [vmem:[#allocation3 + $0x1e8] sm:$0xff] %vm2546_vm6, %v2477_v62  ;;  %v551_v7 = vpop.permute.xlu2 %550  ;;  %v4669_v62 = vld [vmem:[#allocation2 + $0x432] sm:$0xff] }
 0x508   : > { %2993 = vst.msk [vmem:[#allocation3 + $0x1e8] sm:$0xff] %vm2931_vm7, %v2862_v40  ;;  %v4052_v40 = vld [vmem:[#allocation2 + $0x421] sm:$0xff] }
 0x509   : > { %681 = vst.msk [vmem:[#allocation3 + $0x1f0] sm:$0xff] %vm618_vm1, %v551_v7  ;;  %v3987_v7 = vld [vmem:[#allocation2 + $0x420] sm:$0xff] }
 0x50c   : > { %v3440_v27 = vpop.f32.mrf.mxu0 }
 0x50d   : > { %vm3524_vm0 = vcmp.ge.f32.partialorder %v3440_v27, 0.0  ;;  %v3588_v42 = vmul.f32 0.2, %v3440_v27  ;;  %v1322_v44 = vpop.permute.xlu1 %1321 }
 0x50e   : > { %v937_v59 = vpop.permute.xlu0 %936 }
 0x50f   : > { %v3652_v56 = vsel %vm3524_vm0, %v3440_v27, %v3588_v42  ;;  %1067 = vst.msk [vmem:[#allocation3 + $0x1f0] sm:$0xff] %vm1004_vm2, %v937_v59  ;;  %v3057_v12 = vld [vmem:[#allocation3 + $0x1e8] sm:$0xff]  ;;  %v1708_v13 = vpop.permute.xlu2 %1707  ;;  %v14185_v42 = vld [vmem:[%s22899_s2 + $0x6] sm:$0x1]  ;;  %v6701_v59 = vld [vmem:[#allocation2 + $0x132] sm:$0xff] }
 0x510   : > { %3923 = vst.msk [vmem:[#allocation2 + $0x4d1] sm:$0xff] %vm3662_vm9, %v3652_v56  ;;  %13769 = vmatmul.msk.f32.gmra.mxu0 %vm3068_vm8, %v3057_v12  ;;  %v4668_v27 = vld [vmem:[#allocation2 + $0x422] sm:$0xff]  ;;  %v4051_v56 = vld [vmem:[#allocation2 + $0x411] sm:$0xff] }
 0x511   : > { %1452 = vst.msk [vmem:[#allocation3 + $0x1f0] sm:$0xff] %vm1389_vm3, %v1322_v44  ;;  %v3986_v44 = vld [vmem:[#allocation2 + $0x410] sm:$0xff] }
 0x512   : > { %1838 = vst.msk [vmem:[#allocation3 + $0x1f0] sm:$0xff] %vm1775_vm4, %v1708_v13  ;;  %v4667_v12 = vld [vmem:[#allocation2 + $0x412] sm:$0xff]  ;;  %v18398_v13 = vld [vmem:[#allocation2 + $0x122] sm:$0xff] }
 0x515   : > { %v2479_v32 = vpop.permute.xlu1 %2478 }
 0x516   : > { %v2093_v11 = vpop.permute.xlu0 %2092 }
 0x517   : > { %2223 = vst.msk [vmem:[#allocation3 + $0x1f0] sm:$0xff] %vm2160_vm5, %v2093_v11  ;;  %v4061_v36 = vld [vmem:[#allocation2 + $0x4d1] sm:$0xff]  ;;  %v2864_v48 = vpop.permute.xlu2 %2863  ;;  %v4050_v11 = vld [vmem:[#allocation2 + $0x401] sm:$0xff] }
 0x518   : > { %v3996_v8 = vld [vmem:[#allocation2 + $0x4d0] sm:$0xff]  ;;  %13824 = vmatpush.xpose.msk.msrb.mxu1 %vm3662_vm9, %v4061_v36  ;;  %2609 = vst.msk [vmem:[#allocation3 + $0x1f0] sm:$0xff] %vm2546_vm6, %v2479_v32  ;;  %v3985_v36 = vld [vmem:[#allocation2 + $0x400] sm:$0xff] }
 0x519   : > { %v4677_v10 = vld [vmem:[#allocation2 + $0x4d2] sm:$0xff]  ;;  %13892 = vmatpush.xpose.msk.msra.mxu2 %vm3662_vm9, %v3996_v8  ;;  %2994 = vst.msk [vmem:[#allocation3 + $0x1f0] sm:$0xff] %vm2931_vm7, %v2864_v48  ;;  %v4666_v8 = vld [vmem:[#allocation2 + $0x402] sm:$0xff] }
 0x51a   : > { %13961 = vmatpush.xpose.msk.msrb.mxu3 %vm3662_vm9, %v4677_v10  ;;  %v4049_v10 = vld [vmem:[#allocation2 + $0x3f1] sm:$0xff] }
 0x51b   : > { %v3984_v32 = vld [vmem:[#allocation2 + $0x3f0] sm:$0xff] }
 0x51c   : > { %13825 = vmatpush.xpose.msk.msrb.mxu1 %vm3662_vm9, %v4060_v17  ;;  %v4665_v48 = vld [vmem:[#allocation2 + $0x3f2] sm:$0xff]  ;;  %v4048_v17 = vld [vmem:[#allocation2 + $0x3e1] sm:$0xff] }
 0x51d   : > { %13893 = vmatpush.xpose.msk.msra.mxu2 %vm3662_vm9, %v3995_v22  ;;  %v939_v30 = vpop.permute.xlu1 %938  ;;  %v3983_v22 = vld [vmem:[#allocation2 + $0x3e0] sm:$0xff] }
 0x51e   : > { %13962 = vmatpush.xpose.msk.msrb.mxu3 %vm3662_vm9, %v4676_v35  ;;  %v553_v31 = vpop.permute.xlu0 %552  ;;  %v4664_v35 = vld [vmem:[#allocation2 + $0x3e2] sm:$0xff] }
 0x51f   : > { %682 = vst.msk [vmem:[#allocation3 + $0x1f8] sm:$0xff] %vm618_vm1, %v553_v31  ;;  %v1324_v14 = vpop.permute.xlu2 %1323  ;;  %v3982_v31 = vld [vmem:[#allocation2 + $0x3d0] sm:$0xff] }
 0x520   : > { %13826 = vmatpush.xpose.msk.msrb.mxu1 %vm3662_vm9, %v4059_v37  ;;  %1068 = vst.msk [vmem:[#allocation3 + $0x1f8] sm:$0xff] %vm1004_vm2, %v939_v30  ;;  %v3058_v60 = vld [vmem:[#allocation3 + $0x1f0] sm:$0xff]  ;;  %v4662_v30 = vld [vmem:[#allocation2 + $0x3c2] sm:$0xff] }
 0x521   : > { %13894 = vmatpush.xpose.msk.msra.mxu2 %vm3662_vm9, %v3994_v20  ;;  %1453 = vst.msk [vmem:[#allocation3 + $0x1f8] sm:$0xff] %vm1389_vm3, %v1324_v14  ;;  %13770 = vmatmul.msk.f32.gmra.mxu0 %vm3068_vm8, %v3058_v60  ;;  %v4663_v37 = vld [vmem:[#allocation2 + $0x3d2] sm:$0xff]  ;;  %v3981_v20 = vld [vmem:[#allocation2 + $0x3c0] sm:$0xff] }
 0x522   : > { %13963 = vmatpush.xpose.msk.msrb.mxu3 %vm3662_vm9, %v4675_v4  ;;  %v4661_v4 = vld [vmem:[#allocation2 + $0x392] sm:$0xff]  ;;  %v5007_v14 = vld [vmem:[#allocation2 + $0x3a0] sm:$0xff] }
 0x523   : > { %v15653_v60 = vld [vmem:[%s22899_s2 + $0x1] sm:$0x1] }
 0x524   : > { %13827 = vmatpush.xpose.msk.msrb.mxu1 %vm3662_vm9, %v4058_v24  ;;  %v4660_v24 = vld [vmem:[#allocation2 + $0x382] sm:$0xff] }
 0x525   : > { %13895 = vmatpush.xpose.msk.msra.mxu2 %vm3662_vm9, %v3993_v57  ;;  %v2095_v25 = vpop.permute.xlu1 %2094  ;;  %v3978_v57 = vld [vmem:[#allocation2 + $0x370] sm:$0xff] }
 0x526   : > { %13964 = vmatpush.xpose.msk.msrb.mxu3 %vm3662_vm9, %v4674_v33  ;;  %v1710_v2 = vpop.permute.xlu0 %1709  ;;  %v4659_v33 = vld [vmem:[#allocation2 + $0x372] sm:$0xff] }
 0x527   : > { %1839 = vst.msk [vmem:[#allocation3 + $0x1f8] sm:$0xff] %vm1775_vm4, %v1710_v2  ;;  %v2481_v43 = vpop.permute.xlu2 %2480  ;;  %v6693_v2 = vld [vmem:[#allocation2 + $0x92] sm:$0xff] }
 0x528   : > { %13828 = vmatpush.xpose.msk.msrb.mxu1 %vm3662_vm9, %v4057_v53  ;;  %2224 = vst.msk [vmem:[#allocation3 + $0x1f8] sm:$0xff] %vm2160_vm5, %v2095_v25  ;;  %v3977_v53 = vld [vmem:[#allocation2 + $0x360] sm:$0xff]  ;;  %v3976_v25 = vld [vmem:[#allocation2 + $0x350] sm:$0xff] }
 0x529   : > { %13896 = vmatpush.xpose.msk.msra.mxu2 %vm3662_vm9, %v3992_v46  ;;  %2610 = vst.msk [vmem:[#allocation3 + $0x1f8] sm:$0xff] %vm2546_vm6, %v2481_v43  ;;  %v4658_v46 = vld [vmem:[#allocation2 + $0x362] sm:$0xff] }
 0x52a   : > { %13965 = vmatpush.xpose.msk.msrb.mxu3 %vm3662_vm9, %v4673_v38  ;;  %v4657_v38 = vld [vmem:[#allocation2 + $0x352] sm:$0xff]  ;;  %v3975_v43 = vld [vmem:[#allocation2 + $0x340] sm:$0xff] }
 0x52c   : > { %13829 = vmatpush.xpose.msk.msrb.mxu1 %vm3662_vm9, %v4056_v49  ;;  %v4656_v49 = vld [vmem:[#allocation2 + $0x342] sm:$0xff] }
 0x52d   : > { %13897 = vmatpush.xpose.msk.msra.mxu2 %vm3662_vm9, %v3991_v21  ;;  %v3974_v21 = vld [vmem:[#allocation2 + $0x330] sm:$0xff] }
 0x52e   : > { %13966 = vmatpush.xpose.msk.msrb.mxu3 %vm3662_vm9, %v4672_v63  ;;  %v2866_v0 = vpop.permute.xlu0 %2865  ;;  %v4655_v63 = vld [vmem:[#allocation2 + $0x332] sm:$0xff] }
 0x52f   : > { %2995 = vst.msk [vmem:[#allocation3 + $0x1f8] sm:$0xff] %vm2931_vm7, %v2866_v0  ;;  %v4654_v0 = vld [vmem:[#allocation2 + $0x322] sm:$0xff] }
 0x530   : > { %13830 = vmatpush.xpose.msk.msrb.mxu1 %vm3662_vm9, %v4055_v47  ;;  %v4653_v47 = vld [vmem:[#allocation2 + $0x2f2] sm:$0xff] }
 0x531   : > { %13898 = vmatpush.xpose.msk.msra.mxu2 %vm3662_vm9, %v3990_v28  ;;  %v4999_v28 = vld [vmem:[#allocation2 + $0x300] sm:$0xff] }
 0x532   : > { %13967 = vmatpush.xpose.msk.msrb.mxu3 %vm3662_vm9, %v4671_v15  ;;  %v4652_v15 = vld [vmem:[#allocation2 + $0x2e2] sm:$0xff] }
 0x534   : > { %13831 = vmatpush.xpose.msk.msrb.mxu1 %vm3662_vm9, %v4054_v51  ;;  %v3970_v51 = vld [vmem:[#allocation2 + $0x2d0] sm:$0xff] }
 0x535   : > { %13899 = vmatpush.xpose.msk.msra.mxu2 %vm3662_vm9, %v3989_v6  ;;  %v4651_v6 = vld [vmem:[#allocation2 + $0x2d2] sm:$0xff] }
 0x536   : > { %13968 = vmatpush.xpose.msk.msrb.mxu3 %vm3662_vm9, %v4670_v5  ;;  %v3059_v41 = vld [vmem:[#allocation3 + $0x1f8] sm:$0xff]  ;;  %v3969_v5 = vld [vmem:[#allocation2 + $0x2c0] sm:$0xff] }
 0x537   : > { %13771 = vmatmul.msk.f32.gmra.mxu0 %vm3068_vm8, %v3059_v41  ;;  %v18502_v41 = vld [vmem:[#allocation2 + $0x190] sm:$0xff] }
 0x538   : > { %13832 = vmatpush.xpose.msk.msrb.mxu1 %vm3662_vm9, %v4053_v1  ;;  %v3968_v1 = vld [vmem:[#allocation2 + $0x2b0] sm:$0xff] }
 0x539   : > { %13900 = vmatpush.xpose.msk.msra.mxu2 %vm3662_vm9, %v3988_v16  ;;  %v4649_v16 = vld [vmem:[#allocation2 + $0x2b2] sm:$0xff] }
 0x53a   : > { %13969 = vmatpush.xpose.msk.msrb.mxu3 %vm3662_vm9, %v4669_v62  ;;  %v18509_v62 = vld [vmem:[#allocation2 + $0x180] sm:$0xff] }
 0x53c   : > { %13833 = vmatpush.xpose.msk.msrb.mxu1 %vm3662_vm9, %v4052_v40  ;;  %v3967_v40 = vld [vmem:[#allocation2 + $0x2a0] sm:$0xff] }
 0x53d   : > { %13901 = vmatpush.xpose.msk.msra.mxu2 %vm3662_vm9, %v3987_v7  ;;  %v4648_v7 = vld [vmem:[#allocation2 + $0x2a2] sm:$0xff] }
 0x53e   : > { %13970 = vmatpush.xpose.msk.msrb.mxu3 %vm3662_vm9, %v4668_v27  ;;  %v18516_v27 = vld [vmem:[#allocation2 + $0x170] sm:$0xff] }
 0x53f   : > { %14202 = vmatmul.msk.f32.vlgmr.msrb.gmra.mxu0 %vm3662_vm9, %v14185_v42  ;;  %v3966_v42 = vld [vmem:[#allocation2 + $0x290] sm:$0xff] }
 0x540   : > { %14324 = vmatpush.xpose.msk.msrb.mxu0 %vm3662_vm9, %v6701_v59  ;;  %13834 = vmatpush.xpose.msk.msrb.mxu1 %vm3662_vm9, %v4051_v56  ;;  %v4647_v59 = vld [vmem:[#allocation2 + $0x292] sm:$0xff]  ;;  %v3965_v56 = vld [vmem:[#allocation2 + $0x280] sm:$0xff] }
 0x541   : > { %13902 = vmatpush.xpose.msk.msra.mxu2 %vm3662_vm9, %v3986_v44  ;;  %v4646_v44 = vld [vmem:[#allocation2 + $0x282] sm:$0xff] }
 0x542   : > { %13971 = vmatpush.xpose.msk.msrb.mxu3 %vm3662_vm9, %v4667_v12  ;;  %v18523_v12 = vld [vmem:[#allocation2 + $0x160] sm:$0xff] }
 0x544   : > { %14325 = vmatpush.xpose.msk.msrb.mxu0 %vm3662_vm9, %v18398_v13  ;;  %13835 = vmatpush.xpose.msk.msrb.mxu1 %vm3662_vm9, %v4050_v11  ;;  %v4645_v11 = vld [vmem:[#allocation2 + $0x252] sm:$0xff] }
 0x545   : > { %13903 = vmatpush.xpose.msk.msra.mxu2 %vm3662_vm9, %v3985_v36  ;;  %v4991_v36 = vld [vmem:[#allocation2 + $0x260] sm:$0xff] }
 0x546   : > { %13972 = vmatpush.xpose.msk.msrb.mxu3 %vm3662_vm9, %v4666_v8  ;;  %v5336_v8 = vld [vmem:[#allocation2 + $0x261] sm:$0xff] }
 0x548   : > { %14326 = vmatpush.xpose.msk.msrb.mxu0 %vm3662_vm9, %v18053_v58  ;;  %13836 = vmatpush.xpose.msk.msrb.mxu1 %vm3662_vm9, %v4049_v10  ;;  %v4047_v58 = vld [vmem:[#allocation2 + $0x3d1] sm:$0xff]  ;;  %v18534_v10 = vld [vmem:[%s22899_s2 + $0x3] sm:$0x1] }
 0x549   : > { %13904 = vmatpush.xpose.msk.msra.mxu2 %vm3662_vm9, %v3984_v32  ;;  %v18542_v32 = vld [vmem:[#allocation2 + $0x150] sm:$0xff] }
 0x54a   : > { %13973 = vmatpush.xpose.msk.msrb.mxu3 %vm3662_vm9, %v4665_v48  ;;  %v4644_v48 = vld [vmem:[#allocation2 + $0x242] sm:$0xff] }
 0x54c   : > { %14327 = vmatpush.xpose.msk.msrb.mxu0 %vm3662_vm9, %v18064_v19  ;;  %13837 = vmatpush.xpose.msk.msrb.mxu1 %vm3662_vm9, %v4048_v17  ;;  %v4046_v19 = vld [vmem:[#allocation2 + $0x3c1] sm:$0xff]  ;;  %v4990_v17 = vld [vmem:[#allocation2 + $0x250] sm:$0xff] }
 0x54d   : > { %13905 = vmatpush.xpose.msk.msra.mxu2 %vm3662_vm9, %v3983_v22  ;;  %v5335_v22 = vld [vmem:[#allocation2 + $0x251] sm:$0xff] }
 0x54e   : > { %13974 = vmatpush.xpose.msk.msrb.mxu3 %vm3662_vm9, %v4664_v35  ;;  %v7039_v35 = vld [vmem:[#allocation2 + $0x140] sm:$0xff] }
 0x550   : > { %14328 = vmatpush.xpose.msk.msrb.mxu0 %vm3662_vm9, %v18074_v54  ;;  %13838 = vmatpush.xpose.msk.msrb.mxu1 %vm3662_vm9, %v4047_v58  ;;  %v3980_v54 = vld [vmem:[#allocation2 + $0x390] sm:$0xff]  ;;  %v14323_v58 = vld [vmem:[%s22899_s2 + $0x8] sm:$0x1] }
 0x551   : > { %13906 = vmatpush.xpose.msk.msra.mxu2 %vm3662_vm9, %v3982_v31  ;;  %v4989_v31 = vld [vmem:[#allocation2 + $0x240] sm:$0xff] }
 0x552   : > { %13975 = vmatpush.xpose.msk.msrb.mxu3 %vm3662_vm9, %v4663_v37  ;;  %v5334_v37 = vld [vmem:[#allocation2 + $0x241] sm:$0xff] }
 0x554   : > { %14329 = vmatpush.xpose.msk.msrb.mxu0 %vm3662_vm9, %v18084_v26  ;;  %13839 = vmatpush.xpose.msk.msrb.mxu1 %vm3662_vm9, %v4046_v19  ;;  %v3979_v26 = vld [vmem:[#allocation2 + $0x380] sm:$0xff]  ;;  %v18559_v19 = vld [vmem:[#allocation2 + $0x110] sm:$0xff] }
 0x555   : > { %13907 = vmatpush.xpose.msk.msra.mxu2 %vm3662_vm9, %v3981_v20  ;;  %v4642_v20 = vld [vmem:[#allocation2 + $0x222] sm:$0xff] }
 0x556   : > { %13976 = vmatpush.xpose.msk.msrb.mxu3 %vm3662_vm9, %v4662_v30  ;;  %v4988_v30 = vld [vmem:[#allocation2 + $0x230] sm:$0xff] }
 0x557   : > { %13840 = vmatmul.msk.f32.vlgmr.msrb.gmra.mxu1 %vm3662_vm9, %v15653_v60  ;;  %v4987_v60 = vld [vmem:[#allocation2 + $0x220] sm:$0xff] }
 0x558   : > { %13875 = vmatpush.xpose.msk.msra.mxu1 %vm3662_vm9, %v3980_v54  ;;  %14330 = vmatpush.xpose.msk.msrb.mxu0 %vm3662_vm9, %v18090_v29  ;;  %v14254_v29 = vld [vmem:[%s22899_s2 + $0x7] sm:$0x1] }
 0x559   : > { %13944 = vmatpush.xpose.msk.msrb.mxu2 %vm3662_vm9, %v4661_v4  ;;  %13977 = vmatmul.msk.f32.vlgmr.msrb.gmra.mxu3 %vm3662_vm9, %v18376_v23  ;;  %v18566_v4 = vld [vmem:[#allocation2 + $0x100] sm:$0xff] }
 0x55a   : > { %14013 = vmatpush.xpose.msk.msra.mxu3 %vm3662_vm9, %v5007_v14  ;;  %13908 = vmatmul.msk.f32.vlgmr.msra.gmra.mxu2 %vm3662_vm9, %v18296_v50  ;;  %v4641_v14 = vld [vmem:[#allocation2 + $0x212] sm:$0xff] }
 0x55b   : > { %14271 = vmatmul.msk.f32.vlgmr.msra.gmra.mxu0 %vm3662_vm9, %v14254_v29  ;;  %v4640_v29 = vld [vmem:[#allocation2 + $0x202] sm:$0xff] }
 0x55c   : > { %13876 = vmatpush.xpose.msk.msra.mxu1 %vm3662_vm9, %v3979_v26  ;;  %14331 = vmatpush.xpose.msk.msrb.mxu0 %vm3662_vm9, %v18101_v34  ;;  %v18451_v34 = vld [vmem:[#allocation2 + $0x82] sm:$0xff] }
 0x55d   : > { %13945 = vmatpush.xpose.msk.msrb.mxu2 %vm3662_vm9, %v4660_v24  ;;  %v18573_v24 = vld [vmem:[#allocation2 + $0xf0] sm:$0xff] }
 0x55e   : > { %14014 = vmatpush.xpose.msk.msra.mxu3 %vm3662_vm9, %v3980_v54  ;;  %v5333_v54 = vld [vmem:[#allocation2 + $0x231] sm:$0xff] }
 0x560   : > { %13877 = vmatpush.xpose.msk.msra.mxu1 %vm3662_vm9, %v3978_v57  ;;  %14332 = vmatpush.xpose.msk.msrb.mxu0 %vm3662_vm9, %v6693_v2  ;;  %v18580_v2 = vld [vmem:[#allocation2 + $0xe0] sm:$0xff] }
 0x561   : > { %13946 = vmatpush.xpose.msk.msrb.mxu2 %vm3662_vm9, %v4659_v33  ;;  %v5331_v33 = vld [vmem:[#allocation2 + $0x211] sm:$0xff] }
 0x562   : > { %14015 = vmatpush.xpose.msk.msra.mxu3 %vm3662_vm9, %v3979_v26  ;;  %v5332_v26 = vld [vmem:[#allocation2 + $0x221] sm:$0xff] }
 0x564   : > { %13878 = vmatpush.xpose.msk.msra.mxu1 %vm3662_vm9, %v3977_v53  ;;  %14333 = vmatpush.xpose.msk.msrb.mxu0 %vm3662_vm9, %v18451_v34 }
 0x565   : > { %13947 = vmatpush.xpose.msk.msrb.mxu2 %vm3662_vm9, %v4658_v46  ;;  %v4985_v46 = vld [vmem:[#allocation2 + $0x200] sm:$0xff] }
 0x566   : > { %14016 = vmatpush.xpose.msk.msra.mxu3 %vm3662_vm9, %v3978_v57  ;;  %v4986_v57 = vld [vmem:[#allocation2 + $0x210] sm:$0xff] }
 0x568   : > { %13879 = vmatpush.xpose.msk.msra.mxu1 %vm3662_vm9, %v3976_v25  ;;  %14334 = vmatpush.xpose.msk.msrb.mxu0 %vm3662_vm9, %v18219_v61  ;;  %v3973_v61 = vld [vmem:[#allocation2 + $0x320] sm:$0xff] }
 0x569   : > { %13948 = vmatpush.xpose.msk.msrb.mxu2 %vm3662_vm9, %v4657_v38  ;;  %v4638_v38 = vld [vmem:[#allocation2 + $0x1e2] sm:$0xff] }
 0x56a   : > { %14017 = vmatpush.xpose.msk.msra.mxu3 %vm3662_vm9, %v3977_v53  ;;  %v4639_v53 = vld [vmem:[#allocation2 + $0x1f2] sm:$0xff] }
 0x56c   : > { %13880 = vmatpush.xpose.msk.msra.mxu1 %vm3662_vm9, %v3975_v43  ;;  %14335 = vmatpush.xpose.msk.msrb.mxu0 %vm3662_vm9, %v18235_v45  ;;  %v3972_v45 = vld [vmem:[#allocation2 + $0x2f0] sm:$0xff] }
 0x56d   : > { %13949 = vmatpush.xpose.msk.msrb.mxu2 %vm3662_vm9, %v4656_v49  ;;  %v4984_v49 = vld [vmem:[#allocation2 + $0x1f0] sm:$0xff] }
 0x56e   : > { %14018 = vmatpush.xpose.msk.msra.mxu3 %vm3662_vm9, %v3976_v25  ;;  %v5330_v25 = vld [vmem:[#allocation2 + $0x201] sm:$0xff] }
 0x570   : > { %13881 = vmatpush.xpose.msk.msra.mxu1 %vm3662_vm9, %v3974_v21  ;;  %14336 = vmatpush.xpose.msk.msrb.mxu0 %vm3662_vm9, %v18243_v9  ;;  %v3971_v9 = vld [vmem:[#allocation2 + $0x2e0] sm:$0xff] }
 0x571   : > { %13950 = vmatpush.xpose.msk.msrb.mxu2 %vm3662_vm9, %v4655_v63  ;;  %v18594_v63 = vld [vmem:[#allocation2 + $0xc0] sm:$0xff] }
 0x572   : > { %14019 = vmatpush.xpose.msk.msra.mxu3 %vm3662_vm9, %v3975_v43  ;;  %v18587_v43 = vld [vmem:[#allocation2 + $0xd0] sm:$0xff] }
 0x574   : > { %13882 = vmatpush.xpose.msk.msra.mxu1 %vm3662_vm9, %v3973_v61  ;;  %14337 = vmatpush.xpose.msk.msrb.mxu0 %vm3662_vm9, %v18257_v18  ;;  %v18488_v18 = vld [vmem:[#allocation2 + $0x1b0] sm:$0xff] }
 0x575   : > { %13951 = vmatpush.xpose.msk.msrb.mxu2 %vm3662_vm9, %v4654_v0  ;;  %v18598_v61 = vld [vmem:[#allocation2 + $0x1b2] sm:$0xff]  ;;  %v18602_v0 = vld [vmem:[#allocation2 + $0x1c0] sm:$0xff] }
 0x576   : > { %14020 = vmatpush.xpose.msk.msra.mxu3 %vm3662_vm9, %v3974_v21  ;;  %v5329_v21 = vld [vmem:[#allocation2 + $0x1f1] sm:$0xff] }
 0x578   : > { %13883 = vmatpush.xpose.msk.msra.mxu1 %vm3662_vm9, %v3972_v45  ;;  %14338 = vmatpush.xpose.msk.msrb.mxu0 %vm3662_vm9, %v18266_v55  ;;  %v18495_v55 = vld [vmem:[#allocation2 + $0x1a0] sm:$0xff] }
 0x579   : > { %13952 = vmatpush.xpose.msk.msrb.mxu2 %vm3662_vm9, %v4653_v47  ;;  %v18610_v47 = vld [vmem:[#allocation2 + $0xb0] sm:$0xff] }
 0x57a   : > { %14021 = vmatpush.xpose.msk.msra.mxu3 %vm3662_vm9, %v4999_v28  ;;  %v18614_v28 = vld [vmem:[#allocation2 + $0x1a2] sm:$0xff] }
 0x57c   : > { %13884 = vmatpush.xpose.msk.msra.mxu1 %vm3662_vm9, %v3971_v9  ;;  %14339 = vmatpush.xpose.msk.msrb.mxu0 %vm3662_vm9, %v18282_v3  ;;  %v4650_v3 = vld [vmem:[#allocation2 + $0x2c2] sm:$0xff] }
 0x57d   : > { %13953 = vmatpush.xpose.msk.msrb.mxu2 %vm3662_vm9, %v4652_v15  ;;  %v18626_v15 = vld [vmem:[#allocation2 + $0x192] sm:$0xff] }
 0x57e   : > { %14022 = vmatpush.xpose.msk.msra.mxu3 %vm3662_vm9, %v3972_v45  ;;  %v18604_v45 = vld [vmem:[#allocation2 + $0x1c1] sm:$0xff] }
 0x57f   : > { %14340 = vmatmul.msk.f32.vlgmr.msrb.gmra.mxu0 %vm3662_vm9, %v14323_v58 }
 0x580   : > { %14393 = vmatpush.xpose.msk.msra.mxu0 %vm3662_vm9, %v18488_v18  ;;  %13885 = vmatpush.xpose.msk.msra.mxu1 %vm3662_vm9, %v3970_v51 }
 0x581   : > { %13954 = vmatpush.xpose.msk.msrb.mxu2 %vm3662_vm9, %v4651_v6  ;;  %v18638_v6 = vld [vmem:[#allocation2 + $0x182] sm:$0xff] }
 0x582   : > { %14023 = vmatpush.xpose.msk.msra.mxu3 %vm3662_vm9, %v3971_v9  ;;  %v18618_v9 = vld [vmem:[#allocation2 + $0x1b1] sm:$0xff] }
 0x584   : > { %14394 = vmatpush.xpose.msk.msra.mxu0 %vm3662_vm9, %v18495_v55  ;;  %13886 = vmatpush.xpose.msk.msra.mxu1 %vm3662_vm9, %v3969_v5 }
 0x585   : > { %13955 = vmatpush.xpose.msk.msrb.mxu2 %vm3662_vm9, %v4650_v3  ;;  %v18656_v3 = vld [vmem:[#allocation2 + $0x181] sm:$0xff] }
 0x586   : > { %14024 = vmatpush.xpose.msk.msra.mxu3 %vm3662_vm9, %v3970_v51  ;;  %v18632_v51 = vld [vmem:[#allocation2 + $0x1a1] sm:$0xff] }
 0x588   : > { %14395 = vmatpush.xpose.msk.msra.mxu0 %vm3662_vm9, %v18502_v41  ;;  %13887 = vmatpush.xpose.msk.msra.mxu1 %vm3662_vm9, %v3968_v1 }
 0x589   : > { %13956 = vmatpush.xpose.msk.msrb.mxu2 %vm3662_vm9, %v4649_v16  ;;  %v18668_v16 = vld [vmem:[#allocation2 + $0x171] sm:$0xff] }
 0x58a   : > { %14025 = vmatpush.xpose.msk.msra.mxu3 %vm3662_vm9, %v3969_v5  ;;  %v18650_v5 = vld [vmem:[#allocation2 + $0x172] sm:$0xff] }
 0x58c   : > { %14396 = vmatpush.xpose.msk.msra.mxu0 %vm3662_vm9, %v18509_v62  ;;  %13888 = vmatpush.xpose.msk.msra.mxu1 %vm3662_vm9, %v3967_v40 }
 0x58d   : > { %13957 = vmatpush.xpose.msk.msrb.mxu2 %vm3662_vm9, %v4648_v7  ;;  %v18680_v7 = vld [vmem:[#allocation2 + $0x161] sm:$0xff] }
 0x58e   : > { %14026 = vmatpush.xpose.msk.msra.mxu3 %vm3662_vm9, %v3968_v1  ;;  %v18662_v1 = vld [vmem:[#allocation2 + $0x162] sm:$0xff] }
 0x590   : > { %14397 = vmatpush.xpose.msk.msra.mxu0 %vm3662_vm9, %v18516_v27  ;;  %13889 = vmatpush.xpose.msk.msra.mxu1 %vm3662_vm9, %v3966_v42 }
 0x591   : > { %13958 = vmatpush.xpose.msk.msrb.mxu2 %vm3662_vm9, %v4647_v59  ;;  %v18692_v59 = vld [vmem:[#allocation2 + $0x151] sm:$0xff] }
 0x592   : > { %14027 = vmatpush.xpose.msk.msra.mxu3 %vm3662_vm9, %v3967_v40  ;;  %v18674_v40 = vld [vmem:[#allocation2 + $0x152] sm:$0xff] }
 0x594   : > { %14398 = vmatpush.xpose.msk.msra.mxu0 %vm3662_vm9, %v18523_v12  ;;  %13890 = vmatpush.xpose.msk.msra.mxu1 %vm3662_vm9, %v3965_v56  ;;  %v18698_v56 = vld [vmem:[#allocation2 + $0x120] sm:$0xff] }
 0x595   : > { %13959 = vmatpush.xpose.msk.msrb.mxu2 %vm3662_vm9, %v4646_v44  ;;  %v18700_v44 = vld [vmem:[#allocation2 + $0x121] sm:$0xff] }
 0x596   : > { %14028 = vmatpush.xpose.msk.msra.mxu3 %vm3662_vm9, %v3966_v42  ;;  %v18686_v42 = vld [vmem:[#allocation2 + $0x142] sm:$0xff] }
 0x597   : > { %13891 = vmatmul.msk.f32.vlgmr.msra.gmra.mxu1 %vm3662_vm9, %v18296_v50  ;;  %v4643_v50 = vld [vmem:[#allocation2 + $0x232] sm:$0xff] }
 0x598   : > { %13927 = vmatpush.xpose.msk.msrb.mxu1 %vm3662_vm9, %v4645_v11  ;;  %13960 = vmatmul.msk.f32.vlgmr.msrb.gmra.mxu2 %vm3662_vm9, %v18376_v23  ;;  %v18709_v11 = vld [vmem:[%s22899_s2 + $0x4] sm:$0x1] }
 0x599   : > { %13996 = vmatpush.xpose.msk.msra.mxu2 %vm3662_vm9, %v4991_v36  ;;  %14399 = vmatpush.xpose.msk.msra.mxu0 %vm3662_vm9, %v18542_v32  ;;  %v18719_v36 = vld [vmem:[#allocation2 + $0x111] sm:$0xff] }
 0x59a   : > { %14065 = vmatpush.xpose.msk.msrb.mxu3 %vm3662_vm9, %v5336_v8  ;;  %v7384_v8 = vld [vmem:[#allocation2 + $0x141] sm:$0xff] }
 0x59b   : > { %14029 = vmatmul.msk.f32.vlgmr.msra.gmra.mxu3 %vm3662_vm9, %v18534_v10 }
 0x59c   : > { %13928 = vmatpush.xpose.msk.msrb.mxu1 %vm3662_vm9, %v4644_v48  ;;  %v18735_v48 = vld [vmem:[#allocation2 + $0x101] sm:$0xff] }
 0x59d   : > { %13997 = vmatpush.xpose.msk.msra.mxu2 %vm3662_vm9, %v4990_v17  ;;  %14400 = vmatpush.xpose.msk.msra.mxu0 %vm3662_vm9, %v7039_v35  ;;  %v18742_v17 = vld [vmem:[#allocation2 + $0x102] sm:$0xff]  ;;  %v18754_v35 = vld [vmem:[#allocation2 + $0xf2] sm:$0xff] }
 0x59e   : > { %14066 = vmatpush.xpose.msk.msrb.mxu3 %vm3662_vm9, %v5335_v22  ;;  %v18748_v22 = vld [vmem:[#allocation2 + $0xf1] sm:$0xff] }
 0x5a0   : > { %13929 = vmatpush.xpose.msk.msrb.mxu1 %vm3662_vm9, %v4643_v50  ;;  %v3443_v50 = vpop.f32.mrf.mxu0 }
 0x5a1   : > { %13998 = vmatpush.xpose.msk.msra.mxu2 %vm3662_vm9, %v4989_v31  ;;  %14401 = vmatpush.xpose.msk.msra.mxu0 %vm3662_vm9, %v18559_v19  ;;  %vm3525_vm1 = vcmp.ge.f32.partialorder %v3443_v50, 0.0  ;;  %v3589_v58 = vmul.f32 0.2, %v3443_v50  ;;  %v18760_v31 = vld [vmem:[#allocation2 + $0xe1] sm:$0xff] }
 0x5a2   : > { %14067 = vmatpush.xpose.msk.msrb.mxu3 %vm3662_vm9, %v5334_v37  ;;  %v18766_v37 = vld [vmem:[#allocation2 + $0xe2] sm:$0xff] }
 0x5a4   : > { %13930 = vmatpush.xpose.msk.msrb.mxu1 %vm3662_vm9, %v4642_v20  ;;  %v3653_v20 = vsel %vm3525_vm1, %v3443_v50, %v3589_v58  ;;  %v5653_v50 = vld [vmem:[#allocation2 + $0x42] sm:$0xff]  ;;  %v4962_v58 = vld [vmem:[#allocation2 + $0x30] sm:$0xff] }
 0x5a5   : > { %13999 = vmatpush.xpose.msk.msra.mxu2 %vm3662_vm9, %v4988_v30  ;;  %14402 = vmatpush.xpose.msk.msra.mxu0 %vm3662_vm9, %v18566_v4  ;;  %3924 = vst.msk [vmem:[#allocation2 + $0x4e1] sm:$0xff] %vm3662_vm9, %v3653_v20  ;;  %v18773_v30 = vld [vmem:[#allocation2 + $0xd1] sm:$0xff] }
 0x5a6   : > { %14068 = vmatpush.xpose.msk.msrb.mxu3 %vm3662_vm9, %v5333_v54  ;;  %v18779_v54 = vld [vmem:[#allocation2 + $0xd2] sm:$0xff] }
 0x5a7   : > { %v5652_v20 = vld [vmem:[#allocation2 + $0x32] sm:$0xff] }
 0x5a8   : > { %13931 = vmatpush.xpose.msk.msrb.mxu1 %vm3662_vm9, %v4641_v14  ;;  %v18785_v14 = vld [vmem:[#allocation2 + $0xc1] sm:$0xff] }
 0x5a9   : > { %14000 = vmatpush.xpose.msk.msra.mxu2 %vm3662_vm9, %v4987_v60  ;;  %14403 = vmatpush.xpose.msk.msra.mxu0 %vm3662_vm9, %v18573_v24  ;;  %v18791_v60 = vld [vmem:[#allocation2 + $0xc2] sm:$0xff] }
 0x5aa   : > { %14069 = vmatpush.xpose.msk.msrb.mxu3 %vm3662_vm9, %v5332_v26  ;;  %v18797_v26 = vld [vmem:[#allocation2 + $0xb1] sm:$0xff] }
 0x5ac   : > { %13932 = vmatpush.xpose.msk.msrb.mxu1 %vm3662_vm9, %v4640_v29  ;;  %v18803_v29 = vld [vmem:[#allocation2 + $0xb2] sm:$0xff] }
 0x5ad   : > { %14001 = vmatpush.xpose.msk.msra.mxu2 %vm3662_vm9, %v4986_v57  ;;  %14404 = vmatpush.xpose.msk.msra.mxu0 %vm3662_vm9, %v18580_v2  ;;  %v4967_v57 = vld [vmem:[#allocation2 + $0x80] sm:$0xff] }
 0x5ae   : > { %14070 = vmatpush.xpose.msk.msrb.mxu3 %vm3662_vm9, %v5331_v33  ;;  %v4966_v33 = vld [vmem:[#allocation2 + $0x70] sm:$0xff] }
 0x5b0   : > { %13933 = vmatpush.xpose.msk.msrb.mxu1 %vm3662_vm9, %v4639_v53  ;;  %v5311_v53 = vld [vmem:[#allocation2 + $0x71] sm:$0xff] }
 0x5b1   : > { %14002 = vmatpush.xpose.msk.msra.mxu2 %vm3662_vm9, %v4985_v46  ;;  %14405 = vmatpush.xpose.msk.msra.mxu0 %vm3662_vm9, %v18587_v43  ;;  %v5656_v46 = vld [vmem:[#allocation2 + $0x72] sm:$0xff] }
 0x5b2   : > { %14071 = vmatpush.xpose.msk.msrb.mxu3 %vm3662_vm9, %v5330_v25  ;;  %v7376_v25 = vld [vmem:[#allocation2 + $0xa1] sm:$0xff] }
 0x5b4   : > { %13934 = vmatpush.xpose.msk.msrb.mxu1 %vm3662_vm9, %v4638_v38  ;;  %v4965_v38 = vld [vmem:[#allocation2 + $0x60] sm:$0xff] }
 0x5b5   : > { %14003 = vmatpush.xpose.msk.msra.mxu2 %vm3662_vm9, %v4984_v49  ;;  %14406 = vmatpush.xpose.msk.msra.mxu0 %vm3662_vm9, %v18594_v63  ;;  %v5310_v49 = vld [vmem:[#allocation2 + $0x61] sm:$0xff] }
 0x5b6   : > { %14072 = vmatpush.xpose.msk.msrb.mxu3 %vm3662_vm9, %v5329_v21  ;;  %v5309_v21 = vld [vmem:[#allocation2 + $0x51] sm:$0xff] }
 0x5b8   : > { %13935 = vmatpush.xpose.msk.msrb.mxu1 %vm3662_vm9, %v18598_v61 }
 0x5b9   : > { %14004 = vmatpush.xpose.msk.msra.mxu2 %vm3662_vm9, %v18602_v0  ;;  %14407 = vmatpush.xpose.msk.msra.mxu0 %vm3662_vm9, %v18610_v47 }
 0x5ba   : > { %14073 = vmatpush.xpose.msk.msrb.mxu3 %vm3662_vm9, %v18604_v45 }
 0x5bc   : > { %13936 = vmatpush.xpose.msk.msrb.mxu1 %vm3662_vm9, %v18614_v28 }
 0x5bd   : > { %14005 = vmatpush.xpose.msk.msra.mxu2 %vm3662_vm9, %v18488_v18  ;;  %14408 = vmatpush.xpose.msk.msra.mxu0 %vm3662_vm9, %v18207_v39  ;;  %v18644_v39 = vld [vmem:[#allocation2 + $0x191] sm:$0xff] }
 0x5be   : > { %14074 = vmatpush.xpose.msk.msrb.mxu3 %vm3662_vm9, %v18618_v9 }
 0x5c0   : > { %13937 = vmatpush.xpose.msk.msrb.mxu1 %vm3662_vm9, %v18626_v15 }
 0x5c1   : > { %14462 = vmatpush.xpose.msk.msrb.mxu0 %vm3662_vm9, %v18618_v9  ;;  %14006 = vmatpush.xpose.msk.msra.mxu2 %vm3662_vm9, %v18495_v55 }
 0x5c2   : > { %14075 = vmatpush.xpose.msk.msrb.mxu3 %vm3662_vm9, %v18632_v51 }
 0x5c4   : > { %13938 = vmatpush.xpose.msk.msrb.mxu1 %vm3662_vm9, %v18638_v6 }
 0x5c5   : > { %14463 = vmatpush.xpose.msk.msrb.mxu0 %vm3662_vm9, %v18632_v51  ;;  %14007 = vmatpush.xpose.msk.msra.mxu2 %vm3662_vm9, %v18502_v41 }
 0x5c6   : > { %14076 = vmatpush.xpose.msk.msrb.mxu3 %vm3662_vm9, %v18644_v39 }
 0x5c8   : > { %13939 = vmatpush.xpose.msk.msrb.mxu1 %vm3662_vm9, %v18650_v5 }
 0x5c9   : > { %14464 = vmatpush.xpose.msk.msrb.mxu0 %vm3662_vm9, %v18644_v39  ;;  %14008 = vmatpush.xpose.msk.msra.mxu2 %vm3662_vm9, %v18509_v62 }
 0x5ca   : > { %14077 = vmatpush.xpose.msk.msrb.mxu3 %vm3662_vm9, %v18656_v3 }
 0x5cc   : > { %13940 = vmatpush.xpose.msk.msrb.mxu1 %vm3662_vm9, %v18662_v1 }
 0x5cd   : > { %14465 = vmatpush.xpose.msk.msrb.mxu0 %vm3662_vm9, %v18656_v3  ;;  %14009 = vmatpush.xpose.msk.msra.mxu2 %vm3662_vm9, %v18516_v27 }
 0x5ce   : > { %14078 = vmatpush.xpose.msk.msrb.mxu3 %vm3662_vm9, %v18668_v16 }
 0x5d0   : > { %13941 = vmatpush.xpose.msk.msrb.mxu1 %vm3662_vm9, %v18674_v40 }
 0x5d1   : > { %14466 = vmatpush.xpose.msk.msrb.mxu0 %vm3662_vm9, %v18668_v16  ;;  %14010 = vmatpush.xpose.msk.msra.mxu2 %vm3662_vm9, %v18523_v12 }
 0x5d2   : > { %14079 = vmatpush.xpose.msk.msrb.mxu3 %vm3662_vm9, %v18680_v7 }
 0x5d4   : > { %13942 = vmatpush.xpose.msk.msrb.mxu1 %vm3662_vm9, %v18686_v42 }
 0x5d5   : > { %14467 = vmatpush.xpose.msk.msrb.mxu0 %vm3662_vm9, %v18680_v7  ;;  %14011 = vmatpush.xpose.msk.msra.mxu2 %vm3662_vm9, %v18542_v32 }
 0x5d6   : > { %14080 = vmatpush.xpose.msk.msrb.mxu3 %vm3662_vm9, %v18692_v59 }
 0x5d7   : > { %13943 = vmatmul.msk.f32.vlgmr.msrb.gmra.mxu1 %vm3662_vm9, %v18376_v23  ;;  %v14392_v23 = vld [vmem:[%s22899_s2 + $0x9] sm:$0x1] }
 0x5d8   : > { %13979 = vmatpush.xpose.msk.msra.mxu1 %vm3662_vm9, %v18698_v56  ;;  %14012 = vmatmul.msk.f32.vlgmr.msra.gmra.mxu2 %vm3662_vm9, %v18534_v10 }
 0x5d9   : > { %14048 = vmatpush.xpose.msk.msrb.mxu2 %vm3662_vm9, %v18700_v44  ;;  %14468 = vmatpush.xpose.msk.msrb.mxu0 %vm3662_vm9, %v18692_v59 }
 0x5da   : > { %14117 = vmatpush.xpose.msk.msra.mxu3 %vm3662_vm9, %v18398_v13  ;;  %v18727_v13 = vld [vmem:[#allocation2 + $0x112] sm:$0xff]  ;;  %14409 = vmatmul.msk.f32.vlgmr.msra.gmra.mxu0 %vm3662_vm9, %v14392_v23  ;;  %v4963_v23 = vld [vmem:[#allocation2 + $0x40] sm:$0xff] }
 0x5db   : > { %14081 = vmatmul.msk.f32.vlgmr.msrb.gmra.mxu3 %vm3662_vm9, %v18709_v11 }
 0x5dc   : > { %13980 = vmatpush.xpose.msk.msra.mxu1 %vm3662_vm9, %v18559_v19 }
 0x5dd   : > { %14049 = vmatpush.xpose.msk.msrb.mxu2 %vm3662_vm9, %v18719_v36  ;;  %14469 = vmatpush.xpose.msk.msrb.mxu0 %vm3662_vm9, %v7384_v8  ;;  %v5654_v8 = vld [vmem:[#allocation2 + $0x52] sm:$0xff] }
 0x5de   : > { %14118 = vmatpush.xpose.msk.msra.mxu3 %vm3662_vm9, %v18727_v13 }
 0x5e0   : > { %13981 = vmatpush.xpose.msk.msra.mxu1 %vm3662_vm9, %v18566_v4 }
 0x5e1   : > { %14050 = vmatpush.xpose.msk.msrb.mxu2 %vm3662_vm9, %v18735_v48  ;;  %14470 = vmatpush.xpose.msk.msrb.mxu0 %vm3662_vm9, %v18719_v36 }
 0x5e2   : > { %14119 = vmatpush.xpose.msk.msra.mxu3 %vm3662_vm9, %v18742_v17 }
 0x5e4   : > { %13982 = vmatpush.xpose.msk.msra.mxu1 %vm3662_vm9, %v18573_v24 }
 0x5e5   : > { %14051 = vmatpush.xpose.msk.msrb.mxu2 %vm3662_vm9, %v18748_v22  ;;  %14471 = vmatpush.xpose.msk.msrb.mxu0 %vm3662_vm9, %v18735_v48 }
 0x5e6   : > { %14120 = vmatpush.xpose.msk.msra.mxu3 %vm3662_vm9, %v18754_v35 }
 0x5e8   : > { %13983 = vmatpush.xpose.msk.msra.mxu1 %vm3662_vm9, %v18580_v2 }
 0x5e9   : > { %14052 = vmatpush.xpose.msk.msrb.mxu2 %vm3662_vm9, %v18760_v31  ;;  %14472 = vmatpush.xpose.msk.msrb.mxu0 %vm3662_vm9, %v18748_v22 }
 0x5ea   : > { %14121 = vmatpush.xpose.msk.msra.mxu3 %vm3662_vm9, %v18766_v37 }
 0x5ec   : > { %13984 = vmatpush.xpose.msk.msra.mxu1 %vm3662_vm9, %v18587_v43 }
 0x5ed   : > { %14053 = vmatpush.xpose.msk.msrb.mxu2 %vm3662_vm9, %v18773_v30  ;;  %14473 = vmatpush.xpose.msk.msrb.mxu0 %vm3662_vm9, %v18760_v31 }
 0x5ee   : > { %14122 = vmatpush.xpose.msk.msra.mxu3 %vm3662_vm9, %v18779_v54 }
 0x5f0   : > { %13985 = vmatpush.xpose.msk.msra.mxu1 %vm3662_vm9, %v18594_v63 }
 0x5f1   : > { %14054 = vmatpush.xpose.msk.msrb.mxu2 %vm3662_vm9, %v18785_v14  ;;  %14474 = vmatpush.xpose.msk.msrb.mxu0 %vm3662_vm9, %v18773_v30 }
 0x5f2   : > { %14123 = vmatpush.xpose.msk.msra.mxu3 %vm3662_vm9, %v18791_v60 }
 0x5f4   : > { %13986 = vmatpush.xpose.msk.msra.mxu1 %vm3662_vm9, %v18610_v47 }
 0x5f5   : > { %14055 = vmatpush.xpose.msk.msrb.mxu2 %vm3662_vm9, %v18797_v26  ;;  %14475 = vmatpush.xpose.msk.msrb.mxu0 %vm3662_vm9, %v18785_v14 }
 0x5f6   : > { %14124 = vmatpush.xpose.msk.msra.mxu3 %vm3662_vm9, %v18803_v29 }
 0x5f8   : > { %13987 = vmatpush.xpose.msk.msra.mxu1 %vm3662_vm9, %v4967_v57  ;;  %v14461_v57 = vld [vmem:[%s22899_s2 + $0xa] sm:$0x1] }
 0x5f9   : > { %14056 = vmatpush.xpose.msk.msrb.mxu2 %vm3662_vm9, %v18318_v52  ;;  %14476 = vmatpush.xpose.msk.msrb.mxu0 %vm3662_vm9, %v18797_v26  ;;  %v5655_v52 = vld [vmem:[#allocation2 + $0x62] sm:$0xff] }
 0x5fa   : > { %14125 = vmatpush.xpose.msk.msra.mxu3 %vm3662_vm9, %v18451_v34  ;;  %v4964_v34 = vld [vmem:[#allocation2 + $0x50] sm:$0xff] }
 0x5fc   : > { %13988 = vmatpush.xpose.msk.msra.mxu1 %vm3662_vm9, %v4966_v33  ;;  %v5306_v33 = vld [vmem:[#allocation2 + $0x21] sm:$0xff] }
 0x5fd   : > { %14057 = vmatpush.xpose.msk.msrb.mxu2 %vm3662_vm9, %v5311_v53  ;;  %14477 = vmatpush.xpose.msk.msrb.mxu0 %vm3662_vm9, %v7376_v25  ;;  %v5651_v53 = vld [vmem:[#allocation2 + $0x22] sm:$0xff]  ;;  %v5650_v25 = vld [vmem:[#allocation2 + $0x12] sm:$0xff] }
 0x5fe   : > { %14126 = vmatpush.xpose.msk.msra.mxu3 %vm3662_vm9, %v5656_v46  ;;  %v5305_v46 = vld [vmem:[#allocation2 + $0x11] sm:$0xff] }
 0x600   : > { %13989 = vmatpush.xpose.msk.msra.mxu1 %vm3662_vm9, %v4965_v38  ;;  %14478 = vmatmul.msk.f32.vlgmr.msrb.gmra.mxu0 %vm3662_vm9, %v14461_v57  ;;  %v18853_v38 = vld [vmem:[#allocation2 + $0x4e0] sm:$0xff] }
 0x601   : > { %14531 = vmatpush.xpose.msk.msra.mxu0 %vm3662_vm9, %v18598_v61  ;;  %14058 = vmatpush.xpose.msk.msrb.mxu2 %vm3662_vm9, %v5310_v49  ;;  %v5308_v61 = vld [vmem:[#allocation2 + $0x41] sm:$0xff] }
 0x602   : > { %14127 = vmatpush.xpose.msk.msra.mxu3 %vm3662_vm9, %v5655_v52  ;;  %v18860_v49 = vld [vmem:[#allocation2 + $0x4e2] sm:$0xff] }
 0x603   : > { %23075 = vst [vmem:[#allocation4_spill] sm:$0xff] %v18860_v49  ;;  %v18865_v52 = vld [vmem:[%s22899_s2 + $0x5] sm:$0x1] }
 0x604   : > { %13990 = vmatpush.xpose.msk.msra.mxu1 %vm3662_vm9, %v4964_v34  ;;  %v18883_v34 = vld [vmem:[#allocation2 + $0x4d1] sm:$0xff] }
 0x605   : > { %14532 = vmatpush.xpose.msk.msra.mxu0 %vm3662_vm9, %v18614_v28  ;;  %14059 = vmatpush.xpose.msk.msrb.mxu2 %vm3662_vm9, %v5309_v21  ;;  %v5307_v28 = vld [vmem:[#allocation2 + $0x31] sm:$0xff] }
 0x606   : > { %14128 = vmatpush.xpose.msk.msra.mxu3 %vm3662_vm9, %v5654_v8  ;;  %v18885_v21 = vld [vmem:[#allocation2 + $0x4d2] sm:$0xff]  ;;  %v18897_v8 = vld [vmem:[#allocation2 + $0x4c1] sm:$0xff] }
 0x607   : > { %23076 = vst [vmem:[#allocation5_spill] sm:$0xff] %v18885_v21 }
 0x608   : > { %13991 = vmatpush.xpose.msk.msra.mxu1 %vm3662_vm9, %v4963_v23  ;;  %v18899_v23 = vld [vmem:[#allocation2 + $0x4c2] sm:$0xff] }
 0x609   : > { %14533 = vmatpush.xpose.msk.msra.mxu0 %vm3662_vm9, %v18626_v15  ;;  %14060 = vmatpush.xpose.msk.msrb.mxu2 %vm3662_vm9, %v5308_v61  ;;  %v4961_v15 = vld [vmem:[#allocation2 + $0x20] sm:$0xff]  ;;  %23077 = vst [vmem:[#allocation6_spill] sm:$0xff] %v18899_v23  ;;  %v18907_v61 = vld [vmem:[#allocation2 + $0x4b0] sm:$0xff] }
 0x60a   : > { %14129 = vmatpush.xpose.msk.msra.mxu3 %vm3662_vm9, %v5653_v50  ;;  %v18913_v50 = vld [vmem:[#allocation2 + $0x4b2] sm:$0xff] }
 0x60b   : > { %23078 = vst [vmem:[#allocation7_spill] sm:$0xff] %v18913_v50 }
 0x60c   : > { %13992 = vmatpush.xpose.msk.msra.mxu1 %vm3662_vm9, %v4962_v58  ;;  %v18921_v58 = vld [vmem:[#allocation2 + $0x4a0] sm:$0xff] }
 0x60d   : > { %14534 = vmatpush.xpose.msk.msra.mxu0 %vm3662_vm9, %v18638_v6  ;;  %14061 = vmatpush.xpose.msk.msrb.mxu2 %vm3662_vm9, %v5307_v28  ;;  %v4960_v6 = vld [vmem:[#allocation2 + $0x10] sm:$0xff]  ;;  %v18927_v28 = vld [vmem:[#allocation2 + $0x4a2] sm:$0xff] }
 0x60e   : > { %14130 = vmatpush.xpose.msk.msra.mxu3 %vm3662_vm9, %v5652_v20  ;;  %23079 = vst [vmem:[#allocation8_spill] sm:$0xff] %v18927_v28  ;;  %v3446_v20 = vpop.f32.mrf.mxu0 }
 0x60f   : > { %vm3526_vm2 = vcmp.ge.f32.partialorder %v3446_v20, 0.0  ;;  %v3590_v57 = vmul.f32 0.2, %v3446_v20 }
 0x610   : > { %13993 = vmatpush.xpose.msk.msra.mxu1 %vm3662_vm9, %v4961_v15  ;;  %v18939_v15 = vld [vmem:[#allocation2 + $0x491] sm:$0xff] }
 0x611   : > { %14535 = vmatpush.xpose.msk.msra.mxu0 %vm3662_vm9, %v18650_v5  ;;  %14062 = vmatpush.xpose.msk.msrb.mxu2 %vm3662_vm9, %v5306_v33  ;;  %v18858_v5 = vld [vmem:[#allocation2 + $0x4e1] sm:$0xff]  ;;  %v18941_v33 = vld [vmem:[#allocation2 + $0x492] sm:$0xff] }
 0x612   : > { %14131 = vmatpush.xpose.msk.msra.mxu3 %vm3662_vm9, %v5651_v53  ;;  %23080 = vst [vmem:[#allocation9_spill] sm:$0xff] %v18941_v33  ;;  %v3654_v53 = vsel %vm3526_vm2, %v3446_v20, %v3590_v57  ;;  %v5361_v57 = vld [vmem:[#allocation2 + $0x471] sm:$0xff] }
 0x613   : > { %3925 = vst.msk [vmem:[#allocation2 + $0x511] sm:$0xff] %vm3662_vm9, %v3654_v53  ;;  %v5706_v53 = vld [vmem:[#allocation2 + $0x472] sm:$0xff] }
 0x614   : > { %13994 = vmatpush.xpose.msk.msra.mxu1 %vm3662_vm9, %v4960_v6  ;;  %v18954_v6 = vld [vmem:[#allocation2 + $0x481] sm:$0xff] }
 0x615   : > { %14536 = vmatpush.xpose.msk.msra.mxu0 %vm3662_vm9, %v18662_v1  ;;  %14063 = vmatpush.xpose.msk.msrb.mxu2 %vm3662_vm9, %v5305_v46  ;;  %v18877_v1 = vld [vmem:[#allocation2 + $0x4d0] sm:$0xff]  ;;  %v18956_v46 = vld [vmem:[#allocation2 + $0x482] sm:$0xff] }
 0x616   : > { %14132 = vmatpush.xpose.msk.msra.mxu3 %vm3662_vm9, %v5650_v25  ;;  %23081 = vst [vmem:[#allocation10_spill] sm:$0xff] %v18956_v46  ;;  %v3449_v25 = vpop.f32.mrf.mxu0 }
 0x617   : > { %13995 = vmatmul.msk.f32.vlgmr.msra.gmra.mxu1 %vm3662_vm9, %v18534_v10  ;;  %vm3527_vm3 = vcmp.ge.f32.partialorder %v3449_v25, 0.0  ;;  %v3591_v20 = vmul.f32 0.2, %v3449_v25 }
 0x618   : > { %14030 = vmatpush.xpose.msk.msrb.mxu1 %vm3662_vm9, %v18853_v38  ;;  %14064 = vmatmul.msk.f32.vlgmr.msrb.gmra.mxu2 %vm3662_vm9, %v18709_v11 }
 0x619   : > { %14099 = vmatpush.xpose.msk.msra.mxu2 %vm3662_vm9, %v18858_v5  ;;  %14537 = vmatpush.xpose.msk.msra.mxu0 %vm3662_vm9, %v18674_v40  ;;  %v18893_v40 = vld [vmem:[#allocation2 + $0x4c0] sm:$0xff] }
 0x61a   : > { %14168 = vmatpush.xpose.msk.msrb.mxu3 %vm3662_vm9, %v18860_v49  ;;  %v19068_v49 = vld [vmem:[#allocation2 + $0x3e2] sm:$0xff] }
 0x61b   : > { %14133 = vmatmul.msk.f32.vlgmr.msra.gmra.mxu3 %vm3662_vm9, %v18865_v52  ;;  %23091 = vst [vmem:[#allocation20_spill] sm:$0xff] %v19068_v49 }
 0x61c   : > { %14031 = vmatpush.xpose.msk.msrb.mxu1 %vm3662_vm9, %v18877_v1 }
 0x61d   : > { %14100 = vmatpush.xpose.msk.msra.mxu2 %vm3662_vm9, %v18883_v34  ;;  %14538 = vmatpush.xpose.msk.msra.mxu0 %vm3662_vm9, %v18686_v42  ;;  %v18911_v42 = vld [vmem:[#allocation2 + $0x4b1] sm:$0xff] }
 0x61e   : > { %14169 = vmatpush.xpose.msk.msrb.mxu3 %vm3662_vm9, %v18885_v21 }
 0x620   : > { %14032 = vmatpush.xpose.msk.msrb.mxu1 %vm3662_vm9, %v18893_v40 }
 0x621   : > { %14101 = vmatpush.xpose.msk.msra.mxu2 %vm3662_vm9, %v18897_v8  ;;  %14539 = vmatpush.xpose.msk.msra.mxu0 %vm3662_vm9, %v18727_v13  ;;  %v18925_v13 = vld [vmem:[#allocation2 + $0x4a1] sm:$0xff] }
 0x622   : > { %14170 = vmatpush.xpose.msk.msrb.mxu3 %vm3662_vm9, %v18899_v23 }
 0x624   : > { %14033 = vmatpush.xpose.msk.msrb.mxu1 %vm3662_vm9, %v18907_v61 }
 0x625   : > { %14102 = vmatpush.xpose.msk.msra.mxu2 %vm3662_vm9, %v18911_v42  ;;  %14540 = vmatpush.xpose.msk.msra.mxu0 %vm3662_vm9, %v18742_v17  ;;  %v18935_v17 = vld [vmem:[#allocation2 + $0x490] sm:$0xff] }
 0x626   : > { %14171 = vmatpush.xpose.msk.msrb.mxu3 %vm3662_vm9, %v18913_v50  ;;  %v19024_v50 = vld [vmem:[#allocation2 + $0x412] sm:$0xff] }
 0x627   : > { %23085 = vst [vmem:[#allocation14_spill] sm:$0xff] %v19024_v50 }
 0x628   : > { %14034 = vmatpush.xpose.msk.msrb.mxu1 %vm3662_vm9, %v18921_v58 }
 0x629   : > { %14103 = vmatpush.xpose.msk.msra.mxu2 %vm3662_vm9, %v18925_v13  ;;  %14541 = vmatpush.xpose.msk.msra.mxu0 %vm3662_vm9, %v18754_v35  ;;  %v18950_v35 = vld [vmem:[#allocation2 + $0x480] sm:$0xff] }
 0x62a   : > { %14172 = vmatpush.xpose.msk.msrb.mxu3 %vm3662_vm9, %v18927_v28 }
 0x62c   : > { %14035 = vmatpush.xpose.msk.msrb.mxu1 %vm3662_vm9, %v18935_v17 }
 0x62d   : > { %14104 = vmatpush.xpose.msk.msra.mxu2 %vm3662_vm9, %v18939_v15  ;;  %14542 = vmatpush.xpose.msk.msra.mxu0 %vm3662_vm9, %v18766_v37  ;;  %v5016_v37 = vld [vmem:[#allocation2 + $0x470] sm:$0xff] }
 0x62e   : > { %14173 = vmatpush.xpose.msk.msrb.mxu3 %vm3662_vm9, %v18941_v33  ;;  %v3655_v33 = vsel %vm3527_vm3, %v3449_v25, %v3591_v20  ;;  %v3452_v25 = vpop.f32.mrf.mxu0  ;;  %v18988_v20 = vld [vmem:[#allocation2 + $0x431] sm:$0xff] }
 0x62f   : > { %3926 = vst.msk [vmem:[#allocation2 + $0x521] sm:$0xff] %vm3662_vm9, %v3655_v33  ;;  %vm3528_vm4 = vcmp.ge.f32.partialorder %v3452_v25, 0.0  ;;  %v3592_v33 = vmul.f32 0.2, %v3452_v25 }
 0x630   : > { %14036 = vmatpush.xpose.msk.msrb.mxu1 %vm3662_vm9, %v18950_v35 }
 0x631   : > { %14105 = vmatpush.xpose.msk.msra.mxu2 %vm3662_vm9, %v18954_v6  ;;  %14543 = vmatpush.xpose.msk.msra.mxu0 %vm3662_vm9, %v18779_v54  ;;  %v18974_v54 = vld [vmem:[#allocation2 + $0x441] sm:$0xff]  ;;  %v3656_v28 = vsel %vm3528_vm4, %v3452_v25, %v3592_v33 }
 0x632   : > { %14174 = vmatpush.xpose.msk.msrb.mxu3 %vm3662_vm9, %v18956_v46  ;;  %v18970_v46 = vld [vmem:[#allocation2 + $0x440] sm:$0xff]  ;;  %3927 = vst.msk [vmem:[#allocation2 + $0x531] sm:$0xff] %vm3662_vm9, %v3656_v28 }
 0x633   : > { %v19007_v25 = vld [vmem:[#allocation2 + $0x421] sm:$0xff] }
 0x634   : > { %14037 = vmatpush.xpose.msk.msrb.mxu1 %vm3662_vm9, %v5016_v37  ;;  %v18976_v37 = vld [vmem:[#allocation2 + $0x442] sm:$0xff] }
 0x635   : > { %14106 = vmatpush.xpose.msk.msra.mxu2 %vm3662_vm9, %v5361_v57  ;;  %14544 = vmatpush.xpose.msk.msra.mxu0 %vm3662_vm9, %v18791_v60  ;;  %23082 = vst [vmem:[#allocation11_spill] sm:$0xff] %v18976_v37  ;;  %v18984_v60 = vld [vmem:[#allocation2 + $0x430] sm:$0xff]  ;;  %v19009_v33 = vld [vmem:[#allocation2 + $0x422] sm:$0xff] }
 0x636   : > { %14175 = vmatpush.xpose.msk.msrb.mxu3 %vm3662_vm9, %v5706_v53  ;;  %v18990_v57 = vld [vmem:[#allocation2 + $0x432] sm:$0xff]  ;;  %v7721_v53 = vld [vmem:[#allocation2 + $0xa2] sm:$0xff]  ;;  %23084 = vst [vmem:[#allocation13_spill] sm:$0xff] %v19009_v33  ;;  %v3455_v28 = vpop.f32.mrf.mxu0 }
 0x637   : > { %23083 = vst [vmem:[#allocation12_spill] sm:$0xff] %v18990_v57  ;;  %vm3529_vm5 = vcmp.ge.f32.partialorder %v3455_v28, 0.0 }
 0x638   : > { %14038 = vmatpush.xpose.msk.msrb.mxu1 %vm3662_vm9, %v18970_v46 }
 0x639   : > { %14107 = vmatpush.xpose.msk.msra.mxu2 %vm3662_vm9, %v18974_v54  ;;  %14545 = vmatpush.xpose.msk.msra.mxu0 %vm3662_vm9, %v18803_v29  ;;  %v18998_v29 = vld [vmem:[#allocation2 + $0x420] sm:$0xff] }
 0x63a   : > { %14176 = vmatpush.xpose.msk.msrb.mxu3 %vm3662_vm9, %v18976_v37  ;;  %v14530_v37 = vld [vmem:[%s22899_s2 + $0xb] sm:$0x1] }
 0x63c   : > { %14039 = vmatpush.xpose.msk.msrb.mxu1 %vm3662_vm9, %v18984_v60 }
 0x63d   : > { %14108 = vmatpush.xpose.msk.msra.mxu2 %vm3662_vm9, %v18988_v20  ;;  %14546 = vmatpush.xpose.msk.msra.mxu0 %vm3662_vm9, %v7721_v53  ;;  %v3593_v53 = vmul.f32 0.2, %v3455_v28 }
 0x63e   : > { %14177 = vmatpush.xpose.msk.msrb.mxu3 %vm3662_vm9, %v18990_v57  ;;  %v19016_v57 = vld [vmem:[#allocation2 + $0x410] sm:$0xff] }
 0x63f   : > { %v3657_v23 = vsel %vm3529_vm5, %v3455_v28, %v3593_v53  ;;  %v3458_v28 = vpop.f32.mrf.mxu0  ;;  %v19045_v53 = vld [vmem:[#allocation2 + $0x3f0] sm:$0xff] }
 0x640   : > { %14040 = vmatpush.xpose.msk.msrb.mxu1 %vm3662_vm9, %v18998_v29  ;;  %14547 = vmatmul.msk.f32.vlgmr.msra.gmra.mxu0 %vm3662_vm9, %v14530_v37  ;;  %3928 = vst.msk [vmem:[#allocation2 + $0x541] sm:$0xff] %vm3662_vm9, %v3657_v23  ;;  %v19031_v37 = vld [vmem:[#allocation2 + $0x400] sm:$0xff]  ;;  %vm3530_vm6 = vcmp.ge.f32.partialorder %v3458_v28, 0.0  ;;  %v3594_v23 = vmul.f32 0.2, %v3458_v28 }
 0x641   : > { %14600 = vmatpush.xpose.msk.msrb.mxu0 %vm3662_vm9, %v18602_v0  ;;  %14109 = vmatpush.xpose.msk.msra.mxu2 %vm3662_vm9, %v19007_v25  ;;  %v19022_v0 = vld [vmem:[#allocation2 + $0x411] sm:$0xff] }
 0x642   : > { %14178 = vmatpush.xpose.msk.msrb.mxu3 %vm3662_vm9, %v19009_v33  ;;  %v19039_v33 = vld [vmem:[#allocation2 + $0x402] sm:$0xff]  ;;  %v3658_v21 = vsel %vm3530_vm6, %v3458_v28, %v3594_v23  ;;  %v5008_v23 = vld [vmem:[#allocation2 + $0x3d0] sm:$0xff] }
 0x643   : > { %23087 = vst [vmem:[#allocation16_spill] sm:$0xff] %v19039_v33 }
 0x644   : > { %14041 = vmatpush.xpose.msk.msrb.mxu1 %vm3662_vm9, %v19016_v57  ;;  %3929 = vst.msk [vmem:[#allocation2 + $0x551] sm:$0xff] %vm3662_vm9, %v3658_v21 }
 0x645   : > { %14601 = vmatpush.xpose.msk.msrb.mxu0 %vm3662_vm9, %v18488_v18  ;;  %14110 = vmatpush.xpose.msk.msra.mxu2 %vm3662_vm9, %v19022_v0  ;;  %v19037_v18 = vld [vmem:[#allocation2 + $0x401] sm:$0xff] }
 0x646   : > { %14179 = vmatpush.xpose.msk.msrb.mxu3 %vm3662_vm9, %v19024_v50  ;;  %23086 = vst [vmem:[#allocation15_spill] sm:$0xff] %v19037_v18  ;;  %v19053_v50 = vld [vmem:[#allocation2 + $0x3f2] sm:$0xff] }
 0x647   : > { %23089 = vst [vmem:[#allocation18_spill] sm:$0xff] %v19053_v50  ;;  %v3461_v28 = vpop.f32.mrf.mxu0 }
 0x648   : > { %14042 = vmatpush.xpose.msk.msrb.mxu1 %vm3662_vm9, %v19031_v37  ;;  %vm3531_vm7 = vcmp.ge.f32.partialorder %v3461_v28, 0.0  ;;  %v3595_v21 = vmul.f32 0.2, %v3461_v28 }
 0x649   : > { %14602 = vmatpush.xpose.msk.msrb.mxu0 %vm3662_vm9, %v18495_v55  ;;  %14111 = vmatpush.xpose.msk.msra.mxu2 %vm3662_vm9, %v19037_v18  ;;  %v19051_v55 = vld [vmem:[#allocation2 + $0x3f1] sm:$0xff] }
 0x64a   : > { %14180 = vmatpush.xpose.msk.msrb.mxu3 %vm3662_vm9, %v19039_v33  ;;  %23088 = vst [vmem:[#allocation17_spill] sm:$0xff] %v19051_v55  ;;  %v19060_v33 = vld [vmem:[#allocation2 + $0x3e0] sm:$0xff]  ;;  %v3659_v18 = vsel %vm3531_vm7, %v3461_v28, %v3595_v21 }
 0x64b   : > { %3930 = vst.msk [vmem:[#allocation2 + $0x561] sm:$0xff] %vm3662_vm9, %v3659_v18  ;;  %v19111_v28 = vld [vmem:[#allocation2 + $0x382] sm:$0xff] }
 0x64c   : > { %14043 = vmatpush.xpose.msk.msrb.mxu1 %vm3662_vm9, %v19045_v53 }
 0x64d   : > { %14603 = vmatpush.xpose.msk.msrb.mxu0 %vm3662_vm9, %v18502_v41  ;;  %14112 = vmatpush.xpose.msk.msra.mxu2 %vm3662_vm9, %v19051_v55  ;;  %v19066_v41 = vld [vmem:[#allocation2 + $0x3e1] sm:$0xff]  ;;  %v6059_v55 = vld [vmem:[#allocation2 + $0x4f0] sm:$0xff] }
 0x64e   : > { %14181 = vmatpush.xpose.msk.msrb.mxu3 %vm3662_vm9, %v19053_v50  ;;  %23090 = vst [vmem:[#allocation19_spill] sm:$0xff] %v19066_v41  ;;  %v5698_v50 = vld [vmem:[#allocation2 + $0x3d2] sm:$0xff] }
 0x64f   : > { %v3464_v18 = vpop.f32.mrf.mxu0 }
 0x650   : > { %14044 = vmatpush.xpose.msk.msrb.mxu1 %vm3662_vm9, %v19060_v33  ;;  %vm3532_vm8 = vcmp.ge.f32.partialorder %v3464_v18, 0.0 }
 0x651   : > { %14604 = vmatpush.xpose.msk.msrb.mxu0 %vm3662_vm9, %v18509_v62  ;;  %14113 = vmatpush.xpose.msk.msra.mxu2 %vm3662_vm9, %v19066_v41  ;;  %v5353_v62 = vld [vmem:[#allocation2 + $0x3d1] sm:$0xff]  ;;  %v19079_v41 = vld [vmem:[#allocation2 + $0x3a1] sm:$0xff] }
 0x652   : > { %14182 = vmatpush.xpose.msk.msrb.mxu3 %vm3662_vm9, %v19068_v49  ;;  %v19081_v49 = vld [vmem:[#allocation2 + $0x3a2] sm:$0xff] }
 0x654   : > { %14045 = vmatpush.xpose.msk.msrb.mxu1 %vm3662_vm9, %v5008_v23 }
 0x655   : > { %14605 = vmatpush.xpose.msk.msrb.mxu0 %vm3662_vm9, %v18516_v27  ;;  %14114 = vmatpush.xpose.msk.msra.mxu2 %vm3662_vm9, %v5353_v62  ;;  %v19095_v27 = vld [vmem:[#allocation2 + $0x391] sm:$0xff]  ;;  %v19136_v62 = vld [vmem:[#allocation2 + $0x362] sm:$0xff] }
 0x656   : > { %14183 = vmatpush.xpose.msk.msrb.mxu3 %vm3662_vm9, %v5698_v50  ;;  %v19097_v50 = vld [vmem:[#allocation2 + $0x392] sm:$0xff] }
 0x657   : > { %14046 = vmatmul.msk.f32.vlgmr.msrb.gmra.mxu1 %vm3662_vm9, %v18534_v10  ;;  %v3596_v10 = vmul.f32 0.2, %v3464_v18  ;;  %v3467_v21 = vpop.f32.mrf.mxu0 }
 0x658   : > { %14082 = vmatpush.xpose.msk.msra.mxu1 %vm3662_vm9, %v19079_v41  ;;  %14115 = vmatmul.msk.f32.vlgmr.msra.gmra.mxu2 %vm3662_vm9, %v18709_v11  ;;  %vm3533_vm13 = vcmp.ge.f32.partialorder %v3467_v21, 0.0  ;;  %v3597_v23 = vmul.f32 0.2, %v3467_v21 }
 0x659   : > { %14151 = vmatpush.xpose.msk.msrb.mxu2 %vm3662_vm9, %v19081_v49  ;;  %14606 = vmatpush.xpose.msk.msrb.mxu0 %vm3662_vm9, %v18523_v12  ;;  %v3660_v12 = vsel %vm3532_vm8, %v3464_v18, %v3596_v10  ;;  %v19151_v18 = vld [vmem:[#allocation2 + $0x352] sm:$0xff]  ;;  %v19163_v10 = vld [vmem:[#allocation2 + $0x342] sm:$0xff] }
 0x65a   : > { %14237 = vmatpush.xpose.msk.msra.mxu3 %vm3662_vm9, %v6059_v55  ;;  %v19109_v55 = vld [vmem:[#allocation2 + $0x381] sm:$0xff]  ;;  %3931 = vst.msk [vmem:[#allocation2 + $0x571] sm:$0xff] %vm3662_vm9, %v3660_v12 }
 0x65b   : > { %14184 = vmatmul.msk.f32.vlgmr.msrb.gmra.mxu3 %vm3662_vm9, %v18865_v52  ;;  %23092 = vst [vmem:[#allocation21_spill] sm:$0xff] %v19151_v18 }
 0x65c   : > { %14083 = vmatpush.xpose.msk.msra.mxu1 %vm3662_vm9, %v19095_v27  ;;  %23093 = vst [vmem:[#allocation22_spill] sm:$0xff] %v19163_v10 }
 0x65d   : > { %14152 = vmatpush.xpose.msk.msrb.mxu2 %vm3662_vm9, %v19097_v50  ;;  %14607 = vmatpush.xpose.msk.msrb.mxu0 %vm3662_vm9, %v18542_v32  ;;  %v19122_v32 = vld [vmem:[#allocation2 + $0x371] sm:$0xff] }
 0x65e   : > { %14238 = vmatpush.xpose.msk.msra.mxu3 %vm3662_vm9, %v18853_v38  ;;  %v19124_v38 = vld [vmem:[#allocation2 + $0x372] sm:$0xff] }
 0x660   : > { %14084 = vmatpush.xpose.msk.msra.mxu1 %vm3662_vm9, %v19109_v55 }
 0x661   : > { %14153 = vmatpush.xpose.msk.msrb.mxu2 %vm3662_vm9, %v19111_v28  ;;  %14608 = vmatpush.xpose.msk.msrb.mxu0 %vm3662_vm9, %v18698_v56  ;;  %v3661_v56 = vsel %vm3533_vm13, %v3467_v21, %v3597_v23  ;;  %v19183_v21 = vld [vmem:[#allocation2 + $0x301] sm:$0xff]  ;;  %v19191_v23 = vpop.f32.mrf.mxu1 }
 0x662   : > { %14239 = vmatpush.xpose.msk.msra.mxu3 %vm3662_vm9, %v18877_v1  ;;  %v19134_v1 = vld [vmem:[#allocation2 + $0x361] sm:$0xff]  ;;  %3932 = vst.msk [vmem:[#allocation2 + $0x581] sm:$0xff] %vm3662_vm9, %v3661_v56 }
 0x664   : > { %14085 = vmatpush.xpose.msk.msra.mxu1 %vm3662_vm9, %v19122_v32 }
 0x665   : > { %14154 = vmatpush.xpose.msk.msrb.mxu2 %vm3662_vm9, %v19124_v38  ;;  %14609 = vmatpush.xpose.msk.msrb.mxu0 %vm3662_vm9, %v18559_v19  ;;  %v19149_v19 = vld [vmem:[#allocation2 + $0x351] sm:$0xff] }
 0x666   : > { %14240 = vmatpush.xpose.msk.msra.mxu3 %vm3662_vm9, %v18893_v40  ;;  %v19145_v40 = vpop.f32.mrf.mxu3 }
 0x668   : > { %14086 = vmatpush.xpose.msk.msra.mxu1 %vm3662_vm9, %v19134_v1 }
 0x669   : > { %14155 = vmatpush.xpose.msk.msrb.mxu2 %vm3662_vm9, %v19136_v62  ;;  %14610 = vmatpush.xpose.msk.msrb.mxu0 %vm3662_vm9, %v18566_v4  ;;  %v19173_v4 = vpop.f32.mrf.mxu2 }
 0x66a   : > { %14241 = vmatpush.xpose.msk.msra.mxu3 %vm3662_vm9, %v18907_v61  ;;  %v19161_v61 = vld [vmem:[#allocation2 + $0x341] sm:$0xff]  ;;  %23094 = vst [vmem:[#allocation23_spill] sm:$0xff] %v19173_v4 }
 0x66c   : > { %14087 = vmatpush.xpose.msk.msra.mxu1 %vm3662_vm9, %v19149_v19 }
 0x66d   : > { %14156 = vmatpush.xpose.msk.msrb.mxu2 %vm3662_vm9, %v19151_v18  ;;  %14611 = vmatpush.xpose.msk.msrb.mxu0 %vm3662_vm9, %v18573_v24  ;;  %v5690_v24 = vld [vmem:[#allocation2 + $0x332] sm:$0xff]  ;;  %v19296_v18 = vld [vmem:[#allocation2 + $0x262] sm:$0xff] }
 0x66e   : > { %14242 = vmatpush.xpose.msk.msra.mxu3 %vm3662_vm9, %v18921_v58  ;;  %v5345_v58 = vld [vmem:[#allocation2 + $0x331] sm:$0xff]  ;;  %v19175_v12 = vpop.f32.mrf.mxu3 }
 0x66f   : > { %23095 = vst [vmem:[#allocation24_spill] sm:$0xff] %v19175_v12  ;;  %v19234_v12 = vld [vmem:[#allocation2 + $0x2d2] sm:$0xff] }
 0x670   : > { %14088 = vmatpush.xpose.msk.msra.mxu1 %vm3662_vm9, %v19161_v61  ;;  %23099 = vst [vmem:[#allocation28_spill] sm:$0xff] %v19234_v12 }
 0x671   : > { %14157 = vmatpush.xpose.msk.msrb.mxu2 %vm3662_vm9, %v19163_v10  ;;  %14612 = vmatpush.xpose.msk.msrb.mxu0 %vm3662_vm9, %v18580_v2  ;;  %v19185_v2 = vld [vmem:[#allocation2 + $0x302] sm:$0xff]  ;;  %v4551_v56 = vpop.f32.mrf.mxu2  ;;  %v6404_v10 = vld [vmem:[#allocation2 + $0x4f1] sm:$0xff] }
 0x672   : > { %14243 = vmatpush.xpose.msk.msra.mxu3 %vm3662_vm9, %v18935_v17  ;;  %v6051_v17 = vld [vmem:[#allocation2 + $0x450] sm:$0xff]  ;;  %23096 = vst [vmem:[#allocation25_spill] sm:$0xff] %v19185_v2 }
 0x674   : > { %14089 = vmatpush.xpose.msk.msra.mxu1 %vm3662_vm9, %v5345_v58 }
 0x675   : > { %14158 = vmatpush.xpose.msk.msrb.mxu2 %vm3662_vm9, %v5690_v24  ;;  %14613 = vmatpush.xpose.msk.msrb.mxu0 %vm3662_vm9, %v18587_v43  ;;  %v19198_v43 = vld [vmem:[#allocation2 + $0x2f2] sm:$0xff]  ;;  %v19215_v24 = vld [vmem:[#allocation2 + $0x2e1] sm:$0xff] }
 0x676   : > { %14244 = vmatpush.xpose.msk.msra.mxu3 %vm3662_vm9, %v18950_v35  ;;  %v19196_v35 = vld [vmem:[#allocation2 + $0x2f1] sm:$0xff]  ;;  %23097 = vst [vmem:[#allocation26_spill] sm:$0xff] %v19198_v43  ;;  %v19206_v58 = vpop.f32.mrf.mxu3 }
 0x678   : > { %14090 = vmatpush.xpose.msk.msra.mxu1 %vm3662_vm9, %v19183_v21 }
 0x679   : > { %14159 = vmatpush.xpose.msk.msrb.mxu2 %vm3662_vm9, %v19185_v2  ;;  %14614 = vmatpush.xpose.msk.msrb.mxu0 %vm3662_vm9, %v18594_v63  ;;  %v14599_v63 = vld [vmem:[%s22899_s2 + $0xc] sm:$0x1]  ;;  %v19240_v4 = vpop.f32.mrf.mxu2  ;;  %v6043_v2 = vld [vmem:[#allocation2 + $0x3b0] sm:$0xff] }
 0x67a   : > { %14245 = vmatpush.xpose.msk.msra.mxu3 %vm3662_vm9, %v6051_v17  ;;  %v19217_v17 = vld [vmem:[#allocation2 + $0x2e2] sm:$0xff] }
 0x67b   : > { %23098 = vst [vmem:[#allocation27_spill] sm:$0xff] %v19217_v17 }
 0x67c   : > { %14091 = vmatpush.xpose.msk.msra.mxu1 %vm3662_vm9, %v19196_v35 }
 0x67d   : > { %14160 = vmatpush.xpose.msk.msrb.mxu2 %vm3662_vm9, %v19198_v43  ;;  %14615 = vmatpush.xpose.msk.msrb.mxu0 %vm3662_vm9, %v18610_v47  ;;  %v19228_v47 = vpop.f32.mrf.mxu0 }
 0x67e   : > { %14246 = vmatpush.xpose.msk.msra.mxu3 %vm3662_vm9, %v18970_v46  ;;  %v19223_v46 = vpop.f32.mrf.mxu1 }
 0x680   : > { %14092 = vmatpush.xpose.msk.msra.mxu1 %vm3662_vm9, %v19215_v24  ;;  %14616 = vmatmul.msk.f32.vlgmr.msrb.gmra.mxu0 %vm3662_vm9, %v14599_v63  ;;  %v19250_v63 = vld [vmem:[#allocation2 + $0x2c2] sm:$0xff] }
 0x681   : > { %14669 = vmatpush.xpose.msk.msra.mxu0 %vm3662_vm9, %v18604_v45  ;;  %14161 = vmatpush.xpose.msk.msrb.mxu2 %vm3662_vm9, %v19217_v17  ;;  %v19232_v45 = vld [vmem:[#allocation2 + $0x2d1] sm:$0xff]  ;;  %23100 = vst [vmem:[#allocation29_spill] sm:$0xff] %v19250_v63 }
 0x682   : > { %14247 = vmatpush.xpose.msk.msra.mxu3 %vm3662_vm9, %v18984_v60  ;;  %v19244_v60 = vpop.f32.mrf.mxu3 }
 0x684   : > { %14093 = vmatpush.xpose.msk.msra.mxu1 %vm3662_vm9, %v19232_v45 }
 0x685   : > { %14670 = vmatpush.xpose.msk.msra.mxu0 %vm3662_vm9, %v18618_v9  ;;  %14162 = vmatpush.xpose.msk.msrb.mxu2 %vm3662_vm9, %v19234_v12  ;;  %v19248_v9 = vld [vmem:[#allocation2 + $0x2c1] sm:$0xff]  ;;  %v19266_v17 = vpop.f32.mrf.mxu0 }
 0x686   : > { %14248 = vmatpush.xpose.msk.msra.mxu3 %vm3662_vm9, %v18998_v29  ;;  %v19258_v12 = vpop.f32.mrf.mxu1  ;;  %v19262_v29 = vld [vmem:[#allocation2 + $0x2b1] sm:$0xff] }
 0x688   : > { %14094 = vmatpush.xpose.msk.msra.mxu1 %vm3662_vm9, %v19248_v9 }
 0x689   : > { %14671 = vmatpush.xpose.msk.msra.mxu0 %vm3662_vm9, %v18632_v51  ;;  %14163 = vmatpush.xpose.msk.msrb.mxu2 %vm3662_vm9, %v19250_v63  ;;  %v19264_v51 = vld [vmem:[#allocation2 + $0x2b2] sm:$0xff]  ;;  %v19280_v63 = vld [vmem:[#allocation2 + $0x2a2] sm:$0xff] }
 0x68a   : > { %14249 = vmatpush.xpose.msk.msra.mxu3 %vm3662_vm9, %v19016_v57  ;;  %23101 = vst [vmem:[#allocation30_spill] sm:$0xff] %v19264_v51  ;;  %v19274_v57 = vpop.f32.mrf.mxu2  ;;  %v19282_v43 = vpop.f32.mrf.mxu3 }
 0x68c   : > { %14095 = vmatpush.xpose.msk.msra.mxu1 %vm3662_vm9, %v19262_v29 }
 0x68d   : > { %14672 = vmatpush.xpose.msk.msra.mxu0 %vm3662_vm9, %v18644_v39  ;;  %14164 = vmatpush.xpose.msk.msrb.mxu2 %vm3662_vm9, %v19264_v51  ;;  %v19278_v39 = vld [vmem:[#allocation2 + $0x2a1] sm:$0xff] }
 0x68e   : > { %14250 = vmatpush.xpose.msk.msra.mxu3 %vm3662_vm9, %v19031_v37  ;;  %v5337_v37 = vld [vmem:[#allocation2 + $0x291] sm:$0xff]  ;;  %v19290_v51 = vpop.f32.mrf.mxu1 }
 0x690   : > { %14096 = vmatpush.xpose.msk.msra.mxu1 %vm3662_vm9, %v19278_v39 }
 0x691   : > { %14673 = vmatpush.xpose.msk.msra.mxu0 %vm3662_vm9, %v18656_v3  ;;  %14165 = vmatpush.xpose.msk.msrb.mxu2 %vm3662_vm9, %v19280_v63  ;;  %v5682_v3 = vld [vmem:[#allocation2 + $0x292] sm:$0xff] }
 0x692   : > { %14251 = vmatpush.xpose.msk.msra.mxu3 %vm3662_vm9, %v19045_v53  ;;  %v6964_v53 = vpop.f32.mrf.mxu0 }
 0x694   : > { %14097 = vmatpush.xpose.msk.msra.mxu1 %vm3662_vm9, %v5337_v37  ;;  %v4552_v37 = vadd.f32 %v4551_v56, %v19191_v23  ;;  %v19332_v56 = vld [vmem:[#allocation2 + $0x242] sm:$0xff] }
 0x695   : > { %14674 = vmatpush.xpose.msk.msra.mxu0 %vm3662_vm9, %v18668_v16  ;;  %14166 = vmatpush.xpose.msk.msrb.mxu2 %vm3662_vm9, %v5682_v3  ;;  %v19304_v16 = vpop.f32.mrf.mxu2  ;;  %v19311_v3 = vpop.f32.mrf.mxu3  ;;  %23103 = vst [vmem:[#allocation32_spill] sm:$0xff] %v19332_v56 }
 0x696   : > { %14252 = vmatpush.xpose.msk.msra.mxu3 %vm3662_vm9, %v19060_v33  ;;  %v19316_v33 = vld [vmem:[%s22899_s2 + $0x6] sm:$0x1]  ;;  %v4955_v23 = vadd.f32 %v19206_v58, %v4552_v37  ;;  %v19344_v58 = vld [vmem:[#allocation2 + $0x232] sm:$0xff] }
 0x697   : > { %14098 = vmatmul.msk.f32.vlgmr.msra.gmra.mxu1 %vm3662_vm9, %v18709_v11  ;;  %v6042_v11 = vld [vmem:[#allocation2 + $0x3a0] sm:$0xff] }
 0x698   : > { %14134 = vmatpush.xpose.msk.msrb.mxu1 %vm3662_vm9, %v19296_v18  ;;  %14167 = vmatmul.msk.f32.vlgmr.msrb.gmra.mxu2 %vm3662_vm9, %v18865_v52 }
 0x699   : > { %14220 = vmatpush.xpose.msk.msra.mxu2 %vm3662_vm9, %v6043_v2  ;;  %14253 = vmatmul.msk.f32.vlgmr.msra.gmra.mxu3 %vm3662_vm9, %v19316_v33  ;;  %v5238_v2 = vpop.f32.mrf.mxu1 }
 0x69a   : > { %14306 = vmatpush.xpose.msk.msrb.mxu3 %vm3662_vm9, %v6404_v10  ;;  %14675 = vmatpush.xpose.msk.msra.mxu0 %vm3662_vm9, %v18680_v7  ;;  %v19322_v10 = vld [vmem:[#allocation2 + $0x252] sm:$0xff] }
 0x69b   : > { %23102 = vst [vmem:[#allocation31_spill] sm:$0xff] %v19322_v10  ;;  %v19336_v7 = vld [vmem:[#allocation2 + $0x390] sm:$0xff] }
 0x69c   : > { %14135 = vmatpush.xpose.msk.msrb.mxu1 %vm3662_vm9, %v19322_v10  ;;  %v5301_v10 = vadd.f32 %v5238_v2, %v4955_v23 }
 0x69d   : > { %14221 = vmatpush.xpose.msk.msra.mxu2 %vm3662_vm9, %v6042_v11  ;;  %v7309_v11 = vpop.f32.mrf.mxu0 }
 0x69e   : > { %14307 = vmatpush.xpose.msk.msrb.mxu3 %vm3662_vm9, %v18858_v5  ;;  %14676 = vmatpush.xpose.msk.msra.mxu0 %vm3662_vm9, %v18692_v59  ;;  %v5583_v5 = vpop.f32.mrf.mxu2  ;;  %v5928_v37 = vpop.f32.mrf.mxu3 }
 0x69f   : > { %v5646_v59 = vadd.f32 %v5583_v5, %v5301_v10  ;;  %v19361_v10 = vld [vmem:[#allocation2 + $0x370] sm:$0xff] }
 0x6a0   : > { %14136 = vmatpush.xpose.msk.msrb.mxu1 %vm3662_vm9, %v19332_v56  ;;  %v19348_v56 = vld [vmem:[#allocation2 + $0x380] sm:$0xff] }
 0x6a1   : > { %14222 = vmatpush.xpose.msk.msra.mxu2 %vm3662_vm9, %v19336_v7 }
 0x6a2   : > { %14308 = vmatpush.xpose.msk.msrb.mxu3 %vm3662_vm9, %v18883_v34  ;;  %14677 = vmatpush.xpose.msk.msra.mxu0 %vm3662_vm9, %v18700_v44  ;;  %v5991_v34 = vadd.f32 %v5928_v37, %v5646_v59  ;;  %v19357_v44 = vld [vmem:[#allocation2 + $0x222] sm:$0xff]  ;;  %v19429_v37 = vld [vmem:[#allocation2 + $0x2f0] sm:$0xff] }
 0x6a4   : > { %14137 = vmatpush.xpose.msk.msrb.mxu1 %vm3662_vm9, %v19344_v58  ;;  %v6337_v2 = vadd.f32 %v19228_v47, %v5991_v34  ;;  %v19374_v47 = vld [vmem:[#allocation2 + $0x360] sm:$0xff] }
 0x6a5   : > { %14223 = vmatpush.xpose.msk.msra.mxu2 %vm3662_vm9, %v19348_v56  ;;  %v7654_v5 = vpop.f32.mrf.mxu0 }
 0x6a6   : > { %14309 = vmatpush.xpose.msk.msrb.mxu3 %vm3662_vm9, %v18897_v8  ;;  %14678 = vmatpush.xpose.msk.msra.mxu0 %vm3662_vm9, %v18719_v36  ;;  %v6682_v23 = vadd.f32 %v19266_v17, %v6337_v2  ;;  %v19370_v36 = vld [vmem:[#allocation2 + $0x212] sm:$0xff]  ;;  %v19450_v2 = vld [vmem:[#allocation2 + $0x182] sm:$0xff] }
 0x6a7   : > { %v19386_v17 = vld [vmem:[#allocation2 + $0x350] sm:$0xff] }
 0x6a8   : > { %14138 = vmatpush.xpose.msk.msrb.mxu1 %vm3662_vm9, %v19357_v44  ;;  %v7027_v8 = vadd.f32 %v6964_v53, %v6682_v23  ;;  %v6035_v53 = vld [vmem:[#allocation2 + $0x310] sm:$0xff] }
 0x6a9   : > { %14224 = vmatpush.xpose.msk.msra.mxu2 %vm3662_vm9, %v19361_v10  ;;  %v19456_v23 = vld [vmem:[#allocation2 + $0x2d0] sm:$0xff] }
 0x6aa   : > { %14310 = vmatpush.xpose.msk.msrb.mxu3 %vm3662_vm9, %v18911_v42  ;;  %14679 = vmatpush.xpose.msk.msra.mxu0 %vm3662_vm9, %v18735_v48  ;;  %v7372_v59 = vadd.f32 %v7309_v11, %v7027_v8  ;;  %v19382_v48 = vld [vmem:[#allocation2 + $0x202] sm:$0xff]  ;;  %v6396_v11 = vld [vmem:[#allocation2 + $0x451] sm:$0xff] }
 0x6ab   : > { %v19462_v8 = vld [vmem:[#allocation2 + $0x172] sm:$0xff] }
 0x6ac   : > { %14139 = vmatpush.xpose.msk.msrb.mxu1 %vm3662_vm9, %v19370_v36  ;;  %v7717_v42 = vadd.f32 %v7654_v5, %v7372_v59  ;;  %v23104_v5 = vld [vmem:[#allocation15_spill] sm:$0xff]  ;;  %v19474_v59 = vld [vmem:[#allocation2 + $0x162] sm:$0xff] }
 0x6ad   : > { %14225 = vmatpush.xpose.msk.msra.mxu2 %vm3662_vm9, %v19374_v47 }
 0x6ae   : > { %14311 = vmatpush.xpose.msk.msrb.mxu3 %vm3662_vm9, %v18925_v13  ;;  %14680 = vmatpush.xpose.msk.msra.mxu0 %vm3662_vm9, %v18748_v22  ;;  %v5674_v13 = vld [vmem:[#allocation2 + $0x1f2] sm:$0xff]  ;;  %v19395_v22 = vld [vmem:[#allocation2 + $0x340] sm:$0xff] }
 0x6b0   : > { %14140 = vmatpush.xpose.msk.msrb.mxu1 %vm3662_vm9, %v19382_v48 }
 0x6b1   : > { %14226 = vmatpush.xpose.msk.msra.mxu2 %vm3662_vm9, %v19386_v17 }
 0x6b2   : > { %14312 = vmatpush.xpose.msk.msrb.mxu3 %vm3662_vm9, %v18939_v15  ;;  %14681 = vmatpush.xpose.msk.msra.mxu0 %vm3662_vm9, %v18760_v31  ;;  %v19403_v15 = vld [vmem:[#allocation2 + $0x1c2] sm:$0xff]  ;;  %v19411_v31 = vld [vmem:[#allocation2 + $0x1b2] sm:$0xff] }
 0x6b4   : > { %14141 = vmatpush.xpose.msk.msrb.mxu1 %vm3662_vm9, %v5674_v13  ;;  %v5666_v13 = vld [vmem:[#allocation2 + $0x152] sm:$0xff] }
 0x6b5   : > { %14227 = vmatpush.xpose.msk.msra.mxu2 %vm3662_vm9, %v19395_v22 }
 0x6b6   : > { %14313 = vmatpush.xpose.msk.msrb.mxu3 %vm3662_vm9, %v18954_v6  ;;  %14682 = vmatpush.xpose.msk.msra.mxu0 %vm3662_vm9, %v18773_v30  ;;  %v6034_v6 = vld [vmem:[#allocation2 + $0x300] sm:$0xff] }
 0x6b7   : > { %v19420_v30 = vld [vmem:[#allocation2 + $0x1a2] sm:$0xff] }
 0x6b8   : > { %14142 = vmatpush.xpose.msk.msrb.mxu1 %vm3662_vm9, %v19403_v15 }
 0x6b9   : > { %14228 = vmatpush.xpose.msk.msra.mxu2 %vm3662_vm9, %v6035_v53  ;;  %v6027_v53 = vld [vmem:[#allocation2 + $0x270] sm:$0xff] }
 0x6ba   : > { %14314 = vmatpush.xpose.msk.msrb.mxu3 %vm3662_vm9, %v6396_v11  ;;  %14683 = vmatpush.xpose.msk.msra.mxu0 %vm3662_vm9, %v18785_v14  ;;  %v14668_v14 = vld [vmem:[%s22899_s2 + $0xd] sm:$0x1]  ;;  %v6388_v11 = vld [vmem:[#allocation2 + $0x3b1] sm:$0xff] }
 0x6bc   : > { %14143 = vmatpush.xpose.msk.msrb.mxu1 %vm3662_vm9, %v19411_v31 }
 0x6bd   : > { %14229 = vmatpush.xpose.msk.msra.mxu2 %vm3662_vm9, %v6034_v6  ;;  %v7999_v34 = vpop.f32.mrf.mxu0  ;;  %v19489_v6 = vld [vmem:[#allocation2 + $0x2a0] sm:$0xff] }
 0x6be   : > { %14315 = vmatpush.xpose.msk.msrb.mxu3 %vm3662_vm9, %v18974_v54  ;;  %14684 = vmatpush.xpose.msk.msra.mxu0 %vm3662_vm9, %v18797_v26  ;;  %v19436_v26 = vld [vmem:[#allocation2 + $0x192] sm:$0xff]  ;;  %v19442_v54 = vld [vmem:[#allocation2 + $0x2e0] sm:$0xff] }
 0x6c0   : > { %14144 = vmatpush.xpose.msk.msrb.mxu1 %vm3662_vm9, %v19420_v30 }
 0x6c1   : > { %14230 = vmatpush.xpose.msk.msra.mxu2 %vm3662_vm9, %v19429_v37  ;;  %14685 = vmatmul.msk.f32.vlgmr.msra.gmra.mxu0 %vm3662_vm9, %v14668_v14  ;;  %v6749_v14 = vld [vmem:[#allocation2 + $0x4f2] sm:$0xff] }
 0x6c2   : > { %14738 = vmatpush.xpose.msk.msrb.mxu0 %vm3662_vm9, %v19403_v15  ;;  %14316 = vmatpush.xpose.msk.msrb.mxu3 %vm3662_vm9, %v18988_v20  ;;  %v19448_v20 = vadd.f32 %v7999_v34, %v7717_v42  ;;  %v23105_v42 = vld [vmem:[#allocation17_spill] sm:$0xff]  ;;  %v23106_v34 = vld [vmem:[#allocation19_spill] sm:$0xff] }
 0x6c4   : > { %14145 = vmatpush.xpose.msk.msrb.mxu1 %vm3662_vm9, %v19436_v26 }
 0x6c5   : > { %14231 = vmatpush.xpose.msk.msra.mxu2 %vm3662_vm9, %v19442_v54 }
 0x6c6   : > { %14739 = vmatpush.xpose.msk.msrb.mxu0 %vm3662_vm9, %v19411_v31  ;;  %14317 = vmatpush.xpose.msk.msrb.mxu3 %vm3662_vm9, %v19007_v25  ;;  %v19468_v25 = vld [vmem:[#allocation2 + $0x2c0] sm:$0xff] }
 0x6c8   : > { %14146 = vmatpush.xpose.msk.msrb.mxu1 %vm3662_vm9, %v19450_v2 }
 0x6c9   : > { %14232 = vmatpush.xpose.msk.msra.mxu2 %vm3662_vm9, %v19456_v23 }
 0x6ca   : > { %14740 = vmatpush.xpose.msk.msrb.mxu0 %vm3662_vm9, %v19420_v30  ;;  %14318 = vmatpush.xpose.msk.msrb.mxu3 %vm3662_vm9, %v19022_v0  ;;  %v19480_v0 = vld [vmem:[#allocation2 + $0x2b0] sm:$0xff] }
 0x6cc   : > { %14147 = vmatpush.xpose.msk.msrb.mxu1 %vm3662_vm9, %v19462_v8 }
 0x6cd   : > { %14233 = vmatpush.xpose.msk.msra.mxu2 %vm3662_vm9, %v19468_v25 }
 0x6ce   : > { %14741 = vmatpush.xpose.msk.msrb.mxu0 %vm3662_vm9, %v19436_v26  ;;  %14319 = vmatpush.xpose.msk.msrb.mxu3 %vm3662_vm9, %v23104_v5  ;;  %v19505_v5 = vld [vmem:[%s22899_s2 + $0x7] sm:$0x1] }
 0x6d0   : > { %14148 = vmatpush.xpose.msk.msrb.mxu1 %vm3662_vm9, %v19474_v59 }
 0x6d1   : > { %14234 = vmatpush.xpose.msk.msra.mxu2 %vm3662_vm9, %v19480_v0 }
 0x6d2   : > { %14742 = vmatpush.xpose.msk.msrb.mxu0 %vm3662_vm9, %v19450_v2  ;;  %14320 = vmatpush.xpose.msk.msrb.mxu3 %vm3662_vm9, %v23105_v42  ;;  %v4612_v42 = vadd.f32 %v19240_v4, %v19223_v46  ;;  %v23108_v46 = vld [vmem:[#allocation5_spill] sm:$0xff] }
 0x6d4   : > { %14149 = vmatpush.xpose.msk.msrb.mxu1 %vm3662_vm9, %v5666_v13 }
 0x6d5   : > { %14235 = vmatpush.xpose.msk.msra.mxu2 %vm3662_vm9, %v19489_v6 }
 0x6d6   : > { %14743 = vmatpush.xpose.msk.msrb.mxu0 %vm3662_vm9, %v19462_v8  ;;  %14321 = vmatpush.xpose.msk.msrb.mxu3 %vm3662_vm9, %v23106_v34  ;;  %v19520_v34 = vld [vmem:[#allocation2 + $0x250] sm:$0xff] }
 0x6d7   : > { %14150 = vmatmul.msk.f32.vlgmr.msrb.gmra.mxu1 %vm3662_vm9, %v18865_v52  ;;  %v23107_v52 = vld [vmem:[#allocation4_spill] sm:$0xff] }
 0x6d8   : > { %14203 = vmatpush.xpose.msk.msra.mxu1 %vm3662_vm9, %v6027_v53  ;;  %14236 = vmatmul.msk.f32.vlgmr.msra.gmra.mxu2 %vm3662_vm9, %v19316_v33  ;;  %v6026_v53 = vld [vmem:[#allocation2 + $0x260] sm:$0xff] }
 0x6d9   : > { %14289 = vmatpush.xpose.msk.msrb.mxu2 %vm3662_vm9, %v6388_v11  ;;  %14322 = vmatmul.msk.f32.vlgmr.msrb.gmra.mxu3 %vm3662_vm9, %v19505_v5  ;;  %v5298_v11 = vpop.f32.mrf.mxu1 }
 0x6da   : > { %14375 = vmatpush.xpose.msk.msra.mxu3 %vm3662_vm9, %v6749_v14  ;;  %14744 = vmatpush.xpose.msk.msrb.mxu0 %vm3662_vm9, %v19474_v59  ;;  %v4958_v14 = vadd.f32 %v19244_v60, %v4612_v42 }
 0x6dc   : > { %14204 = vmatpush.xpose.msk.msra.mxu1 %vm3662_vm9, %v6026_v53  ;;  %v5304_v4 = vadd.f32 %v5298_v11, %v4958_v14  ;;  %v5643_v53 = vpop.f32.mrf.mxu2  ;;  %v19542_v11 = vld [vmem:[#allocation2 + $0x112] sm:$0xff] }
 0x6dd   : > { %14290 = vmatpush.xpose.msk.msrb.mxu2 %vm3662_vm9, %v19079_v41  ;;  %v19528_v41 = vld [vmem:[#allocation2 + $0x122] sm:$0xff]  ;;  %v19546_v14 = vld [vmem:[#allocation2 + $0x230] sm:$0xff] }
 0x6de   : > { %14376 = vmatpush.xpose.msk.msra.mxu3 %vm3662_vm9, %v23107_v52  ;;  %14745 = vmatpush.xpose.msk.msrb.mxu0 %vm3662_vm9, %v5666_v13  ;;  %v5649_v60 = vadd.f32 %v5643_v53, %v5304_v4  ;;  %v19532_v13 = vld [vmem:[#allocation2 + $0x240] sm:$0xff]  ;;  %v5988_v42 = vpop.f32.mrf.mxu3  ;;  %v23110_v4 = vld [vmem:[#allocation7_spill] sm:$0xff] }
 0x6df   : > { %v23112_v53 = vld [vmem:[#allocation8_spill] sm:$0xff] }
 0x6e0   : > { %14205 = vmatpush.xpose.msk.msra.mxu1 %vm3662_vm9, %v19520_v34  ;;  %v19540_v52 = vadd.f32 %v5988_v42, %v5649_v60  ;;  %v19570_v60 = vld [vmem:[#allocation2 + $0x210] sm:$0xff]  ;;  %v23114_v42 = vld [vmem:[#allocation9_spill] sm:$0xff] }
 0x6e1   : > { %14291 = vmatpush.xpose.msk.msrb.mxu2 %vm3662_vm9, %v19095_v27  ;;  %v23109_v27 = vld [vmem:[#allocation6_spill] sm:$0xff]  ;;  %23113 = vst [vmem:[#allocation17_spill] sm:$0xff] %v19570_v60 }
 0x6e2   : > { %14377 = vmatpush.xpose.msk.msra.mxu3 %vm3662_vm9, %v23108_v46  ;;  %14746 = vmatpush.xpose.msk.msrb.mxu0 %vm3662_vm9, %v19528_v41  ;;  %v19558_v46 = vld [vmem:[#allocation2 + $0x220] sm:$0xff] }
 0x6e3   : > { %23111 = vst [vmem:[#allocation15_spill] sm:$0xff] %v19558_v46 }
 0x6e4   : > { %14206 = vmatpush.xpose.msk.msra.mxu1 %vm3662_vm9, %v19532_v13 }
 0x6e5   : > { %14292 = vmatpush.xpose.msk.msrb.mxu2 %vm3662_vm9, %v19109_v55  ;;  %v19554_v55 = vld [vmem:[#allocation2 + $0x102] sm:$0xff] }
 0x6e6   : > { %14378 = vmatpush.xpose.msk.msra.mxu3 %vm3662_vm9, %v23109_v27  ;;  %14747 = vmatpush.xpose.msk.msrb.mxu0 %vm3662_vm9, %v19542_v11  ;;  %v19582_v27 = vld [vmem:[#allocation2 + $0x200] sm:$0xff] }
 0x6e7   : > { %23115 = vst [vmem:[#allocation19_spill] sm:$0xff] %v19582_v27 }
 0x6e8   : > { %14207 = vmatpush.xpose.msk.msra.mxu1 %vm3662_vm9, %v19546_v14 }
 0x6e9   : > { %14293 = vmatpush.xpose.msk.msrb.mxu2 %vm3662_vm9, %v19122_v32  ;;  %v19566_v32 = vld [vmem:[#allocation2 + $0xf2] sm:$0xff] }
 0x6ea   : > { %14379 = vmatpush.xpose.msk.msra.mxu3 %vm3662_vm9, %v23110_v4  ;;  %14748 = vmatpush.xpose.msk.msrb.mxu0 %vm3662_vm9, %v19554_v55  ;;  %v23116_v4 = vld [vmem:[#allocation10_spill] sm:$0xff] }
 0x6ec   : > { %14208 = vmatpush.xpose.msk.msra.mxu1 %vm3662_vm9, %v19558_v46  ;;  %v8756_v46 = vld [vmem:[#allocation2 + $0xb2] sm:$0xff] }
 0x6ed   : > { %14294 = vmatpush.xpose.msk.msrb.mxu2 %vm3662_vm9, %v19134_v1  ;;  %v19578_v1 = vld [vmem:[#allocation2 + $0xe2] sm:$0xff] }
 0x6ee   : > { %14380 = vmatpush.xpose.msk.msra.mxu3 %vm3662_vm9, %v23112_v53  ;;  %14749 = vmatpush.xpose.msk.msrb.mxu0 %vm3662_vm9, %v19566_v32  ;;  %v6380_v53 = vld [vmem:[#allocation2 + $0x311] sm:$0xff] }
 0x6f0   : > { %14209 = vmatpush.xpose.msk.msra.mxu1 %vm3662_vm9, %v19570_v60  ;;  %v19590_v60 = vld [vmem:[#allocation2 + $0xd2] sm:$0xff] }
 0x6f1   : > { %14295 = vmatpush.xpose.msk.msrb.mxu2 %vm3662_vm9, %v19149_v19  ;;  %v6019_v19 = vld [vmem:[#allocation2 + $0x1d0] sm:$0xff] }
 0x6f2   : > { %14381 = vmatpush.xpose.msk.msra.mxu3 %vm3662_vm9, %v23114_v42  ;;  %14750 = vmatpush.xpose.msk.msrb.mxu0 %vm3662_vm9, %v19578_v1  ;;  %v6741_v42 = vld [vmem:[#allocation2 + $0x452] sm:$0xff] }
 0x6f4   : > { %14210 = vmatpush.xpose.msk.msra.mxu1 %vm3662_vm9, %v19582_v27  ;;  %v19597_v27 = vld [vmem:[#allocation2 + $0xc2] sm:$0xff] }
 0x6f5   : > { %14296 = vmatpush.xpose.msk.msrb.mxu2 %vm3662_vm9, %v19161_v61  ;;  %v6018_v61 = vld [vmem:[#allocation2 + $0x1c0] sm:$0xff] }
 0x6f6   : > { %14382 = vmatpush.xpose.msk.msra.mxu3 %vm3662_vm9, %v23116_v4  ;;  %14751 = vmatpush.xpose.msk.msrb.mxu0 %vm3662_vm9, %v19590_v60  ;;  %v23117_v4 = vld [vmem:[#allocation11_spill] sm:$0xff] }
 0x6f8   : > { %14211 = vmatpush.xpose.msk.msra.mxu1 %vm3662_vm9, %v6019_v19 }
 0x6f9   : > { %14297 = vmatpush.xpose.msk.msrb.mxu2 %vm3662_vm9, %v6380_v53  ;;  %v19607_v53 = vld [vmem:[#allocation2 + $0x1b0] sm:$0xff] }
 0x6fa   : > { %14383 = vmatpush.xpose.msk.msra.mxu3 %vm3662_vm9, %v6741_v42  ;;  %14752 = vmatpush.xpose.msk.msrb.mxu0 %vm3662_vm9, %v19597_v27  ;;  %v14737_v42 = vld [vmem:[%s22899_s2 + $0xe] sm:$0x1] }
 0x6fc   : > { %14212 = vmatpush.xpose.msk.msra.mxu1 %vm3662_vm9, %v6018_v61 }
 0x6fd   : > { %14298 = vmatpush.xpose.msk.msrb.mxu2 %vm3662_vm9, %v19183_v21  ;;  %v23118_v21 = vld [vmem:[#allocation12_spill] sm:$0xff] }
 0x6fe   : > { %14384 = vmatpush.xpose.msk.msra.mxu3 %vm3662_vm9, %v23117_v4  ;;  %14753 = vmatpush.xpose.msk.msrb.mxu0 %vm3662_vm9, %v8756_v46  ;;  %v19620_v46 = vld [vmem:[#allocation2 + $0x1a0] sm:$0xff]  ;;  %v8344_v4 = vpop.f32.mrf.mxu0 }
 0x700   : > { %14213 = vmatpush.xpose.msk.msra.mxu1 %vm3662_vm9, %v19607_v53 }
 0x701   : > { %14299 = vmatpush.xpose.msk.msrb.mxu2 %vm3662_vm9, %v19196_v35  ;;  %14754 = vmatmul.msk.f32.vlgmr.msrb.gmra.mxu0 %vm3662_vm9, %v14737_v42  ;;  %v23119_v35 = vld [vmem:[#allocation13_spill] sm:$0xff]  ;;  %v19652_v42 = vld [vmem:[#allocation2 + $0x170] sm:$0xff] }
 0x702   : > { %14807 = vmatpush.xpose.msk.msra.mxu0 %vm3662_vm9, %v6019_v19  ;;  %14385 = vmatpush.xpose.msk.msra.mxu3 %vm3662_vm9, %v23118_v21  ;;  %v19626_v19 = vadd.f32 %v8344_v4, %v19448_v20  ;;  %v19632_v21 = vld [vmem:[#allocation2 + $0x190] sm:$0xff]  ;;  %v19642_v20 = vld [vmem:[#allocation2 + $0x180] sm:$0xff]  ;;  %23122 = vst [vmem:[#allocation4_spill] sm:$0xff] %v19652_v42 }
 0x703   : > { %v19662_v4 = vld [vmem:[#allocation2 + $0x160] sm:$0xff] }
 0x704   : > { %14214 = vmatpush.xpose.msk.msra.mxu1 %vm3662_vm9, %v19620_v46  ;;  %23124 = vst [vmem:[#allocation5_spill] sm:$0xff] %v19662_v4 }
 0x705   : > { %14300 = vmatpush.xpose.msk.msrb.mxu2 %vm3662_vm9, %v19215_v24  ;;  %v23121_v24 = vld [vmem:[#allocation16_spill] sm:$0xff] }
 0x706   : > { %14808 = vmatpush.xpose.msk.msra.mxu0 %vm3662_vm9, %v6018_v61  ;;  %14386 = vmatpush.xpose.msk.msra.mxu3 %vm3662_vm9, %v23119_v35  ;;  %v23120_v61 = vld [vmem:[#allocation14_spill] sm:$0xff] }
 0x707   : > { %v6733_v35 = vld [vmem:[#allocation2 + $0x3b2] sm:$0xff] }
 0x708   : > { %14215 = vmatpush.xpose.msk.msra.mxu1 %vm3662_vm9, %v19632_v21 }
 0x709   : > { %14301 = vmatpush.xpose.msk.msrb.mxu2 %vm3662_vm9, %v19232_v45  ;;  %v23123_v45 = vld [vmem:[#allocation18_spill] sm:$0xff] }
 0x70a   : > { %14809 = vmatpush.xpose.msk.msra.mxu0 %vm3662_vm9, %v19607_v53  ;;  %14387 = vmatpush.xpose.msk.msra.mxu3 %vm3662_vm9, %v23120_v61  ;;  %v19668_v61 = vld [vmem:[#allocation2 + $0x570] sm:$0xff] }
 0x70c   : > { %14216 = vmatpush.xpose.msk.msra.mxu1 %vm3662_vm9, %v19642_v20 }
 0x70d   : > { %14302 = vmatpush.xpose.msk.msrb.mxu2 %vm3662_vm9, %v19248_v9  ;;  %v6372_v9 = vld [vmem:[#allocation2 + $0x271] sm:$0xff] }
 0x70e   : > { %14810 = vmatpush.xpose.msk.msra.mxu0 %vm3662_vm9, %v19620_v46  ;;  %14388 = vmatpush.xpose.msk.msra.mxu3 %vm3662_vm9, %v23121_v24  ;;  %v23125_v24 = vld [vmem:[#allocation20_spill] sm:$0xff] }
 0x710   : > { %14217 = vmatpush.xpose.msk.msra.mxu1 %vm3662_vm9, %v19652_v42 }
 0x711   : > { %14303 = vmatpush.xpose.msk.msrb.mxu2 %vm3662_vm9, %v19262_v29  ;;  %v4592_v29 = vadd.f32 %v19258_v12, %v19145_v40  ;;  %v19692_v40 = vld [vmem:[#allocation2 + $0x560] sm:$0xff] }
 0x712   : > { %14811 = vmatpush.xpose.msk.msra.mxu0 %vm3662_vm9, %v19632_v21  ;;  %14389 = vmatpush.xpose.msk.msra.mxu3 %vm3662_vm9, %v23123_v45  ;;  %v6371_v12 = vld [vmem:[#allocation2 + $0x261] sm:$0xff] }
 0x713   : > { %v4957_v45 = vadd.f32 %v19274_v57, %v4592_v29 }
 0x714   : > { %14218 = vmatpush.xpose.msk.msra.mxu1 %vm3662_vm9, %v19662_v4  ;;  %v5623_v57 = vpop.f32.mrf.mxu1 }
 0x715   : > { %14304 = vmatpush.xpose.msk.msrb.mxu2 %vm3662_vm9, %v19278_v39  ;;  %v19688_v39 = vld [vmem:[%s22899_s2 + $0x8] sm:$0x1] }
 0x716   : > { %14812 = vmatpush.xpose.msk.msra.mxu0 %vm3662_vm9, %v19642_v20  ;;  %14390 = vmatpush.xpose.msk.msra.mxu3 %vm3662_vm9, %v23125_v24 }
 0x717   : > { %14219 = vmatmul.msk.f32.vlgmr.msra.gmra.mxu1 %vm3662_vm9, %v19316_v33  ;;  %v5303_v33 = vadd.f32 %v19282_v43, %v4957_v45 }
 0x718   : > { %14272 = vmatpush.xpose.msk.msrb.mxu1 %vm3662_vm9, %v6372_v9  ;;  %14305 = vmatmul.msk.f32.vlgmr.msrb.gmra.mxu2 %vm3662_vm9, %v19505_v5  ;;  %v19702_v9 = vld [vmem:[#allocation2 + $0x550] sm:$0xff] }
 0x719   : > { %14358 = vmatpush.xpose.msk.msra.mxu2 %vm3662_vm9, %v6733_v35  ;;  %14391 = vmatmul.msk.f32.vlgmr.msra.gmra.mxu3 %vm3662_vm9, %v19688_v39  ;;  %v19706_v35 = vld [vmem:[#allocation2 + $0x251] sm:$0xff]  ;;  %v5648_v24 = vadd.f32 %v5623_v57, %v5303_v33  ;;  %v19722_v33 = vld [vmem:[#allocation2 + $0x241] sm:$0xff] }
 0x71a   : > { %14444 = vmatpush.xpose.msk.msrb.mxu3 %vm3662_vm9, %v19668_v61  ;;  %14813 = vmatpush.xpose.msk.msra.mxu0 %vm3662_vm9, %v19652_v42  ;;  %23126 = vst [vmem:[#allocation6_spill] sm:$0xff] %v19706_v35  ;;  %v23153_v42 = vld [vmem:[#allocation30_spill] sm:$0xff] }
 0x71b   : > { %v5968_v29 = vpop.f32.mrf.mxu2  ;;  %23127 = vst [vmem:[#allocation7_spill] sm:$0xff] %v19722_v33 }
 0x71c   : > { %14273 = vmatpush.xpose.msk.msrb.mxu1 %vm3662_vm9, %v6371_v12  ;;  %v19714_v43 = vadd.f32 %v5968_v29, %v5648_v24  ;;  %v6334_v45 = vpop.f32.mrf.mxu3  ;;  %v19716_v12 = vld [vmem:[#allocation2 + $0x540] sm:$0xff]  ;;  %v19730_v24 = vld [vmem:[#allocation2 + $0x530] sm:$0xff] }
 0x71d   : > { %14359 = vmatpush.xpose.msk.msra.mxu2 %vm3662_vm9, %v19081_v49  ;;  %v9109_v49 = vld [vmem:[#allocation2 + $0x130] sm:$0xff]  ;;  %v19720_v57 = vadd.f32 %v6334_v45, %v19540_v52  ;;  %v19741_v52 = vld [vmem:[#allocation2 + $0x520] sm:$0xff] }
 0x71e   : > { %14445 = vmatpush.xpose.msk.msrb.mxu3 %vm3662_vm9, %v19692_v40  ;;  %14814 = vmatpush.xpose.msk.msra.mxu0 %vm3662_vm9, %v19662_v4  ;;  %v19744_v29 = vld [vmem:[#allocation2 + $0x221] sm:$0xff]  ;;  %v19753_v45 = vld [vmem:[#allocation2 + $0x211] sm:$0xff] }
 0x71f   : > { %23129 = vst [vmem:[#allocation9_spill] sm:$0xff] %v19744_v29 }
 0x720   : > { %14274 = vmatpush.xpose.msk.msrb.mxu1 %vm3662_vm9, %v19706_v35  ;;  %23130 = vst [vmem:[#allocation10_spill] sm:$0xff] %v19753_v45  ;;  %v19782_v35 = vld [vmem:[#allocation2 + $0x4c0] sm:$0xff] }
 0x721   : > { %14360 = vmatpush.xpose.msk.msra.mxu2 %vm3662_vm9, %v19097_v50  ;;  %v9108_v50 = vld [vmem:[#allocation2 + $0x120] sm:$0xff]  ;;  %23137 = vst [vmem:[#allocation14_spill] sm:$0xff] %v19782_v35 }
 0x722   : > { %14446 = vmatpush.xpose.msk.msrb.mxu3 %vm3662_vm9, %v19702_v9  ;;  %14815 = vmatpush.xpose.msk.msra.mxu0 %vm3662_vm9, %v9109_v49  ;;  %v19733_v49 = vld [vmem:[#allocation2 + $0x231] sm:$0xff] }
 0x723   : > { %23128 = vst [vmem:[#allocation8_spill] sm:$0xff] %v19733_v49 }
 0x724   : > { %14275 = vmatpush.xpose.msk.msrb.mxu1 %vm3662_vm9, %v19722_v33  ;;  %v9104_v33 = vld [vmem:[#allocation2 + $0xe0] sm:$0xff] }
 0x725   : > { %14361 = vmatpush.xpose.msk.msra.mxu2 %vm3662_vm9, %v19111_v28  ;;  %v9107_v28 = vld [vmem:[#allocation2 + $0x110] sm:$0xff] }
 0x726   : > { %14447 = vmatpush.xpose.msk.msrb.mxu3 %vm3662_vm9, %v19716_v12  ;;  %14816 = vmatpush.xpose.msk.msra.mxu0 %vm3662_vm9, %v9108_v50  ;;  %v23131_v50 = vld [vmem:[#allocation21_spill] sm:$0xff] }
 0x728   : > { %14276 = vmatpush.xpose.msk.msrb.mxu1 %vm3662_vm9, %v19733_v49  ;;  %v19764_v49 = vld [vmem:[#allocation2 + $0x201] sm:$0xff] }
 0x729   : > { %14362 = vmatpush.xpose.msk.msra.mxu2 %vm3662_vm9, %v19124_v38  ;;  %v9106_v38 = vld [vmem:[#allocation2 + $0x100] sm:$0xff]  ;;  %23133 = vst [vmem:[#allocation12_spill] sm:$0xff] %v19764_v49 }
 0x72a   : > { %14448 = vmatpush.xpose.msk.msrb.mxu3 %vm3662_vm9, %v19730_v24  ;;  %14817 = vmatpush.xpose.msk.msra.mxu0 %vm3662_vm9, %v9107_v28  ;;  %v19759_v28 = vld [vmem:[#allocation2 + $0x510] sm:$0xff] }
 0x72b   : > { %23132 = vst [vmem:[#allocation11_spill] sm:$0xff] %v19759_v28 }
 0x72c   : > { %14277 = vmatpush.xpose.msk.msrb.mxu1 %vm3662_vm9, %v19744_v29  ;;  %v7087_v29 = vld [vmem:[#allocation2 + $0x500] sm:$0xff] }
 0x72d   : > { %14363 = vmatpush.xpose.msk.msra.mxu2 %vm3662_vm9, %v19136_v62  ;;  %v9105_v62 = vld [vmem:[#allocation2 + $0xf0] sm:$0xff] }
 0x72e   : > { %14449 = vmatpush.xpose.msk.msrb.mxu3 %vm3662_vm9, %v19741_v52  ;;  %14818 = vmatpush.xpose.msk.msra.mxu0 %vm3662_vm9, %v9106_v38  ;;  %v23134_v38 = vld [vmem:[#allocation22_spill] sm:$0xff] }
 0x730   : > { %14278 = vmatpush.xpose.msk.msrb.mxu1 %vm3662_vm9, %v19753_v45  ;;  %v6725_v45 = vld [vmem:[#allocation2 + $0x312] sm:$0xff] }
 0x731   : > { %14364 = vmatpush.xpose.msk.msra.mxu2 %vm3662_vm9, %v23131_v50  ;;  %v6364_v50 = vld [vmem:[#allocation2 + $0x1d1] sm:$0xff] }
 0x732   : > { %14450 = vmatpush.xpose.msk.msrb.mxu3 %vm3662_vm9, %v19759_v28  ;;  %14819 = vmatpush.xpose.msk.msra.mxu0 %vm3662_vm9, %v9105_v62  ;;  %v19774_v62 = vld [vmem:[#allocation2 + $0x4d0] sm:$0xff]  ;;  %v23143_v28 = vld [vmem:[#allocation27_spill] sm:$0xff] }
 0x733   : > { %23135 = vst [vmem:[#allocation13_spill] sm:$0xff] %v19774_v62 }
 0x734   : > { %14279 = vmatpush.xpose.msk.msrb.mxu1 %vm3662_vm9, %v19764_v49  ;;  %v9103_v49 = vld [vmem:[#allocation2 + $0xd0] sm:$0xff] }
 0x735   : > { %14365 = vmatpush.xpose.msk.msra.mxu2 %vm3662_vm9, %v23134_v38  ;;  %v6363_v38 = vld [vmem:[#allocation2 + $0x1c1] sm:$0xff] }
 0x736   : > { %14451 = vmatpush.xpose.msk.msrb.mxu3 %vm3662_vm9, %v7087_v29  ;;  %14820 = vmatpush.xpose.msk.msra.mxu0 %vm3662_vm9, %v9104_v33  ;;  %v23136_v29 = vld [vmem:[#allocation25_spill] sm:$0xff]  ;;  %v9102_v33 = vld [vmem:[#allocation2 + $0xc0] sm:$0xff] }
 0x738   : > { %14280 = vmatpush.xpose.msk.msrb.mxu1 %vm3662_vm9, %v6364_v50 }
 0x739   : > { %14366 = vmatpush.xpose.msk.msra.mxu2 %vm3662_vm9, %v6725_v45  ;;  %v19787_v45 = vld [vmem:[#allocation2 + $0x1b1] sm:$0xff] }
 0x73a   : > { %14452 = vmatpush.xpose.msk.msrb.mxu3 %vm3662_vm9, %v19774_v62  ;;  %14821 = vmatpush.xpose.msk.msra.mxu0 %vm3662_vm9, %v9103_v49  ;;  %23138 = vst [vmem:[#allocation16_spill] sm:$0xff] %v19787_v45  ;;  %v14806_v49 = vld [vmem:[%s22899_s2 + $0xf] sm:$0x1]  ;;  %v23140_v62 = vld [vmem:[#allocation26_spill] sm:$0xff] }
 0x73c   : > { %14281 = vmatpush.xpose.msk.msrb.mxu1 %vm3662_vm9, %v6363_v38 }
 0x73d   : > { %14367 = vmatpush.xpose.msk.msra.mxu2 %vm3662_vm9, %v23136_v29  ;;  %v19795_v29 = vld [vmem:[#allocation2 + $0x4b0] sm:$0xff] }
 0x73e   : > { %14453 = vmatpush.xpose.msk.msrb.mxu3 %vm3662_vm9, %v19782_v35  ;;  %14822 = vmatpush.xpose.msk.msra.mxu0 %vm3662_vm9, %v9102_v33  ;;  %23139 = vst [vmem:[#allocation18_spill] sm:$0xff] %v19795_v29  ;;  %v19802_v33 = vld [vmem:[#allocation2 + $0x1a1] sm:$0xff]  ;;  %v8689_v35 = vpop.f32.mrf.mxu0 }
 0x73f   : > { %23141 = vst [vmem:[#allocation20_spill] sm:$0xff] %v19802_v33  ;;  %v19810_v4 = vadd.f32 %v8689_v35, %v19626_v19  ;;  %v19828_v19 = vld [vmem:[#allocation2 + $0x181] sm:$0xff] }
 0x740   : > { %14282 = vmatpush.xpose.msk.msrb.mxu1 %vm3662_vm9, %v19787_v45  ;;  %23147 = vst [vmem:[#allocation26_spill] sm:$0xff] %v19828_v19  ;;  %v19834_v35 = vld [vmem:[#allocation2 + $0x480] sm:$0xff] }
 0x741   : > { %14368 = vmatpush.xpose.msk.msra.mxu2 %vm3662_vm9, %v23140_v62  ;;  %14823 = vmatmul.msk.f32.vlgmr.msra.gmra.mxu0 %vm3662_vm9, %v14806_v49  ;;  %v19816_v62 = vld [vmem:[#allocation2 + $0x191] sm:$0xff]  ;;  %v23146_v49 = vld [vmem:[#allocation28_spill] sm:$0xff]  ;;  %23148 = vst [vmem:[#allocation27_spill] sm:$0xff] %v19834_v35 }
 0x742   : > { %14876 = vmatpush.xpose.msk.msrb.mxu0 %vm3662_vm9, %v6364_v50  ;;  %14454 = vmatpush.xpose.msk.msrb.mxu3 %vm3662_vm9, %v19795_v29  ;;  %v19807_v50 = vld [vmem:[#allocation2 + $0x4a0] sm:$0xff]  ;;  %23144 = vst [vmem:[#allocation22_spill] sm:$0xff] %v19816_v62 }
 0x743   : > { %23142 = vst [vmem:[#allocation21_spill] sm:$0xff] %v19807_v50 }
 0x744   : > { %14283 = vmatpush.xpose.msk.msrb.mxu1 %vm3662_vm9, %v19802_v33 }
 0x745   : > { %14369 = vmatpush.xpose.msk.msra.mxu2 %vm3662_vm9, %v23143_v28  ;;  %v23149_v28 = vld [vmem:[#allocation29_spill] sm:$0xff] }
 0x746   : > { %14877 = vmatpush.xpose.msk.msrb.mxu0 %vm3662_vm9, %v6363_v38  ;;  %14455 = vmatpush.xpose.msk.msrb.mxu3 %vm3662_vm9, %v19807_v50  ;;  %v19822_v38 = vld [vmem:[#allocation2 + $0x490] sm:$0xff] }
 0x747   : > { %23145 = vst [vmem:[#allocation25_spill] sm:$0xff] %v19822_v38 }
 0x748   : > { %14284 = vmatpush.xpose.msk.msrb.mxu1 %vm3662_vm9, %v19816_v62 }
 0x749   : > { %14370 = vmatpush.xpose.msk.msra.mxu2 %vm3662_vm9, %v23146_v49  ;;  %v23150_v49 = vld [vmem:[#allocation23_spill] sm:$0xff] }
 0x74a   : > { %14878 = vmatpush.xpose.msk.msrb.mxu0 %vm3662_vm9, %v19787_v45  ;;  %14456 = vmatpush.xpose.msk.msrb.mxu3 %vm3662_vm9, %v19822_v38  ;;  %v23151_v45 = vld [vmem:[#allocation24_spill] sm:$0xff]  ;;  %v19842_v38 = vld [vmem:[#allocation2 + $0x171] sm:$0xff] }
 0x74b   : > { %v4572_v50 = vadd.f32 %v23151_v45, %v23150_v49  ;;  %23152 = vst [vmem:[#allocation28_spill] sm:$0xff] %v19842_v38  ;;  %v19856_v49 = vld [vmem:[#allocation2 + $0x161] sm:$0xff] }
 0x74c   : > { %14285 = vmatpush.xpose.msk.msrb.mxu1 %vm3662_vm9, %v19828_v19  ;;  %23154 = vst [vmem:[#allocation29_spill] sm:$0xff] %v19856_v49 }
 0x74d   : > { %14371 = vmatpush.xpose.msk.msra.mxu2 %vm3662_vm9, %v23149_v28  ;;  %v4956_v29 = vadd.f32 %v19290_v51, %v4572_v50  ;;  %v7079_v28 = vld [vmem:[#allocation2 + $0x460] sm:$0xff]  ;;  %v19867_v51 = vld [vmem:[#allocation2 + $0x430] sm:$0xff] }
 0x74e   : > { %14879 = vmatpush.xpose.msk.msrb.mxu0 %vm3662_vm9, %v19802_v33  ;;  %14457 = vmatpush.xpose.msk.msrb.mxu3 %vm3662_vm9, %v19834_v35  ;;  %v19848_v33 = vld [vmem:[#allocation2 + $0x470] sm:$0xff] }
 0x74f   : > { %v5302_v45 = vadd.f32 %v19304_v16, %v4956_v29  ;;  %v6717_v35 = vld [vmem:[#allocation2 + $0x272] sm:$0xff]  ;;  %v19890_v29 = vld [vmem:[#allocation2 + $0x420] sm:$0xff] }
 0x750   : > { %14286 = vmatpush.xpose.msk.msrb.mxu1 %vm3662_vm9, %v19842_v38  ;;  %v19900_v50 = vld [vmem:[#allocation2 + $0x551] sm:$0xff] }
 0x751   : > { %14372 = vmatpush.xpose.msk.msra.mxu2 %vm3662_vm9, %v23153_v42  ;;  %v5647_v16 = vadd.f32 %v19311_v3, %v5302_v45  ;;  %v19886_v42 = vld [vmem:[#allocation2 + $0x561] sm:$0xff] }
 0x752   : > { %14880 = vmatpush.xpose.msk.msrb.mxu0 %vm3662_vm9, %v19816_v62  ;;  %14458 = vmatpush.xpose.msk.msrb.mxu3 %vm3662_vm9, %v19848_v33  ;;  %v19862_v62 = vld [vmem:[#allocation2 + $0x571] sm:$0xff] }
 0x754   : > { %14287 = vmatpush.xpose.msk.msrb.mxu1 %vm3662_vm9, %v19856_v49  ;;  %v5948_v3 = vpop.f32.mrf.mxu1 }
 0x755   : > { %14373 = vmatpush.xpose.msk.msra.mxu2 %vm3662_vm9, %v19280_v63  ;;  %v19882_v63 = vld [vmem:[%s22899_s2 + $0x9] sm:$0x1] }
 0x756   : > { %14881 = vmatpush.xpose.msk.msrb.mxu0 %vm3662_vm9, %v19828_v19  ;;  %14459 = vmatpush.xpose.msk.msrb.mxu3 %vm3662_vm9, %v7079_v28  ;;  %v23155_v28 = vld [vmem:[#allocation31_spill] sm:$0xff]  ;;  %v19925_v19 = vld [vmem:[#allocation2 + $0x541] sm:$0xff] }
 0x757   : > { %14288 = vmatmul.msk.f32.vlgmr.msrb.gmra.mxu1 %vm3662_vm9, %v19505_v5  ;;  %v19892_v5 = vadd.f32 %v5948_v3, %v5647_v16 }
 0x758   : > { %14341 = vmatpush.xpose.msk.msra.mxu1 %vm3662_vm9, %v6717_v35  ;;  %14374 = vmatmul.msk.f32.vlgmr.msra.gmra.mxu2 %vm3662_vm9, %v19688_v39  ;;  %v19904_v35 = vld [vmem:[#allocation2 + $0x410] sm:$0xff] }
 0x759   : > { %14427 = vmatpush.xpose.msk.msrb.mxu2 %vm3662_vm9, %v19867_v51  ;;  %14460 = vmatmul.msk.f32.vlgmr.msrb.gmra.mxu3 %vm3662_vm9, %v19882_v63 }
 0x75a   : > { %14513 = vmatpush.xpose.msk.msra.mxu3 %vm3662_vm9, %v19862_v62  ;;  %14882 = vmatpush.xpose.msk.msrb.mxu0 %vm3662_vm9, %v19842_v38 }
 0x75b   : > { %v6314_v45 = vpop.f32.mrf.mxu2 }
 0x75c   : > { %14342 = vmatpush.xpose.msk.msra.mxu1 %vm3662_vm9, %v19296_v18  ;;  %v9454_v18 = vld [vmem:[#allocation2 + $0x131] sm:$0xff]  ;;  %v6679_v16 = vpop.f32.mrf.mxu3  ;;  %v19913_v3 = vadd.f32 %v6314_v45, %v19714_v43  ;;  %v9453_v43 = vld [vmem:[#allocation2 + $0x121] sm:$0xff] }
 0x75d   : > { %14428 = vmatpush.xpose.msk.msrb.mxu2 %vm3662_vm9, %v19890_v29  ;;  %v19916_v38 = vadd.f32 %v6679_v16, %v19720_v57  ;;  %v19930_v57 = vld [vmem:[#allocation2 + $0x3f0] sm:$0xff]  ;;  %v19941_v16 = vld [vmem:[#allocation2 + $0x3e0] sm:$0xff] }
 0x75e   : > { %14514 = vmatpush.xpose.msk.msra.mxu3 %vm3662_vm9, %v19886_v42  ;;  %14883 = vmatpush.xpose.msk.msrb.mxu0 %vm3662_vm9, %v19856_v49  ;;  %v19919_v49 = vld [vmem:[#allocation2 + $0x400] sm:$0xff]  ;;  %v9452_v45 = vld [vmem:[#allocation2 + $0x111] sm:$0xff]  ;;  %23158 = vst [vmem:[#allocation24_spill] sm:$0xff] %v19941_v16 }
 0x760   : > { %14343 = vmatpush.xpose.msk.msra.mxu1 %vm3662_vm9, %v23155_v28  ;;  %v23156_v28 = vld [vmem:[#allocation32_spill] sm:$0xff] }
 0x761   : > { %14429 = vmatpush.xpose.msk.msrb.mxu2 %vm3662_vm9, %v19904_v35 }
 0x762   : > { %14515 = vmatpush.xpose.msk.msra.mxu3 %vm3662_vm9, %v19900_v50  ;;  %14884 = vmatpush.xpose.msk.msrb.mxu0 %vm3662_vm9, %v9454_v18  ;;  %v19936_v18 = vld [vmem:[#allocation2 + $0x531] sm:$0xff] }
 0x763   : > { %23157 = vst [vmem:[#allocation23_spill] sm:$0xff] %v19936_v18 }
 0x764   : > { %14344 = vmatpush.xpose.msk.msra.mxu1 %vm3662_vm9, %v23156_v28  ;;  %v9451_v28 = vld [vmem:[#allocation2 + $0x101] sm:$0xff] }
 0x765   : > { %14430 = vmatpush.xpose.msk.msrb.mxu2 %vm3662_vm9, %v19919_v49 }
 0x766   : > { %14516 = vmatpush.xpose.msk.msra.mxu3 %vm3662_vm9, %v19925_v19  ;;  %14885 = vmatpush.xpose.msk.msrb.mxu0 %vm3662_vm9, %v9453_v43  ;;  %v19952_v43 = vld [vmem:[#allocation2 + $0x3d0] sm:$0xff] }
 0x768   : > { %14345 = vmatpush.xpose.msk.msra.mxu1 %vm3662_vm9, %v19344_v58  ;;  %v19947_v58 = vld [vmem:[#allocation2 + $0x521] sm:$0xff] }
 0x769   : > { %14431 = vmatpush.xpose.msk.msrb.mxu2 %vm3662_vm9, %v19930_v57 }
 0x76a   : > { %14517 = vmatpush.xpose.msk.msra.mxu3 %vm3662_vm9, %v19936_v18  ;;  %14886 = vmatpush.xpose.msk.msrb.mxu0 %vm3662_vm9, %v9452_v45  ;;  %v7071_v45 = vld [vmem:[#allocation2 + $0x3c0] sm:$0xff] }
 0x76b   : > { %v7432_v18 = vld [vmem:[#allocation2 + $0x501] sm:$0xff] }
 0x76c   : > { %14346 = vmatpush.xpose.msk.msra.mxu1 %vm3662_vm9, %v19357_v44  ;;  %v19958_v44 = vld [vmem:[#allocation2 + $0x511] sm:$0xff] }
 0x76d   : > { %14432 = vmatpush.xpose.msk.msrb.mxu2 %vm3662_vm9, %v19941_v16  ;;  %23159 = vst [vmem:[#allocation30_spill] sm:$0xff] %v19958_v44  ;;  %v9450_v16 = vld [vmem:[#allocation2 + $0xf1] sm:$0xff] }
 0x76e   : > { %14518 = vmatpush.xpose.msk.msra.mxu3 %vm3662_vm9, %v19947_v58  ;;  %14887 = vmatpush.xpose.msk.msrb.mxu0 %vm3662_vm9, %v9451_v28  ;;  %v9449_v28 = vld [vmem:[#allocation2 + $0xe1] sm:$0xff] }
 0x770   : > { %14347 = vmatpush.xpose.msk.msra.mxu1 %vm3662_vm9, %v19370_v36  ;;  %v6709_v36 = vld [vmem:[#allocation2 + $0x1d2] sm:$0xff] }
 0x771   : > { %14433 = vmatpush.xpose.msk.msrb.mxu2 %vm3662_vm9, %v19952_v43 }
 0x772   : > { %14519 = vmatpush.xpose.msk.msra.mxu3 %vm3662_vm9, %v19958_v44  ;;  %14888 = vmatpush.xpose.msk.msrb.mxu0 %vm3662_vm9, %v9450_v16  ;;  %v19971_v44 = vld [vmem:[#allocation2 + $0x4d1] sm:$0xff] }
 0x773   : > { %v9448_v16 = vld [vmem:[#allocation2 + $0xd1] sm:$0xff] }
 0x774   : > { %14348 = vmatpush.xpose.msk.msra.mxu1 %vm3662_vm9, %v19382_v48  ;;  %v19980_v48 = vld [vmem:[#allocation2 + $0x4c1] sm:$0xff] }
 0x775   : > { %14434 = vmatpush.xpose.msk.msrb.mxu2 %vm3662_vm9, %v7071_v45  ;;  %v19991_v45 = vld [vmem:[#allocation2 + $0x4b1] sm:$0xff] }
 0x776   : > { %14520 = vmatpush.xpose.msk.msra.mxu3 %vm3662_vm9, %v7432_v18  ;;  %14889 = vmatpush.xpose.msk.msrb.mxu0 %vm3662_vm9, %v9449_v28  ;;  %v14875_v18 = vld [vmem:[%s22899_s2 + $0x10] sm:$0x1] }
 0x778   : > { %14349 = vmatpush.xpose.msk.msra.mxu1 %vm3662_vm9, %v6709_v36 }
 0x779   : > { %14435 = vmatpush.xpose.msk.msrb.mxu2 %vm3662_vm9, %v19336_v7  ;;  %v9447_v7 = vld [vmem:[#allocation2 + $0xc1] sm:$0xff] }
 0x77a   : > { %14521 = vmatpush.xpose.msk.msra.mxu3 %vm3662_vm9, %v19971_v44  ;;  %14890 = vmatpush.xpose.msk.msrb.mxu0 %vm3662_vm9, %v9448_v16 }
 0x77c   : > { %14350 = vmatpush.xpose.msk.msra.mxu1 %vm3662_vm9, %v19403_v15 }
 0x77d   : > { %14436 = vmatpush.xpose.msk.msrb.mxu2 %vm3662_vm9, %v19348_v56 }
 0x77e   : > { %14522 = vmatpush.xpose.msk.msra.mxu3 %vm3662_vm9, %v19980_v48  ;;  %14891 = vmatpush.xpose.msk.msrb.mxu0 %vm3662_vm9, %v9447_v7  ;;  %v9034_v56 = vpop.f32.mrf.mxu0 }
 0x77f   : > { %v20005_v28 = vadd.f32 %v9034_v56, %v19810_v4  ;;  %v20072_v4 = vld [vmem:[#allocation2 + $0x421] sm:$0xff] }
 0x780   : > { %14351 = vmatpush.xpose.msk.msra.mxu1 %vm3662_vm9, %v19411_v31 }
 0x781   : > { %14437 = vmatpush.xpose.msk.msrb.mxu2 %vm3662_vm9, %v19361_v10  ;;  %14892 = vmatmul.msk.f32.vlgmr.msrb.gmra.mxu0 %vm3662_vm9, %v14875_v18  ;;  %v20015_v10 = vld [vmem:[#allocation2 + $0x491] sm:$0xff] }
 0x782   : > { %14945 = vmatpush.xpose.msk.msra.mxu0 %vm3662_vm9, %v6709_v36  ;;  %14523 = vmatpush.xpose.msk.msra.mxu3 %vm3662_vm9, %v19991_v45  ;;  %v20002_v36 = vld [vmem:[#allocation2 + $0x4a1] sm:$0xff] }
 0x784   : > { %14352 = vmatpush.xpose.msk.msra.mxu1 %vm3662_vm9, %v19420_v30 }
 0x785   : > { %14438 = vmatpush.xpose.msk.msrb.mxu2 %vm3662_vm9, %v19374_v47  ;;  %v20025_v47 = vld [vmem:[#allocation2 + $0x481] sm:$0xff] }
 0x786   : > { %14946 = vmatpush.xpose.msk.msra.mxu0 %vm3662_vm9, %v19403_v15  ;;  %14524 = vmatpush.xpose.msk.msra.mxu3 %vm3662_vm9, %v20002_v36  ;;  %v20037_v15 = vld [vmem:[#allocation2 + $0x471] sm:$0xff] }
 0x788   : > { %14353 = vmatpush.xpose.msk.msra.mxu1 %vm3662_vm9, %v19436_v26 }
 0x789   : > { %14439 = vmatpush.xpose.msk.msrb.mxu2 %vm3662_vm9, %v19386_v17  ;;  %v20035_v17 = vld [vmem:[#allocation2 + $0x330] sm:$0xff] }
 0x78a   : > { %14947 = vmatpush.xpose.msk.msra.mxu0 %vm3662_vm9, %v19411_v31  ;;  %14525 = vmatpush.xpose.msk.msra.mxu3 %vm3662_vm9, %v20015_v10  ;;  %v7424_v31 = vld [vmem:[#allocation2 + $0x461] sm:$0xff] }
 0x78c   : > { %14354 = vmatpush.xpose.msk.msra.mxu1 %vm3662_vm9, %v19450_v2 }
 0x78d   : > { %14440 = vmatpush.xpose.msk.msrb.mxu2 %vm3662_vm9, %v19395_v22  ;;  %v7063_v22 = vld [vmem:[#allocation2 + $0x320] sm:$0xff] }
 0x78e   : > { %14948 = vmatpush.xpose.msk.msra.mxu0 %vm3662_vm9, %v19420_v30  ;;  %14526 = vmatpush.xpose.msk.msra.mxu3 %vm3662_vm9, %v20025_v47  ;;  %v20049_v30 = vld [vmem:[#allocation2 + $0x431] sm:$0xff] }
 0x790   : > { %14355 = vmatpush.xpose.msk.msra.mxu1 %vm3662_vm9, %v19462_v8 }
 0x791   : > { %14441 = vmatpush.xpose.msk.msrb.mxu2 %vm3662_vm9, %v20035_v17 }
 0x792   : > { %14949 = vmatpush.xpose.msk.msra.mxu0 %vm3662_vm9, %v19436_v26  ;;  %14527 = vmatpush.xpose.msk.msra.mxu3 %vm3662_vm9, %v20037_v15  ;;  %v20055_v26 = vld [vmem:[#allocation2 + $0x572] sm:$0xff] }
 0x794   : > { %14356 = vmatpush.xpose.msk.msra.mxu1 %vm3662_vm9, %v19474_v59 }
 0x795   : > { %14442 = vmatpush.xpose.msk.msrb.mxu2 %vm3662_vm9, %v7063_v22  ;;  %v20110_v22 = vld [vmem:[#allocation2 + $0x542] sm:$0xff] }
 0x796   : > { %14950 = vmatpush.xpose.msk.msra.mxu0 %vm3662_vm9, %v19450_v2  ;;  %14528 = vmatpush.xpose.msk.msra.mxu3 %vm3662_vm9, %v7424_v31  ;;  %v20066_v2 = vld [vmem:[%s22899_s2 + $0xa] sm:$0x1]  ;;  %v20142_v31 = vld [vmem:[#allocation2 + $0x3d1] sm:$0xff] }
 0x797   : > { %14357 = vmatmul.msk.f32.vlgmr.msra.gmra.mxu1 %vm3662_vm9, %v19688_v39  ;;  %v20081_v39 = vld [vmem:[#allocation2 + $0x562] sm:$0xff] }
 0x798   : > { %14410 = vmatpush.xpose.msk.msrb.mxu1 %vm3662_vm9, %v19429_v37  ;;  %14443 = vmatmul.msk.f32.vlgmr.msrb.gmra.mxu2 %vm3662_vm9, %v19882_v63  ;;  %v6294_v37 = vpop.f32.mrf.mxu1 }
 0x799   : > { %14496 = vmatpush.xpose.msk.msra.mxu2 %vm3662_vm9, %v20049_v30  ;;  %14529 = vmatmul.msk.f32.vlgmr.msra.gmra.mxu3 %vm3662_vm9, %v20066_v2  ;;  %v20075_v16 = vadd.f32 %v6294_v37, %v19892_v5  ;;  %v9799_v5 = vld [vmem:[#allocation2 + $0x132] sm:$0xff]  ;;  %v7416_v37 = vld [vmem:[#allocation2 + $0x3c1] sm:$0xff] }
 0x79a   : > { %14582 = vmatpush.xpose.msk.msrb.mxu3 %vm3662_vm9, %v20055_v26  ;;  %14951 = vmatpush.xpose.msk.msra.mxu0 %vm3662_vm9, %v19462_v8  ;;  %v20087_v8 = vld [vmem:[#allocation2 + $0x411] sm:$0xff] }
 0x79b   : > { %v6659_v7 = vpop.f32.mrf.mxu2 }
 0x79c   : > { %14411 = vmatpush.xpose.msk.msrb.mxu1 %vm3662_vm9, %v19442_v54  ;;  %v20093_v54 = vld [vmem:[#allocation2 + $0x552] sm:$0xff]  ;;  %v7024_v18 = vpop.f32.mrf.mxu3  ;;  %v20098_v56 = vadd.f32 %v6659_v7, %v19913_v3  ;;  %v20128_v3 = vld [vmem:[#allocation2 + $0x3e1] sm:$0xff] }
 0x79d   : > { %14497 = vmatpush.xpose.msk.msra.mxu2 %vm3662_vm9, %v20072_v4  ;;  %v20165_v7 = vld [vmem:[#allocation2 + $0x4d2] sm:$0xff] }
 0x79e   : > { %14583 = vmatpush.xpose.msk.msrb.mxu3 %vm3662_vm9, %v20081_v39  ;;  %14952 = vmatpush.xpose.msk.msra.mxu0 %vm3662_vm9, %v19474_v59  ;;  %v20101_v59 = vadd.f32 %v7024_v18, %v19916_v38  ;;  %v20116_v38 = vld [vmem:[#allocation2 + $0x3f1] sm:$0xff] }
 0x79f   : > { %v20190_v18 = vld [vmem:[#allocation2 + $0x371] sm:$0xff] }
 0x7a0   : > { %14412 = vmatpush.xpose.msk.msrb.mxu1 %vm3662_vm9, %v19456_v23  ;;  %v20104_v23 = vld [vmem:[#allocation2 + $0x401] sm:$0xff] }
 0x7a1   : > { %14498 = vmatpush.xpose.msk.msra.mxu2 %vm3662_vm9, %v20087_v8 }
 0x7a2   : > { %14584 = vmatpush.xpose.msk.msrb.mxu3 %vm3662_vm9, %v20093_v54  ;;  %14953 = vmatpush.xpose.msk.msra.mxu0 %vm3662_vm9, %v9799_v5  ;;  %v7777_v5 = vld [vmem:[#allocation2 + $0x502] sm:$0xff] }
 0x7a4   : > { %14413 = vmatpush.xpose.msk.msrb.mxu1 %vm3662_vm9, %v19468_v25  ;;  %v20122_v25 = vld [vmem:[#allocation2 + $0x532] sm:$0xff] }
 0x7a5   : > { %14499 = vmatpush.xpose.msk.msra.mxu2 %vm3662_vm9, %v20104_v23 }
 0x7a6   : > { %14585 = vmatpush.xpose.msk.msrb.mxu3 %vm3662_vm9, %v20110_v22  ;;  %14954 = vmatpush.xpose.msk.msra.mxu0 %vm3662_vm9, %v19528_v41  ;;  %v20140_v41 = vld [vmem:[#allocation2 + $0x290] sm:$0xff] }
 0x7a8   : > { %14414 = vmatpush.xpose.msk.msrb.mxu1 %vm3662_vm9, %v19480_v0  ;;  %v20134_v0 = vld [vmem:[#allocation2 + $0x522] sm:$0xff] }
 0x7a9   : > { %14500 = vmatpush.xpose.msk.msra.mxu2 %vm3662_vm9, %v20116_v38 }
 0x7aa   : > { %14586 = vmatpush.xpose.msk.msrb.mxu3 %vm3662_vm9, %v20122_v25  ;;  %14955 = vmatpush.xpose.msk.msra.mxu0 %vm3662_vm9, %v19542_v11  ;;  %v7055_v11 = vld [vmem:[#allocation2 + $0x280] sm:$0xff] }
 0x7ac   : > { %14415 = vmatpush.xpose.msk.msrb.mxu1 %vm3662_vm9, %v19489_v6  ;;  %v20148_v6 = vld [vmem:[#allocation2 + $0x512] sm:$0xff] }
 0x7ad   : > { %14501 = vmatpush.xpose.msk.msra.mxu2 %vm3662_vm9, %v20128_v3 }
 0x7ae   : > { %14587 = vmatpush.xpose.msk.msrb.mxu3 %vm3662_vm9, %v20134_v0  ;;  %14956 = vmatpush.xpose.msk.msra.mxu0 %vm3662_vm9, %v19554_v55  ;;  %v20159_v55 = vld [vmem:[#allocation2 + $0x391] sm:$0xff] }
 0x7b0   : > { %14416 = vmatpush.xpose.msk.msrb.mxu1 %vm3662_vm9, %v20140_v41 }
 0x7b1   : > { %14502 = vmatpush.xpose.msk.msra.mxu2 %vm3662_vm9, %v20142_v31 }
 0x7b2   : > { %14588 = vmatpush.xpose.msk.msrb.mxu3 %vm3662_vm9, %v20148_v6  ;;  %14957 = vmatpush.xpose.msk.msra.mxu0 %vm3662_vm9, %v19566_v32  ;;  %v20171_v32 = vld [vmem:[#allocation2 + $0x381] sm:$0xff] }
 0x7b4   : > { %14417 = vmatpush.xpose.msk.msrb.mxu1 %vm3662_vm9, %v7055_v11  ;;  %v20192_v11 = vld [vmem:[#allocation2 + $0x4b2] sm:$0xff] }
 0x7b5   : > { %14503 = vmatpush.xpose.msk.msra.mxu2 %vm3662_vm9, %v7416_v37  ;;  %23161 = vst [vmem:[#allocation32_spill] sm:$0xff] %v20192_v11  ;;  %v20203_v37 = vld [vmem:[#allocation2 + $0x361] sm:$0xff] }
 0x7b6   : > { %14589 = vmatpush.xpose.msk.msrb.mxu3 %vm3662_vm9, %v7777_v5  ;;  %14958 = vmatpush.xpose.msk.msra.mxu0 %vm3662_vm9, %v19578_v1  ;;  %v20177_v1 = vld [vmem:[#allocation2 + $0x4c2] sm:$0xff] }
 0x7b7   : > { %23160 = vst [vmem:[#allocation31_spill] sm:$0xff] %v20177_v1  ;;  %v20205_v5 = vld [vmem:[#allocation2 + $0x4a2] sm:$0xff] }
 0x7b8   : > { %14418 = vmatpush.xpose.msk.msrb.mxu1 %vm3662_vm9, %v19520_v34 }
 0x7b9   : > { %14504 = vmatpush.xpose.msk.msra.mxu2 %vm3662_vm9, %v20159_v55 }
 0x7ba   : > { %14590 = vmatpush.xpose.msk.msrb.mxu3 %vm3662_vm9, %v20165_v7  ;;  %14959 = vmatpush.xpose.msk.msra.mxu0 %vm3662_vm9, %v19590_v60  ;;  %v14944_v60 = vld [vmem:[%s22899_s2 + $0x11] sm:$0x1] }
 0x7bc   : > { %14419 = vmatpush.xpose.msk.msrb.mxu1 %vm3662_vm9, %v19532_v13 }
 0x7bd   : > { %14505 = vmatpush.xpose.msk.msra.mxu2 %vm3662_vm9, %v20171_v32 }
 0x7be   : > { %14591 = vmatpush.xpose.msk.msrb.mxu3 %vm3662_vm9, %v20177_v1  ;;  %14960 = vmatpush.xpose.msk.msra.mxu0 %vm3662_vm9, %v19597_v27  ;;  %v9380_v27 = vpop.f32.mrf.mxu0 }
 0x7bf   : > { %v20208_v1 = vadd.f32 %v9380_v27, %v20005_v28  ;;  %v23168_v28 = vld [vmem:[#allocation19_spill] sm:$0xff]  ;;  %v20232_v27 = vld [vmem:[#allocation2 + $0x482] sm:$0xff] }
 0x7c0   : > { %14420 = vmatpush.xpose.msk.msrb.mxu1 %vm3662_vm9, %v19546_v14  ;;  %23170 = vst [vmem:[#allocation35_spill] sm:$0xff] %v20232_v27 }
 0x7c1   : > { %14506 = vmatpush.xpose.msk.msra.mxu2 %vm3662_vm9, %v20190_v18  ;;  %14961 = vmatmul.msk.f32.vlgmr.msra.gmra.mxu0 %vm3662_vm9, %v14944_v60  ;;  %23164 = vst [vmem:[#allocation33_spill] sm:$0xff] %v20208_v1  ;;  %v20218_v60 = vld [vmem:[#allocation2 + $0x351] sm:$0xff] }
 0x7c2   : > { %15014 = vmatpush.xpose.msk.msrb.mxu0 %vm3662_vm9, %v19520_v34  ;;  %14592 = vmatpush.xpose.msk.msrb.mxu3 %vm3662_vm9, %v20192_v11  ;;  %v23162_v34 = vld [vmem:[#allocation15_spill] sm:$0xff]  ;;  %v20238_v1 = vld [vmem:[#allocation2 + $0x1f0] sm:$0xff] }
 0x7c3   : > { %23163 = vst [vmem:[#allocation15_spill] sm:$0xff] %v20205_v5  ;;  %v20220_v11 = vld [vmem:[#allocation2 + $0x492] sm:$0xff] }
 0x7c4   : > { %14421 = vmatpush.xpose.msk.msrb.mxu1 %vm3662_vm9, %v23162_v34  ;;  %23167 = vst [vmem:[#allocation34_spill] sm:$0xff] %v20220_v11 }
 0x7c5   : > { %14507 = vmatpush.xpose.msk.msra.mxu2 %vm3662_vm9, %v20203_v37 }
 0x7c6   : > { %15015 = vmatpush.xpose.msk.msrb.mxu0 %vm3662_vm9, %v19532_v13  ;;  %14593 = vmatpush.xpose.msk.msrb.mxu3 %vm3662_vm9, %v20205_v5  ;;  %v23165_v13 = vld [vmem:[#allocation17_spill] sm:$0xff]  ;;  %v20259_v5 = vld [vmem:[#allocation2 + $0x2f1] sm:$0xff] }
 0x7c7   : > { %23166 = vst [vmem:[#allocation17_spill] sm:$0xff] %v20218_v60 }
 0x7c8   : > { %14422 = vmatpush.xpose.msk.msrb.mxu1 %vm3662_vm9, %v23165_v13  ;;  %23173 = vst [vmem:[#allocation38_spill] sm:$0xff] %v20259_v5 }
 0x7c9   : > { %14508 = vmatpush.xpose.msk.msra.mxu2 %vm3662_vm9, %v20218_v60  ;;  %v7769_v60 = vld [vmem:[#allocation2 + $0x462] sm:$0xff] }
 0x7ca   : > { %15016 = vmatpush.xpose.msk.msrb.mxu0 %vm3662_vm9, %v19546_v14  ;;  %14594 = vmatpush.xpose.msk.msrb.mxu3 %vm3662_vm9, %v20220_v11  ;;  %v20230_v14 = vld [vmem:[#allocation2 + $0x341] sm:$0xff]  ;;  %v20246_v11 = vld [vmem:[#allocation2 + $0x472] sm:$0xff] }
 0x7cb   : > { %23169 = vst [vmem:[#allocation19_spill] sm:$0xff] %v20230_v14 }
 0x7cc   : > { %14423 = vmatpush.xpose.msk.msrb.mxu1 %vm3662_vm9, %v23168_v28 }
 0x7cd   : > { %14509 = vmatpush.xpose.msk.msra.mxu2 %vm3662_vm9, %v20230_v14  ;;  %v7047_v14 = vld [vmem:[#allocation2 + $0x1e0] sm:$0xff] }
 0x7ce   : > { %15017 = vmatpush.xpose.msk.msrb.mxu0 %vm3662_vm9, %v23162_v34  ;;  %14595 = vmatpush.xpose.msk.msrb.mxu3 %vm3662_vm9, %v20232_v27  ;;  %v20244_v34 = vld [vmem:[#allocation2 + $0x331] sm:$0xff]  ;;  %v7408_v27 = vld [vmem:[#allocation2 + $0x321] sm:$0xff] }
 0x7cf   : > { %23171 = vst [vmem:[#allocation36_spill] sm:$0xff] %v20244_v34 }
 0x7d0   : > { %14424 = vmatpush.xpose.msk.msrb.mxu1 %vm3662_vm9, %v20238_v1 }
 0x7d1   : > { %14510 = vmatpush.xpose.msk.msra.mxu2 %vm3662_vm9, %v20244_v34  ;;  %v20261_v34 = vld [vmem:[#allocation2 + $0x432] sm:$0xff] }
 0x7d2   : > { %15018 = vmatpush.xpose.msk.msrb.mxu0 %vm3662_vm9, %v23165_v13  ;;  %14596 = vmatpush.xpose.msk.msrb.mxu3 %vm3662_vm9, %v20246_v11  ;;  %v20255_v13 = vld [vmem:[#allocation2 + $0x580] sm:$0xff]  ;;  %23174 = vst [vmem:[#allocation39_spill] sm:$0xff] %v20261_v34 }
 0x7d3   : > { %23172 = vst [vmem:[#allocation37_spill] sm:$0xff] %v20255_v13 }
 0x7d4   : > { %14425 = vmatpush.xpose.msk.msrb.mxu1 %vm3662_vm9, %v7047_v14 }
 0x7d5   : > { %14511 = vmatpush.xpose.msk.msra.mxu2 %vm3662_vm9, %v7408_v27  ;;  %v20282_v27 = vld [vmem:[#allocation2 + $0x2e1] sm:$0xff] }
 0x7d6   : > { %15019 = vmatpush.xpose.msk.msrb.mxu0 %vm3662_vm9, %v23168_v28  ;;  %14597 = vmatpush.xpose.msk.msrb.mxu3 %vm3662_vm9, %v7769_v60  ;;  %v20276_v60 = vld [vmem:[%s22899_s2 + $0xb] sm:$0x1]  ;;  %v6639_v28 = vpop.f32.mrf.mxu1 }
 0x7d7   : > { %14426 = vmatmul.msk.f32.vlgmr.msrb.gmra.mxu1 %vm3662_vm9, %v19882_v63  ;;  %v20287_v63 = vadd.f32 %v6639_v28, %v20075_v16 }
 0x7d8   : > { %14479 = vmatpush.xpose.msk.msra.mxu1 %vm3662_vm9, %v20259_v5  ;;  %14512 = vmatmul.msk.f32.vlgmr.msra.gmra.mxu2 %vm3662_vm9, %v20066_v2  ;;  %v20298_v5 = vld [vmem:[#allocation2 + $0x412] sm:$0xff] }
 0x7d9   : > { %14565 = vmatpush.xpose.msk.msrb.mxu2 %vm3662_vm9, %v20261_v34  ;;  %14598 = vmatmul.msk.f32.vlgmr.msrb.gmra.mxu3 %vm3662_vm9, %v20276_v60  ;;  %v20296_v34 = vld [vmem:[#allocation2 + $0x2d1] sm:$0xff] }
 0x7da   : > { %14651 = vmatpush.xpose.msk.msra.mxu3 %vm3662_vm9, %v20255_v13  ;;  %15020 = vmatpush.xpose.msk.msrb.mxu0 %vm3662_vm9, %v20238_v1  ;;  %v20284_v13 = vld [vmem:[#allocation2 + $0x422] sm:$0xff]  ;;  %23176 = vst [vmem:[#allocation41_spill] sm:$0xff] %v20296_v34 }
 0x7db   : > { %23175 = vst [vmem:[#allocation40_spill] sm:$0xff] %v20284_v13  ;;  %v7004_v16 = vpop.f32.mrf.mxu2 }
 0x7dc   : > { %14480 = vmatpush.xpose.msk.msra.mxu1 %vm3662_vm9, %v20282_v27  ;;  %v7369_v28 = vpop.f32.mrf.mxu3 }
 0x7dd   : > { %14566 = vmatpush.xpose.msk.msrb.mxu2 %vm3662_vm9, %v20284_v13  ;;  %v20307_v13 = vadd.f32 %v7004_v16, %v20098_v56  ;;  %v20328_v56 = vld [vmem:[#allocation2 + $0x3f2] sm:$0xff]  ;;  %v23178_v16 = vld [vmem:[#allocation4_spill] sm:$0xff] }
 0x7de   : > { %14652 = vmatpush.xpose.msk.msra.mxu3 %vm3662_vm9, %v19668_v61  ;;  %15021 = vmatpush.xpose.msk.msrb.mxu0 %vm3662_vm9, %v7047_v14  ;;  %v20310_v61 = vadd.f32 %v7369_v28, %v20101_v59  ;;  %v20314_v14 = vld [vmem:[#allocation2 + $0x2c1] sm:$0xff]  ;;  %v20368_v28 = vld [vmem:[#allocation2 + $0x392] sm:$0xff] }
 0x7df   : > { %v7761_v59 = vld [vmem:[#allocation2 + $0x3c2] sm:$0xff]  ;;  %23181 = vst [vmem:[#allocation4_spill] sm:$0xff] %v20368_v28 }
 0x7e0   : > { %14481 = vmatpush.xpose.msk.msra.mxu1 %vm3662_vm9, %v20296_v34  ;;  %v20316_v34 = vld [vmem:[#allocation2 + $0x402] sm:$0xff] }
 0x7e1   : > { %14567 = vmatpush.xpose.msk.msrb.mxu2 %vm3662_vm9, %v20298_v5 }
 0x7e2   : > { %14653 = vmatpush.xpose.msk.msra.mxu3 %vm3662_vm9, %v19692_v40  ;;  %15022 = vmatpush.xpose.msk.msrb.mxu0 %vm3662_vm9, %v19607_v53  ;;  %v20326_v40 = vld [vmem:[#allocation2 + $0x2b1] sm:$0xff]  ;;  %v20338_v53 = vld [vmem:[#allocation2 + $0x2a1] sm:$0xff] }
 0x7e4   : > { %14482 = vmatpush.xpose.msk.msra.mxu1 %vm3662_vm9, %v20314_v14 }
 0x7e5   : > { %14568 = vmatpush.xpose.msk.msrb.mxu2 %vm3662_vm9, %v20316_v34 }
 0x7e6   : > { %14654 = vmatpush.xpose.msk.msra.mxu3 %vm3662_vm9, %v19702_v9  ;;  %15023 = vmatpush.xpose.msk.msrb.mxu0 %vm3662_vm9, %v19620_v46  ;;  %v20340_v9 = vld [vmem:[#allocation2 + $0x3e2] sm:$0xff]  ;;  %v20350_v46 = vld [vmem:[#allocation2 + $0x291] sm:$0xff] }
 0x7e8   : > { %14483 = vmatpush.xpose.msk.msra.mxu1 %vm3662_vm9, %v20326_v40 }
 0x7e9   : > { %14569 = vmatpush.xpose.msk.msrb.mxu2 %vm3662_vm9, %v20328_v56 }
 0x7ea   : > { %14655 = vmatpush.xpose.msk.msra.mxu3 %vm3662_vm9, %v19716_v12  ;;  %15024 = vmatpush.xpose.msk.msrb.mxu0 %vm3662_vm9, %v19632_v21  ;;  %v20352_v12 = vld [vmem:[#allocation2 + $0x3d2] sm:$0xff]  ;;  %v7400_v21 = vld [vmem:[#allocation2 + $0x281] sm:$0xff] }
 0x7eb   : > { %23177 = vst [vmem:[#allocation42_spill] sm:$0xff] %v20352_v12 }
 0x7ec   : > { %14484 = vmatpush.xpose.msk.msra.mxu1 %vm3662_vm9, %v20338_v53 }
 0x7ed   : > { %14570 = vmatpush.xpose.msk.msrb.mxu2 %vm3662_vm9, %v20340_v9 }
 0x7ee   : > { %14656 = vmatpush.xpose.msk.msra.mxu3 %vm3662_vm9, %v19730_v24  ;;  %15025 = vmatpush.xpose.msk.msrb.mxu0 %vm3662_vm9, %v19642_v20  ;;  %v23179_v20 = vld [vmem:[#allocation11_spill] sm:$0xff]  ;;  %v23180_v24 = vld [vmem:[#allocation5_spill] sm:$0xff] }
 0x7f0   : > { %14485 = vmatpush.xpose.msk.msra.mxu1 %vm3662_vm9, %v20350_v46 }
 0x7f1   : > { %14571 = vmatpush.xpose.msk.msrb.mxu2 %vm3662_vm9, %v20352_v12  ;;  %v23182_v12 = vld [vmem:[#allocation6_spill] sm:$0xff] }
 0x7f2   : > { %14657 = vmatpush.xpose.msk.msra.mxu3 %vm3662_vm9, %v19741_v52  ;;  %15026 = vmatpush.xpose.msk.msrb.mxu0 %vm3662_vm9, %v23178_v16  ;;  %v20374_v52 = vld [vmem:[#allocation2 + $0x4e0] sm:$0xff]  ;;  %v23186_v16 = vld [vmem:[#allocation7_spill] sm:$0xff] }
 0x7f3   : > { %23183 = vst [vmem:[#allocation11_spill] sm:$0xff] %v20374_v52 }
 0x7f4   : > { %14486 = vmatpush.xpose.msk.msra.mxu1 %vm3662_vm9, %v7400_v21  ;;  %v20378_v21 = vld [vmem:[#allocation2 + $0x150] sm:$0xff] }
 0x7f5   : > { %14572 = vmatpush.xpose.msk.msrb.mxu2 %vm3662_vm9, %v7761_v59  ;;  %23184 = vst [vmem:[#allocation5_spill] sm:$0xff] %v20378_v21  ;;  %v20382_v59 = vld [vmem:[#allocation2 + $0x382] sm:$0xff] }
 0x7f6   : > { %14658 = vmatpush.xpose.msk.msra.mxu3 %vm3662_vm9, %v23179_v20  ;;  %15027 = vmatpush.xpose.msk.msrb.mxu0 %vm3662_vm9, %v23180_v24  ;;  %23185 = vst [vmem:[#allocation6_spill] sm:$0xff] %v20382_v59  ;;  %v10138_v20 = vld [vmem:[#allocation2 + $0x140] sm:$0xff]  ;;  %v23187_v24 = vld [vmem:[#allocation13_spill] sm:$0xff] }
 0x7f8   : > { %14487 = vmatpush.xpose.msk.msra.mxu1 %vm3662_vm9, %v23182_v12 }
 0x7f9   : > { %14573 = vmatpush.xpose.msk.msrb.mxu2 %vm3662_vm9, %v20368_v28  ;;  %v20398_v28 = vld [vmem:[#allocation2 + $0x372] sm:$0xff] }
 0x7fa   : > { %14659 = vmatpush.xpose.msk.msra.mxu3 %vm3662_vm9, %v20374_v52  ;;  %15028 = vmatpush.xpose.msk.msrb.mxu0 %vm3662_vm9, %v20378_v21  ;;  %v15013_v52 = vld [vmem:[%s22899_s2 + $0x12] sm:$0x1]  ;;  %v23188_v21 = vld [vmem:[#allocation8_spill] sm:$0xff]  ;;  %23189 = vst [vmem:[#allocation7_spill] sm:$0xff] %v20398_v28 }
 0x7fc   : > { %14488 = vmatpush.xpose.msk.msra.mxu1 %vm3662_vm9, %v23186_v16 }
 0x7fd   : > { %14574 = vmatpush.xpose.msk.msrb.mxu2 %vm3662_vm9, %v20382_v59  ;;  %v23190_v59 = vld [vmem:[#allocation14_spill] sm:$0xff] }
 0x7fe   : > { %14660 = vmatpush.xpose.msk.msra.mxu3 %vm3662_vm9, %v23187_v24  ;;  %15029 = vmatpush.xpose.msk.msrb.mxu0 %vm3662_vm9, %v10138_v20  ;;  %v23191_v20 = vld [vmem:[#allocation9_spill] sm:$0xff]  ;;  %v23193_v24 = vld [vmem:[#allocation18_spill] sm:$0xff] }
 0x800   : > { %14489 = vmatpush.xpose.msk.msra.mxu1 %vm3662_vm9, %v23188_v21 }
 0x801   : > { %14575 = vmatpush.xpose.msk.msrb.mxu2 %vm3662_vm9, %v20398_v28  ;;  %15030 = vmatmul.msk.f32.vlgmr.msrb.gmra.mxu0 %vm3662_vm9, %v15013_v52  ;;  %v20419_v52 = vld [vmem:[#allocation2 + $0x352] sm:$0xff] }
 0x802   : > { %15083 = vmatpush.xpose.msk.msra.mxu0 %vm3662_vm9, %v23182_v12  ;;  %14661 = vmatpush.xpose.msk.msra.mxu3 %vm3662_vm9, %v23190_v59  ;;  %v20409_v12 = vld [vmem:[#allocation2 + $0x362] sm:$0xff]  ;;  %v23194_v59 = vld [vmem:[#allocation10_spill] sm:$0xff]  ;;  %23195 = vst [vmem:[#allocation8_spill] sm:$0xff] %v20419_v52 }
 0x803   : > { %23192 = vst [vmem:[#allocation13_spill] sm:$0xff] %v20409_v12  ;;  %v20435_v28 = vld [vmem:[#allocation2 + $0x1f1] sm:$0xff] }
 0x804   : > { %14490 = vmatpush.xpose.msk.msra.mxu1 %vm3662_vm9, %v23191_v20 }
 0x805   : > { %14576 = vmatpush.xpose.msk.msrb.mxu2 %vm3662_vm9, %v20409_v12  ;;  %v23197_v12 = vld [vmem:[#allocation12_spill] sm:$0xff] }
 0x806   : > { %15084 = vmatpush.xpose.msk.msra.mxu0 %vm3662_vm9, %v23186_v16  ;;  %14662 = vmatpush.xpose.msk.msra.mxu3 %vm3662_vm9, %v23193_v24  ;;  %v23196_v16 = vld [vmem:[#allocation21_spill] sm:$0xff] }
 0x807   : > { %v20429_v24 = vld [vmem:[#allocation2 + $0x342] sm:$0xff] }
 0x808   : > { %14491 = vmatpush.xpose.msk.msra.mxu1 %vm3662_vm9, %v23194_v59  ;;  %23198 = vst [vmem:[#allocation14_spill] sm:$0xff] %v20429_v24 }
 0x809   : > { %14577 = vmatpush.xpose.msk.msrb.mxu2 %vm3662_vm9, %v20419_v52  ;;  %v7753_v52 = vld [vmem:[#allocation2 + $0x322] sm:$0xff] }
 0x80a   : > { %15085 = vmatpush.xpose.msk.msra.mxu0 %vm3662_vm9, %v23188_v21  ;;  %14663 = vmatpush.xpose.msk.msra.mxu3 %vm3662_vm9, %v23196_v16  ;;  %v23199_v21 = vld [vmem:[#allocation25_spill] sm:$0xff]  ;;  %v23200_v16 = vld [vmem:[#allocation27_spill] sm:$0xff] }
 0x80c   : > { %14492 = vmatpush.xpose.msk.msra.mxu1 %vm3662_vm9, %v23197_v12 }
 0x80d   : > { %14578 = vmatpush.xpose.msk.msrb.mxu2 %vm3662_vm9, %v20429_v24  ;;  %v7392_v24 = vld [vmem:[#allocation2 + $0x1e1] sm:$0xff] }
 0x80e   : > { %15086 = vmatpush.xpose.msk.msra.mxu0 %vm3662_vm9, %v23191_v20  ;;  %14664 = vmatpush.xpose.msk.msra.mxu3 %vm3662_vm9, %v23199_v21  ;;  %v20441_v20 = vld [vmem:[#allocation2 + $0x332] sm:$0xff]  ;;  %v20455_v21 = vld [vmem:[#allocation2 + $0x440] sm:$0xff] }
 0x810   : > { %14493 = vmatpush.xpose.msk.msra.mxu1 %vm3662_vm9, %v20435_v28 }
 0x811   : > { %14579 = vmatpush.xpose.msk.msrb.mxu2 %vm3662_vm9, %v20441_v20 }
 0x812   : > { %15087 = vmatpush.xpose.msk.msra.mxu0 %vm3662_vm9, %v23194_v59  ;;  %14665 = vmatpush.xpose.msk.msra.mxu3 %vm3662_vm9, %v23200_v16  ;;  %v20453_v59 = vld [vmem:[#allocation2 + $0x2f2] sm:$0xff]  ;;  %v20461_v16 = vld [vmem:[#allocation2 + $0x581] sm:$0xff] }
 0x813   : > { %23201 = vst [vmem:[#allocation9_spill] sm:$0xff] %v20461_v16 }
 0x814   : > { %14494 = vmatpush.xpose.msk.msra.mxu1 %vm3662_vm9, %v7392_v24 }
 0x815   : > { %14580 = vmatpush.xpose.msk.msrb.mxu2 %vm3662_vm9, %v7753_v52  ;;  %v20478_v52 = vld [vmem:[#allocation2 + $0x2e2] sm:$0xff] }
 0x816   : > { %15088 = vmatpush.xpose.msk.msra.mxu0 %vm3662_vm9, %v23197_v12  ;;  %14666 = vmatpush.xpose.msk.msra.mxu3 %vm3662_vm9, %v19848_v33  ;;  %v20472_v33 = vld [vmem:[%s22899_s2 + $0xc] sm:$0x1]  ;;  %v6984_v12 = vpop.f32.mrf.mxu1  ;;  %23202 = vst [vmem:[#allocation18_spill] sm:$0xff] %v20478_v52 }
 0x817   : > { %14495 = vmatmul.msk.f32.vlgmr.msra.gmra.mxu1 %vm3662_vm9, %v20066_v2  ;;  %v20490_v2 = vld [vmem:[#allocation2 + $0x2d2] sm:$0xff] }
 0x818   : > { %14548 = vmatpush.xpose.msk.msrb.mxu1 %vm3662_vm9, %v20453_v59  ;;  %14581 = vmatmul.msk.f32.vlgmr.msrb.gmra.mxu2 %vm3662_vm9, %v20276_v60 }
 0x819   : > { %14634 = vmatpush.xpose.msk.msra.mxu2 %vm3662_vm9, %v20455_v21  ;;  %14667 = vmatmul.msk.f32.vlgmr.msra.gmra.mxu3 %vm3662_vm9, %v20472_v33 }
 0x81a   : > { %14720 = vmatpush.xpose.msk.msrb.mxu3 %vm3662_vm9, %v20461_v16  ;;  %15089 = vmatpush.xpose.msk.msra.mxu0 %vm3662_vm9, %v20435_v28  ;;  %v20481_v16 = vadd.f32 %v6984_v12, %v20287_v63 }
 0x81b   : > { %v7349_v63 = vpop.f32.mrf.mxu2 }
 0x81c   : > { %14549 = vmatpush.xpose.msk.msrb.mxu1 %vm3662_vm9, %v20478_v52  ;;  %v7714_v12 = vpop.f32.mrf.mxu3  ;;  %v20506_v52 = vld [vmem:[#allocation2 + $0x2c2] sm:$0xff] }
 0x81d   : > { %14635 = vmatpush.xpose.msk.msra.mxu2 %vm3662_vm9, %v19867_v51  ;;  %v20499_v51 = vadd.f32 %v7349_v63, %v20307_v13  ;;  %v23205_v13 = vld [vmem:[#allocation22_spill] sm:$0xff]  ;;  %v7745_v63 = vld [vmem:[#allocation2 + $0x282] sm:$0xff] }
 0x81e   : > { %14721 = vmatpush.xpose.msk.msrb.mxu3 %vm3662_vm9, %v19862_v62  ;;  %15090 = vmatpush.xpose.msk.msra.mxu0 %vm3662_vm9, %v7392_v24  ;;  %v20502_v62 = vadd.f32 %v7714_v12, %v20310_v61  ;;  %v23203_v24 = vld [vmem:[#allocation16_spill] sm:$0xff]  ;;  %v23207_v61 = vld [vmem:[#allocation26_spill] sm:$0xff] }
 0x81f   : > { %v23209_v12 = vld [vmem:[#allocation28_spill] sm:$0xff] }
 0x820   : > { %14550 = vmatpush.xpose.msk.msrb.mxu1 %vm3662_vm9, %v20490_v2 }
 0x821   : > { %14636 = vmatpush.xpose.msk.msra.mxu2 %vm3662_vm9, %v19890_v29  ;;  %v20516_v29 = vld [vmem:[#allocation2 + $0x2b2] sm:$0xff] }
 0x822   : > { %14722 = vmatpush.xpose.msk.msrb.mxu3 %vm3662_vm9, %v19886_v42  ;;  %15091 = vmatpush.xpose.msk.msra.mxu0 %vm3662_vm9, %v23203_v24  ;;  %v23204_v42 = vld [vmem:[#allocation20_spill] sm:$0xff]  ;;  %v23211_v24 = vld [vmem:[#allocation29_spill] sm:$0xff] }
 0x824   : > { %14551 = vmatpush.xpose.msk.msrb.mxu1 %vm3662_vm9, %v20506_v52 }
 0x825   : > { %14637 = vmatpush.xpose.msk.msra.mxu2 %vm3662_vm9, %v19904_v35  ;;  %v20526_v35 = vld [vmem:[#allocation2 + $0x2a2] sm:$0xff] }
 0x826   : > { %14723 = vmatpush.xpose.msk.msrb.mxu3 %vm3662_vm9, %v19900_v50  ;;  %15092 = vmatpush.xpose.msk.msra.mxu0 %vm3662_vm9, %v23204_v42  ;;  %v23206_v50 = vld [vmem:[#allocation23_spill] sm:$0xff] }
 0x827   : > { %v20553_v42 = vld [vmem:[#allocation2 + $0x252] sm:$0xff] }
 0x828   : > { %14552 = vmatpush.xpose.msk.msrb.mxu1 %vm3662_vm9, %v20516_v29 }
 0x829   : > { %14638 = vmatpush.xpose.msk.msra.mxu2 %vm3662_vm9, %v19919_v49  ;;  %v20536_v49 = vld [vmem:[#allocation2 + $0x292] sm:$0xff] }
 0x82a   : > { %14724 = vmatpush.xpose.msk.msrb.mxu3 %vm3662_vm9, %v19925_v19  ;;  %15093 = vmatpush.xpose.msk.msra.mxu0 %vm3662_vm9, %v23205_v13  ;;  %v23208_v19 = vld [vmem:[#allocation24_spill] sm:$0xff] }
 0x82b   : > { %v20555_v13 = vld [vmem:[#allocation2 + $0x3a0] sm:$0xff] }
 0x82c   : > { %14553 = vmatpush.xpose.msk.msrb.mxu1 %vm3662_vm9, %v20526_v35 }
 0x82d   : > { %14639 = vmatpush.xpose.msk.msra.mxu2 %vm3662_vm9, %v19930_v57  ;;  %v23210_v57 = vld [vmem:[#allocation30_spill] sm:$0xff] }
 0x82e   : > { %14725 = vmatpush.xpose.msk.msrb.mxu3 %vm3662_vm9, %v23206_v50  ;;  %15094 = vmatpush.xpose.msk.msra.mxu0 %vm3662_vm9, %v23207_v61  ;;  %v20569_v50 = vld [vmem:[#allocation2 + $0x242] sm:$0xff]  ;;  %v20571_v61 = vld [vmem:[#allocation2 + $0x390] sm:$0xff] }
 0x830   : > { %14554 = vmatpush.xpose.msk.msrb.mxu1 %vm3662_vm9, %v20536_v49 }
 0x831   : > { %14640 = vmatpush.xpose.msk.msra.mxu2 %vm3662_vm9, %v23208_v19  ;;  %v10483_v19 = vld [vmem:[#allocation2 + $0x141] sm:$0xff] }
 0x832   : > { %14726 = vmatpush.xpose.msk.msrb.mxu3 %vm3662_vm9, %v19947_v58  ;;  %15095 = vmatpush.xpose.msk.msra.mxu0 %vm3662_vm9, %v23209_v12  ;;  %v20561_v58 = vld [vmem:[#allocation2 + $0x4e1] sm:$0xff]  ;;  %v15082_v12 = vld [vmem:[%s22899_s2 + $0x13] sm:$0x1] }
 0x834   : > { %14555 = vmatpush.xpose.msk.msrb.mxu1 %vm3662_vm9, %v7745_v63  ;;  %v20580_v63 = vld [vmem:[#allocation2 + $0x232] sm:$0xff] }
 0x835   : > { %14641 = vmatpush.xpose.msk.msra.mxu2 %vm3662_vm9, %v19952_v43  ;;  %v20565_v43 = vld [vmem:[#allocation2 + $0x151] sm:$0xff] }
 0x836   : > { %14727 = vmatpush.xpose.msk.msrb.mxu3 %vm3662_vm9, %v23210_v57  ;;  %15096 = vmatpush.xpose.msk.msra.mxu0 %vm3662_vm9, %v23211_v24  ;;  %v20589_v57 = vld [vmem:[#allocation2 + $0x380] sm:$0xff]  ;;  %v20602_v24 = vld [vmem:[#allocation2 + $0x370] sm:$0xff] }
 0x838   : > { %14556 = vmatpush.xpose.msk.msrb.mxu1 %vm3662_vm9, %v20553_v42 }
 0x839   : > { %14642 = vmatpush.xpose.msk.msra.mxu2 %vm3662_vm9, %v20555_v13 }
 0x83a   : > { %14728 = vmatpush.xpose.msk.msrb.mxu3 %vm3662_vm9, %v20561_v58  ;;  %15097 = vmatpush.xpose.msk.msra.mxu0 %vm3662_vm9, %v20565_v43 }
 0x83c   : > { %14557 = vmatpush.xpose.msk.msrb.mxu1 %vm3662_vm9, %v20569_v50 }
 0x83d   : > { %14643 = vmatpush.xpose.msk.msra.mxu2 %vm3662_vm9, %v20571_v61 }
 0x83e   : > { %14729 = vmatpush.xpose.msk.msrb.mxu3 %vm3662_vm9, %v19971_v44  ;;  %15098 = vmatpush.xpose.msk.msra.mxu0 %vm3662_vm9, %v10483_v19  ;;  %v20596_v44 = vld [vmem:[#allocation2 + $0x222] sm:$0xff]  ;;  %v20608_v19 = vld [vmem:[#allocation2 + $0x212] sm:$0xff] }
 0x83f   : > { %23212 = vst [vmem:[#allocation10_spill] sm:$0xff] %v20608_v19 }
 0x840   : > { %14558 = vmatpush.xpose.msk.msrb.mxu1 %vm3662_vm9, %v20580_v63 }
 0x841   : > { %14644 = vmatpush.xpose.msk.msra.mxu2 %vm3662_vm9, %v20589_v57  ;;  %15099 = vmatmul.msk.f32.vlgmr.msra.gmra.mxu0 %vm3662_vm9, %v15082_v12  ;;  %v20620_v12 = vld [vmem:[#allocation2 + $0x202] sm:$0xff] }
 0x842   : > { %15152 = vmatpush.xpose.msk.msrb.mxu0 %vm3662_vm9, %v20553_v42  ;;  %14730 = vmatpush.xpose.msk.msrb.mxu3 %vm3662_vm9, %v19980_v48  ;;  %v20614_v48 = vld [vmem:[#allocation2 + $0x360] sm:$0xff] }
 0x843   : > { %23213 = vst [vmem:[#allocation21_spill] sm:$0xff] %v20614_v48 }
 0x844   : > { %14559 = vmatpush.xpose.msk.msrb.mxu1 %vm3662_vm9, %v20596_v44 }
 0x845   : > { %14645 = vmatpush.xpose.msk.msra.mxu2 %vm3662_vm9, %v20602_v24 }
 0x846   : > { %15153 = vmatpush.xpose.msk.msrb.mxu0 %vm3662_vm9, %v20569_v50  ;;  %14731 = vmatpush.xpose.msk.msrb.mxu3 %vm3662_vm9, %v19991_v45  ;;  %v20626_v45 = vld [vmem:[#allocation2 + $0x350] sm:$0xff] }
 0x847   : > { %23214 = vst [vmem:[#allocation12_spill] sm:$0xff] %v20626_v45 }
 0x848   : > { %14560 = vmatpush.xpose.msk.msrb.mxu1 %vm3662_vm9, %v20608_v19 }
 0x849   : > { %14646 = vmatpush.xpose.msk.msra.mxu2 %vm3662_vm9, %v20614_v48  ;;  %v20632_v48 = vld [vmem:[#allocation2 + $0x1f2] sm:$0xff] }
 0x84a   : > { %15154 = vmatpush.xpose.msk.msrb.mxu0 %vm3662_vm9, %v20580_v63  ;;  %14732 = vmatpush.xpose.msk.msrb.mxu3 %vm3662_vm9, %v20002_v36  ;;  %v20638_v36 = vld [vmem:[#allocation2 + $0x340] sm:$0xff] }
 0x84c   : > { %14561 = vmatpush.xpose.msk.msrb.mxu1 %vm3662_vm9, %v20620_v12 }
 0x84d   : > { %14647 = vmatpush.xpose.msk.msra.mxu2 %vm3662_vm9, %v20626_v45  ;;  %v7737_v45 = vld [vmem:[#allocation2 + $0x1e2] sm:$0xff] }
 0x84e   : > { %15155 = vmatpush.xpose.msk.msrb.mxu0 %vm3662_vm9, %v20596_v44  ;;  %14733 = vmatpush.xpose.msk.msrb.mxu3 %vm3662_vm9, %v20015_v10  ;;  %v20651_v10 = vld [vmem:[#allocation2 + $0x300] sm:$0xff] }
 0x850   : > { %14562 = vmatpush.xpose.msk.msrb.mxu1 %vm3662_vm9, %v20632_v48 }
 0x851   : > { %14648 = vmatpush.xpose.msk.msra.mxu2 %vm3662_vm9, %v20638_v36 }
 0x852   : > { %15156 = vmatpush.xpose.msk.msrb.mxu0 %vm3662_vm9, %v20608_v19  ;;  %14734 = vmatpush.xpose.msk.msrb.mxu3 %vm3662_vm9, %v20025_v47  ;;  %v20653_v19 = vld [vmem:[#allocation2 + $0x441] sm:$0xff] }
 0x853   : > { %23215 = vst [vmem:[#allocation25_spill] sm:$0xff] %v20653_v19  ;;  %v20659_v47 = vld [vmem:[#allocation2 + $0x582] sm:$0xff] }
 0x854   : > { %14563 = vmatpush.xpose.msk.msrb.mxu1 %vm3662_vm9, %v7737_v45  ;;  %23216 = vst [vmem:[#allocation27_spill] sm:$0xff] %v20659_v47 }
 0x855   : > { %14649 = vmatpush.xpose.msk.msra.mxu2 %vm3662_vm9, %v20035_v17  ;;  %v20670_v17 = vld [vmem:[%s22899_s2 + $0xd] sm:$0x1] }
 0x856   : > { %15157 = vmatpush.xpose.msk.msrb.mxu0 %vm3662_vm9, %v20620_v12  ;;  %14735 = vmatpush.xpose.msk.msrb.mxu3 %vm3662_vm9, %v20037_v15  ;;  %v7329_v15 = vpop.f32.mrf.mxu1 }
 0x857   : > { %14564 = vmatmul.msk.f32.vlgmr.msrb.gmra.mxu1 %vm3662_vm9, %v20276_v60  ;;  %v20688_v60 = vld [vmem:[#allocation2 + $0x2e0] sm:$0xff] }
 0x858   : > { %14617 = vmatpush.xpose.msk.msra.mxu1 %vm3662_vm9, %v20651_v10  ;;  %14650 = vmatmul.msk.f32.vlgmr.msra.gmra.mxu2 %vm3662_vm9, %v20472_v33 }
 0x859   : > { %14703 = vmatpush.xpose.msk.msrb.mxu2 %vm3662_vm9, %v20653_v19  ;;  %14736 = vmatmul.msk.f32.vlgmr.msrb.gmra.mxu3 %vm3662_vm9, %v20670_v17  ;;  %v20676_v19 = vld [vmem:[#allocation2 + $0x2f0] sm:$0xff] }
 0x85a   : > { %14789 = vmatpush.xpose.msk.msra.mxu3 %vm3662_vm9, %v20659_v47  ;;  %15158 = vmatpush.xpose.msk.msrb.mxu0 %vm3662_vm9, %v20632_v48  ;;  %23217 = vst [vmem:[#allocation16_spill] sm:$0xff] %v20676_v19  ;;  %v20679_v47 = vadd.f32 %v7329_v15, %v20481_v16 }
 0x85b   : > { %v7694_v16 = vpop.f32.mrf.mxu2 }
 0x85c   : > { %14618 = vmatpush.xpose.msk.msra.mxu1 %vm3662_vm9, %v20676_v19  ;;  %v8059_v15 = vpop.f32.mrf.mxu3  ;;  %v20696_v19 = vld [vmem:[#allocation2 + $0x1b2] sm:$0xff] }
 0x85d   : > { %14704 = vmatpush.xpose.msk.msrb.mxu2 %vm3662_vm9, %v20049_v30  ;;  %v20699_v30 = vadd.f32 %v7694_v16, %v20499_v51  ;;  %v10828_v51 = vld [vmem:[#allocation2 + $0x142] sm:$0xff]  ;;  %v15151_v16 = vld [vmem:[%s22899_s2 + $0x14] sm:$0x1] }
 0x85e   : > { %14790 = vmatpush.xpose.msk.msra.mxu3 %vm3662_vm9, %v20055_v26  ;;  %15159 = vmatpush.xpose.msk.msrb.mxu0 %vm3662_vm9, %v7737_v45  ;;  %v20702_v26 = vadd.f32 %v8059_v15, %v20502_v62  ;;  %v20706_v45 = vld [vmem:[#allocation2 + $0x2d0] sm:$0xff]  ;;  %v20789_v62 = vld [vmem:[#allocation2 + $0x240] sm:$0xff] }
 0x85f   : > { %v23220_v15 = vld [vmem:[#allocation32_spill] sm:$0xff] }
 0x860   : > { %14619 = vmatpush.xpose.msk.msra.mxu1 %vm3662_vm9, %v20688_v60 }
 0x861   : > { %14705 = vmatpush.xpose.msk.msrb.mxu2 %vm3662_vm9, %v20072_v4  ;;  %v20714_v4 = vld [vmem:[#allocation2 + $0x1a2] sm:$0xff] }
 0x862   : > { %14791 = vmatpush.xpose.msk.msra.mxu3 %vm3662_vm9, %v20081_v39  ;;  %15160 = vmatpush.xpose.msk.msrb.mxu0 %vm3662_vm9, %v20696_v19  ;;  %v20718_v39 = vld [vmem:[#allocation2 + $0x2c0] sm:$0xff] }
 0x864   : > { %14620 = vmatpush.xpose.msk.msra.mxu1 %vm3662_vm9, %v20706_v45 }
 0x865   : > { %14706 = vmatpush.xpose.msk.msrb.mxu2 %vm3662_vm9, %v20087_v8  ;;  %v20726_v8 = vld [vmem:[#allocation2 + $0x192] sm:$0xff] }
 0x866   : > { %14792 = vmatpush.xpose.msk.msra.mxu3 %vm3662_vm9, %v20093_v54  ;;  %15161 = vmatpush.xpose.msk.msrb.mxu0 %vm3662_vm9, %v20714_v4  ;;  %v20730_v54 = vld [vmem:[#allocation2 + $0x2b0] sm:$0xff] }
 0x868   : > { %14621 = vmatpush.xpose.msk.msra.mxu1 %vm3662_vm9, %v20718_v39 }
 0x869   : > { %14707 = vmatpush.xpose.msk.msrb.mxu2 %vm3662_vm9, %v20104_v23  ;;  %v20738_v23 = vld [vmem:[#allocation2 + $0x182] sm:$0xff] }
 0x86a   : > { %14793 = vmatpush.xpose.msk.msra.mxu3 %vm3662_vm9, %v20110_v22  ;;  %15162 = vmatpush.xpose.msk.msrb.mxu0 %vm3662_vm9, %v20726_v8  ;;  %v20742_v22 = vld [vmem:[#allocation2 + $0x2a0] sm:$0xff] }
 0x86c   : > { %14622 = vmatpush.xpose.msk.msra.mxu1 %vm3662_vm9, %v20730_v54 }
 0x86d   : > { %14708 = vmatpush.xpose.msk.msrb.mxu2 %vm3662_vm9, %v20116_v38  ;;  %v20750_v38 = vld [vmem:[#allocation2 + $0x172] sm:$0xff] }
 0x86e   : > { %14794 = vmatpush.xpose.msk.msra.mxu3 %vm3662_vm9, %v20122_v25  ;;  %15163 = vmatpush.xpose.msk.msrb.mxu0 %vm3662_vm9, %v20738_v23  ;;  %v20760_v25 = vld [vmem:[#allocation2 + $0x162] sm:$0xff] }
 0x870   : > { %14623 = vmatpush.xpose.msk.msra.mxu1 %vm3662_vm9, %v20742_v22 }
 0x871   : > { %14709 = vmatpush.xpose.msk.msrb.mxu2 %vm3662_vm9, %v20128_v3  ;;  %v20764_v3 = vld [vmem:[#allocation2 + $0x260] sm:$0xff] }
 0x872   : > { %14795 = vmatpush.xpose.msk.msra.mxu3 %vm3662_vm9, %v20134_v0  ;;  %15164 = vmatpush.xpose.msk.msrb.mxu0 %vm3662_vm9, %v20750_v38  ;;  %v20766_v0 = vld [vmem:[#allocation2 + $0x3a1] sm:$0xff] }
 0x874   : > { %14624 = vmatpush.xpose.msk.msra.mxu1 %vm3662_vm9, %v20140_v41  ;;  %v20772_v41 = vld [vmem:[#allocation2 + $0x4e2] sm:$0xff] }
 0x875   : > { %14710 = vmatpush.xpose.msk.msrb.mxu2 %vm3662_vm9, %v20142_v31  ;;  %v20776_v31 = vld [vmem:[#allocation2 + $0x152] sm:$0xff] }
 0x876   : > { %14796 = vmatpush.xpose.msk.msra.mxu3 %vm3662_vm9, %v20148_v6  ;;  %15165 = vmatpush.xpose.msk.msrb.mxu0 %vm3662_vm9, %v20760_v25  ;;  %v20780_v6 = vld [vmem:[#allocation2 + $0x250] sm:$0xff] }
 0x878   : > { %14625 = vmatpush.xpose.msk.msra.mxu1 %vm3662_vm9, %v20764_v3 }
 0x879   : > { %14711 = vmatpush.xpose.msk.msrb.mxu2 %vm3662_vm9, %v20766_v0 }
 0x87a   : > { %14797 = vmatpush.xpose.msk.msra.mxu3 %vm3662_vm9, %v20772_v41  ;;  %15166 = vmatpush.xpose.msk.msrb.mxu0 %vm3662_vm9, %v20776_v31 }
 0x87c   : > { %14626 = vmatpush.xpose.msk.msra.mxu1 %vm3662_vm9, %v20780_v6 }
 0x87d   : > { %14712 = vmatpush.xpose.msk.msrb.mxu2 %vm3662_vm9, %v20159_v55  ;;  %v23218_v55 = vld [vmem:[#allocation31_spill] sm:$0xff] }
 0x87e   : > { %14798 = vmatpush.xpose.msk.msra.mxu3 %vm3662_vm9, %v20165_v7  ;;  %15167 = vmatpush.xpose.msk.msrb.mxu0 %vm3662_vm9, %v10828_v51  ;;  %v20803_v7 = vld [vmem:[#allocation2 + $0x230] sm:$0xff]  ;;  %v23222_v51 = vld [vmem:[#allocation15_spill] sm:$0xff] }
 0x87f   : > { %23219 = vst [vmem:[#allocation20_spill] sm:$0xff] %v20803_v7 }
 0x880   : > { %14627 = vmatpush.xpose.msk.msra.mxu1 %vm3662_vm9, %v20789_v62 }
 0x881   : > { %14713 = vmatpush.xpose.msk.msrb.mxu2 %vm3662_vm9, %v20171_v32  ;;  %15168 = vmatmul.msk.f32.vlgmr.msrb.gmra.mxu0 %vm3662_vm9, %v15151_v16  ;;  %v20813_v32 = vld [vmem:[#allocation2 + $0x220] sm:$0xff]  ;;  %v20823_v16 = vld [vmem:[#allocation2 + $0x210] sm:$0xff] }
 0x882   : > { %15221 = vmatpush.xpose.msk.msra.mxu0 %vm3662_vm9, %v20764_v3  ;;  %14799 = vmatpush.xpose.msk.msra.mxu3 %vm3662_vm9, %v23218_v55  ;;  %23221 = vst [vmem:[#allocation22_spill] sm:$0xff] %v20813_v32  ;;  %v23224_v55 = vld [vmem:[#allocation34_spill] sm:$0xff] }
 0x884   : > { %14628 = vmatpush.xpose.msk.msra.mxu1 %vm3662_vm9, %v20803_v7 }
 0x885   : > { %14714 = vmatpush.xpose.msk.msrb.mxu2 %vm3662_vm9, %v20190_v18  ;;  %v23223_v18 = vld [vmem:[#allocation17_spill] sm:$0xff] }
 0x886   : > { %15222 = vmatpush.xpose.msk.msra.mxu0 %vm3662_vm9, %v20780_v6  ;;  %14800 = vmatpush.xpose.msk.msra.mxu3 %vm3662_vm9, %v23220_v15  ;;  %v20833_v15 = vld [vmem:[#allocation2 + $0x200] sm:$0xff] }
 0x888   : > { %14629 = vmatpush.xpose.msk.msra.mxu1 %vm3662_vm9, %v20813_v32 }
 0x889   : > { %14715 = vmatpush.xpose.msk.msrb.mxu2 %vm3662_vm9, %v20203_v37  ;;  %v23225_v37 = vld [vmem:[#allocation19_spill] sm:$0xff] }
 0x88a   : > { %15223 = vmatpush.xpose.msk.msra.mxu0 %vm3662_vm9, %v20789_v62  ;;  %14801 = vmatpush.xpose.msk.msra.mxu3 %vm3662_vm9, %v23222_v51  ;;  %v23226_v51 = vld [vmem:[#allocation35_spill] sm:$0xff] }
 0x88c   : > { %14630 = vmatpush.xpose.msk.msra.mxu1 %vm3662_vm9, %v20823_v16 }
 0x88d   : > { %14716 = vmatpush.xpose.msk.msrb.mxu2 %vm3662_vm9, %v23223_v18  ;;  %v9165_v18 = vld [vmem:[#allocation2 + $0x590] sm:$0xff] }
 0x88e   : > { %15224 = vmatpush.xpose.msk.msra.mxu0 %vm3662_vm9, %v20803_v7  ;;  %14802 = vmatpush.xpose.msk.msra.mxu3 %vm3662_vm9, %v23224_v55  ;;  %v23227_v55 = vld [vmem:[#allocation36_spill] sm:$0xff] }
 0x88f   : > { %v20853_v7 = vld [vmem:[#allocation2 + $0x442] sm:$0xff] }
 0x890   : > { %14631 = vmatpush.xpose.msk.msra.mxu1 %vm3662_vm9, %v20833_v15  ;;  %23228 = vst [vmem:[#allocation23_spill] sm:$0xff] %v20853_v7 }
 0x891   : > { %14717 = vmatpush.xpose.msk.msrb.mxu2 %vm3662_vm9, %v23225_v37 }
 0x892   : > { %15225 = vmatpush.xpose.msk.msra.mxu0 %vm3662_vm9, %v20813_v32  ;;  %14803 = vmatpush.xpose.msk.msra.mxu3 %vm3662_vm9, %v23226_v51  ;;  %v20851_v32 = vld [vmem:[#allocation2 + $0x301] sm:$0xff] }
 0x894   : > { %14632 = vmatpush.xpose.msk.msra.mxu1 %vm3662_vm9, %v20238_v1  ;;  %v7674_v37 = vpop.f32.mrf.mxu1 }
 0x895   : > { %14718 = vmatpush.xpose.msk.msrb.mxu2 %vm3662_vm9, %v23227_v55  ;;  %v20874_v51 = vadd.f32 %v7674_v37, %v20679_v47  ;;  %v23231_v55 = vld [vmem:[#allocation37_spill] sm:$0xff]  ;;  %v20888_v47 = vld [vmem:[#allocation2 + $0x570] sm:$0xff] }
 0x896   : > { %15226 = vmatpush.xpose.msk.msra.mxu0 %vm3662_vm9, %v20823_v16  ;;  %14804 = vmatpush.xpose.msk.msra.mxu3 %vm3662_vm9, %v20246_v11  ;;  %v20867_v11 = vld [vmem:[%s22899_s2 + $0xe] sm:$0x1]  ;;  %23233 = vst [vmem:[#allocation26_spill] sm:$0xff] %v20888_v47 }
 0x897   : > { %14633 = vmatmul.msk.f32.vlgmr.msra.gmra.mxu1 %vm3662_vm9, %v20472_v33  ;;  %v23230_v33 = vld [vmem:[#allocation39_spill] sm:$0xff] }
 0x898   : > { %14686 = vmatpush.xpose.msk.msrb.mxu1 %vm3662_vm9, %v20851_v32  ;;  %14719 = vmatmul.msk.f32.vlgmr.msrb.gmra.mxu2 %vm3662_vm9, %v20670_v17 }
 0x899   : > { %14772 = vmatpush.xpose.msk.msra.mxu2 %vm3662_vm9, %v20853_v7  ;;  %14805 = vmatmul.msk.f32.vlgmr.msra.gmra.mxu3 %vm3662_vm9, %v20867_v11  ;;  %v23232_v7 = vld [vmem:[#allocation40_spill] sm:$0xff] }
 0x89a   : > { %14858 = vmatpush.xpose.msk.msrb.mxu3 %vm3662_vm9, %v9165_v18  ;;  %15227 = vmatpush.xpose.msk.msra.mxu0 %vm3662_vm9, %v20833_v15  ;;  %v23229_v18 = vld [vmem:[#allocation38_spill] sm:$0xff] }
 0x89b   : > { %v8039_v37 = vpop.f32.mrf.mxu2 }
 0x89c   : > { %14687 = vmatpush.xpose.msk.msrb.mxu1 %vm3662_vm9, %v23229_v18  ;;  %v8404_v18 = vpop.f32.mrf.mxu3 }
 0x89d   : > { %14773 = vmatpush.xpose.msk.msra.mxu2 %vm3662_vm9, %v23230_v33  ;;  %v20892_v33 = vld [vmem:[#allocation2 + $0x1c0] sm:$0xff] }
 0x89e   : > { %14859 = vmatpush.xpose.msk.msrb.mxu3 %vm3662_vm9, %v23231_v55  ;;  %15228 = vmatpush.xpose.msk.msra.mxu0 %vm3662_vm9, %v20238_v1  ;;  %v20895_v55 = vadd.f32 %v8039_v37, %v20699_v30  ;;  %v20898_v1 = vadd.f32 %v8404_v18, %v20702_v26  ;;  %v20918_v30 = vld [vmem:[#allocation2 + $0x550] sm:$0xff]  ;;  %v20962_v18 = vld [vmem:[#allocation2 + $0x261] sm:$0xff] }
 0x89f   : > { %23236 = vst [vmem:[#allocation28_spill] sm:$0xff] %v20918_v30  ;;  %v23239_v26 = vld [vmem:[#allocation42_spill] sm:$0xff] }
 0x8a0   : > { %14688 = vmatpush.xpose.msk.msrb.mxu1 %vm3662_vm9, %v20282_v27  ;;  %v23234_v27 = vld [vmem:[#allocation41_spill] sm:$0xff]  ;;  %v9157_v37 = vld [vmem:[#allocation2 + $0x4f0] sm:$0xff] }
 0x8a1   : > { %14774 = vmatpush.xpose.msk.msra.mxu2 %vm3662_vm9, %v23232_v7  ;;  %v20906_v7 = vld [vmem:[#allocation2 + $0x560] sm:$0xff] }
 0x8a2   : > { %14860 = vmatpush.xpose.msk.msrb.mxu3 %vm3662_vm9, %v20888_v47  ;;  %15229 = vmatpush.xpose.msk.msra.mxu0 %vm3662_vm9, %v20892_v33  ;;  %23235 = vst [vmem:[#allocation24_spill] sm:$0xff] %v20906_v7  ;;  %v20910_v47 = vld [vmem:[#allocation2 + $0x1b0] sm:$0xff] }
 0x8a4   : > { %14689 = vmatpush.xpose.msk.msrb.mxu1 %vm3662_vm9, %v23234_v27  ;;  %v20964_v27 = vld [vmem:[#allocation2 + $0x3a2] sm:$0xff] }
 0x8a5   : > { %14775 = vmatpush.xpose.msk.msra.mxu2 %vm3662_vm9, %v20298_v5  ;;  %v20922_v5 = vld [vmem:[#allocation2 + $0x1a0] sm:$0xff] }
 0x8a6   : > { %14861 = vmatpush.xpose.msk.msrb.mxu3 %vm3662_vm9, %v20906_v7  ;;  %15230 = vmatpush.xpose.msk.msra.mxu0 %vm3662_vm9, %v20910_v47  ;;  %v23250_v7 = vld [vmem:[#allocation7_spill] sm:$0xff] }
 0x8a8   : > { %14690 = vmatpush.xpose.msk.msrb.mxu1 %vm3662_vm9, %v20314_v14  ;;  %v20930_v14 = vld [vmem:[#allocation2 + $0x540] sm:$0xff] }
 0x8a9   : > { %14776 = vmatpush.xpose.msk.msra.mxu2 %vm3662_vm9, %v20316_v34  ;;  %23237 = vst [vmem:[#allocation30_spill] sm:$0xff] %v20930_v14  ;;  %v20934_v34 = vld [vmem:[#allocation2 + $0x190] sm:$0xff] }
 0x8aa   : > { %14862 = vmatpush.xpose.msk.msrb.mxu3 %vm3662_vm9, %v20918_v30  ;;  %15231 = vmatpush.xpose.msk.msra.mxu0 %vm3662_vm9, %v20922_v5  ;;  %v15220_v30 = vld [vmem:[%s22899_s2 + $0x15] sm:$0x1] }
 0x8ac   : > { %14691 = vmatpush.xpose.msk.msrb.mxu1 %vm3662_vm9, %v20326_v40  ;;  %v20942_v40 = vld [vmem:[#allocation2 + $0x530] sm:$0xff] }
 0x8ad   : > { %14777 = vmatpush.xpose.msk.msra.mxu2 %vm3662_vm9, %v20328_v56  ;;  %23238 = vst [vmem:[#allocation29_spill] sm:$0xff] %v20942_v40  ;;  %v20946_v56 = vld [vmem:[#allocation2 + $0x180] sm:$0xff] }
 0x8ae   : > { %14863 = vmatpush.xpose.msk.msrb.mxu3 %vm3662_vm9, %v20930_v14  ;;  %15232 = vmatpush.xpose.msk.msra.mxu0 %vm3662_vm9, %v20934_v34  ;;  %v23244_v14 = vld [vmem:[#allocation5_spill] sm:$0xff] }
 0x8b0   : > { %14692 = vmatpush.xpose.msk.msrb.mxu1 %vm3662_vm9, %v20338_v53  ;;  %v20954_v53 = vld [vmem:[#allocation2 + $0x520] sm:$0xff] }
 0x8b1   : > { %14778 = vmatpush.xpose.msk.msra.mxu2 %vm3662_vm9, %v20340_v9  ;;  %23240 = vst [vmem:[#allocation31_spill] sm:$0xff] %v20954_v53  ;;  %v20958_v9 = vld [vmem:[#allocation2 + $0x170] sm:$0xff] }
 0x8b2   : > { %14864 = vmatpush.xpose.msk.msrb.mxu3 %vm3662_vm9, %v20942_v40  ;;  %15233 = vmatpush.xpose.msk.msra.mxu0 %vm3662_vm9, %v20946_v56  ;;  %v23243_v40 = vld [vmem:[#allocation11_spill] sm:$0xff] }
 0x8b4   : > { %14693 = vmatpush.xpose.msk.msrb.mxu1 %vm3662_vm9, %v20350_v46  ;;  %v20971_v46 = vld [vmem:[#allocation2 + $0x160] sm:$0xff] }
 0x8b5   : > { %14779 = vmatpush.xpose.msk.msra.mxu2 %vm3662_vm9, %v23239_v26  ;;  %23241 = vst [vmem:[#allocation32_spill] sm:$0xff] %v20971_v46  ;;  %v20975_v26 = vld [vmem:[#allocation2 + $0x251] sm:$0xff] }
 0x8b6   : > { %14865 = vmatpush.xpose.msk.msrb.mxu3 %vm3662_vm9, %v20954_v53  ;;  %15234 = vmatpush.xpose.msk.msra.mxu0 %vm3662_vm9, %v20958_v9  ;;  %v23242_v53 = vld [vmem:[#allocation4_spill] sm:$0xff] }
 0x8b8   : > { %14694 = vmatpush.xpose.msk.msrb.mxu1 %vm3662_vm9, %v20962_v18 }
 0x8b9   : > { %14780 = vmatpush.xpose.msk.msra.mxu2 %vm3662_vm9, %v20964_v27 }
 0x8ba   : > { %14866 = vmatpush.xpose.msk.msrb.mxu3 %vm3662_vm9, %v9157_v37  ;;  %15235 = vmatpush.xpose.msk.msra.mxu0 %vm3662_vm9, %v20971_v46  ;;  %v20985_v37 = vld [vmem:[#allocation2 + $0x241] sm:$0xff]  ;;  %v20994_v46 = vld [vmem:[#allocation2 + $0x4d0] sm:$0xff] }
 0x8bb   : > { %23245 = vst [vmem:[#allocation15_spill] sm:$0xff] %v20985_v37 }
 0x8bc   : > { %14695 = vmatpush.xpose.msk.msrb.mxu1 %vm3662_vm9, %v20975_v26  ;;  %23246 = vst [vmem:[#allocation17_spill] sm:$0xff] %v20994_v46 }
 0x8bd   : > { %14781 = vmatpush.xpose.msk.msra.mxu2 %vm3662_vm9, %v23242_v53  ;;  %v23247_v53 = vld [vmem:[#allocation6_spill] sm:$0xff] }
 0x8be   : > { %14867 = vmatpush.xpose.msk.msrb.mxu3 %vm3662_vm9, %v23243_v40  ;;  %15236 = vmatpush.xpose.msk.msra.mxu0 %vm3662_vm9, %v23244_v14  ;;  %v21001_v14 = vld [vmem:[#allocation2 + $0x231] sm:$0xff]  ;;  %v21007_v40 = vld [vmem:[#allocation2 + $0x4c0] sm:$0xff] }
 0x8bf   : > { %23248 = vst [vmem:[#allocation34_spill] sm:$0xff] %v21001_v14 }
 0x8c0   : > { %14696 = vmatpush.xpose.msk.msrb.mxu1 %vm3662_vm9, %v20985_v37  ;;  %23249 = vst [vmem:[#allocation19_spill] sm:$0xff] %v21007_v40 }
 0x8c1   : > { %14782 = vmatpush.xpose.msk.msra.mxu2 %vm3662_vm9, %v23247_v53  ;;  %15237 = vmatmul.msk.f32.vlgmr.msra.gmra.mxu0 %vm3662_vm9, %v15220_v30  ;;  %v21013_v53 = vld [vmem:[#allocation2 + $0x221] sm:$0xff]  ;;  %v21019_v30 = vld [vmem:[#allocation2 + $0x4b0] sm:$0xff] }
 0x8c2   : > { %15290 = vmatpush.xpose.msk.msrb.mxu0 %vm3662_vm9, %v20962_v18  ;;  %14868 = vmatpush.xpose.msk.msrb.mxu3 %vm3662_vm9, %v20994_v46  ;;  %23251 = vst [vmem:[#allocation35_spill] sm:$0xff] %v21013_v53  ;;  %v23253_v46 = vld [vmem:[#allocation13_spill] sm:$0xff] }
 0x8c3   : > { %23252 = vst [vmem:[#allocation36_spill] sm:$0xff] %v21019_v30 }
 0x8c4   : > { %14697 = vmatpush.xpose.msk.msrb.mxu1 %vm3662_vm9, %v21001_v14 }
 0x8c5   : > { %14783 = vmatpush.xpose.msk.msra.mxu2 %vm3662_vm9, %v23250_v7  ;;  %v21025_v7 = vld [vmem:[#allocation2 + $0x211] sm:$0xff] }
 0x8c6   : > { %15291 = vmatpush.xpose.msk.msrb.mxu0 %vm3662_vm9, %v20975_v26  ;;  %14869 = vmatpush.xpose.msk.msrb.mxu3 %vm3662_vm9, %v21007_v40  ;;  %v21031_v40 = vld [vmem:[#allocation2 + $0x4a0] sm:$0xff] }
 0x8c7   : > { %23254 = vst [vmem:[#allocation38_spill] sm:$0xff] %v21031_v40 }
 0x8c8   : > { %14698 = vmatpush.xpose.msk.msrb.mxu1 %vm3662_vm9, %v21013_v53 }
 0x8c9   : > { %14784 = vmatpush.xpose.msk.msra.mxu2 %vm3662_vm9, %v23253_v46  ;;  %v21037_v46 = vld [vmem:[#allocation2 + $0x201] sm:$0xff] }
 0x8ca   : > { %15292 = vmatpush.xpose.msk.msrb.mxu0 %vm3662_vm9, %v20985_v37  ;;  %14870 = vmatpush.xpose.msk.msrb.mxu3 %vm3662_vm9, %v21019_v30  ;;  %v23255_v37 = vld [vmem:[#allocation8_spill] sm:$0xff]  ;;  %v21043_v30 = vld [vmem:[#allocation2 + $0x490] sm:$0xff] }
 0x8cb   : > { %23256 = vst [vmem:[#allocation39_spill] sm:$0xff] %v21043_v30 }
 0x8cc   : > { %14699 = vmatpush.xpose.msk.msrb.mxu1 %vm3662_vm9, %v21025_v7 }
 0x8cd   : > { %14785 = vmatpush.xpose.msk.msra.mxu2 %vm3662_vm9, %v23255_v37  ;;  %v9149_v37 = vld [vmem:[#allocation2 + $0x450] sm:$0xff] }
 0x8ce   : > { %15293 = vmatpush.xpose.msk.msrb.mxu0 %vm3662_vm9, %v21001_v14  ;;  %14871 = vmatpush.xpose.msk.msrb.mxu3 %vm3662_vm9, %v21031_v40  ;;  %v23257_v14 = vld [vmem:[#allocation14_spill] sm:$0xff]  ;;  %v21053_v40 = vld [vmem:[#allocation2 + $0x480] sm:$0xff] }
 0x8cf   : > { %23258 = vst [vmem:[#allocation37_spill] sm:$0xff] %v21053_v40 }
 0x8d0   : > { %14700 = vmatpush.xpose.msk.msrb.mxu1 %vm3662_vm9, %v21037_v46 }
 0x8d1   : > { %14786 = vmatpush.xpose.msk.msra.mxu2 %vm3662_vm9, %v23257_v14  ;;  %v21059_v14 = vld [vmem:[#allocation2 + $0x302] sm:$0xff] }
 0x8d2   : > { %15294 = vmatpush.xpose.msk.msrb.mxu0 %vm3662_vm9, %v21013_v53  ;;  %14872 = vmatpush.xpose.msk.msrb.mxu3 %vm3662_vm9, %v21043_v30  ;;  %v9510_v53 = vld [vmem:[#allocation2 + $0x591] sm:$0xff] }
 0x8d3   : > { %v23260_v30 = vld [vmem:[#allocation18_spill] sm:$0xff] }
 0x8d4   : > { %14701 = vmatpush.xpose.msk.msrb.mxu1 %vm3662_vm9, %v20435_v28 }
 0x8d5   : > { %14787 = vmatpush.xpose.msk.msra.mxu2 %vm3662_vm9, %v20441_v20  ;;  %v21072_v20 = vld [vmem:[%s22899_s2 + $0xf] sm:$0x1] }
 0x8d6   : > { %15295 = vmatpush.xpose.msk.msrb.mxu0 %vm3662_vm9, %v21025_v7  ;;  %14873 = vmatpush.xpose.msk.msrb.mxu3 %vm3662_vm9, %v21053_v40  ;;  %v8019_v40 = vpop.f32.mrf.mxu1 }
 0x8d7   : > { %14702 = vmatmul.msk.f32.vlgmr.msrb.gmra.mxu1 %vm3662_vm9, %v20670_v17  ;;  %v23259_v17 = vld [vmem:[#allocation9_spill] sm:$0xff] }
 0x8d8   : > { %14755 = vmatpush.xpose.msk.msra.mxu1 %vm3662_vm9, %v21059_v14  ;;  %14788 = vmatmul.msk.f32.vlgmr.msra.gmra.mxu2 %vm3662_vm9, %v20867_v11 }
 0x8d9   : > { %14841 = vmatpush.xpose.msk.msrb.mxu2 %vm3662_vm9, %v9149_v37  ;;  %14874 = vmatmul.msk.f32.vlgmr.msrb.gmra.mxu3 %vm3662_vm9, %v21072_v20  ;;  %v21089_v37 = vld [vmem:[#allocation2 + $0x430] sm:$0xff] }
 0x8da   : > { %14927 = vmatpush.xpose.msk.msra.mxu3 %vm3662_vm9, %v9510_v53  ;;  %15296 = vmatpush.xpose.msk.msrb.mxu0 %vm3662_vm9, %v21037_v46  ;;  %v21079_v53 = vadd.f32 %v8019_v40, %v20874_v51  ;;  %v21095_v51 = vld [vmem:[#allocation2 + $0x571] sm:$0xff]  ;;  %v21099_v40 = vld [vmem:[#allocation2 + $0x1c1] sm:$0xff] }
 0x8db   : > { %23261 = vst [vmem:[#allocation40_spill] sm:$0xff] %v21095_v51 }
 0x8dc   : > { %14756 = vmatpush.xpose.msk.msra.mxu1 %vm3662_vm9, %v20453_v59  ;;  %v8384_v59 = vpop.f32.mrf.mxu2 }
 0x8dd   : > { %14842 = vmatpush.xpose.msk.msrb.mxu2 %vm3662_vm9, %v20455_v21  ;;  %v8749_v21 = vpop.f32.mrf.mxu3 }
 0x8de   : > { %14928 = vmatpush.xpose.msk.msra.mxu3 %vm3662_vm9, %v23259_v17  ;;  %15297 = vmatpush.xpose.msk.msrb.mxu0 %vm3662_vm9, %v20435_v28  ;;  %v21102_v17 = vadd.f32 %v8384_v59, %v20895_v55  ;;  %v21105_v28 = vadd.f32 %v8749_v21, %v20898_v1  ;;  %v21119_v55 = vld [vmem:[#allocation2 + $0x1b1] sm:$0xff]  ;;  %v21133_v59 = vld [vmem:[#allocation2 + $0x1a1] sm:$0xff] }
 0x8df   : > { %v21123_v1 = vld [vmem:[#allocation2 + $0x410] sm:$0xff]  ;;  %v21137_v21 = vld [vmem:[#allocation2 + $0x400] sm:$0xff] }
 0x8e0   : > { %14757 = vmatpush.xpose.msk.msra.mxu1 %vm3662_vm9, %v23260_v30  ;;  %v21109_v30 = vld [vmem:[#allocation2 + $0x420] sm:$0xff]  ;;  %23264 = vst [vmem:[#allocation4_spill] sm:$0xff] %v21123_v1 }
 0x8e1   : > { %14843 = vmatpush.xpose.msk.msrb.mxu2 %vm3662_vm9, %v21089_v37  ;;  %23262 = vst [vmem:[#allocation41_spill] sm:$0xff] %v21109_v30 }
 0x8e2   : > { %14929 = vmatpush.xpose.msk.msra.mxu3 %vm3662_vm9, %v21095_v51  ;;  %15298 = vmatpush.xpose.msk.msrb.mxu0 %vm3662_vm9, %v21099_v40  ;;  %v21115_v51 = vld [vmem:[#allocation2 + $0x561] sm:$0xff]  ;;  %23266 = vst [vmem:[#allocation5_spill] sm:$0xff] %v21137_v21 }
 0x8e3   : > { %23263 = vst [vmem:[#allocation42_spill] sm:$0xff] %v21115_v51 }
 0x8e4   : > { %14758 = vmatpush.xpose.msk.msra.mxu1 %vm3662_vm9, %v20490_v2  ;;  %v21129_v2 = vld [vmem:[#allocation2 + $0x551] sm:$0xff] }
 0x8e5   : > { %14844 = vmatpush.xpose.msk.msrb.mxu2 %vm3662_vm9, %v21109_v30  ;;  %23265 = vst [vmem:[#allocation11_spill] sm:$0xff] %v21129_v2  ;;  %v21179_v30 = vld [vmem:[#allocation2 + $0x262] sm:$0xff] }
 0x8e6   : > { %14930 = vmatpush.xpose.msk.msra.mxu3 %vm3662_vm9, %v21115_v51  ;;  %15299 = vmatpush.xpose.msk.msrb.mxu0 %vm3662_vm9, %v21119_v55  ;;  %v9502_v51 = vld [vmem:[#allocation2 + $0x4f1] sm:$0xff] }
 0x8e8   : > { %14759 = vmatpush.xpose.msk.msra.mxu1 %vm3662_vm9, %v20506_v52  ;;  %v21143_v52 = vld [vmem:[#allocation2 + $0x541] sm:$0xff] }
 0x8e9   : > { %14845 = vmatpush.xpose.msk.msrb.mxu2 %vm3662_vm9, %v21123_v1  ;;  %23267 = vst [vmem:[#allocation6_spill] sm:$0xff] %v21143_v52  ;;  %v21147_v1 = vld [vmem:[#allocation2 + $0x191] sm:$0xff] }
 0x8ea   : > { %14931 = vmatpush.xpose.msk.msra.mxu3 %vm3662_vm9, %v21129_v2  ;;  %15300 = vmatpush.xpose.msk.msrb.mxu0 %vm3662_vm9, %v21133_v59  ;;  %v21151_v2 = vld [vmem:[#allocation2 + $0x3f0] sm:$0xff] }
 0x8eb   : > { %23268 = vst [vmem:[#allocation7_spill] sm:$0xff] %v21151_v2 }
 0x8ec   : > { %14760 = vmatpush.xpose.msk.msra.mxu1 %vm3662_vm9, %v20516_v29  ;;  %v21157_v29 = vld [vmem:[#allocation2 + $0x531] sm:$0xff] }
 0x8ed   : > { %14846 = vmatpush.xpose.msk.msrb.mxu2 %vm3662_vm9, %v21137_v21  ;;  %23269 = vst [vmem:[#allocation13_spill] sm:$0xff] %v21157_v29  ;;  %v21161_v21 = vld [vmem:[#allocation2 + $0x181] sm:$0xff] }
 0x8ee   : > { %14932 = vmatpush.xpose.msk.msra.mxu3 %vm3662_vm9, %v21143_v52  ;;  %15301 = vmatpush.xpose.msk.msrb.mxu0 %vm3662_vm9, %v21147_v1  ;;  %v21165_v52 = vld [vmem:[#allocation2 + $0x3e0] sm:$0xff] }
 0x8f0   : > { %14761 = vmatpush.xpose.msk.msra.mxu1 %vm3662_vm9, %v20526_v35  ;;  %v21171_v35 = vld [vmem:[#allocation2 + $0x521] sm:$0xff] }
 0x8f1   : > { %14847 = vmatpush.xpose.msk.msrb.mxu2 %vm3662_vm9, %v21151_v2  ;;  %v9141_v2 = vld [vmem:[#allocation2 + $0x3b0] sm:$0xff] }
 0x8f2   : > { %14933 = vmatpush.xpose.msk.msra.mxu3 %vm3662_vm9, %v21157_v29  ;;  %15302 = vmatpush.xpose.msk.msrb.mxu0 %vm3662_vm9, %v21161_v21  ;;  %v21175_v29 = vld [vmem:[#allocation2 + $0x171] sm:$0xff] }
 0x8f4   : > { %14762 = vmatpush.xpose.msk.msra.mxu1 %vm3662_vm9, %v20536_v49  ;;  %v21185_v49 = vld [vmem:[#allocation2 + $0x161] sm:$0xff] }
 0x8f5   : > { %14848 = vmatpush.xpose.msk.msrb.mxu2 %vm3662_vm9, %v21165_v52 }
 0x8f6   : > { %14934 = vmatpush.xpose.msk.msra.mxu3 %vm3662_vm9, %v21171_v35  ;;  %15303 = vmatpush.xpose.msk.msrb.mxu0 %vm3662_vm9, %v21175_v29 }
 0x8f8   : > { %14763 = vmatpush.xpose.msk.msra.mxu1 %vm3662_vm9, %v21179_v30 }
 0x8f9   : > { %14849 = vmatpush.xpose.msk.msrb.mxu2 %vm3662_vm9, %v9141_v2  ;;  %v21204_v2 = vld [vmem:[#allocation2 + $0x4d1] sm:$0xff] }
 0x8fa   : > { %14935 = vmatpush.xpose.msk.msra.mxu3 %vm3662_vm9, %v9502_v51  ;;  %15304 = vmatpush.xpose.msk.msrb.mxu0 %vm3662_vm9, %v21185_v49  ;;  %v15289_v51 = vld [vmem:[%s22899_s2 + $0x16] sm:$0x1] }
 0x8fc   : > { %14764 = vmatpush.xpose.msk.msra.mxu1 %vm3662_vm9, %v20553_v42 }
 0x8fd   : > { %14850 = vmatpush.xpose.msk.msrb.mxu2 %vm3662_vm9, %v20555_v13  ;;  %v21215_v13 = vld [vmem:[#allocation2 + $0x4c1] sm:$0xff] }
 0x8fe   : > { %14936 = vmatpush.xpose.msk.msra.mxu3 %vm3662_vm9, %v20561_v58  ;;  %15305 = vmatpush.xpose.msk.msrb.mxu0 %vm3662_vm9, %v20565_v43  ;;  %v21225_v58 = vld [vmem:[#allocation2 + $0x4b1] sm:$0xff]  ;;  %v21235_v43 = vld [vmem:[#allocation2 + $0x4a1] sm:$0xff] }
 0x900   : > { %14765 = vmatpush.xpose.msk.msra.mxu1 %vm3662_vm9, %v20569_v50 }
 0x901   : > { %14851 = vmatpush.xpose.msk.msrb.mxu2 %vm3662_vm9, %v20571_v61  ;;  %15306 = vmatmul.msk.f32.vlgmr.msrb.gmra.mxu0 %vm3662_vm9, %v15289_v51  ;;  %v21245_v61 = vld [vmem:[#allocation2 + $0x491] sm:$0xff] }
 0x902   : > { %15359 = vmatpush.xpose.msk.msra.mxu0 %vm3662_vm9, %v21179_v30  ;;  %14937 = vmatpush.xpose.msk.msra.mxu3 %vm3662_vm9, %v21204_v2  ;;  %v9855_v51 = vld [vmem:[#allocation2 + $0x592] sm:$0xff] }
 0x904   : > { %14766 = vmatpush.xpose.msk.msra.mxu1 %vm3662_vm9, %v20580_v63 }
 0x905   : > { %14852 = vmatpush.xpose.msk.msrb.mxu2 %vm3662_vm9, %v20589_v57  ;;  %v9133_v57 = vld [vmem:[#allocation2 + $0x310] sm:$0xff] }
 0x906   : > { %15360 = vmatpush.xpose.msk.msra.mxu0 %vm3662_vm9, %v20553_v42  ;;  %14938 = vmatpush.xpose.msk.msra.mxu3 %vm3662_vm9, %v21215_v13  ;;  %v23270_v42 = vld [vmem:[#allocation10_spill] sm:$0xff] }
 0x908   : > { %14767 = vmatpush.xpose.msk.msra.mxu1 %vm3662_vm9, %v20596_v44 }
 0x909   : > { %14853 = vmatpush.xpose.msk.msrb.mxu2 %vm3662_vm9, %v20602_v24  ;;  %v9494_v24 = vld [vmem:[#allocation2 + $0x451] sm:$0xff] }
 0x90a   : > { %15361 = vmatpush.xpose.msk.msra.mxu0 %vm3662_vm9, %v20569_v50  ;;  %14939 = vmatpush.xpose.msk.msra.mxu3 %vm3662_vm9, %v21225_v58  ;;  %v23271_v50 = vld [vmem:[#allocation21_spill] sm:$0xff] }
 0x90c   : > { %14768 = vmatpush.xpose.msk.msra.mxu1 %vm3662_vm9, %v23270_v42 }
 0x90d   : > { %14854 = vmatpush.xpose.msk.msrb.mxu2 %vm3662_vm9, %v23271_v50 }
 0x90e   : > { %15362 = vmatpush.xpose.msk.msra.mxu0 %vm3662_vm9, %v20580_v63  ;;  %14940 = vmatpush.xpose.msk.msra.mxu3 %vm3662_vm9, %v21235_v43  ;;  %v23272_v63 = vld [vmem:[#allocation12_spill] sm:$0xff] }
 0x910   : > { %14769 = vmatpush.xpose.msk.msra.mxu1 %vm3662_vm9, %v20620_v12 }
 0x911   : > { %14855 = vmatpush.xpose.msk.msrb.mxu2 %vm3662_vm9, %v23272_v63  ;;  %v23274_v63 = vld [vmem:[#allocation27_spill] sm:$0xff] }
 0x912   : > { %15363 = vmatpush.xpose.msk.msra.mxu0 %vm3662_vm9, %v20596_v44  ;;  %14941 = vmatpush.xpose.msk.msra.mxu3 %vm3662_vm9, %v21245_v61  ;;  %v21255_v44 = vld [vmem:[#allocation2 + $0x481] sm:$0xff] }
 0x914   : > { %14770 = vmatpush.xpose.msk.msra.mxu1 %vm3662_vm9, %v20632_v48 }
 0x915   : > { %14856 = vmatpush.xpose.msk.msrb.mxu2 %vm3662_vm9, %v20638_v36  ;;  %v8364_v36 = vpop.f32.mrf.mxu1 }
 0x916   : > { %15364 = vmatpush.xpose.msk.msra.mxu0 %vm3662_vm9, %v23270_v42  ;;  %14942 = vmatpush.xpose.msk.msra.mxu3 %vm3662_vm9, %v21255_v44  ;;  %v21271_v42 = vld [vmem:[%s22899_s2 + $0x10] sm:$0x1]  ;;  %v21278_v50 = vadd.f32 %v8364_v36, %v21079_v53 }
 0x917   : > { %14771 = vmatmul.msk.f32.vlgmr.msra.gmra.mxu1 %vm3662_vm9, %v20867_v11  ;;  %v23273_v11 = vld [vmem:[#allocation25_spill] sm:$0xff] }
 0x918   : > { %14824 = vmatpush.xpose.msk.msrb.mxu1 %vm3662_vm9, %v9133_v57  ;;  %14857 = vmatmul.msk.f32.vlgmr.msrb.gmra.mxu2 %vm3662_vm9, %v21072_v20  ;;  %v21288_v57 = vld [vmem:[#allocation2 + $0x431] sm:$0xff] }
 0x919   : > { %14910 = vmatpush.xpose.msk.msra.mxu2 %vm3662_vm9, %v9494_v24  ;;  %14943 = vmatmul.msk.f32.vlgmr.msra.gmra.mxu3 %vm3662_vm9, %v21271_v42  ;;  %v23275_v24 = vld [vmem:[#allocation16_spill] sm:$0xff] }
 0x91a   : > { %14996 = vmatpush.xpose.msk.msrb.mxu3 %vm3662_vm9, %v9855_v51  ;;  %15365 = vmatpush.xpose.msk.msra.mxu0 %vm3662_vm9, %v20620_v12  ;;  %v21294_v12 = vld [vmem:[#allocation2 + $0x572] sm:$0xff]  ;;  %v21298_v51 = vld [vmem:[#allocation2 + $0x1c2] sm:$0xff] }
 0x91c   : > { %14825 = vmatpush.xpose.msk.msrb.mxu1 %vm3662_vm9, %v20651_v10  ;;  %v8729_v10 = vpop.f32.mrf.mxu2  ;;  %v9094_v53 = vpop.f32.mrf.mxu3 }
 0x91d   : > { %14911 = vmatpush.xpose.msk.msra.mxu2 %vm3662_vm9, %v23273_v11  ;;  %v21301_v36 = vadd.f32 %v8729_v10, %v21102_v17  ;;  %v21308_v11 = vld [vmem:[#allocation2 + $0x421] sm:$0xff]  ;;  %v21320_v17 = vld [vmem:[#allocation2 + $0x411] sm:$0xff] }
 0x91e   : > { %14997 = vmatpush.xpose.msk.msrb.mxu3 %vm3662_vm9, %v23274_v63  ;;  %15366 = vmatpush.xpose.msk.msra.mxu0 %vm3662_vm9, %v20632_v48  ;;  %v21304_v48 = vadd.f32 %v9094_v53, %v21105_v28  ;;  %v21314_v63 = vld [vmem:[#allocation2 + $0x562] sm:$0xff]  ;;  %v9847_v10 = vld [vmem:[#allocation2 + $0x4f2] sm:$0xff] }
 0x91f   : > { %v21332_v28 = vld [vmem:[#allocation2 + $0x401] sm:$0xff]  ;;  %v23277_v53 = vld [vmem:[#allocation22_spill] sm:$0xff] }
 0x920   : > { %14826 = vmatpush.xpose.msk.msrb.mxu1 %vm3662_vm9, %v23275_v24  ;;  %v9486_v24 = vld [vmem:[#allocation2 + $0x3b1] sm:$0xff] }
 0x921   : > { %14912 = vmatpush.xpose.msk.msra.mxu2 %vm3662_vm9, %v21288_v57 }
 0x922   : > { %14998 = vmatpush.xpose.msk.msrb.mxu3 %vm3662_vm9, %v21294_v12  ;;  %15367 = vmatpush.xpose.msk.msra.mxu0 %vm3662_vm9, %v21298_v51 }
 0x924   : > { %14827 = vmatpush.xpose.msk.msrb.mxu1 %vm3662_vm9, %v20688_v60  ;;  %v21326_v60 = vld [vmem:[#allocation2 + $0x552] sm:$0xff] }
 0x925   : > { %14913 = vmatpush.xpose.msk.msra.mxu2 %vm3662_vm9, %v21308_v11 }
 0x926   : > { %14999 = vmatpush.xpose.msk.msrb.mxu3 %vm3662_vm9, %v21314_v63  ;;  %15368 = vmatpush.xpose.msk.msra.mxu0 %vm3662_vm9, %v20696_v19  ;;  %v21338_v19 = vld [vmem:[#allocation2 + $0x542] sm:$0xff] }
 0x928   : > { %14828 = vmatpush.xpose.msk.msrb.mxu1 %vm3662_vm9, %v20706_v45  ;;  %v21344_v45 = vld [vmem:[#allocation2 + $0x3f1] sm:$0xff] }
 0x929   : > { %14914 = vmatpush.xpose.msk.msra.mxu2 %vm3662_vm9, %v21320_v17 }
 0x92a   : > { %15000 = vmatpush.xpose.msk.msrb.mxu3 %vm3662_vm9, %v21326_v60  ;;  %15369 = vmatpush.xpose.msk.msra.mxu0 %vm3662_vm9, %v20714_v4  ;;  %v21350_v4 = vld [vmem:[#allocation2 + $0x532] sm:$0xff] }
 0x92c   : > { %14829 = vmatpush.xpose.msk.msrb.mxu1 %vm3662_vm9, %v20718_v39  ;;  %v21356_v39 = vld [vmem:[#allocation2 + $0x3e1] sm:$0xff] }
 0x92d   : > { %14915 = vmatpush.xpose.msk.msra.mxu2 %vm3662_vm9, %v21332_v28 }
 0x92e   : > { %15001 = vmatpush.xpose.msk.msrb.mxu3 %vm3662_vm9, %v21338_v19  ;;  %15370 = vmatpush.xpose.msk.msra.mxu0 %vm3662_vm9, %v20726_v8  ;;  %v21362_v8 = vld [vmem:[#allocation2 + $0x522] sm:$0xff] }
 0x930   : > { %14830 = vmatpush.xpose.msk.msrb.mxu1 %vm3662_vm9, %v20730_v54  ;;  %v9125_v54 = vld [vmem:[#allocation2 + $0x270] sm:$0xff] }
 0x931   : > { %14916 = vmatpush.xpose.msk.msra.mxu2 %vm3662_vm9, %v21344_v45 }
 0x932   : > { %15002 = vmatpush.xpose.msk.msrb.mxu3 %vm3662_vm9, %v21350_v4  ;;  %15371 = vmatpush.xpose.msk.msra.mxu0 %vm3662_vm9, %v20738_v23  ;;  %v15358_v23 = vld [vmem:[%s22899_s2 + $0x17] sm:$0x1] }
 0x934   : > { %14831 = vmatpush.xpose.msk.msrb.mxu1 %vm3662_vm9, %v20742_v22  ;;  %v21387_v22 = vld [vmem:[#allocation2 + $0x391] sm:$0xff] }
 0x935   : > { %14917 = vmatpush.xpose.msk.msra.mxu2 %vm3662_vm9, %v21356_v39 }
 0x936   : > { %15003 = vmatpush.xpose.msk.msrb.mxu3 %vm3662_vm9, %v21362_v8  ;;  %15372 = vmatpush.xpose.msk.msra.mxu0 %vm3662_vm9, %v20750_v38  ;;  %v21389_v38 = vld [vmem:[#allocation2 + $0x4d2] sm:$0xff] }
 0x938   : > { %14832 = vmatpush.xpose.msk.msrb.mxu1 %vm3662_vm9, %v9125_v54 }
 0x939   : > { %14918 = vmatpush.xpose.msk.msra.mxu2 %vm3662_vm9, %v9486_v24  ;;  %v21438_v24 = vld [vmem:[#allocation2 + $0x492] sm:$0xff] }
 0x93a   : > { %15004 = vmatpush.xpose.msk.msrb.mxu3 %vm3662_vm9, %v9847_v10  ;;  %15373 = vmatpush.xpose.msk.msra.mxu0 %vm3662_vm9, %v20760_v25  ;;  %v21400_v25 = vld [vmem:[#allocation2 + $0x381] sm:$0xff]  ;;  %23281 = vst [vmem:[#allocation18_spill] sm:$0xff] %v21438_v24  ;;  %v9478_v10 = vld [vmem:[#allocation2 + $0x311] sm:$0xff] }
 0x93c   : > { %14833 = vmatpush.xpose.msk.msrb.mxu1 %vm3662_vm9, %v20764_v3 }
 0x93d   : > { %14919 = vmatpush.xpose.msk.msra.mxu2 %vm3662_vm9, %v20766_v0  ;;  %v21402_v0 = vld [vmem:[#allocation2 + $0x4c2] sm:$0xff] }
 0x93e   : > { %15005 = vmatpush.xpose.msk.msrb.mxu3 %vm3662_vm9, %v20772_v41  ;;  %15374 = vmatpush.xpose.msk.msra.mxu0 %vm3662_vm9, %v20776_v31  ;;  %v23276_v41 = vld [vmem:[#allocation20_spill] sm:$0xff]  ;;  %v21414_v31 = vld [vmem:[#allocation2 + $0x4b2] sm:$0xff] }
 0x940   : > { %14834 = vmatpush.xpose.msk.msrb.mxu1 %vm3662_vm9, %v20780_v6 }
 0x941   : > { %14920 = vmatpush.xpose.msk.msra.mxu2 %vm3662_vm9, %v21387_v22  ;;  %15375 = vmatmul.msk.f32.vlgmr.msra.gmra.mxu0 %vm3662_vm9, %v15358_v23  ;;  %v9839_v23 = vld [vmem:[#allocation2 + $0x452] sm:$0xff] }
 0x942   : > { %15428 = vmatpush.xpose.msk.msrb.mxu0 %vm3662_vm9, %v9125_v54  ;;  %15006 = vmatpush.xpose.msk.msrb.mxu3 %vm3662_vm9, %v21389_v38  ;;  %v21426_v54 = vld [vmem:[#allocation2 + $0x4a2] sm:$0xff] }
 0x943   : > { %23279 = vst [vmem:[#allocation14_spill] sm:$0xff] %v21426_v54 }
 0x944   : > { %14835 = vmatpush.xpose.msk.msrb.mxu1 %vm3662_vm9, %v20789_v62 }
 0x945   : > { %14921 = vmatpush.xpose.msk.msra.mxu2 %vm3662_vm9, %v21400_v25 }
 0x946   : > { %15429 = vmatpush.xpose.msk.msrb.mxu0 %vm3662_vm9, %v20764_v3  ;;  %15007 = vmatpush.xpose.msk.msrb.mxu3 %vm3662_vm9, %v21402_v0  ;;  %v21412_v3 = vld [vmem:[#allocation2 + $0x371] sm:$0xff] }
 0x948   : > { %14836 = vmatpush.xpose.msk.msrb.mxu1 %vm3662_vm9, %v23276_v41 }
 0x949   : > { %14922 = vmatpush.xpose.msk.msra.mxu2 %vm3662_vm9, %v21412_v3 }
 0x94a   : > { %15430 = vmatpush.xpose.msk.msrb.mxu0 %vm3662_vm9, %v20780_v6  ;;  %15008 = vmatpush.xpose.msk.msrb.mxu3 %vm3662_vm9, %v21414_v31  ;;  %v21424_v6 = vld [vmem:[#allocation2 + $0x361] sm:$0xff] }
 0x94b   : > { %23278 = vst [vmem:[#allocation8_spill] sm:$0xff] %v21424_v6 }
 0x94c   : > { %14837 = vmatpush.xpose.msk.msrb.mxu1 %vm3662_vm9, %v23277_v53 }
 0x94d   : > { %14923 = vmatpush.xpose.msk.msra.mxu2 %vm3662_vm9, %v21424_v6  ;;  %v21452_v6 = vld [vmem:[#allocation2 + $0x610] sm:$0xff] }
 0x94e   : > { %15431 = vmatpush.xpose.msk.msrb.mxu0 %vm3662_vm9, %v20789_v62  ;;  %15009 = vmatpush.xpose.msk.msrb.mxu3 %vm3662_vm9, %v21426_v54  ;;  %v21436_v62 = vld [vmem:[#allocation2 + $0x351] sm:$0xff]  ;;  %v21450_v54 = vld [vmem:[#allocation2 + $0x482] sm:$0xff] }
 0x94f   : > { %23280 = vst [vmem:[#allocation9_spill] sm:$0xff] %v21436_v62 }
 0x950   : > { %14838 = vmatpush.xpose.msk.msrb.mxu1 %vm3662_vm9, %v20823_v16  ;;  %23283 = vst [vmem:[#allocation21_spill] sm:$0xff] %v21450_v54 }
 0x951   : > { %14924 = vmatpush.xpose.msk.msra.mxu2 %vm3662_vm9, %v21436_v62  ;;  %v21506_v62 = vld [vmem:[#allocation2 + $0x5e0] sm:$0xff] }
 0x952   : > { %15432 = vmatpush.xpose.msk.msrb.mxu0 %vm3662_vm9, %v23276_v41  ;;  %15010 = vmatpush.xpose.msk.msrb.mxu3 %vm3662_vm9, %v21438_v24  ;;  %v21448_v41 = vld [vmem:[#allocation2 + $0x341] sm:$0xff]  ;;  %v21490_v24 = vld [vmem:[#allocation2 + $0x2f1] sm:$0xff] }
 0x953   : > { %23282 = vst [vmem:[#allocation10_spill] sm:$0xff] %v21448_v41 }
 0x954   : > { %14839 = vmatpush.xpose.msk.msrb.mxu1 %vm3662_vm9, %v20833_v15  ;;  %23286 = vst [vmem:[#allocation25_spill] sm:$0xff] %v21490_v24 }
 0x955   : > { %14925 = vmatpush.xpose.msk.msra.mxu2 %vm3662_vm9, %v21448_v41  ;;  %v21486_v41 = vld [vmem:[#allocation2 + $0x5f0] sm:$0xff] }
 0x956   : > { %15433 = vmatpush.xpose.msk.msrb.mxu0 %vm3662_vm9, %v23277_v53  ;;  %15011 = vmatpush.xpose.msk.msrb.mxu3 %vm3662_vm9, %v21450_v54  ;;  %v21469_v53 = vld [vmem:[%s22899_s2 + $0x11] sm:$0x1] }
 0x957   : > { %14840 = vmatmul.msk.f32.vlgmr.msrb.gmra.mxu1 %vm3662_vm9, %v21072_v20  ;;  %v23285_v20 = vld [vmem:[#allocation23_spill] sm:$0xff] }
 0x958   : > { %14893 = vmatpush.xpose.msk.msra.mxu1 %vm3662_vm9, %v9478_v10  ;;  %14926 = vmatmul.msk.f32.vlgmr.msra.gmra.mxu2 %vm3662_vm9, %v21271_v42  ;;  %v21473_v10 = vld [vmem:[#allocation2 + $0x600] sm:$0xff] }
 0x959   : > { %14979 = vmatpush.xpose.msk.msrb.mxu2 %vm3662_vm9, %v9839_v23  ;;  %15012 = vmatmul.msk.f32.vlgmr.msrb.gmra.mxu3 %vm3662_vm9, %v21469_v53  ;;  %23284 = vst [vmem:[#allocation12_spill] sm:$0xff] %v21473_v10  ;;  %v8709_v23 = vpop.f32.mrf.mxu1 }
 0x95a   : > { %15065 = vmatpush.xpose.msk.msra.mxu3 %vm3662_vm9, %v21452_v6  ;;  %15434 = vmatpush.xpose.msk.msrb.mxu0 %vm3662_vm9, %v20823_v16  ;;  %v21478_v54 = vadd.f32 %v8709_v23, %v21278_v50  ;;  %v21492_v16 = vld [vmem:[#allocation2 + $0x432] sm:$0xff] }
 0x95b   : > { %v9074_v50 = vpop.f32.mrf.mxu2 }
 0x95c   : > { %14894 = vmatpush.xpose.msk.msra.mxu1 %vm3662_vm9, %v20851_v32  ;;  %v12217_v32 = vld [vmem:[#allocation2 + $0x1d0] sm:$0xff]  ;;  %v9440_v23 = vpop.f32.mrf.mxu3 }
 0x95d   : > { %14980 = vmatpush.xpose.msk.msrb.mxu2 %vm3662_vm9, %v23285_v20  ;;  %v21501_v20 = vadd.f32 %v9074_v50, %v21301_v36  ;;  %v21519_v36 = vld [vmem:[#allocation2 + $0x5d0] sm:$0xff]  ;;  %v21533_v50 = vld [vmem:[#allocation2 + $0x5c0] sm:$0xff] }
 0x95e   : > { %15066 = vmatpush.xpose.msk.msra.mxu3 %vm3662_vm9, %v21473_v10  ;;  %15435 = vmatpush.xpose.msk.msrb.mxu0 %vm3662_vm9, %v20833_v15  ;;  %v21504_v15 = vadd.f32 %v9440_v23, %v21304_v48  ;;  %v21511_v10 = vld [vmem:[#allocation2 + $0x422] sm:$0xff]  ;;  %v21523_v48 = vld [vmem:[#allocation2 + $0x2d1] sm:$0xff] }
 0x95f   : > { %v21537_v23 = vld [vmem:[#allocation2 + $0x2c1] sm:$0xff] }
 0x960   : > { %14895 = vmatpush.xpose.msk.msra.mxu1 %vm3662_vm9, %v21490_v24  ;;  %23287 = vst [vmem:[#allocation27_spill] sm:$0xff] %v21504_v15  ;;  %v21509_v24 = vld [vmem:[#allocation2 + $0x2e1] sm:$0xff]  ;;  %v21547_v15 = vld [vmem:[#allocation2 + $0x5b0] sm:$0xff] }
 0x961   : > { %14981 = vmatpush.xpose.msk.msrb.mxu2 %vm3662_vm9, %v21492_v16  ;;  %23289 = vst [vmem:[#allocation20_spill] sm:$0xff] %v21537_v23 }
 0x962   : > { %15067 = vmatpush.xpose.msk.msra.mxu3 %vm3662_vm9, %v21486_v41  ;;  %15436 = vmatpush.xpose.msk.msrb.mxu0 %vm3662_vm9, %v12217_v32  ;;  %v21525_v32 = vld [vmem:[#allocation2 + $0x412] sm:$0xff] }
 0x963   : > { %23288 = vst [vmem:[#allocation16_spill] sm:$0xff] %v21525_v32 }
 0x964   : > { %14896 = vmatpush.xpose.msk.msra.mxu1 %vm3662_vm9, %v21509_v24 }
 0x965   : > { %14982 = vmatpush.xpose.msk.msrb.mxu2 %vm3662_vm9, %v21511_v10 }
 0x966   : > { %15068 = vmatpush.xpose.msk.msra.mxu3 %vm3662_vm9, %v21506_v62  ;;  %15437 = vmatpush.xpose.msk.msrb.mxu0 %vm3662_vm9, %v20892_v33  ;;  %v21539_v33 = vld [vmem:[#allocation2 + $0x402] sm:$0xff] }
 0x967   : > { %23290 = vst [vmem:[#allocation22_spill] sm:$0xff] %v21539_v33 }
 0x968   : > { %14897 = vmatpush.xpose.msk.msra.mxu1 %vm3662_vm9, %v21523_v48 }
 0x969   : > { %14983 = vmatpush.xpose.msk.msrb.mxu2 %vm3662_vm9, %v21525_v32  ;;  %v21551_v32 = vld [vmem:[#allocation2 + $0x2b1] sm:$0xff] }
 0x96a   : > { %15069 = vmatpush.xpose.msk.msra.mxu3 %vm3662_vm9, %v21519_v36  ;;  %15438 = vmatpush.xpose.msk.msrb.mxu0 %vm3662_vm9, %v20910_v47  ;;  %23291 = vst [vmem:[#allocation23_spill] sm:$0xff] %v21551_v32  ;;  %v21553_v47 = vld [vmem:[#allocation2 + $0x3f2] sm:$0xff] }
 0x96b   : > { %23292 = vst [vmem:[#allocation43_spill] sm:$0xff] %v21553_v47 }
 0x96c   : > { %14898 = vmatpush.xpose.msk.msra.mxu1 %vm3662_vm9, %v21537_v23  ;;  %v21563_v23 = vld [vmem:[#allocation2 + $0x2a1] sm:$0xff] }
 0x96d   : > { %14984 = vmatpush.xpose.msk.msrb.mxu2 %vm3662_vm9, %v21539_v33  ;;  %v10194_v33 = vld [vmem:[#allocation2 + $0x5a0] sm:$0xff] }
 0x96e   : > { %15070 = vmatpush.xpose.msk.msra.mxu3 %vm3662_vm9, %v21533_v50  ;;  %15439 = vmatpush.xpose.msk.msrb.mxu0 %vm3662_vm9, %v20922_v5  ;;  %v21565_v5 = vld [vmem:[#allocation2 + $0x3e2] sm:$0xff] }
 0x970   : > { %14899 = vmatpush.xpose.msk.msra.mxu1 %vm3662_vm9, %v21551_v32  ;;  %v9831_v32 = vld [vmem:[#allocation2 + $0x3b2] sm:$0xff] }
 0x971   : > { %14985 = vmatpush.xpose.msk.msrb.mxu2 %vm3662_vm9, %v21553_v47  ;;  %v9470_v47 = vld [vmem:[#allocation2 + $0x271] sm:$0xff] }
 0x972   : > { %15071 = vmatpush.xpose.msk.msra.mxu3 %vm3662_vm9, %v21547_v15  ;;  %15440 = vmatpush.xpose.msk.msrb.mxu0 %vm3662_vm9, %v20934_v34  ;;  %v23293_v34 = vld [vmem:[#allocation26_spill] sm:$0xff] }
 0x974   : > { %14900 = vmatpush.xpose.msk.msra.mxu1 %vm3662_vm9, %v21563_v23 }
 0x975   : > { %14986 = vmatpush.xpose.msk.msrb.mxu2 %vm3662_vm9, %v21565_v5 }
 0x976   : > { %15072 = vmatpush.xpose.msk.msra.mxu3 %vm3662_vm9, %v10194_v33  ;;  %15441 = vmatpush.xpose.msk.msrb.mxu0 %vm3662_vm9, %v20946_v56  ;;  %v23294_v33 = vld [vmem:[#allocation24_spill] sm:$0xff] }
 0x977   : > { %v23295_v56 = vld [vmem:[#allocation32_spill] sm:$0xff] }
 0x978   : > { %14901 = vmatpush.xpose.msk.msra.mxu1 %vm3662_vm9, %v9470_v47 }
 0x979   : > { %14987 = vmatpush.xpose.msk.msrb.mxu2 %vm3662_vm9, %v9831_v32  ;;  %v15427_v32 = vld [vmem:[%s22899_s2 + $0x18] sm:$0x1] }
 0x97a   : > { %15073 = vmatpush.xpose.msk.msra.mxu3 %vm3662_vm9, %v23293_v34  ;;  %15442 = vmatpush.xpose.msk.msrb.mxu0 %vm3662_vm9, %v20958_v9  ;;  %v21594_v9 = vld [vmem:[#allocation2 + $0x392] sm:$0xff] }
 0x97b   : > { %v23297_v34 = vld [vmem:[#allocation15_spill] sm:$0xff] }
 0x97c   : > { %14902 = vmatpush.xpose.msk.msra.mxu1 %vm3662_vm9, %v20962_v18 }
 0x97d   : > { %14988 = vmatpush.xpose.msk.msrb.mxu2 %vm3662_vm9, %v20964_v27  ;;  %v23296_v27 = vld [vmem:[#allocation28_spill] sm:$0xff] }
 0x97e   : > { %15074 = vmatpush.xpose.msk.msra.mxu3 %vm3662_vm9, %v23294_v33  ;;  %15443 = vmatpush.xpose.msk.msrb.mxu0 %vm3662_vm9, %v23295_v56  ;;  %v23298_v33 = vld [vmem:[#allocation30_spill] sm:$0xff] }
 0x97f   : > { %v23299_v56 = vld [vmem:[#allocation34_spill] sm:$0xff] }
 0x980   : > { %14903 = vmatpush.xpose.msk.msra.mxu1 %vm3662_vm9, %v20975_v26 }
 0x981   : > { %14989 = vmatpush.xpose.msk.msrb.mxu2 %vm3662_vm9, %v21594_v9  ;;  %15444 = vmatmul.msk.f32.vlgmr.msrb.gmra.mxu0 %vm3662_vm9, %v15427_v32  ;;  %v21615_v32 = vld [vmem:[#allocation2 + $0x372] sm:$0xff] }
 0x982   : > { %15497 = vmatpush.xpose.msk.msra.mxu0 %vm3662_vm9, %v9470_v47  ;;  %15075 = vmatpush.xpose.msk.msra.mxu3 %vm3662_vm9, %v23296_v27  ;;  %v21605_v47 = vld [vmem:[#allocation2 + $0x382] sm:$0xff]  ;;  %23300 = vst [vmem:[#allocation26_spill] sm:$0xff] %v21615_v32  ;;  %v23302_v27 = vld [vmem:[#allocation35_spill] sm:$0xff] }
 0x984   : > { %14904 = vmatpush.xpose.msk.msra.mxu1 %vm3662_vm9, %v23297_v34 }
 0x985   : > { %14990 = vmatpush.xpose.msk.msrb.mxu2 %vm3662_vm9, %v21605_v47 }
 0x986   : > { %15498 = vmatpush.xpose.msk.msra.mxu0 %vm3662_vm9, %v20962_v18  ;;  %15076 = vmatpush.xpose.msk.msra.mxu3 %vm3662_vm9, %v23298_v33  ;;  %v23301_v18 = vld [vmem:[#allocation29_spill] sm:$0xff] }
 0x987   : > { %v21625_v33 = vld [vmem:[#allocation2 + $0x362] sm:$0xff] }
 0x988   : > { %14905 = vmatpush.xpose.msk.msra.mxu1 %vm3662_vm9, %v23299_v56  ;;  %23303 = vst [vmem:[#allocation24_spill] sm:$0xff] %v21625_v33 }
 0x989   : > { %14991 = vmatpush.xpose.msk.msrb.mxu2 %vm3662_vm9, %v21615_v32  ;;  %v9823_v32 = vld [vmem:[#allocation2 + $0x312] sm:$0xff] }
 0x98a   : > { %15499 = vmatpush.xpose.msk.msra.mxu0 %vm3662_vm9, %v20975_v26  ;;  %15077 = vmatpush.xpose.msk.msra.mxu3 %vm3662_vm9, %v23301_v18  ;;  %v23304_v26 = vld [vmem:[#allocation31_spill] sm:$0xff] }
 0x98b   : > { %v21635_v18 = vld [vmem:[#allocation2 + $0x352] sm:$0xff] }
 0x98c   : > { %14906 = vmatpush.xpose.msk.msra.mxu1 %vm3662_vm9, %v23302_v27  ;;  %23305 = vst [vmem:[#allocation32_spill] sm:$0xff] %v21635_v18 }
 0x98d   : > { %14992 = vmatpush.xpose.msk.msrb.mxu2 %vm3662_vm9, %v21625_v33  ;;  %v10186_v33 = vld [vmem:[#allocation2 + $0x500] sm:$0xff] }
 0x98e   : > { %15500 = vmatpush.xpose.msk.msra.mxu0 %vm3662_vm9, %v23297_v34  ;;  %15078 = vmatpush.xpose.msk.msra.mxu3 %vm3662_vm9, %v23304_v26  ;;  %v21637_v34 = vld [vmem:[#allocation2 + $0x510] sm:$0xff] }
 0x98f   : > { %v21649_v26 = vld [vmem:[#allocation2 + $0x611] sm:$0xff] }
 0x990   : > { %14907 = vmatpush.xpose.msk.msra.mxu1 %vm3662_vm9, %v21025_v7  ;;  %23307 = vst [vmem:[#allocation15_spill] sm:$0xff] %v21649_v26 }
 0x991   : > { %14993 = vmatpush.xpose.msk.msrb.mxu2 %vm3662_vm9, %v21635_v18  ;;  %v23308_v18 = vld [vmem:[#allocation17_spill] sm:$0xff] }
 0x992   : > { %15501 = vmatpush.xpose.msk.msra.mxu0 %vm3662_vm9, %v23299_v56  ;;  %15079 = vmatpush.xpose.msk.msra.mxu3 %vm3662_vm9, %v21637_v34  ;;  %v21647_v56 = vld [vmem:[#allocation2 + $0x342] sm:$0xff] }
 0x993   : > { %23306 = vst [vmem:[#allocation28_spill] sm:$0xff] %v21647_v56 }
 0x994   : > { %14908 = vmatpush.xpose.msk.msra.mxu1 %vm3662_vm9, %v21037_v46 }
 0x995   : > { %14994 = vmatpush.xpose.msk.msrb.mxu2 %vm3662_vm9, %v21647_v56  ;;  %v21683_v56 = vld [vmem:[#allocation2 + $0x5f1] sm:$0xff] }
 0x996   : > { %15502 = vmatpush.xpose.msk.msra.mxu0 %vm3662_vm9, %v23302_v27  ;;  %15080 = vmatpush.xpose.msk.msra.mxu3 %vm3662_vm9, %v10186_v33  ;;  %v21666_v27 = vld [vmem:[%s22899_s2 + $0x12] sm:$0x1]  ;;  %v9054_v33 = vpop.f32.mrf.mxu1 }
 0x997   : > { %14909 = vmatmul.msk.f32.vlgmr.msra.gmra.mxu1 %vm3662_vm9, %v21271_v42  ;;  %v23309_v42 = vld [vmem:[#allocation19_spill] sm:$0xff] }
 0x998   : > { %14962 = vmatpush.xpose.msk.msrb.mxu1 %vm3662_vm9, %v9823_v32  ;;  %14995 = vmatmul.msk.f32.vlgmr.msrb.gmra.mxu2 %vm3662_vm9, %v21469_v53  ;;  %v21670_v32 = vld [vmem:[#allocation2 + $0x601] sm:$0xff] }
 0x999   : > { %15048 = vmatpush.xpose.msk.msra.mxu2 %vm3662_vm9, %v23308_v18  ;;  %15081 = vmatmul.msk.f32.vlgmr.msra.gmra.mxu3 %vm3662_vm9, %v21666_v27  ;;  %v21675_v18 = vadd.f32 %v9054_v33, %v21478_v54 }
 0x99a   : > { %15134 = vmatpush.xpose.msk.msrb.mxu3 %vm3662_vm9, %v21649_v26  ;;  %15503 = vmatpush.xpose.msk.msra.mxu0 %vm3662_vm9, %v21025_v7  ;;  %v21687_v26 = vld [vmem:[#allocation2 + $0x2f2] sm:$0xff]  ;;  %v23311_v7 = vld [vmem:[#allocation36_spill] sm:$0xff] }
 0x99b   : > { %23310 = vst [vmem:[#allocation30_spill] sm:$0xff] %v21687_v26  ;;  %v9420_v54 = vpop.f32.mrf.mxu2 }
 0x99c   : > { %14963 = vmatpush.xpose.msk.msrb.mxu1 %vm3662_vm9, %v21059_v14  ;;  %v12562_v14 = vld [vmem:[#allocation2 + $0x1d1] sm:$0xff]  ;;  %v21696_v33 = vadd.f32 %v9420_v54, %v21501_v20  ;;  %v21725_v54 = vld [vmem:[#allocation2 + $0x2c2] sm:$0xff] }
 0x99d   : > { %15049 = vmatpush.xpose.msk.msra.mxu2 %vm3662_vm9, %v23309_v42  ;;  %v21698_v42 = vld [vmem:[#allocation2 + $0x5e1] sm:$0xff]  ;;  %v21713_v20 = vld [vmem:[#allocation2 + $0x2d2] sm:$0xff]  ;;  %23316 = vst [vmem:[#allocation35_spill] sm:$0xff] %v21725_v54 }
 0x99e   : > { %15135 = vmatpush.xpose.msk.msrb.mxu3 %vm3662_vm9, %v21670_v32  ;;  %15504 = vmatpush.xpose.msk.msra.mxu0 %vm3662_vm9, %v21037_v46  ;;  %23312 = vst [vmem:[#allocation34_spill] sm:$0xff] %v21696_v33  ;;  %v21701_v46 = vld [vmem:[#allocation2 + $0x2e2] sm:$0xff]  ;;  %v21737_v33 = vld [vmem:[#allocation2 + $0x2b2] sm:$0xff] }
 0x99f   : > { %23314 = vst [vmem:[#allocation29_spill] sm:$0xff] %v21713_v20 }
 0x9a0   : > { %14964 = vmatpush.xpose.msk.msrb.mxu1 %vm3662_vm9, %v21687_v26  ;;  %v23313_v26 = vld [vmem:[#allocation38_spill] sm:$0xff]  ;;  %23318 = vst [vmem:[#allocation31_spill] sm:$0xff] %v21737_v33 }
 0x9a1   : > { %15050 = vmatpush.xpose.msk.msra.mxu2 %vm3662_vm9, %v23311_v7  ;;  %v21709_v7 = vld [vmem:[#allocation2 + $0x5d1] sm:$0xff] }
 0x9a2   : > { %15136 = vmatpush.xpose.msk.msrb.mxu3 %vm3662_vm9, %v21683_v56  ;;  %15505 = vmatpush.xpose.msk.msra.mxu0 %vm3662_vm9, %v12562_v14  ;;  %v23315_v14 = vld [vmem:[#allocation39_spill] sm:$0xff] }
 0x9a4   : > { %14965 = vmatpush.xpose.msk.msrb.mxu1 %vm3662_vm9, %v21701_v46 }
 0x9a5   : > { %15051 = vmatpush.xpose.msk.msra.mxu2 %vm3662_vm9, %v23313_v26  ;;  %v21721_v26 = vld [vmem:[#allocation2 + $0x5c1] sm:$0xff] }
 0x9a6   : > { %15137 = vmatpush.xpose.msk.msrb.mxu3 %vm3662_vm9, %v21698_v42  ;;  %15506 = vmatpush.xpose.msk.msra.mxu0 %vm3662_vm9, %v21099_v40  ;;  %v23317_v40 = vld [vmem:[#allocation37_spill] sm:$0xff] }
 0x9a8   : > { %14966 = vmatpush.xpose.msk.msrb.mxu1 %vm3662_vm9, %v21713_v20  ;;  %v21739_v20 = vld [vmem:[#allocation2 + $0x470] sm:$0xff] }
 0x9a9   : > { %15052 = vmatpush.xpose.msk.msra.mxu2 %vm3662_vm9, %v23315_v14  ;;  %v21733_v14 = vld [vmem:[#allocation2 + $0x5b1] sm:$0xff] }
 0x9aa   : > { %15138 = vmatpush.xpose.msk.msrb.mxu3 %vm3662_vm9, %v21709_v7  ;;  %15507 = vmatpush.xpose.msk.msra.mxu0 %vm3662_vm9, %v21119_v55  ;;  %v10178_v55 = vld [vmem:[#allocation2 + $0x460] sm:$0xff] }
 0x9ac   : > { %14967 = vmatpush.xpose.msk.msrb.mxu1 %vm3662_vm9, %v21725_v54  ;;  %v21749_v54 = vld [vmem:[#allocation2 + $0x2a2] sm:$0xff] }
 0x9ad   : > { %15053 = vmatpush.xpose.msk.msra.mxu2 %vm3662_vm9, %v23317_v40  ;;  %v10539_v40 = vld [vmem:[#allocation2 + $0x5a1] sm:$0xff] }
 0x9ae   : > { %15139 = vmatpush.xpose.msk.msrb.mxu3 %vm3662_vm9, %v21721_v26  ;;  %15508 = vmatpush.xpose.msk.msra.mxu0 %vm3662_vm9, %v21133_v59  ;;  %v9815_v59 = vld [vmem:[#allocation2 + $0x272] sm:$0xff] }
 0x9b0   : > { %14968 = vmatpush.xpose.msk.msrb.mxu1 %vm3662_vm9, %v21737_v33  ;;  %v23319_v33 = vld [vmem:[#allocation40_spill] sm:$0xff] }
 0x9b1   : > { %15054 = vmatpush.xpose.msk.msra.mxu2 %vm3662_vm9, %v21739_v20 }
 0x9b2   : > { %15140 = vmatpush.xpose.msk.msrb.mxu3 %vm3662_vm9, %v21733_v14  ;;  %15509 = vmatpush.xpose.msk.msra.mxu0 %vm3662_vm9, %v21147_v1  ;;  %v23320_v1 = vld [vmem:[#allocation41_spill] sm:$0xff] }
 0x9b4   : > { %14969 = vmatpush.xpose.msk.msrb.mxu1 %vm3662_vm9, %v21749_v54 }
 0x9b5   : > { %15055 = vmatpush.xpose.msk.msra.mxu2 %vm3662_vm9, %v10178_v55  ;;  %v23321_v55 = vld [vmem:[#allocation42_spill] sm:$0xff] }
 0x9b6   : > { %15141 = vmatpush.xpose.msk.msrb.mxu3 %vm3662_vm9, %v10539_v40  ;;  %15510 = vmatpush.xpose.msk.msra.mxu0 %vm3662_vm9, %v21161_v21  ;;  %v9813_v21 = vld [vmem:[#allocation2 + $0x252] sm:$0xff]  ;;  %v9812_v40 = vld [vmem:[#allocation2 + $0x242] sm:$0xff] }
 0x9b8   : > { %14970 = vmatpush.xpose.msk.msrb.mxu1 %vm3662_vm9, %v9815_v59 }
 0x9b9   : > { %15056 = vmatpush.xpose.msk.msra.mxu2 %vm3662_vm9, %v21089_v37  ;;  %v15496_v37 = vld [vmem:[%s22899_s2 + $0x19] sm:$0x1] }
 0x9ba   : > { %15142 = vmatpush.xpose.msk.msrb.mxu3 %vm3662_vm9, %v23319_v33  ;;  %15511 = vmatpush.xpose.msk.msra.mxu0 %vm3662_vm9, %v21175_v29  ;;  %v23322_v29 = vld [vmem:[#allocation4_spill] sm:$0xff]  ;;  %v23323_v33 = vld [vmem:[#allocation11_spill] sm:$0xff] }
 0x9bc   : > { %14971 = vmatpush.xpose.msk.msrb.mxu1 %vm3662_vm9, %v21179_v30 }
 0x9bd   : > { %15057 = vmatpush.xpose.msk.msra.mxu2 %vm3662_vm9, %v23320_v1  ;;  %v9811_v1 = vld [vmem:[#allocation2 + $0x232] sm:$0xff] }
 0x9be   : > { %15143 = vmatpush.xpose.msk.msrb.mxu3 %vm3662_vm9, %v23321_v55  ;;  %15512 = vmatpush.xpose.msk.msra.mxu0 %vm3662_vm9, %v21185_v49  ;;  %v23324_v49 = vld [vmem:[#allocation5_spill] sm:$0xff]  ;;  %v23326_v55 = vld [vmem:[#allocation7_spill] sm:$0xff] }
 0x9c0   : > { %14972 = vmatpush.xpose.msk.msrb.mxu1 %vm3662_vm9, %v9813_v21 }
 0x9c1   : > { %15058 = vmatpush.xpose.msk.msra.mxu2 %vm3662_vm9, %v23322_v29  ;;  %15513 = vmatmul.msk.f32.vlgmr.msra.gmra.mxu0 %vm3662_vm9, %v15496_v37  ;;  %v23327_v37 = vld [vmem:[#allocation13_spill] sm:$0xff]  ;;  %v21803_v29 = vld [vmem:[#allocation2 + $0x3d0] sm:$0xff] }
 0x9c2   : > { %15566 = vmatpush.xpose.msk.msrb.mxu0 %vm3662_vm9, %v9815_v59  ;;  %15144 = vmatpush.xpose.msk.msrb.mxu3 %vm3662_vm9, %v23323_v33  ;;  %v23325_v59 = vld [vmem:[#allocation6_spill] sm:$0xff] }
 0x9c3   : > { %v21805_v33 = vld [vmem:[#allocation2 + $0x511] sm:$0xff] }
 0x9c4   : > { %14973 = vmatpush.xpose.msk.msrb.mxu1 %vm3662_vm9, %v9812_v40 }
 0x9c5   : > { %15059 = vmatpush.xpose.msk.msra.mxu2 %vm3662_vm9, %v23324_v49  ;;  %v9808_v49 = vld [vmem:[#allocation2 + $0x202] sm:$0xff] }
 0x9c6   : > { %15567 = vmatpush.xpose.msk.msrb.mxu0 %vm3662_vm9, %v21179_v30  ;;  %15145 = vmatpush.xpose.msk.msrb.mxu3 %vm3662_vm9, %v23325_v59  ;;  %v9810_v30 = vld [vmem:[#allocation2 + $0x222] sm:$0xff]  ;;  %v21817_v59 = vld [vmem:[#allocation2 + $0x390] sm:$0xff] }
 0x9c8   : > { %14974 = vmatpush.xpose.msk.msrb.mxu1 %vm3662_vm9, %v9811_v1 }
 0x9c9   : > { %15060 = vmatpush.xpose.msk.msra.mxu2 %vm3662_vm9, %v23326_v55  ;;  %v21836_v55 = vld [vmem:[#allocation2 + $0x602] sm:$0xff] }
 0x9ca   : > { %15568 = vmatpush.xpose.msk.msrb.mxu0 %vm3662_vm9, %v9813_v21  ;;  %15146 = vmatpush.xpose.msk.msrb.mxu3 %vm3662_vm9, %v23327_v37  ;;  %v9809_v21 = vld [vmem:[#allocation2 + $0x212] sm:$0xff]  ;;  %v21839_v37 = vld [vmem:[#allocation2 + $0x380] sm:$0xff] }
 0x9cc   : > { %14975 = vmatpush.xpose.msk.msrb.mxu1 %vm3662_vm9, %v9810_v30 }
 0x9cd   : > { %15061 = vmatpush.xpose.msk.msra.mxu2 %vm3662_vm9, %v21165_v52  ;;  %v10531_v52 = vld [vmem:[#allocation2 + $0x501] sm:$0xff] }
 0x9ce   : > { %15569 = vmatpush.xpose.msk.msrb.mxu0 %vm3662_vm9, %v9812_v40  ;;  %15147 = vmatpush.xpose.msk.msrb.mxu3 %vm3662_vm9, %v21171_v35  ;;  %v10170_v40 = vld [vmem:[#allocation2 + $0x3c0] sm:$0xff]  ;;  %v21813_v35 = vld [vmem:[#allocation2 + $0x612] sm:$0xff] }
 0x9d0   : > { %14976 = vmatpush.xpose.msk.msrb.mxu1 %vm3662_vm9, %v9809_v21 }
 0x9d1   : > { %15062 = vmatpush.xpose.msk.msra.mxu2 %vm3662_vm9, %v21803_v29 }
 0x9d2   : > { %15570 = vmatpush.xpose.msk.msrb.mxu0 %vm3662_vm9, %v9811_v1  ;;  %15148 = vmatpush.xpose.msk.msrb.mxu3 %vm3662_vm9, %v21805_v33  ;;  %v21832_v1 = vld [vmem:[%s22899_s2 + $0x13] sm:$0x1] }
 0x9d4   : > { %14977 = vmatpush.xpose.msk.msrb.mxu1 %vm3662_vm9, %v9808_v49 }
 0x9d5   : > { %15063 = vmatpush.xpose.msk.msra.mxu2 %vm3662_vm9, %v10170_v40  ;;  %v21853_v40 = vld [vmem:[#allocation2 + $0x370] sm:$0xff] }
 0x9d6   : > { %15571 = vmatpush.xpose.msk.msrb.mxu0 %vm3662_vm9, %v9810_v30  ;;  %15149 = vmatpush.xpose.msk.msrb.mxu3 %vm3662_vm9, %v10531_v52  ;;  %v21850_v30 = vld [vmem:[#allocation2 + $0x5f2] sm:$0xff] }
 0x9d7   : > { %14978 = vmatmul.msk.f32.vlgmr.msrb.gmra.mxu1 %vm3662_vm9, %v21469_v53  ;;  %v21876_v52 = vld [vmem:[#allocation2 + $0x350] sm:$0xff] }
 0x9d8   : > { %15031 = vmatpush.xpose.msk.msra.mxu1 %vm3662_vm9, %v21817_v59  ;;  %15064 = vmatmul.msk.f32.vlgmr.msra.gmra.mxu2 %vm3662_vm9, %v21666_v27 }
 0x9d9   : > { %15117 = vmatpush.xpose.msk.msrb.mxu2 %vm3662_vm9, %v21204_v2  ;;  %15150 = vmatmul.msk.f32.vlgmr.msrb.gmra.mxu3 %vm3662_vm9, %v21832_v1  ;;  %v9400_v2 = vpop.f32.mrf.mxu1 }
 0x9da   : > { %15203 = vmatpush.xpose.msk.msra.mxu3 %vm3662_vm9, %v21813_v35  ;;  %15572 = vmatpush.xpose.msk.msrb.mxu0 %vm3662_vm9, %v9809_v21  ;;  %v21842_v53 = vadd.f32 %v9400_v2, %v21675_v18  ;;  %v12907_v18 = vld [vmem:[#allocation2 + $0x1d2] sm:$0xff]  ;;  %v21864_v21 = vld [vmem:[#allocation2 + $0x360] sm:$0xff] }
 0x9db   : > { %v21887_v2 = vld [vmem:[#allocation2 + $0x340] sm:$0xff] }
 0x9dc   : > { %23328 = vst [vmem:[#allocation17_spill] sm:$0xff] %v21842_v53  ;;  %15032 = vmatpush.xpose.msk.msra.mxu1 %vm3662_vm9, %v21839_v37  ;;  %v21900_v53 = vld [vmem:[#allocation2 + $0x471] sm:$0xff] }
 0x9dd   : > { %15118 = vmatpush.xpose.msk.msrb.mxu2 %vm3662_vm9, %v21215_v13  ;;  %v21861_v13 = vld [vmem:[#allocation2 + $0x5e2] sm:$0xff]  ;;  %23330 = vst [vmem:[#allocation36_spill] sm:$0xff] %v21887_v2 }
 0x9de   : > { %15204 = vmatpush.xpose.msk.msra.mxu3 %vm3662_vm9, %v21836_v55  ;;  %15573 = vmatpush.xpose.msk.msrb.mxu0 %vm3662_vm9, %v9808_v49  ;;  %v21884_v49 = vld [vmem:[#allocation2 + $0x5c2] sm:$0xff] }
 0x9df   : > { %23329 = vst [vmem:[#allocation19_spill] sm:$0xff] %v21884_v49 }
 0x9e0   : > { %15033 = vmatpush.xpose.msk.msra.mxu1 %vm3662_vm9, %v21853_v40 }
 0x9e1   : > { %15119 = vmatpush.xpose.msk.msrb.mxu2 %vm3662_vm9, %v21225_v58  ;;  %v21872_v58 = vld [vmem:[#allocation2 + $0x5d2] sm:$0xff] }
 0x9e2   : > { %15205 = vmatpush.xpose.msk.msra.mxu3 %vm3662_vm9, %v21850_v30  ;;  %15574 = vmatpush.xpose.msk.msrb.mxu0 %vm3662_vm9, %v12907_v18  ;;  %v21898_v18 = vld [vmem:[#allocation2 + $0x330] sm:$0xff] }
 0x9e3   : > { %23331 = vst [vmem:[#allocation38_spill] sm:$0xff] %v21898_v18 }
 0x9e4   : > { %15034 = vmatpush.xpose.msk.msra.mxu1 %vm3662_vm9, %v21864_v21 }
 0x9e5   : > { %15120 = vmatpush.xpose.msk.msrb.mxu2 %vm3662_vm9, %v21235_v43  ;;  %v12905_v43 = vld [vmem:[#allocation2 + $0x1b2] sm:$0xff] }
 0x9e6   : > { %15206 = vmatpush.xpose.msk.msra.mxu3 %vm3662_vm9, %v21861_v13  ;;  %15575 = vmatpush.xpose.msk.msrb.mxu0 %vm3662_vm9, %v21298_v51  ;;  %v21895_v51 = vld [vmem:[#allocation2 + $0x5b2] sm:$0xff] }
 0x9e8   : > { %15035 = vmatpush.xpose.msk.msra.mxu1 %vm3662_vm9, %v21876_v52 }
 0x9e9   : > { %15121 = vmatpush.xpose.msk.msrb.mxu2 %vm3662_vm9, %v21245_v61  ;;  %v12904_v61 = vld [vmem:[#allocation2 + $0x1a2] sm:$0xff] }
 0x9ea   : > { %15207 = vmatpush.xpose.msk.msra.mxu3 %vm3662_vm9, %v21872_v58  ;;  %15576 = vmatpush.xpose.msk.msrb.mxu0 %vm3662_vm9, %v12905_v43  ;;  %v10523_v43 = vld [vmem:[#allocation2 + $0x461] sm:$0xff] }
 0x9ec   : > { %15036 = vmatpush.xpose.msk.msra.mxu1 %vm3662_vm9, %v21887_v2  ;;  %v10884_v2 = vld [vmem:[#allocation2 + $0x5a2] sm:$0xff] }
 0x9ed   : > { %15122 = vmatpush.xpose.msk.msrb.mxu2 %vm3662_vm9, %v21255_v44  ;;  %v10162_v44 = vld [vmem:[#allocation2 + $0x320] sm:$0xff] }
 0x9ee   : > { %15208 = vmatpush.xpose.msk.msra.mxu3 %vm3662_vm9, %v21884_v49  ;;  %15577 = vmatpush.xpose.msk.msrb.mxu0 %vm3662_vm9, %v12904_v61  ;;  %v12903_v49 = vld [vmem:[#allocation2 + $0x192] sm:$0xff]  ;;  %v12902_v61 = vld [vmem:[#allocation2 + $0x182] sm:$0xff] }
 0x9f0   : > { %15037 = vmatpush.xpose.msk.msra.mxu1 %vm3662_vm9, %v21898_v18  ;;  %v21913_v18 = vld [vmem:[#allocation2 + $0x2f0] sm:$0xff] }
 0x9f1   : > { %15123 = vmatpush.xpose.msk.msrb.mxu2 %vm3662_vm9, %v21900_v53 }
 0x9f2   : > { %15209 = vmatpush.xpose.msk.msra.mxu3 %vm3662_vm9, %v21895_v51  ;;  %15578 = vmatpush.xpose.msk.msrb.mxu0 %vm3662_vm9, %v12903_v49  ;;  %v12901_v49 = vld [vmem:[#allocation2 + $0x172] sm:$0xff] }
 0x9f4   : > { %15038 = vmatpush.xpose.msk.msra.mxu1 %vm3662_vm9, %v10162_v44  ;;  %v21922_v44 = vld [vmem:[#allocation2 + $0x2e0] sm:$0xff] }
 0x9f5   : > { %15124 = vmatpush.xpose.msk.msrb.mxu2 %vm3662_vm9, %v10523_v43  ;;  %v21982_v43 = vld [vmem:[#allocation2 + $0x620] sm:$0xff] }
 0x9f6   : > { %15210 = vmatpush.xpose.msk.msra.mxu3 %vm3662_vm9, %v10884_v2  ;;  %15579 = vmatpush.xpose.msk.msrb.mxu0 %vm3662_vm9, %v12902_v61  ;;  %v12900_v2 = vld [vmem:[#allocation2 + $0x162] sm:$0xff] }
 0x9f7   : > { %v10868_v61 = vld [vmem:[#allocation2 + $0x462] sm:$0xff] }
 0x9f8   : > { %15039 = vmatpush.xpose.msk.msra.mxu1 %vm3662_vm9, %v21913_v18 }
 0x9f9   : > { %15125 = vmatpush.xpose.msk.msrb.mxu2 %vm3662_vm9, %v21288_v57  ;;  %v21931_v57 = vld [vmem:[#allocation2 + $0x2d0] sm:$0xff] }
 0x9fa   : > { %15211 = vmatpush.xpose.msk.msra.mxu3 %vm3662_vm9, %v21294_v12  ;;  %15580 = vmatpush.xpose.msk.msrb.mxu0 %vm3662_vm9, %v12901_v49  ;;  %v21936_v12 = vld [vmem:[%s22899_s2 + $0x1a] sm:$0x1]  ;;  %v22050_v49 = vld [vmem:[#allocation2 + $0x580] sm:$0xff] }
 0x9fb   : > { %23332 = vst [vmem:[#allocation39_spill] sm:$0xff] %v21936_v12 }
 0x9fc   : > { %15040 = vmatpush.xpose.msk.msra.mxu1 %vm3662_vm9, %v21922_v44 }
 0x9fd   : > { %15126 = vmatpush.xpose.msk.msrb.mxu2 %vm3662_vm9, %v21308_v11  ;;  %v21946_v11 = vld [vmem:[#allocation2 + $0x2c0] sm:$0xff] }
 0x9fe   : > { %15212 = vmatpush.xpose.msk.msra.mxu3 %vm3662_vm9, %v21314_v63  ;;  %15581 = vmatpush.xpose.msk.msrb.mxu0 %vm3662_vm9, %v12900_v2  ;;  %v21954_v63 = vld [vmem:[#allocation2 + $0x2b0] sm:$0xff] }
 0x9ff   : > { %v22074_v2 = vld [vmem:[#allocation2 + $0x550] sm:$0xff] }
 0xa00   : > { %15041 = vmatpush.xpose.msk.msra.mxu1 %vm3662_vm9, %v21931_v57 }
 0xa01   : > { %15127 = vmatpush.xpose.msk.msrb.mxu2 %vm3662_vm9, %v21320_v17  ;;  %15582 = vmatmul.msk.f32.vlgmr.msrb.gmra.mxu0 %vm3662_vm9, %v21936_v12  ;;  %v21962_v17 = vld [vmem:[#allocation2 + $0x2a0] sm:$0xff] }
 0xa02   : > { %15213 = vmatpush.xpose.msk.msra.mxu3 %vm3662_vm9, %v21326_v60  ;;  %v21970_v60 = vld [vmem:[#allocation2 + $0x290] sm:$0xff]  ;;  %v22265_v12 = vld [vmem:[#allocation2 + $0x3a0] sm:$0xff] }
 0xa04   : > { %15042 = vmatpush.xpose.msk.msra.mxu1 %vm3662_vm9, %v21946_v11 }
 0xa05   : > { %15128 = vmatpush.xpose.msk.msrb.mxu2 %vm3662_vm9, %v21332_v28  ;;  %v21972_v28 = vld [vmem:[#allocation2 + $0x3d1] sm:$0xff] }
 0xa06   : > { %15214 = vmatpush.xpose.msk.msra.mxu3 %vm3662_vm9, %v21338_v19  ;;  %v21978_v19 = vld [vmem:[#allocation2 + $0x512] sm:$0xff] }
 0xa08   : > { %15043 = vmatpush.xpose.msk.msra.mxu1 %vm3662_vm9, %v21954_v63 }
 0xa09   : > { %15129 = vmatpush.xpose.msk.msrb.mxu2 %vm3662_vm9, %v21344_v45  ;;  %v10154_v45 = vld [vmem:[#allocation2 + $0x280] sm:$0xff] }
 0xa0a   : > { %15215 = vmatpush.xpose.msk.msra.mxu3 %vm3662_vm9, %v21350_v4  ;;  %v10515_v4 = vld [vmem:[#allocation2 + $0x3c1] sm:$0xff] }
 0xa0c   : > { %15044 = vmatpush.xpose.msk.msra.mxu1 %vm3662_vm9, %v21962_v17 }
 0xa0d   : > { %15130 = vmatpush.xpose.msk.msrb.mxu2 %vm3662_vm9, %v21356_v39  ;;  %v10876_v39 = vld [vmem:[#allocation2 + $0x502] sm:$0xff] }
 0xa0e   : > { %15216 = vmatpush.xpose.msk.msra.mxu3 %vm3662_vm9, %v21362_v8  ;;  %v22000_v8 = vld [vmem:[%s22899_s2 + $0x14] sm:$0x1] }
 0xa10   : > { %15045 = vmatpush.xpose.msk.msra.mxu1 %vm3662_vm9, %v21970_v60 }
 0xa11   : > { %15131 = vmatpush.xpose.msk.msrb.mxu2 %vm3662_vm9, %v21972_v28 }
 0xa12   : > { %15217 = vmatpush.xpose.msk.msra.mxu3 %vm3662_vm9, %v21978_v19 }
 0xa14   : > { %15046 = vmatpush.xpose.msk.msra.mxu1 %vm3662_vm9, %v10154_v45  ;;  %v22082_v45 = vld [vmem:[#allocation2 + $0x540] sm:$0xff] }
 0xa15   : > { %15132 = vmatpush.xpose.msk.msrb.mxu2 %vm3662_vm9, %v10515_v4  ;;  %v23345_v4 = vld [vmem:[#allocation43_spill] sm:$0xff] }
 0xa16   : > { %15218 = vmatpush.xpose.msk.msra.mxu3 %vm3662_vm9, %v10876_v39  ;;  %v22090_v39 = vld [vmem:[#allocation2 + $0x530] sm:$0xff] }
 0xa17   : > { %15047 = vmatmul.msk.f32.vlgmr.msra.gmra.mxu1 %vm3662_vm9, %v21666_v27  ;;  %v23335_v27 = vld [vmem:[#allocation14_spill] sm:$0xff] }
 0xa18   : > { %15100 = vmatpush.xpose.msk.msrb.mxu1 %vm3662_vm9, %v21387_v22  ;;  %15133 = vmatmul.msk.f32.vlgmr.msrb.gmra.mxu2 %vm3662_vm9, %v21832_v1  ;;  %v23333_v22 = vld [vmem:[#allocation12_spill] sm:$0xff] }
 0xa19   : > { %15186 = vmatpush.xpose.msk.msra.mxu2 %vm3662_vm9, %v21389_v38  ;;  %15219 = vmatmul.msk.f32.vlgmr.msra.gmra.mxu3 %vm3662_vm9, %v22000_v8  ;;  %v23334_v38 = vld [vmem:[#allocation8_spill] sm:$0xff] }
 0xa1a   : > { %15272 = vmatpush.xpose.msk.msrb.mxu3 %vm3662_vm9, %v21982_v43 }
 0xa1c   : > { %15101 = vmatpush.xpose.msk.msrb.mxu1 %vm3662_vm9, %v21400_v25  ;;  %v23336_v25 = vld [vmem:[#allocation9_spill] sm:$0xff] }
 0xa1d   : > { %15187 = vmatpush.xpose.msk.msra.mxu2 %vm3662_vm9, %v21402_v0  ;;  %v23337_v0 = vld [vmem:[#allocation18_spill] sm:$0xff] }
 0xa1e   : > { %15273 = vmatpush.xpose.msk.msrb.mxu3 %vm3662_vm9, %v21452_v6  ;;  %v22034_v6 = vld [vmem:[#allocation2 + $0x331] sm:$0xff] }
 0xa20   : > { %15102 = vmatpush.xpose.msk.msrb.mxu1 %vm3662_vm9, %v21412_v3  ;;  %v23338_v3 = vld [vmem:[#allocation10_spill] sm:$0xff] }
 0xa21   : > { %15188 = vmatpush.xpose.msk.msra.mxu2 %vm3662_vm9, %v21414_v31  ;;  %v23339_v31 = vld [vmem:[#allocation21_spill] sm:$0xff] }
 0xa22   : > { %15274 = vmatpush.xpose.msk.msrb.mxu3 %vm3662_vm9, %v23333_v22  ;;  %v22096_v22 = vld [vmem:[#allocation2 + $0x291] sm:$0xff] }
 0xa24   : > { %15103 = vmatpush.xpose.msk.msrb.mxu1 %vm3662_vm9, %v23334_v38  ;;  %v22100_v38 = vld [vmem:[#allocation2 + $0x3d2] sm:$0xff] }
 0xa25   : > { %15189 = vmatpush.xpose.msk.msra.mxu2 %vm3662_vm9, %v23335_v27  ;;  %v22102_v27 = vld [vmem:[#allocation2 + $0x520] sm:$0xff] }
 0xa26   : > { %15275 = vmatpush.xpose.msk.msrb.mxu3 %vm3662_vm9, %v21486_v41  ;;  %v22038_v41 = vld [vmem:[#allocation2 + $0x472] sm:$0xff] }
 0xa28   : > { %15104 = vmatpush.xpose.msk.msrb.mxu1 %vm3662_vm9, %v23336_v25  ;;  %v22109_v25 = vld [vmem:[#allocation2 + $0x621] sm:$0xff] }
 0xa29   : > { %15190 = vmatpush.xpose.msk.msra.mxu2 %vm3662_vm9, %v23337_v0  ;;  %v22114_v0 = vld [vmem:[#allocation2 + $0x4e0] sm:$0xff] }
 0xa2a   : > { %15276 = vmatpush.xpose.msk.msrb.mxu3 %vm3662_vm9, %v21506_v62  ;;  %v10507_v62 = vld [vmem:[#allocation2 + $0x321] sm:$0xff] }
 0xa2c   : > { %15105 = vmatpush.xpose.msk.msrb.mxu1 %vm3662_vm9, %v23338_v3  ;;  %v22141_v3 = vld [vmem:[#allocation2 + $0x4c0] sm:$0xff] }
 0xa2d   : > { %15191 = vmatpush.xpose.msk.msra.mxu2 %vm3662_vm9, %v23339_v31  ;;  %v23347_v31 = vld [vmem:[#allocation26_spill] sm:$0xff] }
 0xa2e   : > { %15277 = vmatpush.xpose.msk.msrb.mxu3 %vm3662_vm9, %v21519_v36  ;;  %v23340_v36 = vld [vmem:[#allocation25_spill] sm:$0xff] }
 0xa30   : > { %15106 = vmatpush.xpose.msk.msrb.mxu1 %vm3662_vm9, %v22034_v6 }
 0xa31   : > { %15192 = vmatpush.xpose.msk.msra.mxu2 %vm3662_vm9, %v22038_v41 }
 0xa32   : > { %15278 = vmatpush.xpose.msk.msrb.mxu3 %vm3662_vm9, %v21533_v50  ;;  %v22058_v50 = vld [vmem:[#allocation2 + $0x570] sm:$0xff] }
 0xa34   : > { %15107 = vmatpush.xpose.msk.msrb.mxu1 %vm3662_vm9, %v10507_v62  ;;  %v22149_v62 = vld [vmem:[#allocation2 + $0x4b0] sm:$0xff] }
 0xa35   : > { %15193 = vmatpush.xpose.msk.msra.mxu2 %vm3662_vm9, %v10868_v61  ;;  %v22157_v61 = vld [vmem:[#allocation2 + $0x4a0] sm:$0xff] }
 0xa36   : > { %15279 = vmatpush.xpose.msk.msrb.mxu3 %vm3662_vm9, %v21547_v15  ;;  %v22066_v15 = vld [vmem:[#allocation2 + $0x560] sm:$0xff] }
 0xa38   : > { %15108 = vmatpush.xpose.msk.msrb.mxu1 %vm3662_vm9, %v23340_v36  ;;  %v23349_v36 = vld [vmem:[#allocation32_spill] sm:$0xff] }
 0xa39   : > { %15194 = vmatpush.xpose.msk.msra.mxu2 %vm3662_vm9, %v21492_v16  ;;  %v23341_v16 = vld [vmem:[#allocation16_spill] sm:$0xff] }
 0xa3a   : > { %15280 = vmatpush.xpose.msk.msrb.mxu3 %vm3662_vm9, %v22050_v49 }
 0xa3c   : > { %15109 = vmatpush.xpose.msk.msrb.mxu1 %vm3662_vm9, %v21509_v24  ;;  %v23342_v24 = vld [vmem:[#allocation20_spill] sm:$0xff] }
 0xa3d   : > { %15195 = vmatpush.xpose.msk.msra.mxu2 %vm3662_vm9, %v21511_v10  ;;  %v23343_v10 = vld [vmem:[#allocation22_spill] sm:$0xff] }
 0xa3e   : > { %15281 = vmatpush.xpose.msk.msrb.mxu3 %vm3662_vm9, %v22058_v50 }
 0xa40   : > { %15110 = vmatpush.xpose.msk.msrb.mxu1 %vm3662_vm9, %v21523_v48  ;;  %v23344_v48 = vld [vmem:[#allocation23_spill] sm:$0xff] }
 0xa41   : > { %15196 = vmatpush.xpose.msk.msra.mxu2 %vm3662_vm9, %v23341_v16  ;;  %v23350_v16 = vld [vmem:[#allocation28_spill] sm:$0xff] }
 0xa42   : > { %15282 = vmatpush.xpose.msk.msrb.mxu3 %vm3662_vm9, %v22066_v15 }
 0xa44   : > { %15111 = vmatpush.xpose.msk.msrb.mxu1 %vm3662_vm9, %v23342_v24  ;;  %v22175_v24 = vld [vmem:[#allocation2 + $0x480] sm:$0xff] }
 0xa45   : > { %15197 = vmatpush.xpose.msk.msra.mxu2 %vm3662_vm9, %v23343_v10  ;;  %v23351_v10 = vld [vmem:[#allocation30_spill] sm:$0xff] }
 0xa46   : > { %15283 = vmatpush.xpose.msk.msrb.mxu3 %vm3662_vm9, %v22074_v2 }
 0xa48   : > { %15112 = vmatpush.xpose.msk.msrb.mxu1 %vm3662_vm9, %v23344_v48  ;;  %v22194_v48 = vld [vmem:[#allocation2 + $0x581] sm:$0xff] }
 0xa49   : > { %15198 = vmatpush.xpose.msk.msra.mxu2 %vm3662_vm9, %v23345_v4  ;;  %v23352_v4 = vld [vmem:[#allocation29_spill] sm:$0xff] }
 0xa4a   : > { %15284 = vmatpush.xpose.msk.msrb.mxu3 %vm3662_vm9, %v22082_v45 }
 0xa4c   : > { %15113 = vmatpush.xpose.msk.msrb.mxu1 %vm3662_vm9, %v21563_v23  ;;  %v10499_v23 = vld [vmem:[#allocation2 + $0x281] sm:$0xff] }
 0xa4d   : > { %15199 = vmatpush.xpose.msk.msra.mxu2 %vm3662_vm9, %v21565_v5  ;;  %v10860_v5 = vld [vmem:[#allocation2 + $0x3c2] sm:$0xff] }
 0xa4e   : > { %15285 = vmatpush.xpose.msk.msrb.mxu3 %vm3662_vm9, %v22090_v39 }
 0xa50   : > { %15114 = vmatpush.xpose.msk.msrb.mxu1 %vm3662_vm9, %v22096_v22 }
 0xa51   : > { %15200 = vmatpush.xpose.msk.msra.mxu2 %vm3662_vm9, %v22100_v38 }
 0xa52   : > { %15286 = vmatpush.xpose.msk.msrb.mxu3 %vm3662_vm9, %v22102_v27 }
 0xa54   : > { %15115 = vmatpush.xpose.msk.msrb.mxu1 %vm3662_vm9, %v10499_v23  ;;  %v22214_v23 = vld [vmem:[#allocation2 + $0x561] sm:$0xff] }
 0xa55   : > { %15201 = vmatpush.xpose.msk.msra.mxu2 %vm3662_vm9, %v10860_v5  ;;  %v23353_v5 = vld [vmem:[#allocation35_spill] sm:$0xff] }
 0xa56   : > { %15287 = vmatpush.xpose.msk.msrb.mxu3 %vm3662_vm9, %v21637_v34  ;;  %v22129_v34 = vld [vmem:[%s22899_s2 + $0x15] sm:$0x1] }
 0xa57   : > { %15116 = vmatmul.msk.f32.vlgmr.msrb.gmra.mxu1 %vm3662_vm9, %v21832_v1  ;;  %v23346_v1 = vld [vmem:[#allocation15_spill] sm:$0xff] }
 0xa58   : > { %15169 = vmatpush.xpose.msk.msra.mxu1 %vm3662_vm9, %v21594_v9  ;;  %15202 = vmatmul.msk.f32.vlgmr.msra.gmra.mxu2 %vm3662_vm9, %v22000_v8  ;;  %v22133_v9 = vld [vmem:[#allocation2 + $0x4d0] sm:$0xff] }
 0xa59   : > { %15255 = vmatpush.xpose.msk.msrb.mxu2 %vm3662_vm9, %v22114_v0  ;;  %15288 = vmatmul.msk.f32.vlgmr.msrb.gmra.mxu3 %vm3662_vm9, %v22129_v34 }
 0xa5a   : > { %15341 = vmatpush.xpose.msk.msra.mxu3 %vm3662_vm9, %v22109_v25 }
 0xa5c   : > { %15170 = vmatpush.xpose.msk.msra.mxu1 %vm3662_vm9, %v21605_v47  ;;  %v23348_v47 = vld [vmem:[#allocation24_spill] sm:$0xff] }
 0xa5d   : > { %15256 = vmatpush.xpose.msk.msrb.mxu2 %vm3662_vm9, %v22133_v9 }
 0xa5e   : > { %15342 = vmatpush.xpose.msk.msra.mxu3 %vm3662_vm9, %v23346_v1  ;;  %v22224_v1 = vld [vmem:[#allocation2 + $0x551] sm:$0xff] }
 0xa60   : > { %15171 = vmatpush.xpose.msk.msra.mxu1 %vm3662_vm9, %v23347_v31  ;;  %v22228_v31 = vld [vmem:[#allocation2 + $0x400] sm:$0xff] }
 0xa61   : > { %15257 = vmatpush.xpose.msk.msrb.mxu2 %vm3662_vm9, %v22141_v3 }
 0xa62   : > { %15343 = vmatpush.xpose.msk.msra.mxu3 %vm3662_vm9, %v21670_v32  ;;  %v22165_v32 = vld [vmem:[#allocation2 + $0x490] sm:$0xff] }
 0xa64   : > { %15172 = vmatpush.xpose.msk.msra.mxu1 %vm3662_vm9, %v23348_v47  ;;  %v23354_v47 = vld [vmem:[#allocation31_spill] sm:$0xff] }
 0xa65   : > { %15258 = vmatpush.xpose.msk.msrb.mxu2 %vm3662_vm9, %v22149_v62 }
 0xa66   : > { %15344 = vmatpush.xpose.msk.msra.mxu3 %vm3662_vm9, %v21683_v56  ;;  %v22173_v56 = vld [vmem:[#allocation2 + $0x332] sm:$0xff] }
 0xa68   : > { %15173 = vmatpush.xpose.msk.msra.mxu1 %vm3662_vm9, %v23349_v36  ;;  %v22234_v36 = vld [vmem:[#allocation2 + $0x541] sm:$0xff] }
 0xa69   : > { %15259 = vmatpush.xpose.msk.msrb.mxu2 %vm3662_vm9, %v22157_v61 }
 0xa6a   : > { %15345 = vmatpush.xpose.msk.msra.mxu3 %vm3662_vm9, %v21698_v42  ;;  %v10852_v42 = vld [vmem:[#allocation2 + $0x322] sm:$0xff] }
 0xa6c   : > { %15174 = vmatpush.xpose.msk.msra.mxu1 %vm3662_vm9, %v23350_v16  ;;  %v22238_v16 = vld [vmem:[#allocation2 + $0x3f0] sm:$0xff] }
 0xa6d   : > { %15260 = vmatpush.xpose.msk.msrb.mxu2 %vm3662_vm9, %v22165_v32 }
 0xa6e   : > { %15346 = vmatpush.xpose.msk.msra.mxu3 %vm3662_vm9, %v21709_v7  ;;  %v22188_v7 = vld [vmem:[#allocation2 + $0x440] sm:$0xff] }
 0xa70   : > { %15175 = vmatpush.xpose.msk.msra.mxu1 %vm3662_vm9, %v22173_v56 }
 0xa71   : > { %15261 = vmatpush.xpose.msk.msrb.mxu2 %vm3662_vm9, %v22175_v24 }
 0xa72   : > { %15347 = vmatpush.xpose.msk.msra.mxu3 %vm3662_vm9, %v21721_v26  ;;  %v22198_v26 = vld [vmem:[#allocation2 + $0x430] sm:$0xff] }
 0xa74   : > { %15176 = vmatpush.xpose.msk.msra.mxu1 %vm3662_vm9, %v10852_v42  ;;  %v22244_v42 = vld [vmem:[#allocation2 + $0x531] sm:$0xff] }
 0xa75   : > { %15262 = vmatpush.xpose.msk.msrb.mxu2 %vm3662_vm9, %v21739_v20  ;;  %v22204_v20 = vld [vmem:[#allocation2 + $0x571] sm:$0xff] }
 0xa76   : > { %15348 = vmatpush.xpose.msk.msra.mxu3 %vm3662_vm9, %v21733_v14  ;;  %v22208_v14 = vld [vmem:[#allocation2 + $0x420] sm:$0xff] }
 0xa78   : > { %15177 = vmatpush.xpose.msk.msra.mxu1 %vm3662_vm9, %v23351_v10  ;;  %v22248_v10 = vld [vmem:[#allocation2 + $0x292] sm:$0xff] }
 0xa79   : > { %15263 = vmatpush.xpose.msk.msrb.mxu2 %vm3662_vm9, %v22188_v7 }
 0xa7a   : > { %15349 = vmatpush.xpose.msk.msra.mxu3 %vm3662_vm9, %v22194_v48 }
 0xa7c   : > { %15178 = vmatpush.xpose.msk.msra.mxu1 %vm3662_vm9, %v21701_v46  ;;  %v22218_v46 = vld [vmem:[#allocation2 + $0x410] sm:$0xff] }
 0xa7d   : > { %15264 = vmatpush.xpose.msk.msrb.mxu2 %vm3662_vm9, %v22198_v26 }
 0xa7e   : > { %15350 = vmatpush.xpose.msk.msra.mxu3 %vm3662_vm9, %v22204_v20 }
 0xa80   : > { %15179 = vmatpush.xpose.msk.msra.mxu1 %vm3662_vm9, %v23352_v4  ;;  %v22250_v4 = vld [vmem:[#allocation2 + $0x3e0] sm:$0xff] }
 0xa81   : > { %15265 = vmatpush.xpose.msk.msrb.mxu2 %vm3662_vm9, %v22208_v14  ;;  %23355 = vst [vmem:[#allocation37_spill] sm:$0xff] %v22250_v4 }
 0xa82   : > { %15351 = vmatpush.xpose.msk.msra.mxu3 %vm3662_vm9, %v22214_v23 }
 0xa84   : > { %15180 = vmatpush.xpose.msk.msra.mxu1 %vm3662_vm9, %v23353_v5  ;;  %v22256_v5 = vld [vmem:[#allocation2 + $0x521] sm:$0xff] }
 0xa85   : > { %15266 = vmatpush.xpose.msk.msrb.mxu2 %vm3662_vm9, %v22218_v46 }
 0xa86   : > { %15352 = vmatpush.xpose.msk.msra.mxu3 %vm3662_vm9, %v22224_v1 }
 0xa88   : > { %15181 = vmatpush.xpose.msk.msra.mxu1 %vm3662_vm9, %v23354_v47  ;;  %v22260_v47 = vld [vmem:[#allocation2 + $0x622] sm:$0xff] }
 0xa89   : > { %15267 = vmatpush.xpose.msk.msrb.mxu2 %vm3662_vm9, %v22228_v31 }
 0xa8a   : > { %15353 = vmatpush.xpose.msk.msra.mxu3 %vm3662_vm9, %v22234_v36 }
 0xa8c   : > { %15182 = vmatpush.xpose.msk.msra.mxu1 %vm3662_vm9, %v21749_v54  ;;  %v10844_v54 = vld [vmem:[#allocation2 + $0x282] sm:$0xff] }
 0xa8d   : > { %15268 = vmatpush.xpose.msk.msrb.mxu2 %vm3662_vm9, %v22238_v16 }
 0xa8e   : > { %15354 = vmatpush.xpose.msk.msra.mxu3 %vm3662_vm9, %v22244_v42 }
 0xa90   : > { %15183 = vmatpush.xpose.msk.msra.mxu1 %vm3662_vm9, %v22248_v10 }
 0xa91   : > { %15269 = vmatpush.xpose.msk.msrb.mxu2 %vm3662_vm9, %v22250_v4  ;;  %v22271_v4 = vld [vmem:[#allocation2 + $0x4e1] sm:$0xff] }
 0xa92   : > { %15355 = vmatpush.xpose.msk.msra.mxu3 %vm3662_vm9, %v22256_v5 }
 0xa94   : > { %15184 = vmatpush.xpose.msk.msra.mxu1 %vm3662_vm9, %v10844_v54  ;;  %v22366_v54 = vld [vmem:[#allocation2 + $0x421] sm:$0xff] }
 0xa95   : > { %15270 = vmatpush.xpose.msk.msrb.mxu2 %vm3662_vm9, %v21803_v29  ;;  %v22284_v29 = vld [vmem:[%s22899_s2 + $0x16] sm:$0x1] }
 0xa96   : > { %15356 = vmatpush.xpose.msk.msra.mxu3 %vm3662_vm9, %v21805_v33  ;;  %v22290_v33 = vld [vmem:[#allocation2 + $0x4d1] sm:$0xff] }
 0xa97   : > { %15185 = vmatmul.msk.f32.vlgmr.msra.gmra.mxu1 %vm3662_vm9, %v22000_v8  ;;  %v22298_v8 = vld [vmem:[#allocation2 + $0x4c1] sm:$0xff] }
 0xa98   : > { %15238 = vmatpush.xpose.msk.msrb.mxu1 %vm3662_vm9, %v22265_v12  ;;  %15271 = vmatmul.msk.f32.vlgmr.msrb.gmra.mxu2 %vm3662_vm9, %v22129_v34 }
 0xa99   : > { %15324 = vmatpush.xpose.msk.msra.mxu2 %vm3662_vm9, %v22271_v4  ;;  %15357 = vmatmul.msk.f32.vlgmr.msra.gmra.mxu3 %vm3662_vm9, %v22284_v29 }
 0xa9a   : > { %15410 = vmatpush.xpose.msk.msrb.mxu3 %vm3662_vm9, %v22260_v47 }
 0xa9c   : > { %15239 = vmatpush.xpose.msk.msrb.mxu1 %vm3662_vm9, %v21817_v59  ;;  %v22306_v59 = vld [vmem:[#allocation2 + $0x4b1] sm:$0xff] }
 0xa9d   : > { %15325 = vmatpush.xpose.msk.msra.mxu2 %vm3662_vm9, %v22290_v33 }
 0xa9e   : > { %15411 = vmatpush.xpose.msk.msrb.mxu3 %vm3662_vm9, %v21813_v35  ;;  %v22314_v35 = vld [vmem:[#allocation2 + $0x4a1] sm:$0xff] }
 0xaa0   : > { %15240 = vmatpush.xpose.msk.msrb.mxu1 %vm3662_vm9, %v21839_v37  ;;  %v23356_v37 = vld [vmem:[#allocation36_spill] sm:$0xff] }
 0xaa1   : > { %15326 = vmatpush.xpose.msk.msra.mxu2 %vm3662_vm9, %v22298_v8 }
 0xaa2   : > { %15412 = vmatpush.xpose.msk.msrb.mxu3 %vm3662_vm9, %v21836_v55  ;;  %v22322_v55 = vld [vmem:[#allocation2 + $0x491] sm:$0xff] }
 0xaa4   : > { %15241 = vmatpush.xpose.msk.msrb.mxu1 %vm3662_vm9, %v21853_v40  ;;  %v23357_v40 = vld [vmem:[#allocation19_spill] sm:$0xff] }
 0xaa5   : > { %15327 = vmatpush.xpose.msk.msra.mxu2 %vm3662_vm9, %v22306_v59 }
 0xaa6   : > { %15413 = vmatpush.xpose.msk.msrb.mxu3 %vm3662_vm9, %v21850_v30  ;;  %v22330_v30 = vld [vmem:[#allocation2 + $0x481] sm:$0xff] }
 0xaa8   : > { %15242 = vmatpush.xpose.msk.msrb.mxu1 %vm3662_vm9, %v21864_v21  ;;  %v22342_v21 = vld [vmem:[#allocation2 + $0x300] sm:$0xff] }
 0xaa9   : > { %15328 = vmatpush.xpose.msk.msra.mxu2 %vm3662_vm9, %v22314_v35 }
 0xaaa   : > { %15414 = vmatpush.xpose.msk.msrb.mxu3 %vm3662_vm9, %v21861_v13  ;;  %v23358_v13 = vld [vmem:[#allocation38_spill] sm:$0xff] }
 0xaac   : > { %15243 = vmatpush.xpose.msk.msrb.mxu1 %vm3662_vm9, %v21876_v52  ;;  %v22348_v52 = vld [vmem:[#allocation2 + $0x582] sm:$0xff] }
 0xaad   : > { %15329 = vmatpush.xpose.msk.msra.mxu2 %vm3662_vm9, %v22322_v55 }
 0xaae   : > { %15415 = vmatpush.xpose.msk.msrb.mxu3 %vm3662_vm9, %v21872_v58  ;;  %v22346_v58 = vld [vmem:[#allocation2 + $0x441] sm:$0xff] }
 0xab0   : > { %15244 = vmatpush.xpose.msk.msrb.mxu1 %vm3662_vm9, %v23356_v37  ;;  %v22368_v37 = vld [vmem:[#allocation2 + $0x562] sm:$0xff] }
 0xab1   : > { %15330 = vmatpush.xpose.msk.msra.mxu2 %vm3662_vm9, %v22330_v30 }
 0xab2   : > { %15416 = vmatpush.xpose.msk.msrb.mxu3 %vm3662_vm9, %v23357_v40  ;;  %v22378_v40 = vld [vmem:[#allocation2 + $0x552] sm:$0xff] }
 0xab4   : > { %15245 = vmatpush.xpose.msk.msrb.mxu1 %vm3662_vm9, %v23358_v13  ;;  %v22388_v13 = vld [vmem:[#allocation2 + $0x542] sm:$0xff] }
 0xab5   : > { %15331 = vmatpush.xpose.msk.msra.mxu2 %vm3662_vm9, %v21900_v53  ;;  %v22356_v53 = vld [vmem:[#allocation2 + $0x431] sm:$0xff] }
 0xab6   : > { %15417 = vmatpush.xpose.msk.msrb.mxu3 %vm3662_vm9, %v21895_v51  ;;  %v22358_v51 = vld [vmem:[#allocation2 + $0x572] sm:$0xff] }
 0xab8   : > { %15246 = vmatpush.xpose.msk.msrb.mxu1 %vm3662_vm9, %v22342_v21 }
 0xab9   : > { %15332 = vmatpush.xpose.msk.msra.mxu2 %vm3662_vm9, %v22346_v58 }
 0xaba   : > { %15418 = vmatpush.xpose.msk.msrb.mxu3 %vm3662_vm9, %v22348_v52 }
 0xabc   : > { %15247 = vmatpush.xpose.msk.msrb.mxu1 %vm3662_vm9, %v21913_v18  ;;  %v22376_v18 = vld [vmem:[#allocation2 + $0x411] sm:$0xff] }
 0xabd   : > { %15333 = vmatpush.xpose.msk.msra.mxu2 %vm3662_vm9, %v22356_v53  ;;  %23359 = vst [vmem:[#allocation40_spill] sm:$0xff] %v22376_v18 }
 0xabe   : > { %15419 = vmatpush.xpose.msk.msrb.mxu3 %vm3662_vm9, %v22358_v51 }
 0xac0   : > { %15248 = vmatpush.xpose.msk.msrb.mxu1 %vm3662_vm9, %v21922_v44  ;;  %v22386_v44 = vld [vmem:[#allocation2 + $0x401] sm:$0xff] }
 0xac1   : > { %15334 = vmatpush.xpose.msk.msra.mxu2 %vm3662_vm9, %v22366_v54  ;;  %23360 = vst [vmem:[#allocation41_spill] sm:$0xff] %v22386_v44 }
 0xac2   : > { %15420 = vmatpush.xpose.msk.msrb.mxu3 %vm3662_vm9, %v22368_v37 }
 0xac4   : > { %15249 = vmatpush.xpose.msk.msrb.mxu1 %vm3662_vm9, %v21931_v57  ;;  %v22396_v57 = vld [vmem:[#allocation2 + $0x3f1] sm:$0xff] }
 0xac5   : > { %15335 = vmatpush.xpose.msk.msra.mxu2 %vm3662_vm9, %v22376_v18  ;;  %v22398_v18 = vld [vmem:[#allocation2 + $0x532] sm:$0xff] }
 0xac6   : > { %15421 = vmatpush.xpose.msk.msrb.mxu3 %vm3662_vm9, %v22378_v40  ;;  %23361 = vst [vmem:[#allocation42_spill] sm:$0xff] %v22398_v18 }
 0xac8   : > { %15250 = vmatpush.xpose.msk.msrb.mxu1 %vm3662_vm9, %v21946_v11  ;;  %v22406_v11 = vld [vmem:[#allocation2 + $0x3e1] sm:$0xff] }
 0xac9   : > { %15336 = vmatpush.xpose.msk.msra.mxu2 %vm3662_vm9, %v22386_v44  ;;  %v22408_v44 = vld [vmem:[#allocation2 + $0x522] sm:$0xff] }
 0xaca   : > { %15422 = vmatpush.xpose.msk.msrb.mxu3 %vm3662_vm9, %v22388_v13  ;;  %23362 = vst [vmem:[#allocation4_spill] sm:$0xff] %v22408_v44 }
 0xacc   : > { %15251 = vmatpush.xpose.msk.msrb.mxu1 %vm3662_vm9, %v21954_v63  ;;  %v12273_v63 = vld [vmem:[#allocation2 + $0x630] sm:$0xff] }
 0xacd   : > { %15337 = vmatpush.xpose.msk.msra.mxu2 %vm3662_vm9, %v22396_v57 }
 0xace   : > { %15423 = vmatpush.xpose.msk.msrb.mxu3 %vm3662_vm9, %v22398_v18  ;;  %v22422_v18 = vld [vmem:[#allocation2 + $0x4e2] sm:$0xff] }
 0xacf   : > { %23364 = vst [vmem:[#allocation5_spill] sm:$0xff] %v22422_v18 }
 0xad0   : > { %15252 = vmatpush.xpose.msk.msrb.mxu1 %vm3662_vm9, %v21962_v17  ;;  %v22420_v17 = vld [vmem:[#allocation2 + $0x3a1] sm:$0xff] }
 0xad1   : > { %15338 = vmatpush.xpose.msk.msra.mxu2 %vm3662_vm9, %v22406_v11  ;;  %23363 = vst [vmem:[#allocation11_spill] sm:$0xff] %v22420_v17 }
 0xad2   : > { %15424 = vmatpush.xpose.msk.msrb.mxu3 %vm3662_vm9, %v22408_v44  ;;  %v22470_v44 = vld [vmem:[#allocation2 + $0x4a2] sm:$0xff] }
 0xad4   : > { %15253 = vmatpush.xpose.msk.msrb.mxu1 %vm3662_vm9, %v21970_v60  ;;  %v22436_v60 = vld [vmem:[%s22899_s2 + $0x17] sm:$0x1] }
 0xad5   : > { %15339 = vmatpush.xpose.msk.msra.mxu2 %vm3662_vm9, %v21972_v28  ;;  %v22440_v28 = vld [vmem:[#allocation2 + $0x391] sm:$0xff] }
 0xad6   : > { %15425 = vmatpush.xpose.msk.msrb.mxu3 %vm3662_vm9, %v21978_v19  ;;  %23365 = vst [vmem:[#allocation6_spill] sm:$0xff] %v22440_v28  ;;  %v22442_v19 = vld [vmem:[#allocation2 + $0x4d2] sm:$0xff] }
 0xad7   : > { %15254 = vmatmul.msk.f32.vlgmr.msrb.gmra.mxu1 %vm3662_vm9, %v22129_v34  ;;  %23366 = vst [vmem:[#allocation7_spill] sm:$0xff] %v22442_v19  ;;  %v12271_v34 = vld [vmem:[#allocation2 + $0x610] sm:$0xff] }
 0xad8   : > { %15307 = vmatpush.xpose.msk.msra.mxu1 %vm3662_vm9, %v22420_v17  ;;  %15340 = vmatmul.msk.f32.vlgmr.msra.gmra.mxu2 %vm3662_vm9, %v22284_v29  ;;  %v22459_v17 = vld [vmem:[#allocation2 + $0x371] sm:$0xff] }
 0xad9   : > { %15393 = vmatpush.xpose.msk.msrb.mxu2 %vm3662_vm9, %v22422_v18  ;;  %15426 = vmatmul.msk.f32.vlgmr.msrb.gmra.mxu3 %vm3662_vm9, %v22436_v60  ;;  %v22452_v18 = vld [vmem:[#allocation2 + $0x4c2] sm:$0xff]  ;;  %23369 = vst [vmem:[#allocation8_spill] sm:$0xff] %v22459_v17 }
 0xada   : > { %15479 = vmatpush.xpose.msk.msra.mxu3 %vm3662_vm9, %v12273_v63  ;;  %v22450_v63 = vld [vmem:[#allocation2 + $0x381] sm:$0xff]  ;;  %23368 = vst [vmem:[#allocation12_spill] sm:$0xff] %v22452_v18 }
 0xadb   : > { %23367 = vst [vmem:[#allocation13_spill] sm:$0xff] %v22450_v63 }
 0xadc   : > { %15308 = vmatpush.xpose.msk.msra.mxu1 %vm3662_vm9, %v22440_v28  ;;  %v12270_v28 = vld [vmem:[#allocation2 + $0x600] sm:$0xff] }
 0xadd   : > { %15394 = vmatpush.xpose.msk.msrb.mxu2 %vm3662_vm9, %v22442_v19  ;;  %v22461_v19 = vld [vmem:[#allocation2 + $0x4b2] sm:$0xff] }
 0xade   : > { %15480 = vmatpush.xpose.msk.msra.mxu3 %vm3662_vm9, %v21982_v43  ;;  %23370 = vst [vmem:[#allocation14_spill] sm:$0xff] %v22461_v19  ;;  %v12269_v43 = vld [vmem:[#allocation2 + $0x5f0] sm:$0xff] }
 0xae0   : > { %15309 = vmatpush.xpose.msk.msra.mxu1 %vm3662_vm9, %v22450_v63  ;;  %v22468_v63 = vld [vmem:[#allocation2 + $0x361] sm:$0xff] }
 0xae1   : > { %15395 = vmatpush.xpose.msk.msrb.mxu2 %vm3662_vm9, %v22452_v18  ;;  %23371 = vst [vmem:[#allocation9_spill] sm:$0xff] %v22468_v63  ;;  %v22479_v18 = vld [vmem:[#allocation2 + $0x492] sm:$0xff] }
 0xae2   : > { %15481 = vmatpush.xpose.msk.msra.mxu3 %vm3662_vm9, %v12271_v34  ;;  %v12268_v34 = vld [vmem:[#allocation2 + $0x5e0] sm:$0xff]  ;;  %23373 = vst [vmem:[#allocation10_spill] sm:$0xff] %v22479_v18 }
 0xae4   : > { %15310 = vmatpush.xpose.msk.msra.mxu1 %vm3662_vm9, %v22459_v17  ;;  %v22477_v17 = vld [vmem:[#allocation2 + $0x351] sm:$0xff] }
 0xae5   : > { %15396 = vmatpush.xpose.msk.msrb.mxu2 %vm3662_vm9, %v22461_v19  ;;  %23372 = vst [vmem:[#allocation18_spill] sm:$0xff] %v22477_v17  ;;  %v22488_v19 = vld [vmem:[#allocation2 + $0x482] sm:$0xff] }
 0xae6   : > { %15482 = vmatpush.xpose.msk.msra.mxu3 %vm3662_vm9, %v12270_v28  ;;  %v12267_v28 = vld [vmem:[#allocation2 + $0x5d0] sm:$0xff] }
 0xae8   : > { %15311 = vmatpush.xpose.msk.msra.mxu1 %vm3662_vm9, %v22468_v63  ;;  %v22486_v63 = vld [vmem:[#allocation2 + $0x341] sm:$0xff] }
 0xae9   : > { %15397 = vmatpush.xpose.msk.msrb.mxu2 %vm3662_vm9, %v22470_v44 }
 0xaea   : > { %15483 = vmatpush.xpose.msk.msra.mxu3 %vm3662_vm9, %v12269_v43  ;;  %v12266_v43 = vld [vmem:[#allocation2 + $0x5c0] sm:$0xff] }
 0xaec   : > { %15312 = vmatpush.xpose.msk.msra.mxu1 %vm3662_vm9, %v22477_v17  ;;  %v22502_v17 = vld [vmem:[#allocation2 + $0x442] sm:$0xff] }
 0xaed   : > { %15398 = vmatpush.xpose.msk.msrb.mxu2 %vm3662_vm9, %v22479_v18  ;;  %v22500_v18 = vld [vmem:[#allocation2 + $0x301] sm:$0xff] }
 0xaee   : > { %15484 = vmatpush.xpose.msk.msra.mxu3 %vm3662_vm9, %v12268_v34  ;;  %v12265_v34 = vld [vmem:[#allocation2 + $0x590] sm:$0xff] }
 0xaf0   : > { %15313 = vmatpush.xpose.msk.msra.mxu1 %vm3662_vm9, %v22486_v63 }
 0xaf1   : > { %15399 = vmatpush.xpose.msk.msrb.mxu2 %vm3662_vm9, %v22488_v19 }
 0xaf2   : > { %15485 = vmatpush.xpose.msk.msra.mxu3 %vm3662_vm9, %v12267_v28  ;;  %v22509_v28 = vld [vmem:[#allocation2 + $0x2f1] sm:$0xff] }
 0xaf3   : > { %23374 = vst [vmem:[#allocation21_spill] sm:$0xff] %v22509_v28 }
 0xaf4   : > { %15314 = vmatpush.xpose.msk.msra.mxu1 %vm3662_vm9, %v22034_v6  ;;  %v22511_v6 = vld [vmem:[#allocation2 + $0x432] sm:$0xff] }
 0xaf5   : > { %15400 = vmatpush.xpose.msk.msrb.mxu2 %vm3662_vm9, %v22038_v41  ;;  %v22519_v41 = vld [vmem:[#allocation2 + $0x2e1] sm:$0xff] }
 0xaf6   : > { %15486 = vmatpush.xpose.msk.msra.mxu3 %vm3662_vm9, %v12266_v43  ;;  %23375 = vst [vmem:[#allocation25_spill] sm:$0xff] %v22519_v41  ;;  %v22521_v43 = vld [vmem:[#allocation2 + $0x422] sm:$0xff] }
 0xaf8   : > { %15315 = vmatpush.xpose.msk.msra.mxu1 %vm3662_vm9, %v22500_v18 }
 0xaf9   : > { %15401 = vmatpush.xpose.msk.msrb.mxu2 %vm3662_vm9, %v22502_v17 }
 0xafa   : > { %15487 = vmatpush.xpose.msk.msra.mxu3 %vm3662_vm9, %v12265_v34  ;;  %v22529_v34 = vld [vmem:[#allocation2 + $0x2d1] sm:$0xff] }
 0xafb   : > { %23376 = vst [vmem:[#allocation16_spill] sm:$0xff] %v22529_v34 }
 0xafc   : > { %15316 = vmatpush.xpose.msk.msra.mxu1 %vm3662_vm9, %v22509_v28  ;;  %v22531_v28 = vld [vmem:[#allocation2 + $0x412] sm:$0xff] }
 0xafd   : > { %15402 = vmatpush.xpose.msk.msrb.mxu2 %vm3662_vm9, %v22511_v6 }
 0xafe   : > { %15488 = vmatpush.xpose.msk.msra.mxu3 %vm3662_vm9, %v22050_v49  ;;  %v22539_v49 = vld [vmem:[#allocation2 + $0x2c1] sm:$0xff] }
 0xaff   : > { %23377 = vst [vmem:[#allocation20_spill] sm:$0xff] %v22539_v49 }
 0xb00   : > { %15317 = vmatpush.xpose.msk.msra.mxu1 %vm3662_vm9, %v22519_v41  ;;  %v22541_v41 = vld [vmem:[#allocation2 + $0x402] sm:$0xff] }
 0xb01   : > { %15403 = vmatpush.xpose.msk.msrb.mxu2 %vm3662_vm9, %v22521_v43 }
 0xb02   : > { %15489 = vmatpush.xpose.msk.msra.mxu3 %vm3662_vm9, %v22058_v50  ;;  %v22549_v50 = vld [vmem:[#allocation2 + $0x2b1] sm:$0xff] }
 0xb03   : > { %23378 = vst [vmem:[#allocation22_spill] sm:$0xff] %v22549_v50 }
 0xb04   : > { %15318 = vmatpush.xpose.msk.msra.mxu1 %vm3662_vm9, %v22529_v34  ;;  %v22551_v34 = vld [vmem:[#allocation2 + $0x3f2] sm:$0xff] }
 0xb05   : > { %15404 = vmatpush.xpose.msk.msrb.mxu2 %vm3662_vm9, %v22531_v28 }
 0xb06   : > { %15490 = vmatpush.xpose.msk.msra.mxu3 %vm3662_vm9, %v22066_v15  ;;  %v22559_v15 = vld [vmem:[#allocation2 + $0x2a1] sm:$0xff] }
 0xb08   : > { %15319 = vmatpush.xpose.msk.msra.mxu1 %vm3662_vm9, %v22539_v49  ;;  %v22561_v49 = vld [vmem:[#allocation2 + $0x3e2] sm:$0xff] }
 0xb09   : > { %15405 = vmatpush.xpose.msk.msrb.mxu2 %vm3662_vm9, %v22541_v41 }
 0xb0a   : > { %15491 = vmatpush.xpose.msk.msra.mxu3 %vm3662_vm9, %v22074_v2  ;;  %v12257_v2 = vld [vmem:[#allocation2 + $0x4f0] sm:$0xff] }
 0xb0c   : > { %15320 = vmatpush.xpose.msk.msra.mxu1 %vm3662_vm9, %v22549_v50  ;;  %v12618_v50 = vld [vmem:[#allocation2 + $0x631] sm:$0xff] }
 0xb0d   : > { %15406 = vmatpush.xpose.msk.msrb.mxu2 %vm3662_vm9, %v22551_v34 }
 0xb0e   : > { %15492 = vmatpush.xpose.msk.msra.mxu3 %vm3662_vm9, %v22082_v45  ;;  %v22573_v45 = vld [vmem:[#allocation2 + $0x3a2] sm:$0xff] }
 0xb10   : > { %15321 = vmatpush.xpose.msk.msra.mxu1 %vm3662_vm9, %v22559_v15 }
 0xb11   : > { %15407 = vmatpush.xpose.msk.msrb.mxu2 %vm3662_vm9, %v22561_v49 }
 0xb12   : > { %15493 = vmatpush.xpose.msk.msra.mxu3 %vm3662_vm9, %v22090_v39  ;;  %v22588_v39 = vld [vmem:[%s22899_s2 + $0x18] sm:$0x1] }
 0xb14   : > { %15322 = vmatpush.xpose.msk.msra.mxu1 %vm3662_vm9, %v22096_v22  ;;  %v22592_v22 = vld [vmem:[#allocation2 + $0x392] sm:$0xff] }
 0xb15   : > { %15408 = vmatpush.xpose.msk.msrb.mxu2 %vm3662_vm9, %v22100_v38  ;;  %v12616_v38 = vld [vmem:[#allocation2 + $0x611] sm:$0xff] }
 0xb16   : > { %15494 = vmatpush.xpose.msk.msra.mxu3 %vm3662_vm9, %v22102_v27  ;;  %v22600_v27 = vld [vmem:[#allocation2 + $0x382] sm:$0xff] }
 0xb17   : > { %15323 = vmatmul.msk.f32.vlgmr.msra.gmra.mxu1 %vm3662_vm9, %v22284_v29  ;;  %v12615_v29 = vld [vmem:[#allocation2 + $0x601] sm:$0xff] }
 0xb18   : > { %15376 = vmatpush.xpose.msk.msrb.mxu1 %vm3662_vm9, %v22573_v45  ;;  %15409 = vmatmul.msk.f32.vlgmr.msrb.gmra.mxu2 %vm3662_vm9, %v22436_v60 }
 0xb19   : > { %15462 = vmatpush.xpose.msk.msra.mxu2 %vm3662_vm9, %v12257_v2  ;;  %15495 = vmatmul.msk.f32.vlgmr.msra.gmra.mxu3 %vm3662_vm9, %v22588_v39  ;;  %v22621_v2 = vld [vmem:[#allocation2 + $0x352] sm:$0xff] }
 0xb1a   : > { %15548 = vmatpush.xpose.msk.msrb.mxu3 %vm3662_vm9, %v12618_v50  ;;  %v22607_v50 = vld [vmem:[#allocation2 + $0x372] sm:$0xff] }
 0xb1c   : > { %15377 = vmatpush.xpose.msk.msrb.mxu1 %vm3662_vm9, %v22592_v22 }
 0xb1d   : > { %15463 = vmatpush.xpose.msk.msra.mxu2 %vm3662_vm9, %v22114_v0  ;;  %v22614_v0 = vld [vmem:[#allocation2 + $0x362] sm:$0xff] }
 0xb1e   : > { %15549 = vmatpush.xpose.msk.msrb.mxu3 %vm3662_vm9, %v22109_v25  ;;  %v12614_v25 = vld [vmem:[#allocation2 + $0x5f1] sm:$0xff] }
 0xb20   : > { %15378 = vmatpush.xpose.msk.msrb.mxu1 %vm3662_vm9, %v22600_v27 }
 0xb21   : > { %15464 = vmatpush.xpose.msk.msra.mxu2 %vm3662_vm9, %v22133_v9  ;;  %v12613_v9 = vld [vmem:[#allocation2 + $0x5e1] sm:$0xff] }
 0xb22   : > { %15550 = vmatpush.xpose.msk.msrb.mxu3 %vm3662_vm9, %v12616_v38  ;;  %v22628_v38 = vld [vmem:[#allocation2 + $0x342] sm:$0xff] }
 0xb24   : > { %15379 = vmatpush.xpose.msk.msrb.mxu1 %vm3662_vm9, %v22607_v50 }
 0xb25   : > { %15465 = vmatpush.xpose.msk.msra.mxu2 %vm3662_vm9, %v22141_v3  ;;  %v12612_v3 = vld [vmem:[#allocation2 + $0x5d1] sm:$0xff] }
 0xb26   : > { %15551 = vmatpush.xpose.msk.msrb.mxu3 %vm3662_vm9, %v12615_v29  ;;  %v12610_v29 = vld [vmem:[#allocation2 + $0x591] sm:$0xff] }
 0xb28   : > { %15380 = vmatpush.xpose.msk.msrb.mxu1 %vm3662_vm9, %v22614_v0 }
 0xb29   : > { %15466 = vmatpush.xpose.msk.msra.mxu2 %vm3662_vm9, %v22149_v62  ;;  %v12611_v62 = vld [vmem:[#allocation2 + $0x5c1] sm:$0xff] }
 0xb2a   : > { %15552 = vmatpush.xpose.msk.msrb.mxu3 %vm3662_vm9, %v12614_v25  ;;  %v22640_v25 = vld [vmem:[#allocation2 + $0x302] sm:$0xff] }
 0xb2c   : > { %15381 = vmatpush.xpose.msk.msrb.mxu1 %vm3662_vm9, %v22621_v2 }
 0xb2d   : > { %15467 = vmatpush.xpose.msk.msra.mxu2 %vm3662_vm9, %v22157_v61  ;;  %v12249_v61 = vld [vmem:[#allocation2 + $0x450] sm:$0xff] }
 0xb2e   : > { %15553 = vmatpush.xpose.msk.msrb.mxu3 %vm3662_vm9, %v12613_v9  ;;  %v12955_v9 = vld [vmem:[#allocation2 + $0x592] sm:$0xff] }
 0xb30   : > { %15382 = vmatpush.xpose.msk.msrb.mxu1 %vm3662_vm9, %v22628_v38 }
 0xb31   : > { %15468 = vmatpush.xpose.msk.msra.mxu2 %vm3662_vm9, %v22165_v32  ;;  %v22646_v32 = vld [vmem:[#allocation2 + $0x2f2] sm:$0xff] }
 0xb32   : > { %15554 = vmatpush.xpose.msk.msrb.mxu3 %vm3662_vm9, %v12612_v3  ;;  %v12947_v3 = vld [vmem:[#allocation2 + $0x4f2] sm:$0xff] }
 0xb34   : > { %15383 = vmatpush.xpose.msk.msrb.mxu1 %vm3662_vm9, %v22173_v56  ;;  %v22654_v56 = vld [vmem:[#allocation2 + $0x2e2] sm:$0xff] }
 0xb35   : > { %15469 = vmatpush.xpose.msk.msra.mxu2 %vm3662_vm9, %v22175_v24  ;;  %v22662_v24 = vld [vmem:[#allocation2 + $0x2d2] sm:$0xff] }
 0xb36   : > { %15555 = vmatpush.xpose.msk.msrb.mxu3 %vm3662_vm9, %v12611_v62  ;;  %v23383_v62 = vld [vmem:[#allocation4_spill] sm:$0xff] }
 0xb38   : > { %15384 = vmatpush.xpose.msk.msrb.mxu1 %vm3662_vm9, %v22640_v25 }
 0xb39   : > { %15470 = vmatpush.xpose.msk.msra.mxu2 %vm3662_vm9, %v12249_v61  ;;  %v23387_v61 = vld [vmem:[#allocation6_spill] sm:$0xff] }
 0xb3a   : > { %15556 = vmatpush.xpose.msk.msrb.mxu3 %vm3662_vm9, %v12610_v29  ;;  %v23388_v29 = vld [vmem:[#allocation7_spill] sm:$0xff] }
 0xb3c   : > { %15385 = vmatpush.xpose.msk.msrb.mxu1 %vm3662_vm9, %v22646_v32 }
 0xb3d   : > { %15471 = vmatpush.xpose.msk.msra.mxu2 %vm3662_vm9, %v22188_v7  ;;  %v22670_v7 = vld [vmem:[#allocation2 + $0x2c2] sm:$0xff] }
 0xb3e   : > { %15557 = vmatpush.xpose.msk.msrb.mxu3 %vm3662_vm9, %v22194_v48  ;;  %v22678_v48 = vld [vmem:[#allocation2 + $0x2b2] sm:$0xff] }
 0xb40   : > { %15386 = vmatpush.xpose.msk.msrb.mxu1 %vm3662_vm9, %v22654_v56 }
 0xb41   : > { %15472 = vmatpush.xpose.msk.msra.mxu2 %vm3662_vm9, %v22198_v26  ;;  %v22686_v26 = vld [vmem:[#allocation2 + $0x2a2] sm:$0xff] }
 0xb42   : > { %15558 = vmatpush.xpose.msk.msrb.mxu3 %vm3662_vm9, %v22204_v20  ;;  %v12241_v20 = vld [vmem:[#allocation2 + $0x3b0] sm:$0xff] }
 0xb44   : > { %15387 = vmatpush.xpose.msk.msrb.mxu1 %vm3662_vm9, %v22662_v24 }
 0xb45   : > { %15473 = vmatpush.xpose.msk.msra.mxu2 %vm3662_vm9, %v22208_v14  ;;  %v12602_v14 = vld [vmem:[#allocation2 + $0x4f1] sm:$0xff] }
 0xb46   : > { %15559 = vmatpush.xpose.msk.msrb.mxu3 %vm3662_vm9, %v22214_v23  ;;  %v12963_v23 = vld [vmem:[#allocation2 + $0x632] sm:$0xff] }
 0xb48   : > { %15388 = vmatpush.xpose.msk.msrb.mxu1 %vm3662_vm9, %v22670_v7 }
 0xb49   : > { %15474 = vmatpush.xpose.msk.msra.mxu2 %vm3662_vm9, %v22218_v46  ;;  %v23379_v46 = vld [vmem:[#allocation37_spill] sm:$0xff] }
 0xb4a   : > { %15560 = vmatpush.xpose.msk.msrb.mxu3 %vm3662_vm9, %v22224_v1  ;;  %v22710_v1 = vld [vmem:[%s22899_s2 + $0x19] sm:$0x1] }
 0xb4c   : > { %15389 = vmatpush.xpose.msk.msrb.mxu1 %vm3662_vm9, %v22678_v48 }
 0xb4d   : > { %15475 = vmatpush.xpose.msk.msra.mxu2 %vm3662_vm9, %v22228_v31  ;;  %v12961_v31 = vld [vmem:[#allocation2 + $0x612] sm:$0xff] }
 0xb4e   : > { %15561 = vmatpush.xpose.msk.msrb.mxu3 %vm3662_vm9, %v22234_v36  ;;  %v12239_v36 = vld [vmem:[#allocation2 + $0x390] sm:$0xff] }
 0xb50   : > { %15390 = vmatpush.xpose.msk.msrb.mxu1 %vm3662_vm9, %v22686_v26 }
 0xb51   : > { %15476 = vmatpush.xpose.msk.msra.mxu2 %vm3662_vm9, %v22238_v16  ;;  %v12960_v16 = vld [vmem:[#allocation2 + $0x602] sm:$0xff] }
 0xb52   : > { %15562 = vmatpush.xpose.msk.msrb.mxu3 %vm3662_vm9, %v22244_v42  ;;  %v12238_v42 = vld [vmem:[#allocation2 + $0x380] sm:$0xff] }
 0xb54   : > { %15391 = vmatpush.xpose.msk.msrb.mxu1 %vm3662_vm9, %v22248_v10  ;;  %v12237_v10 = vld [vmem:[#allocation2 + $0x370] sm:$0xff] }
 0xb55   : > { %15477 = vmatpush.xpose.msk.msra.mxu2 %vm3662_vm9, %v23379_v46  ;;  %v23393_v46 = vld [vmem:[#allocation9_spill] sm:$0xff] }
 0xb56   : > { %15563 = vmatpush.xpose.msk.msrb.mxu3 %vm3662_vm9, %v22256_v5  ;;  %v12236_v5 = vld [vmem:[#allocation2 + $0x360] sm:$0xff] }
 0xb57   : > { %15392 = vmatmul.msk.f32.vlgmr.msrb.gmra.mxu1 %vm3662_vm9, %v22436_v60  ;;  %v12594_v60 = vld [vmem:[#allocation2 + $0x451] sm:$0xff] }
 0xb58   : > { %15445 = vmatpush.xpose.msk.msra.mxu1 %vm3662_vm9, %v12241_v20  ;;  %15478 = vmatmul.msk.f32.vlgmr.msra.gmra.mxu2 %vm3662_vm9, %v22588_v39  ;;  %v23389_v20 = vld [vmem:[#allocation13_spill] sm:$0xff] }
 0xb59   : > { %15531 = vmatpush.xpose.msk.msrb.mxu2 %vm3662_vm9, %v12602_v14  ;;  %15564 = vmatmul.msk.f32.vlgmr.msrb.gmra.mxu3 %vm3662_vm9, %v22710_v1  ;;  %v23391_v14 = vld [vmem:[#allocation8_spill] sm:$0xff] }
 0xb5a   : > { %15617 = vmatpush.xpose.msk.msra.mxu3 %vm3662_vm9, %v12963_v23  ;;  %v23392_v23 = vld [vmem:[#allocation14_spill] sm:$0xff] }
 0xb5c   : > { %15446 = vmatpush.xpose.msk.msra.mxu1 %vm3662_vm9, %v22265_v12  ;;  %v12959_v12 = vld [vmem:[#allocation2 + $0x5f2] sm:$0xff] }
 0xb5d   : > { %15532 = vmatpush.xpose.msk.msrb.mxu2 %vm3662_vm9, %v22271_v4  ;;  %v12958_v4 = vld [vmem:[#allocation2 + $0x5e2] sm:$0xff] }
 0xb5e   : > { %15618 = vmatpush.xpose.msk.msra.mxu3 %vm3662_vm9, %v22260_v47  ;;  %v12957_v47 = vld [vmem:[#allocation2 + $0x5d2] sm:$0xff] }
 0xb60   : > { %15447 = vmatpush.xpose.msk.msra.mxu1 %vm3662_vm9, %v12239_v36  ;;  %v23395_v36 = vld [vmem:[#allocation10_spill] sm:$0xff] }
 0xb61   : > { %15533 = vmatpush.xpose.msk.msrb.mxu2 %vm3662_vm9, %v22290_v33  ;;  %v12235_v33 = vld [vmem:[#allocation2 + $0x350] sm:$0xff] }
 0xb62   : > { %15619 = vmatpush.xpose.msk.msra.mxu3 %vm3662_vm9, %v12961_v31  ;;  %v23394_v31 = vld [vmem:[#allocation18_spill] sm:$0xff] }
 0xb64   : > { %15448 = vmatpush.xpose.msk.msra.mxu1 %vm3662_vm9, %v12238_v42  ;;  %v12939_v42 = vld [vmem:[#allocation2 + $0x452] sm:$0xff] }
 0xb65   : > { %15534 = vmatpush.xpose.msk.msrb.mxu2 %vm3662_vm9, %v22298_v8  ;;  %v12956_v8 = vld [vmem:[#allocation2 + $0x5c2] sm:$0xff] }
 0xb66   : > { %15620 = vmatpush.xpose.msk.msra.mxu3 %vm3662_vm9, %v12960_v16  ;;  %v12578_v16 = vld [vmem:[#allocation2 + $0x311] sm:$0xff] }
 0xb68   : > { %15449 = vmatpush.xpose.msk.msra.mxu1 %vm3662_vm9, %v12237_v10 }
 0xb69   : > { %15535 = vmatpush.xpose.msk.msrb.mxu2 %vm3662_vm9, %v22306_v59  ;;  %v12234_v59 = vld [vmem:[#allocation2 + $0x340] sm:$0xff] }
 0xb6a   : > { %15621 = vmatpush.xpose.msk.msra.mxu3 %vm3662_vm9, %v12959_v12  ;;  %v23401_v12 = vld [vmem:[#allocation27_spill] sm:$0xff] }
 0xb6c   : > { %15450 = vmatpush.xpose.msk.msra.mxu1 %vm3662_vm9, %v12236_v5 }
 0xb6d   : > { %15536 = vmatpush.xpose.msk.msrb.mxu2 %vm3662_vm9, %v22314_v35  ;;  %v12233_v35 = vld [vmem:[#allocation2 + $0x310] sm:$0xff] }
 0xb6e   : > { %15622 = vmatpush.xpose.msk.msra.mxu3 %vm3662_vm9, %v12958_v4  ;;  %v23402_v4 = vld [vmem:[#allocation34_spill] sm:$0xff] }
 0xb70   : > { %15451 = vmatpush.xpose.msk.msra.mxu1 %vm3662_vm9, %v12235_v33 }
 0xb71   : > { %15537 = vmatpush.xpose.msk.msrb.mxu2 %vm3662_vm9, %v22322_v55  ;;  %v12231_v55 = vld [vmem:[#allocation2 + $0x2f0] sm:$0xff] }
 0xb72   : > { %15623 = vmatpush.xpose.msk.msra.mxu3 %vm3662_vm9, %v12957_v47 }
 0xb74   : > { %15452 = vmatpush.xpose.msk.msra.mxu1 %vm3662_vm9, %v12234_v59 }
 0xb75   : > { %15538 = vmatpush.xpose.msk.msrb.mxu2 %vm3662_vm9, %v22330_v30  ;;  %v12230_v30 = vld [vmem:[#allocation2 + $0x2e0] sm:$0xff] }
 0xb76   : > { %15624 = vmatpush.xpose.msk.msra.mxu3 %vm3662_vm9, %v12956_v8 }
 0xb78   : > { %15453 = vmatpush.xpose.msk.msra.mxu1 %vm3662_vm9, %v12233_v35 }
 0xb79   : > { %15539 = vmatpush.xpose.msk.msrb.mxu2 %vm3662_vm9, %v12594_v60 }
 0xb7a   : > { %15625 = vmatpush.xpose.msk.msra.mxu3 %vm3662_vm9, %v12955_v9 }
 0xb7c   : > { %15454 = vmatpush.xpose.msk.msra.mxu1 %vm3662_vm9, %v22342_v21  ;;  %v12229_v21 = vld [vmem:[#allocation2 + $0x2d0] sm:$0xff] }
 0xb7d   : > { %15540 = vmatpush.xpose.msk.msrb.mxu2 %vm3662_vm9, %v22346_v58  ;;  %v23380_v58 = vld [vmem:[#allocation40_spill] sm:$0xff] }
 0xb7e   : > { %15626 = vmatpush.xpose.msk.msra.mxu3 %vm3662_vm9, %v22348_v52  ;;  %v12228_v52 = vld [vmem:[#allocation2 + $0x2c0] sm:$0xff] }
 0xb80   : > { %15455 = vmatpush.xpose.msk.msra.mxu1 %vm3662_vm9, %v12231_v55 }
 0xb81   : > { %15541 = vmatpush.xpose.msk.msrb.mxu2 %vm3662_vm9, %v22356_v53  ;;  %v23381_v53 = vld [vmem:[#allocation41_spill] sm:$0xff] }
 0xb82   : > { %15627 = vmatpush.xpose.msk.msra.mxu3 %vm3662_vm9, %v22358_v51  ;;  %v12227_v51 = vld [vmem:[#allocation2 + $0x2b0] sm:$0xff] }
 0xb84   : > { %15456 = vmatpush.xpose.msk.msra.mxu1 %vm3662_vm9, %v12230_v30 }
 0xb85   : > { %15542 = vmatpush.xpose.msk.msrb.mxu2 %vm3662_vm9, %v22366_v54  ;;  %v23382_v54 = vld [vmem:[#allocation42_spill] sm:$0xff] }
 0xb86   : > { %15628 = vmatpush.xpose.msk.msra.mxu3 %vm3662_vm9, %v22368_v37  ;;  %v12586_v37 = vld [vmem:[#allocation2 + $0x3b1] sm:$0xff] }
 0xb88   : > { %15457 = vmatpush.xpose.msk.msra.mxu1 %vm3662_vm9, %v12229_v21 }
 0xb89   : > { %15543 = vmatpush.xpose.msk.msrb.mxu2 %vm3662_vm9, %v23380_v58 }
 0xb8a   : > { %15629 = vmatpush.xpose.msk.msra.mxu3 %vm3662_vm9, %v22378_v40  ;;  %v12226_v40 = vld [vmem:[#allocation2 + $0x2a0] sm:$0xff] }
 0xb8c   : > { %15458 = vmatpush.xpose.msk.msra.mxu1 %vm3662_vm9, %v12228_v52 }
 0xb8d   : > { %15544 = vmatpush.xpose.msk.msrb.mxu2 %vm3662_vm9, %v23381_v53 }
 0xb8e   : > { %15630 = vmatpush.xpose.msk.msra.mxu3 %vm3662_vm9, %v22388_v13  ;;  %v23384_v13 = vld [vmem:[#allocation39_spill] sm:$0xff] }
 0xb90   : > { %15459 = vmatpush.xpose.msk.msra.mxu1 %vm3662_vm9, %v12227_v51 }
 0xb91   : > { %15545 = vmatpush.xpose.msk.msrb.mxu2 %vm3662_vm9, %v22396_v57  ;;  %v23385_v57 = vld [vmem:[#allocation11_spill] sm:$0xff] }
 0xb92   : > { %15631 = vmatpush.xpose.msk.msra.mxu3 %vm3662_vm9, %v23382_v54 }
 0xb94   : > { %15460 = vmatpush.xpose.msk.msra.mxu1 %vm3662_vm9, %v12226_v40 }
 0xb95   : > { %15546 = vmatpush.xpose.msk.msrb.mxu2 %vm3662_vm9, %v22406_v11  ;;  %v23386_v11 = vld [vmem:[#allocation5_spill] sm:$0xff] }
 0xb96   : > { %15632 = vmatpush.xpose.msk.msra.mxu3 %vm3662_vm9, %v23383_v62 }
 0xb97   : > { %15461 = vmatmul.msk.f32.vlgmr.msra.gmra.mxu1 %vm3662_vm9, %v22588_v39  ;;  %v23390_v39 = vld [vmem:[#allocation12_spill] sm:$0xff] }
 0xb98   : > { %15514 = vmatpush.xpose.msk.msrb.mxu1 %vm3662_vm9, %v12586_v37  ;;  %15547 = vmatmul.msk.f32.vlgmr.msrb.gmra.mxu2 %vm3662_vm9, %v22710_v1 }
 0xb99   : > { %15600 = vmatpush.xpose.msk.msra.mxu2 %vm3662_vm9, %v12947_v3  ;;  %15633 = vmatmul.msk.f32.vlgmr.msra.gmra.mxu3 %vm3662_vm9, %v23384_v13 }
 0xb9c   : > { %15515 = vmatpush.xpose.msk.msrb.mxu1 %vm3662_vm9, %v23385_v57 }
 0xb9d   : > { %15601 = vmatpush.xpose.msk.msra.mxu2 %vm3662_vm9, %v23386_v11 }
 0xba0   : > { %15516 = vmatpush.xpose.msk.msrb.mxu1 %vm3662_vm9, %v23387_v61 }
 0xba1   : > { %15602 = vmatpush.xpose.msk.msra.mxu2 %vm3662_vm9, %v23388_v29 }
 0xba4   : > { %15517 = vmatpush.xpose.msk.msrb.mxu1 %vm3662_vm9, %v23389_v20 }
 0xba5   : > { %15603 = vmatpush.xpose.msk.msra.mxu2 %vm3662_vm9, %v23390_v39 }
 0xba8   : > { %15518 = vmatpush.xpose.msk.msrb.mxu1 %vm3662_vm9, %v23391_v14 }
 0xba9   : > { %15604 = vmatpush.xpose.msk.msra.mxu2 %vm3662_vm9, %v23392_v23 }
 0xbac   : > { %15519 = vmatpush.xpose.msk.msrb.mxu1 %vm3662_vm9, %v23393_v46 }
 0xbad   : > { %15605 = vmatpush.xpose.msk.msra.mxu2 %vm3662_vm9, %v22470_v44  ;;  %v23396_v44 = vld [vmem:[#allocation21_spill] sm:$0xff] }
 0xbb0   : > { %15520 = vmatpush.xpose.msk.msrb.mxu1 %vm3662_vm9, %v23394_v31 }
 0xbb1   : > { %15606 = vmatpush.xpose.msk.msra.mxu2 %vm3662_vm9, %v23395_v36 }
 0xbb4   : > { %15521 = vmatpush.xpose.msk.msrb.mxu1 %vm3662_vm9, %v22486_v63  ;;  %v23397_v63 = vld [vmem:[#allocation25_spill] sm:$0xff] }
 0xbb5   : > { %15607 = vmatpush.xpose.msk.msra.mxu2 %vm3662_vm9, %v22488_v19  ;;  %v23398_v19 = vld [vmem:[#allocation16_spill] sm:$0xff] }
 0xbb8   : > { %15522 = vmatpush.xpose.msk.msrb.mxu1 %vm3662_vm9, %v12578_v16 }
 0xbb9   : > { %15608 = vmatpush.xpose.msk.msra.mxu2 %vm3662_vm9, %v12939_v42 }
 0xbbc   : > { %15523 = vmatpush.xpose.msk.msrb.mxu1 %vm3662_vm9, %v22500_v18  ;;  %v23399_v18 = vld [vmem:[#allocation20_spill] sm:$0xff] }
 0xbbd   : > { %15609 = vmatpush.xpose.msk.msra.mxu2 %vm3662_vm9, %v22502_v17  ;;  %v23400_v17 = vld [vmem:[#allocation22_spill] sm:$0xff] }
 0xbc0   : > { %15524 = vmatpush.xpose.msk.msrb.mxu1 %vm3662_vm9, %v23396_v44 }
 0xbc1   : > { %15610 = vmatpush.xpose.msk.msra.mxu2 %vm3662_vm9, %v22511_v6  ;;  %v12931_v6 = vld [vmem:[#allocation2 + $0x3b2] sm:$0xff] }
 0xbc4   : > { %15525 = vmatpush.xpose.msk.msrb.mxu1 %vm3662_vm9, %v23397_v63 }
 0xbc5   : > { %15611 = vmatpush.xpose.msk.msra.mxu2 %vm3662_vm9, %v22521_v43  ;;  %v9785_v43 = vpop.f32.mrf.mxu3 }
 0xbc6   : > { %v9791_v10 = vadd.f32 %v9785_v43, %v23401_v12 }
 0xbc8   : > { %15526 = vmatpush.xpose.msk.msrb.mxu1 %vm3662_vm9, %v23398_v19 }
 0xbc9   : > { %15612 = vmatpush.xpose.msk.msra.mxu2 %vm3662_vm9, %v22531_v28  ;;  %v15674_v28 = vld [vmem:[%s22899_s2 + $0x1a] sm:$0x1] }
 0xbcc   : > { %15527 = vmatpush.xpose.msk.msrb.mxu1 %vm3662_vm9, %v23399_v18 }
 0xbcd   : > { %15613 = vmatpush.xpose.msk.msra.mxu2 %vm3662_vm9, %v22541_v41  ;;  %v12923_v41 = vld [vmem:[#allocation2 + $0x312] sm:$0xff] }
 0xbd0   : > { %15528 = vmatpush.xpose.msk.msrb.mxu1 %vm3662_vm9, %v23400_v17 }
 0xbd1   : > { %15614 = vmatpush.xpose.msk.msra.mxu2 %vm3662_vm9, %v22551_v34  ;;  %v9765_v34 = vpop.f32.mrf.mxu2 }
 0xbd2   : > { %v9790_v5 = vadd.f32 %v9765_v34, %v23402_v4  ;;  %v23403_v34 = vld [vmem:[#allocation17_spill] sm:$0xff] }
 0xbd4   : > { %15529 = vmatpush.xpose.msk.msrb.mxu1 %vm3662_vm9, %v22559_v15 }
 0xbd5   : > { %15615 = vmatpush.xpose.msk.msra.mxu2 %vm3662_vm9, %v22561_v49  ;;  %v10130_v49 = vpop.f32.mrf.mxu3 }
 0xbd6   : > { %v10136_v47 = vadd.f32 %v10130_v49, %v9791_v10 }
 0xbd7   : > { %15530 = vmatmul.msk.f32.vlgmr.msrb.gmra.mxu1 %vm3662_vm9, %v22710_v1 }
 0xbd8   : > { %15583 = vmatpush.xpose.msk.msra.mxu1 %vm3662_vm9, %v12931_v6  ;;  %15616 = vmatmul.msk.f32.vlgmr.msra.gmra.mxu2 %vm3662_vm9, %v15674_v28 }
 0xbd9   : > { %v10110_v15 = vpop.f32.mrf.mxu2 }
 0xbda   : > { %v10135_v59 = vadd.f32 %v10110_v15, %v9790_v5  ;;  %v23404_v15 = vld [vmem:[#allocation33_spill] sm:$0xff] }
 0xbdc   : > { %15584 = vmatpush.xpose.msk.msra.mxu1 %vm3662_vm9, %v22573_v45 }
 0xbdd   : > { %v10476_v45 = vpop.f32.mrf.mxu3 }
 0xbde   : > { %v10482_v35 = vadd.f32 %v10476_v45, %v10136_v47 }
 0xbe0   : > { %15585 = vmatpush.xpose.msk.msra.mxu1 %vm3662_vm9, %v22592_v22 }
 0xbe1   : > { %v10456_v22 = vpop.f32.mrf.mxu2 }
 0xbe2   : > { %v10481_v9 = vadd.f32 %v10456_v22, %v10135_v59 }
 0xbe4   : > { %15586 = vmatpush.xpose.msk.msra.mxu1 %vm3662_vm9, %v22600_v27 }
 0xbe5   : > { %v10821_v27 = vpop.f32.mrf.mxu3 }
 0xbe6   : > { %v10827_v55 = vadd.f32 %v10821_v27, %v10482_v35 }
 0xbe8   : > { %15587 = vmatpush.xpose.msk.msra.mxu1 %vm3662_vm9, %v22607_v50 }
 0xbe9   : > { %v10801_v50 = vpop.f32.mrf.mxu2 }
 0xbea   : > { %v10826_v30 = vadd.f32 %v10801_v50, %v10481_v9 }
 0xbec   : > { %15588 = vmatpush.xpose.msk.msra.mxu1 %vm3662_vm9, %v22614_v0 }
 0xbed   : > { %v11166_v0 = vpop.f32.mrf.mxu3 }
 0xbee   : > { %v11172_v21 = vadd.f32 %v11166_v0, %v10827_v55 }
 0xbf0   : > { %15589 = vmatpush.xpose.msk.msra.mxu1 %vm3662_vm9, %v22621_v2 }
 0xbf1   : > { %v11146_v2 = vpop.f32.mrf.mxu2 }
 0xbf2   : > { %v11171_v52 = vadd.f32 %v11146_v2, %v10826_v30 }
 0xbf4   : > { %15590 = vmatpush.xpose.msk.msra.mxu1 %vm3662_vm9, %v22628_v38 }
 0xbf5   : > { %v11512_v38 = vpop.f32.mrf.mxu3 }
 0xbf6   : > { %v11518_v53 = vadd.f32 %v11512_v38, %v11172_v21 }
 0xbf8   : > { %15591 = vmatpush.xpose.msk.msra.mxu1 %vm3662_vm9, %v12923_v41 }
 0xbfc   : > { %15592 = vmatpush.xpose.msk.msra.mxu1 %vm3662_vm9, %v22640_v25  ;;  %v11492_v25 = vpop.f32.mrf.mxu2 }
 0xbfd   : > { %v11517_v37 = vadd.f32 %v11492_v25, %v11171_v52 }
 0xc00   : > { %15593 = vmatpush.xpose.msk.msra.mxu1 %vm3662_vm9, %v22646_v32  ;;  %v11857_v32 = vpop.f32.mrf.mxu3 }
 0xc01   : > { %v11863_v40 = vadd.f32 %v11857_v32, %v11518_v53 }
 0xc04   : > { %15594 = vmatpush.xpose.msk.msra.mxu1 %vm3662_vm9, %v22654_v56  ;;  %v11837_v56 = vpop.f32.mrf.mxu2 }
 0xc05   : > { %v11862_v62 = vadd.f32 %v11837_v56, %v11517_v37 }
 0xc08   : > { %15595 = vmatpush.xpose.msk.msra.mxu1 %vm3662_vm9, %v22662_v24  ;;  %v12202_v24 = vpop.f32.mrf.mxu3 }
 0xc09   : > { %v12208_v13 = vadd.f32 %v12202_v24, %v11863_v40 }
 0xc0c   : > { %15596 = vmatpush.xpose.msk.msra.mxu1 %vm3662_vm9, %v22670_v7  ;;  %v9725_v7 = vpop.f32.mrf.mxu0  ;;  %v12182_v1 = vpop.f32.mrf.mxu2 }
 0xc0d   : > { %v12207_v57 = vadd.f32 %v12182_v1, %v11862_v62  ;;  %v9788_v45 = vadd.f32 %v9725_v7, %v23404_v15 }
 0xc10   : > { %15597 = vmatpush.xpose.msk.msra.mxu1 %vm3662_vm9, %v22678_v48  ;;  %v9745_v48 = vpop.f32.mrf.mxu1 }
 0xc11   : > { %v9789_v49 = vadd.f32 %v9745_v48, %v23403_v34 }
 0xc14   : > { %15598 = vmatpush.xpose.msk.msra.mxu1 %vm3662_vm9, %v22686_v26  ;;  %v12548_v26 = vpop.f32.mrf.mxu3  ;;  %v10070_v33 = vpop.f32.mrf.mxu0 }
 0xc15   : > { %v12528_v60 = vpop.f32.mrf.mxu2  ;;  %v12554_v11 = vadd.f32 %v12548_v26, %v12208_v13  ;;  %v10133_v0 = vadd.f32 %v10070_v33, %v9788_v45 }
 0xc16   : > { %v12553_v29 = vadd.f32 %v12528_v60, %v12207_v57  ;;  %v13259_v60 = vlaneseq }
 0xc17   : > { %15599 = vmatmul.msk.f32.vlgmr.msra.gmra.mxu1 %vm3662_vm9, %v15674_v28  ;;  %vm13254_vm9 = vcmask 1042434  }
 0xc18   : > { %v10090_v8 = vpop.f32.mrf.mxu1  ;;  %vm13261_vm15 = vcmp.lt.s32.totalorder %v13259_v60, 512 }
 0xc19   : > { %v10134_v22 = vadd.f32 %v10090_v8, %v9789_v49 }
 0xc1c   : > { %v12893_v58 = vpop.f32.mrf.mxu3  ;;  %v10416_v51 = vpop.f32.mrf.mxu0 }
 0xc1d   : > { %v12873_v3 = vpop.f32.mrf.mxu2  ;;  %v12899_v20 = vadd.f32 %v12893_v58, %v12554_v11  ;;  %v10479_v38 = vadd.f32 %v10416_v51, %v10133_v0 }
 0xc1e   : > { %v12898_v23 = vadd.f32 %v12873_v3, %v12553_v29 }
 0xc20   : > { %v10436_v54 = vpop.f32.mrf.mxu1 }
 0xc21   : > { %v10480_v2 = vadd.f32 %v10436_v54, %v10134_v22 }
 0xc24   : > { %v13238_v61 = vpop.f32.mrf.mxu3  ;;  %v10761_v39 = vpop.f32.mrf.mxu0 }
 0xc25   : > { %v13244_v46 = vadd.f32 %v13238_v61, %v12899_v20  ;;  %v10824_v32 = vadd.f32 %v10761_v39, %v10479_v38 }
 0xc27   : > { %v13251_v16 = vrot.slane %v13244_v46, 5 }
 0xc28   : > { %v10781_v14 = vpop.f32.mrf.mxu1 }
 0xc29   : > { %v10825_v25 = vadd.f32 %v10781_v14, %v10480_v2 }
 0xc2c   : > { %v11106_v63 = vpop.f32.mrf.mxu0 }
 0xc2d   : > { %v11169_v24 = vadd.f32 %v11106_v63, %v10824_v32 }
 0xc30   : > { %v11126_v19 = vpop.f32.mrf.mxu1 }
 0xc31   : > { %v11170_v56 = vadd.f32 %v11126_v19, %v10825_v25 }
 0xc34   : > { %v11452_v18 = vpop.f32.mrf.mxu0 }
 0xc35   : > { %v11515_v26 = vadd.f32 %v11452_v18, %v11169_v24 }
 0xc38   : > { %v11472_v17 = vpop.f32.mrf.mxu1 }
 0xc39   : > { %v11516_v1 = vadd.f32 %v11472_v17, %v11170_v56 }
 0xc3c   : > { %v11797_v6 = vpop.f32.mrf.mxu0 }
 0xc3d   : > { %v11860_v5 = vadd.f32 %v11797_v6, %v11515_v26 }
 0xc40   : > { %v11817_v28 = vpop.f32.mrf.mxu1 }
 0xc41   : > { %v11861_v4 = vadd.f32 %v11817_v28, %v11516_v1 }
 0xc44   : > { %v12142_v41 = vpop.f32.mrf.mxu0 }
 0xc45   : > { %v12205_v47 = vadd.f32 %v12142_v41, %v11860_v5 }
 0xc48   : > { %v12162_v43 = vpop.f32.mrf.mxu1 }
 0xc49   : > { %v12206_v48 = vadd.f32 %v12162_v43, %v11861_v4 }
 0xc4c   : > { %v12488_v27 = vpop.f32.mrf.mxu0 }
 0xc4d   : > { %v12551_v8 = vadd.f32 %v12488_v27, %v12205_v47 }
 0xc50   : > { %v12508_v50 = vpop.f32.mrf.mxu1 }
 0xc51   : > { %v12552_v7 = vadd.f32 %v12508_v50, %v12206_v48 }
 0xc54   : > { %v12833_v12 = vpop.f32.mrf.mxu0 }
 0xc55   : > { %v12896_v9 = vadd.f32 %v12833_v12, %v12551_v8 }
 0xc58   : > { %v12853_v10 = vpop.f32.mrf.mxu1 }
 0xc59   : > { %v12897_v59 = vadd.f32 %v12853_v10, %v12552_v7 }
 0xc5b   : > { %v13218_v31 = vpop.f32.mrf.mxu2 }
 0xc5c   : > { %v13243_v36 = vadd.f32 %v13218_v31, %v12898_v23  ;;  %v13178_v35 = vpop.f32.mrf.mxu0 }
 0xc5d   : > { %v13241_v30 = vadd.f32 %v13178_v35, %v12896_v9 }
 0xc5e   : > { %v13250_v42 = vrot.slane %v13243_v36, 6 }
 0xc60   : > { %v13255_v44 = vsel %vm13254_vm9, %v13250_v42, %v13251_v16 }
 0xc94   : > { %v13198_v33 = vpop.f32.mrf.mxu1 }
 0xc95   : > { %v13242_v55 = vadd.f32 %v13198_v33, %v12897_v59 }
 0xc97   : > { %v13249_v21 = vrot.slane %v13242_v55, 7 }
 0xc99   : > { %v13253_v58 = vsel %vm13252_vm14, %v13241_v30, %v13249_v21 }
 0xc9a   : > { %v13257_v52 = vsel %vm13256_vm12, %v13253_v58, %v13255_v44 }
 0xc9b   : > { %13263 = vst.msk [vmem:[%s168_s25] sm:$0xf] %vm13261_vm15, %v13257_v52 }
 0xc9c PF: > { %s13_s12 = sadd.s32 1, %s15681_s12  }
 0xc9d   : > { %p10_p4 = scmp.ge.s32.totalorder %s13_s12, 4  }
 0xc9f   :  { %12 = sbr.rel (!%p10_p4) target bundleno = 1 (0x1), region = 101 }

</bundles_post_ra>
